<compile_context>
chip_gen: v7x
topology: tpu7x:2x2x1
jax: 0.10.0
libtpu: 0.0.40
codegen_flags: <defaults>
</compile_context>

<pallas_src>
import jax
import jax.numpy as jnp
from jax import lax
from jax.experimental import pallas as pl
from jax.experimental.pallas import tpu as pltpu

EPS = 1e-3  # nflows MaskedAffineAutoregressiveTransform._epsilon


# ----------------------------------------------------------------------------- kernel
def maf_inverse_kernel(x_ref, w0_ref, wh_ref, bh_ref, wf_ref, bf_ref, init_ref, out_ref):
    """Iterative MAF inverse for one (features, batch_block) lane-dense tile."""
    x = x_ref[...]                          # (F, TB)  batch on the lane axis
    n_features = x.shape[0]

    # Weights loaded once (traced outside the unrolled loop); biases kept as (H,1)
    # columns -> implicit lane-broadcast at the add sites (no materialization).
    w0 = w0_ref[...]                        # (H, F)
    a1 = wh_ref[0]                          # (H, H)
    b1 = wh_ref[1]
    a2 = wh_ref[2]
    b2 = wh_ref[3]
    b0 = bh_ref[0]                          # (H, 1)
    a1b = bh_ref[1]
    b1b = bh_ref[2]
    a2b = bh_ref[3]
    b2b = bh_ref[4]
    wf = wf_ref[...]                        # (2F, H)  rows [0:F]=scale, [F:2F]=shift
    bf = bf_ref[...]                        # (2F, 1)  +2.0 folded into the scale half
    scale0 = init_ref[0]                    # (F, 1)   MADE(0) hoisted out of the loop
    shift0 = init_ref[1]                    # (F, 1)

    def made(u):                            # u: (F, TB)
        h = jnp.dot(w0, u, preferred_element_type=jnp.float32) + b0      # (H, TB)

        t = jnp.maximum(h, 0.0)             # masked residual block 1
        t = jnp.dot(a1, t, preferred_element_type=jnp.float32) + a1b
        t = jnp.maximum(t, 0.0)
        t = jnp.dot(b1, t, preferred_element_type=jnp.float32) + b1b
        h = h + t

        t = jnp.maximum(h, 0.0)             # masked residual block 2
        t = jnp.dot(a2, t, preferred_element_type=jnp.float32) + a2b
        t = jnp.maximum(t, 0.0)
        t = jnp.dot(b2, t, preferred_element_type=jnp.float32) + b2b
        h = h + t

        p = jnp.dot(wf, h, preferred_element_type=jnp.float32) + bf      # (2F, TB)
        return p[:n_features, :], p[n_features:, :]

    # iteration 0 (input independent) precomputed in the glue -> pure elementwise here
    u0 = (x - shift0) / scale0

    def body(_, u):
        us, sh = made(u)
        scale = jax.nn.sigmoid(us) + EPS    # == sigmoid(raw + 2.0) + eps (bias-folded)
        return (x - sh) / scale             # exact divide (keeps the 1e-4 tolerance)

    # F is tiny & static: fully unroll the remaining F-1 dependent MADE passes.
    u = lax.fori_loop(0, n_features - 1, body, u0, unroll=True)
    out_ref[...] = u


# ------------------------------------------------------------------------------- glue
def _num_batch_blocks(batch):
    # v7x has 2 TensorCores per chip -> two "parallel" batch blocks; single-TC chips
    # (v5e/v6e) get one fat block (each extra grid step costs ~0.35 us for nothing).
    try:
        kind = jax.devices()[0].device_kind.lower()
    except Exception:
        kind = ""
    return 2 if ("7" in kind and batch % 256 == 0) else 1


def maf_inverse_pallas(x_t, kparams, *, block_b=None):
    """x_t: (F, B) features-major input.  kparams: packed kernel-layout parameters."""
    F, B = x_t.shape
    w0, wh, bh, wf, bf, init0 = kparams
    if block_b is None:
        block_b = B // _num_batch_blocks(B)
    assert B % block_b == 0 and block_b % 128 == 0, "batch block must be lane-dense"
    n_blocks = B // block_b

    # Weights/biases: full-array blocks with a constant block index -> stay resident
    # in VMEM across the whole grid (no per-step re-DMA).
    in_specs = [
        pl.BlockSpec((F, block_b), lambda i: (0, i)),      # x_t
        pl.BlockSpec(w0.shape, lambda i: (0, 0)),          # (H, F)
        pl.BlockSpec(wh.shape, lambda i: (0, 0, 0)),       # (4, H, H)
        pl.BlockSpec(bh.shape, lambda i: (0, 0, 0)),       # (5, H, 1)
        pl.BlockSpec(wf.shape, lambda i: (0, 0)),          # (2F, H)
        pl.BlockSpec(bf.shape, lambda i: (0, 0)),          # (2F, 1)
        pl.BlockSpec(init0.shape, lambda i: (0, 0, 0)),    # (2, F, 1)
    ]
    return pl.pallas_call(
        maf_inverse_kernel,
        out_shape=jax.ShapeDtypeStruct((F, B), jnp.float32),
        grid=(n_blocks,),
        in_specs=in_specs,
        out_specs=pl.BlockSpec((F, block_b), lambda i: (0, i)),
        compiler_params=pltpu.CompilerParams(
            dimension_semantics=("parallel",)),             # megacore sharding on v7x
    )(x_t, w0, wh, bh, wf, bf, init0)


@jax.jit
def normalizing_flow_forward(x, kparams):
    # Batch -> lane axis: (B, F) -> (F, B) is one tiny XLA transpose (16 KB).
    u_t = maf_inverse_pallas(x.T, kparams)                  # (F, B)
    # ReversePermutation.inverse (reverse feature axis) fused with the layout change
    # back to (B, F): a single XLA copy, no separate reverse pass over HBM.
    return u_t[::-1, :].T


# --------------------------------------------------------------------- parameter setup
def make_raw_params(key, n_features, n_hidden):
    """Raw nflows-style MADE parameters (torch nn.Linear (out,in) layout, UNmasked)
    plus the autoregressive masks, exactly as nflows builds them."""
    F, H = n_features, n_hidden
    in_deg = jnp.arange(1, F + 1)
    hid_deg = jnp.arange(H) % max(1, F - 1) + min(1, F - 1)
    out_deg = jnp.repeat(jnp.arange(1, F + 1), 2)                 # interleaved [1,1,2,2,...]

    mask0 = (hid_deg[:, None] >= in_deg[None, :]).astype(jnp.float32)    # (H, F)
    mask_h = (hid_deg[:, None] >= hid_deg[None, :]).astype(jnp.float32)  # (H, H)
    mask_f = (out_deg[:, None] > hid_deg[None, :]).astype(jnp.float32)   # (2F, H)

    ks = jax.random.split(key, 12)
    w0 = jax.random.normal(ks[0], (H, F), jnp.float32) * 0.2
    b0 = jax.random.normal(ks[1], (1, H), jnp.float32) * 0.1
    a1 = jax.random.normal(ks[2], (H, H), jnp.float32) * 0.2
    a1b = jax.random.normal(ks[3], (1, H), jnp.float32) * 0.1
    b1 = jax.random.normal(ks[4], (H, H), jnp.float32) * 0.05   # zero_init-style (small)
    b1b = jax.random.normal(ks[5], (1, H), jnp.float32) * 0.05
    a2 = jax.random.normal(ks[6], (H, H), jnp.float32) * 0.2
    a2b = jax.random.normal(ks[7], (1, H), jnp.float32) * 0.1
    b2 = jax.random.normal(ks[8], (H, H), jnp.float32) * 0.05
    b2b = jax.random.normal(ks[9], (1, H), jnp.float32) * 0.05
    wf = jax.random.normal(ks[10], (2 * F, H), jnp.float32) * 0.2
    bf = jax.random.normal(ks[11], (1, 2 * F), jnp.float32) * 0.1

    weights = (w0, b0, a1, a1b, b1, b1b, a2, a2b, b2, b2b, wf, bf)
    masks = (mask0, mask_h, mask_f)
    return weights, masks


def _made_columns(u, w0k, wh, bh, wfk, bfk):
    """Column-layout MADE ((features, batch) activations) — same math as the kernel."""
    h = w0k @ u + bh[0]
    t = jnp.maximum(h, 0.0); t = wh[0] @ t + bh[1]
    t = jnp.maximum(t, 0.0); t = wh[1] @ t + bh[2]
    h = h + t
    t = jnp.maximum(h, 0.0); t = wh[2] @ t + bh[3]
    t = jnp.maximum(t, 0.0); t = wh[3] @ t + bh[4]
    h = h + t
    return wfk @ h + bfk


def make_kernel_params(raw):
    """Derive the packed kernel-layout parameters: pre-masked weights kept in (out,in)
    orientation, hidden weights packed into (4,H,H), biases into (5,H,1), the final
    interleaved layer de-interleaved into one fused (2F,H) [scale|shift] projection
    with the sigmoid '+2.0' folded into the scale-half bias, plus the precomputed
    iteration-0 scale/shift (MADE(0) is input independent)."""
    (w0, b0, a1, a1b, b1, b1b, a2, a2b, b2, b2b, wf, bf), (mask0, mask_h, mask_f) = raw
    H, F = w0.shape

    w0k = w0 * mask0                                                      # (H, F)
    wh = jnp.stack([a1 * mask_h, b1 * mask_h, a2 * mask_h, b2 * mask_h])  # (4, H, H)
    bh = jnp.stack([b0[0], a1b[0], b1b[0], a2b[0], b2b[0]])[:, :, None]   # (5, H, 1)

    wf_m = wf * mask_f                                                    # (2F, H)
    wfk = jnp.concatenate([wf_m[0::2, :], wf_m[1::2, :]], axis=0)         # [scale|shift]
    bfk = jnp.concatenate([bf[0, 0::2] + 2.0, bf[0, 1::2]])[:, None]      # (2F, 1)

    p0 = _made_columns(jnp.zeros((F, 1), jnp.float32), w0k, wh, bh, wfk, bfk)
    scale0 = jax.nn.sigmoid(p0[:F]) + EPS                                 # (F, 1)
    shift0 = p0[F:]
    init0 = jnp.stack([scale0, shift0])                                   # (2, F, 1)

    return (w0k, wh, bh, wfk, bfk, init0)


# -------------------------------------------------- independent pure-JAX reference
def teacher_forward_ref(x, raw):
    """nflows-style reference: raw torch-layout weights, runtime masking, interleaved
    scale/shift via view(-1, F, 2), explicit '+2.0', explicit ReversePermutation.
    Completely independent of the kernel's fusion / bias-fold / layout transforms."""
    (w0, b0, a1, a1b, b1, b1b, a2, a2b, b2, b2b, wf, bf), (mask0, mask_h, mask_f) = raw
    F = x.shape[-1]

    def made(u):
        h = u @ (w0 * mask0).T + b0
        t = jnp.maximum(h, 0.0) @ (a1 * mask_h).T + a1b
        t = jnp.maximum(t, 0.0) @ (b1 * mask_h).T + b1b
        h = h + t
        t = jnp.maximum(h, 0.0) @ (a2 * mask_h).T + a2b
        t = jnp.maximum(t, 0.0) @ (b2 * mask_h).T + b2b
        h = h + t
        return h @ (wf * mask_f).T + bf                   # (B, 2F) interleaved

    u = jnp.zeros_like(x)
    for _ in range(F):                                    # MAF.inverse loop
        p = made(u).reshape(-1, F, 2)                     # .view(-1, F, 2)
        us, sh = p[..., 0], p[..., 1]
        scale = jax.nn.sigmoid(us + 2.0) + EPS
        u = (x - sh) / scale
    return u[:, ::-1]                                     # ReversePermutation.inverse


# ------------------------------------------------------------------------------- main
if __name__ == "__main__":
    # batch kept >=128-multiple so each block is lane-dense; F, H as in the module demo.
    B, F, H = 512, 8, 32          # batch, n_features, n_hidden_features
    key = jax.random.PRNGKey(0)
    kx, kp = jax.random.split(key)

    x = jax.random.normal(kx, (B, F), jnp.float32)
    raw = make_raw_params(kp, F, H)
    kparams = make_kernel_params(raw)

    z = normalizing_flow_forward(x, kparams)
    jax.block_until_ready(z)

    z_ref = teacher_forward_ref(x, raw)
    assert z.shape == (B, F) and z.dtype == jnp.float32
    assert jnp.allclose(z, z_ref, atol=1e-4, rtol=1e-4), "mismatch vs independent reference"

    print("KERNEL_OK")
</pallas_src>

<mosaic_0001>
module attributes {stable_mosaic.version = 11 : i64} {
  func.func @maf_inverse_kernel(%arg0: i32, %arg1: memref<8x512xf32, #tpu.memory_space<vmem>>, %arg2: memref<32x8xf32, #tpu.memory_space<vmem>>, %arg3: memref<4x32x32xf32, #tpu.memory_space<vmem>>, %arg4: memref<5x32x1xf32, #tpu.memory_space<vmem>>, %arg5: memref<16x32xf32, #tpu.memory_space<vmem>>, %arg6: memref<16x1xf32, #tpu.memory_space<vmem>>, %arg7: memref<2x8x1xf32, #tpu.memory_space<vmem>>, %arg8: memref<8x512xf32, #tpu.memory_space<vmem>>) attributes {dimension_semantics = [#tpu.dimension_semantics<parallel>], iteration_bounds = array<i64: 1>, scalar_prefetch = 0 : i64, scratch_operands = 0 : i64, tpu.core_type = #tpu.core_type<tc>, window_params = [{transform_indices = @transform_0, window_bounds = array<i64: 8, 512>}, {pipeline_mode = #tpu.pipeline_mode<synchronous>, transform_indices = @transform_1, window_bounds = array<i64: 32, 8>}, {pipeline_mode = #tpu.pipeline_mode<synchronous>, transform_indices = @transform_2, window_bounds = array<i64: 4, 32, 32>}, {pipeline_mode = #tpu.pipeline_mode<synchronous>, transform_indices = @transform_3, window_bounds = array<i64: 5, 32, 1>}, {pipeline_mode = #tpu.pipeline_mode<synchronous>, transform_indices = @transform_4, window_bounds = array<i64: 16, 32>}, {pipeline_mode = #tpu.pipeline_mode<synchronous>, transform_indices = @transform_5, window_bounds = array<i64: 16, 1>}, {pipeline_mode = #tpu.pipeline_mode<synchronous>, transform_indices = @transform_6, window_bounds = array<i64: 2, 8, 1>}, {transform_indices = @transform_7, window_bounds = array<i64: 8, 512>}]} {
    %c0 = arith.constant 0 : index
    %c0_0 = arith.constant 0 : index
    %0 = vector.load %arg1[%c0, %c0_0] : memref<8x512xf32, #tpu.memory_space<vmem>>, vector<8x512xf32>
    %c0_1 = arith.constant 0 : index
    %c0_2 = arith.constant 0 : index
    %1 = vector.load %arg2[%c0_1, %c0_2] : memref<32x8xf32, #tpu.memory_space<vmem>>, vector<32x8xf32>
    %c0_3 = arith.constant 0 : index
    %c0_4 = arith.constant 0 : index
    %c0_5 = arith.constant 0 : index
    %2 = vector.load %arg3[%c0_3, %c0_4, %c0_5] : memref<4x32x32xf32, #tpu.memory_space<vmem>>, vector<1x32x32xf32>
    %3 = vector.shape_cast %2 : vector<1x32x32xf32> to vector<32x32xf32>
    %c1 = arith.constant 1 : index
    %c0_6 = arith.constant 0 : index
    %c0_7 = arith.constant 0 : index
    %4 = vector.load %arg3[%c1, %c0_6, %c0_7] : memref<4x32x32xf32, #tpu.memory_space<vmem>>, vector<1x32x32xf32>
    %5 = vector.shape_cast %4 : vector<1x32x32xf32> to vector<32x32xf32>
    %c2 = arith.constant 2 : index
    %c0_8 = arith.constant 0 : index
    %c0_9 = arith.constant 0 : index
    %6 = vector.load %arg3[%c2, %c0_8, %c0_9] : memref<4x32x32xf32, #tpu.memory_space<vmem>>, vector<1x32x32xf32>
    %7 = vector.shape_cast %6 : vector<1x32x32xf32> to vector<32x32xf32>
    %c3 = arith.constant 3 : index
    %c0_10 = arith.constant 0 : index
    %c0_11 = arith.constant 0 : index
    %8 = vector.load %arg3[%c3, %c0_10, %c0_11] : memref<4x32x32xf32, #tpu.memory_space<vmem>>, vector<1x32x32xf32>
    %9 = vector.shape_cast %8 : vector<1x32x32xf32> to vector<32x32xf32>
    %c0_12 = arith.constant 0 : index
    %c0_13 = arith.constant 0 : index
    %c0_14 = arith.constant 0 : index
    %10 = vector.load %arg4[%c0_12, %c0_13, %c0_14] : memref<5x32x1xf32, #tpu.memory_space<vmem>>, vector<1x32x1xf32>
    %11 = vector.shape_cast %10 : vector<1x32x1xf32> to vector<32x1xf32>
    %c1_15 = arith.constant 1 : index
    %c0_16 = arith.constant 0 : index
    %c0_17 = arith.constant 0 : index
    %12 = vector.load %arg4[%c1_15, %c0_16, %c0_17] : memref<5x32x1xf32, #tpu.memory_space<vmem>>, vector<1x32x1xf32>
    %13 = vector.shape_cast %12 : vector<1x32x1xf32> to vector<32x1xf32>
    %c2_18 = arith.constant 2 : index
    %c0_19 = arith.constant 0 : index
    %c0_20 = arith.constant 0 : index
    %14 = vector.load %arg4[%c2_18, %c0_19, %c0_20] : memref<5x32x1xf32, #tpu.memory_space<vmem>>, vector<1x32x1xf32>
    %15 = vector.shape_cast %14 : vector<1x32x1xf32> to vector<32x1xf32>
    %c3_21 = arith.constant 3 : index
    %c0_22 = arith.constant 0 : index
    %c0_23 = arith.constant 0 : index
    %16 = vector.load %arg4[%c3_21, %c0_22, %c0_23] : memref<5x32x1xf32, #tpu.memory_space<vmem>>, vector<1x32x1xf32>
    %17 = vector.shape_cast %16 : vector<1x32x1xf32> to vector<32x1xf32>
    %c4 = arith.constant 4 : index
    %c0_24 = arith.constant 0 : index
    %c0_25 = arith.constant 0 : index
    %18 = vector.load %arg4[%c4, %c0_24, %c0_25] : memref<5x32x1xf32, #tpu.memory_space<vmem>>, vector<1x32x1xf32>
    %19 = vector.shape_cast %18 : vector<1x32x1xf32> to vector<32x1xf32>
    %c0_26 = arith.constant 0 : index
    %c0_27 = arith.constant 0 : index
    %20 = vector.load %arg5[%c0_26, %c0_27] : memref<16x32xf32, #tpu.memory_space<vmem>>, vector<16x32xf32>
    %c0_28 = arith.constant 0 : index
    %c0_29 = arith.constant 0 : index
    %21 = vector.load %arg6[%c0_28, %c0_29] : memref<16x1xf32, #tpu.memory_space<vmem>>, vector<16x1xf32>
    %c0_30 = arith.constant 0 : index
    %c0_31 = arith.constant 0 : index
    %c0_32 = arith.constant 0 : index
    %22 = vector.load %arg7[%c0_30, %c0_31, %c0_32] : memref<2x8x1xf32, #tpu.memory_space<vmem>>, vector<1x8x1xf32>
    %23 = vector.shape_cast %22 : vector<1x8x1xf32> to vector<8x1xf32>
    %c1_33 = arith.constant 1 : index
    %c0_34 = arith.constant 0 : index
    %c0_35 = arith.constant 0 : index
    %24 = vector.load %arg7[%c1_33, %c0_34, %c0_35] : memref<2x8x1xf32, #tpu.memory_space<vmem>>, vector<1x8x1xf32>
    %25 = vector.shape_cast %24 : vector<1x8x1xf32> to vector<8x1xf32>
    %26 = vector.broadcast %25 : vector<8x1xf32> to vector<8x512xf32>
    %27 = arith.subf %0, %26 : vector<8x512xf32>
    %28 = vector.broadcast %23 : vector<8x1xf32> to vector<8x512xf32>
    %29 = arith.divf %27, %28 : vector<8x512xf32>
    %c0_i32 = arith.constant 0 : i32
    %cst = arith.constant dense<0.000000e+00> : vector<32x512xf32>
    %30 = tpu.matmul %1, %29, %cst {dimension_numbers = #tpu.dot_dimension_numbers<[1], [0], [0], [1], [0, 0, 1, 1], [], []>} : vector<32x8xf32>, vector<8x512xf32>, vector<32x512xf32> -> vector<32x512xf32>
    %31 = vector.broadcast %11 : vector<32x1xf32> to vector<32x512xf32>
    %32 = arith.addf %30, %31 : vector<32x512xf32>
    %cst_36 = arith.constant 0.000000e+00 : f32
    %33 = vector.broadcast %cst_36 : f32 to vector<32x512xf32>
    %34 = arith.maximumf %32, %33 : vector<32x512xf32>
    %cst_37 = arith.constant dense<0.000000e+00> : vector<32x512xf32>
    %35 = tpu.matmul %3, %34, %cst_37 {dimension_numbers = #tpu.dot_dimension_numbers<[1], [0], [0], [1], [0, 0, 1, 1], [], []>} : vector<32x32xf32>, vector<32x512xf32>, vector<32x512xf32> -> vector<32x512xf32>
    %36 = vector.broadcast %13 : vector<32x1xf32> to vector<32x512xf32>
    %37 = arith.addf %35, %36 : vector<32x512xf32>
    %cst_38 = arith.constant 0.000000e+00 : f32
    %38 = vector.broadcast %cst_38 : f32 to vector<32x512xf32>
    %39 = arith.maximumf %37, %38 : vector<32x512xf32>
    %cst_39 = arith.constant dense<0.000000e+00> : vector<32x512xf32>
    %40 = tpu.matmul %5, %39, %cst_39 {dimension_numbers = #tpu.dot_dimension_numbers<[1], [0], [0], [1], [0, 0, 1, 1], [], []>} : vector<32x32xf32>, vector<32x512xf32>, vector<32x512xf32> -> vector<32x512xf32>
    %41 = vector.broadcast %15 : vector<32x1xf32> to vector<32x512xf32>
    %42 = arith.addf %40, %41 : vector<32x512xf32>
    %43 = arith.addf %32, %42 : vector<32x512xf32>
    %cst_40 = arith.constant 0.000000e+00 : f32
    %44 = vector.broadcast %cst_40 : f32 to vector<32x512xf32>
    %45 = arith.maximumf %43, %44 : vector<32x512xf32>
    %cst_41 = arith.constant dense<0.000000e+00> : vector<32x512xf32>
    %46 = tpu.matmul %7, %45, %cst_41 {dimension_numbers = #tpu.dot_dimension_numbers<[1], [0], [0], [1], [0, 0, 1, 1], [], []>} : vector<32x32xf32>, vector<32x512xf32>, vector<32x512xf32> -> vector<32x512xf32>
    %47 = vector.broadcast %17 : vector<32x1xf32> to vector<32x512xf32>
    %48 = arith.addf %46, %47 : vector<32x512xf32>
    %cst_42 = arith.constant 0.000000e+00 : f32
    %49 = vector.broadcast %cst_42 : f32 to vector<32x512xf32>
    %50 = arith.maximumf %48, %49 : vector<32x512xf32>
    %cst_43 = arith.constant dense<0.000000e+00> : vector<32x512xf32>
    %51 = tpu.matmul %9, %50, %cst_43 {dimension_numbers = #tpu.dot_dimension_numbers<[1], [0], [0], [1], [0, 0, 1, 1], [], []>} : vector<32x32xf32>, vector<32x512xf32>, vector<32x512xf32> -> vector<32x512xf32>
    %52 = vector.broadcast %19 : vector<32x1xf32> to vector<32x512xf32>
    %53 = arith.addf %51, %52 : vector<32x512xf32>
    %54 = arith.addf %43, %53 : vector<32x512xf32>
    %cst_44 = arith.constant dense<0.000000e+00> : vector<16x512xf32>
    %55 = tpu.matmul %20, %54, %cst_44 {dimension_numbers = #tpu.dot_dimension_numbers<[1], [0], [0], [1], [0, 0, 1, 1], [], []>} : vector<16x32xf32>, vector<32x512xf32>, vector<16x512xf32> -> vector<16x512xf32>
    %56 = vector.broadcast %21 : vector<16x1xf32> to vector<16x512xf32>
    %57 = arith.addf %55, %56 : vector<16x512xf32>
    %58 = vector.extract_strided_slice %57 {offsets = [0, 0], sizes = [8, 512], strides = [1, 1]} : vector<16x512xf32> to vector<8x512xf32>
    %59 = vector.extract_strided_slice %57 {offsets = [8, 0], sizes = [8, 512], strides = [1, 1]} : vector<16x512xf32> to vector<8x512xf32>
    %60 = arith.negf %58 : vector<8x512xf32>
    %61 = math.exp %60 : vector<8x512xf32>
    %cst_45 = arith.constant 1.000000e+00 : f32
    %62 = vector.broadcast %cst_45 : f32 to vector<8x512xf32>
    %63 = arith.addf %62, %61 : vector<8x512xf32>
    %64 = arith.divf %62, %63 : vector<8x512xf32>
    %cst_46 = arith.constant 1.000000e-03 : f32
    %65 = vector.broadcast %cst_46 : f32 to vector<8x512xf32>
    %66 = arith.addf %64, %65 : vector<8x512xf32>
    %67 = arith.subf %0, %59 : vector<8x512xf32>
    %68 = arith.divf %67, %66 : vector<8x512xf32>
    %c1_i32 = arith.constant 1 : i32
    %cst_47 = arith.constant dense<0.000000e+00> : vector<32x512xf32>
    %69 = tpu.matmul %1, %68, %cst_47 {dimension_numbers = #tpu.dot_dimension_numbers<[1], [0], [0], [1], [0, 0, 1, 1], [], []>} : vector<32x8xf32>, vector<8x512xf32>, vector<32x512xf32> -> vector<32x512xf32>
    %70 = vector.broadcast %11 : vector<32x1xf32> to vector<32x512xf32>
    %71 = arith.addf %69, %70 : vector<32x512xf32>
    %cst_48 = arith.constant 0.000000e+00 : f32
    %72 = vector.broadcast %cst_48 : f32 to vector<32x512xf32>
    %73 = arith.maximumf %71, %72 : vector<32x512xf32>
    %cst_49 = arith.constant dense<0.000000e+00> : vector<32x512xf32>
    %74 = tpu.matmul %3, %73, %cst_49 {dimension_numbers = #tpu.dot_dimension_numbers<[1], [0], [0], [1], [0, 0, 1, 1], [], []>} : vector<32x32xf32>, vector<32x512xf32>, vector<32x512xf32> -> vector<32x512xf32>
    %75 = vector.broadcast %13 : vector<32x1xf32> to vector<32x512xf32>
    %76 = arith.addf %74, %75 : vector<32x512xf32>
    %cst_50 = arith.constant 0.000000e+00 : f32
    %77 = vector.broadcast %cst_50 : f32 to vector<32x512xf32>
    %78 = arith.maximumf %76, %77 : vector<32x512xf32>
    %cst_51 = arith.constant dense<0.000000e+00> : vector<32x512xf32>
    %79 = tpu.matmul %5, %78, %cst_51 {dimension_numbers = #tpu.dot_dimension_numbers<[1], [0], [0], [1], [0, 0, 1, 1], [], []>} : vector<32x32xf32>, vector<32x512xf32>, vector<32x512xf32> -> vector<32x512xf32>
    %80 = vector.broadcast %15 : vector<32x1xf32> to vector<32x512xf32>
    %81 = arith.addf %79, %80 : vector<32x512xf32>
    %82 = arith.addf %71, %81 : vector<32x512xf32>
    %cst_52 = arith.constant 0.000000e+00 : f32
    %83 = vector.broadcast %cst_52 : f32 to vector<32x512xf32>
    %84 = arith.maximumf %82, %83 : vector<32x512xf32>
    %cst_53 = arith.constant dense<0.000000e+00> : vector<32x512xf32>
    %85 = tpu.matmul %7, %84, %cst_53 {dimension_numbers = #tpu.dot_dimension_numbers<[1], [0], [0], [1], [0, 0, 1, 1], [], []>} : vector<32x32xf32>, vector<32x512xf32>, vector<32x512xf32> -> vector<32x512xf32>
    %86 = vector.broadcast %17 : vector<32x1xf32> to vector<32x512xf32>
    %87 = arith.addf %85, %86 : vector<32x512xf32>
    %cst_54 = arith.constant 0.000000e+00 : f32
    %88 = vector.broadcast %cst_54 : f32 to vector<32x512xf32>
    %89 = arith.maximumf %87, %88 : vector<32x512xf32>
    %cst_55 = arith.constant dense<0.000000e+00> : vector<32x512xf32>
    %90 = tpu.matmul %9, %89, %cst_55 {dimension_numbers = #tpu.dot_dimension_numbers<[1], [0], [0], [1], [0, 0, 1, 1], [], []>} : vector<32x32xf32>, vector<32x512xf32>, vector<32x512xf32> -> vector<32x512xf32>
    %91 = vector.broadcast %19 : vector<32x1xf32> to vector<32x512xf32>
    %92 = arith.addf %90, %91 : vector<32x512xf32>
    %93 = arith.addf %82, %92 : vector<32x512xf32>
    %cst_56 = arith.constant dense<0.000000e+00> : vector<16x512xf32>
    %94 = tpu.matmul %20, %93, %cst_56 {dimension_numbers = #tpu.dot_dimension_numbers<[1], [0], [0], [1], [0, 0, 1, 1], [], []>} : vector<16x32xf32>, vector<32x512xf32>, vector<16x512xf32> -> vector<16x512xf32>
    %95 = vector.broadcast %21 : vector<16x1xf32> to vector<16x512xf32>
    %96 = arith.addf %94, %95 : vector<16x512xf32>
    %97 = vector.extract_strided_slice %96 {offsets = [0, 0], sizes = [8, 512], strides = [1, 1]} : vector<16x512xf32> to vector<8x512xf32>
    %98 = vector.extract_strided_slice %96 {offsets = [8, 0], sizes = [8, 512], strides = [1, 1]} : vector<16x512xf32> to vector<8x512xf32>
    %99 = arith.negf %97 : vector<8x512xf32>
    %100 = math.exp %99 : vector<8x512xf32>
    %cst_57 = arith.constant 1.000000e+00 : f32
    %101 = vector.broadcast %cst_57 : f32 to vector<8x512xf32>
    %102 = arith.addf %101, %100 : vector<8x512xf32>
    %103 = arith.divf %101, %102 : vector<8x512xf32>
    %cst_58 = arith.constant 1.000000e-03 : f32
    %104 = vector.broadcast %cst_58 : f32 to vector<8x512xf32>
    %105 = arith.addf %103, %104 : vector<8x512xf32>
    %106 = arith.subf %0, %98 : vector<8x512xf32>
    %107 = arith.divf %106, %105 : vector<8x512xf32>
    %c2_i32 = arith.constant 2 : i32
    %cst_59 = arith.constant dense<0.000000e+00> : vector<32x512xf32>
    %108 = tpu.matmul %1, %107, %cst_59 {dimension_numbers = #tpu.dot_dimension_numbers<[1], [0], [0], [1], [0, 0, 1, 1], [], []>} : vector<32x8xf32>, vector<8x512xf32>, vector<32x512xf32> -> vector<32x512xf32>
    %109 = vector.broadcast %11 : vector<32x1xf32> to vector<32x512xf32>
    %110 = arith.addf %108, %109 : vector<32x512xf32>
    %cst_60 = arith.constant 0.000000e+00 : f32
    %111 = vector.broadcast %cst_60 : f32 to vector<32x512xf32>
    %112 = arith.maximumf %110, %111 : vector<32x512xf32>
    %cst_61 = arith.constant dense<0.000000e+00> : vector<32x512xf32>
    %113 = tpu.matmul %3, %112, %cst_61 {dimension_numbers = #tpu.dot_dimension_numbers<[1], [0], [0], [1], [0, 0, 1, 1], [], []>} : vector<32x32xf32>, vector<32x512xf32>, vector<32x512xf32> -> vector<32x512xf32>
    %114 = vector.broadcast %13 : vector<32x1xf32> to vector<32x512xf32>
    %115 = arith.addf %113, %114 : vector<32x512xf32>
    %cst_62 = arith.constant 0.000000e+00 : f32
    %116 = vector.broadcast %cst_62 : f32 to vector<32x512xf32>
    %117 = arith.maximumf %115, %116 : vector<32x512xf32>
    %cst_63 = arith.constant dense<0.000000e+00> : vector<32x512xf32>
    %118 = tpu.matmul %5, %117, %cst_63 {dimension_numbers = #tpu.dot_dimension_numbers<[1], [0], [0], [1], [0, 0, 1, 1], [], []>} : vector<32x32xf32>, vector<32x512xf32>, vector<32x512xf32> -> vector<32x512xf32>
    %119 = vector.broadcast %15 : vector<32x1xf32> to vector<32x512xf32>
    %120 = arith.addf %118, %119 : vector<32x512xf32>
    %121 = arith.addf %110, %120 : vector<32x512xf32>
    %cst_64 = arith.constant 0.000000e+00 : f32
    %122 = vector.broadcast %cst_64 : f32 to vector<32x512xf32>
    %123 = arith.maximumf %121, %122 : vector<32x512xf32>
    %cst_65 = arith.constant dense<0.000000e+00> : vector<32x512xf32>
    %124 = tpu.matmul %7, %123, %cst_65 {dimension_numbers = #tpu.dot_dimension_numbers<[1], [0], [0], [1], [0, 0, 1, 1], [], []>} : vector<32x32xf32>, vector<32x512xf32>, vector<32x512xf32> -> vector<32x512xf32>
    %125 = vector.broadcast %17 : vector<32x1xf32> to vector<32x512xf32>
    %126 = arith.addf %124, %125 : vector<32x512xf32>
    %cst_66 = arith.constant 0.000000e+00 : f32
    %127 = vector.broadcast %cst_66 : f32 to vector<32x512xf32>
    %128 = arith.maximumf %126, %127 : vector<32x512xf32>
    %cst_67 = arith.constant dense<0.000000e+00> : vector<32x512xf32>
    %129 = tpu.matmul %9, %128, %cst_67 {dimension_numbers = #tpu.dot_dimension_numbers<[1], [0], [0], [1], [0, 0, 1, 1], [], []>} : vector<32x32xf32>, vector<32x512xf32>, vector<32x512xf32> -> vector<32x512xf32>
    %130 = vector.broadcast %19 : vector<32x1xf32> to vector<32x512xf32>
    %131 = arith.addf %129, %130 : vector<32x512xf32>
    %132 = arith.addf %121, %131 : vector<32x512xf32>
    %cst_68 = arith.constant dense<0.000000e+00> : vector<16x512xf32>
    %133 = tpu.matmul %20, %132, %cst_68 {dimension_numbers = #tpu.dot_dimension_numbers<[1], [0], [0], [1], [0, 0, 1, 1], [], []>} : vector<16x32xf32>, vector<32x512xf32>, vector<16x512xf32> -> vector<16x512xf32>
    %134 = vector.broadcast %21 : vector<16x1xf32> to vector<16x512xf32>
    %135 = arith.addf %133, %134 : vector<16x512xf32>
    %136 = vector.extract_strided_slice %135 {offsets = [0, 0], sizes = [8, 512], strides = [1, 1]} : vector<16x512xf32> to vector<8x512xf32>
    %137 = vector.extract_strided_slice %135 {offsets = [8, 0], sizes = [8, 512], strides = [1, 1]} : vector<16x512xf32> to vector<8x512xf32>
    %138 = arith.negf %136 : vector<8x512xf32>
    %139 = math.exp %138 : vector<8x512xf32>
    %cst_69 = arith.constant 1.000000e+00 : f32
    %140 = vector.broadcast %cst_69 : f32 to vector<8x512xf32>
    %141 = arith.addf %140, %139 : vector<8x512xf32>
    %142 = arith.divf %140, %141 : vector<8x512xf32>
    %cst_70 = arith.constant 1.000000e-03 : f32
    %143 = vector.broadcast %cst_70 : f32 to vector<8x512xf32>
    %144 = arith.addf %142, %143 : vector<8x512xf32>
    %145 = arith.subf %0, %137 : vector<8x512xf32>
    %146 = arith.divf %145, %144 : vector<8x512xf32>
    %c3_i32 = arith.constant 3 : i32
    %cst_71 = arith.constant dense<0.000000e+00> : vector<32x512xf32>
    %147 = tpu.matmul %1, %146, %cst_71 {dimension_numbers = #tpu.dot_dimension_numbers<[1], [0], [0], [1], [0, 0, 1, 1], [], []>} : vector<32x8xf32>, vector<8x512xf32>, vector<32x512xf32> -> vector<32x512xf32>
    %148 = vector.broadcast %11 : vector<32x1xf32> to vector<32x512xf32>
    %149 = arith.addf %147, %148 : vector<32x512xf32>
    %cst_72 = arith.constant 0.000000e+00 : f32
    %150 = vector.broadcast %cst_72 : f32 to vector<32x512xf32>
    %151 = arith.maximumf %149, %150 : vector<32x512xf32>
    %cst_73 = arith.constant dense<0.000000e+00> : vector<32x512xf32>
    %152 = tpu.matmul %3, %151, %cst_73 {dimension_numbers = #tpu.dot_dimension_numbers<[1], [0], [0], [1], [0, 0, 1, 1], [], []>} : vector<32x32xf32>, vector<32x512xf32>, vector<32x512xf32> -> vector<32x512xf32>
    %153 = vector.broadcast %13 : vector<32x1xf32> to vector<32x512xf32>
    %154 = arith.addf %152, %153 : vector<32x512xf32>
    %cst_74 = arith.constant 0.000000e+00 : f32
    %155 = vector.broadcast %cst_74 : f32 to vector<32x512xf32>
    %156 = arith.maximumf %154, %155 : vector<32x512xf32>
    %cst_75 = arith.constant dense<0.000000e+00> : vector<32x512xf32>
    %157 = tpu.matmul %5, %156, %cst_75 {dimension_numbers = #tpu.dot_dimension_numbers<[1], [0], [0], [1], [0, 0, 1, 1], [], []>} : vector<32x32xf32>, vector<32x512xf32>, vector<32x512xf32> -> vector<32x512xf32>
    %158 = vector.broadcast %15 : vector<32x1xf32> to vector<32x512xf32>
    %159 = arith.addf %157, %158 : vector<32x512xf32>
    %160 = arith.addf %149, %159 : vector<32x512xf32>
    %cst_76 = arith.constant 0.000000e+00 : f32
    %161 = vector.broadcast %cst_76 : f32 to vector<32x512xf32>
    %162 = arith.maximumf %160, %161 : vector<32x512xf32>
    %cst_77 = arith.constant dense<0.000000e+00> : vector<32x512xf32>
    %163 = tpu.matmul %7, %162, %cst_77 {dimension_numbers = #tpu.dot_dimension_numbers<[1], [0], [0], [1], [0, 0, 1, 1], [], []>} : vector<32x32xf32>, vector<32x512xf32>, vector<32x512xf32> -> vector<32x512xf32>
    %164 = vector.broadcast %17 : vector<32x1xf32> to vector<32x512xf32>
    %165 = arith.addf %163, %164 : vector<32x512xf32>
    %cst_78 = arith.constant 0.000000e+00 : f32
    %166 = vector.broadcast %cst_78 : f32 to vector<32x512xf32>
    %167 = arith.maximumf %165, %166 : vector<32x512xf32>
    %cst_79 = arith.constant dense<0.000000e+00> : vector<32x512xf32>
    %168 = tpu.matmul %9, %167, %cst_79 {dimension_numbers = #tpu.dot_dimension_numbers<[1], [0], [0], [1], [0, 0, 1, 1], [], []>} : vector<32x32xf32>, vector<32x512xf32>, vector<32x512xf32> -> vector<32x512xf32>
    %169 = vector.broadcast %19 : vector<32x1xf32> to vector<32x512xf32>
    %170 = arith.addf %168, %169 : vector<32x512xf32>
    %171 = arith.addf %160, %170 : vector<32x512xf32>
    %cst_80 = arith.constant dense<0.000000e+00> : vector<16x512xf32>
    %172 = tpu.matmul %20, %171, %cst_80 {dimension_numbers = #tpu.dot_dimension_numbers<[1], [0], [0], [1], [0, 0, 1, 1], [], []>} : vector<16x32xf32>, vector<32x512xf32>, vector<16x512xf32> -> vector<16x512xf32>
    %173 = vector.broadcast %21 : vector<16x1xf32> to vector<16x512xf32>
    %174 = arith.addf %172, %173 : vector<16x512xf32>
    %175 = vector.extract_strided_slice %174 {offsets = [0, 0], sizes = [8, 512], strides = [1, 1]} : vector<16x512xf32> to vector<8x512xf32>
    %176 = vector.extract_strided_slice %174 {offsets = [8, 0], sizes = [8, 512], strides = [1, 1]} : vector<16x512xf32> to vector<8x512xf32>
    %177 = arith.negf %175 : vector<8x512xf32>
    %178 = math.exp %177 : vector<8x512xf32>
    %cst_81 = arith.constant 1.000000e+00 : f32
    %179 = vector.broadcast %cst_81 : f32 to vector<8x512xf32>
    %180 = arith.addf %179, %178 : vector<8x512xf32>
    %181 = arith.divf %179, %180 : vector<8x512xf32>
    %cst_82 = arith.constant 1.000000e-03 : f32
    %182 = vector.broadcast %cst_82 : f32 to vector<8x512xf32>
    %183 = arith.addf %181, %182 : vector<8x512xf32>
    %184 = arith.subf %0, %176 : vector<8x512xf32>
    %185 = arith.divf %184, %183 : vector<8x512xf32>
    %c4_i32 = arith.constant 4 : i32
    %cst_83 = arith.constant dense<0.000000e+00> : vector<32x512xf32>
    %186 = tpu.matmul %1, %185, %cst_83 {dimension_numbers = #tpu.dot_dimension_numbers<[1], [0], [0], [1], [0, 0, 1, 1], [], []>} : vector<32x8xf32>, vector<8x512xf32>, vector<32x512xf32> -> vector<32x512xf32>
    %187 = vector.broadcast %11 : vector<32x1xf32> to vector<32x512xf32>
    %188 = arith.addf %186, %187 : vector<32x512xf32>
    %cst_84 = arith.constant 0.000000e+00 : f32
    %189 = vector.broadcast %cst_84 : f32 to vector<32x512xf32>
    %190 = arith.maximumf %188, %189 : vector<32x512xf32>
    %cst_85 = arith.constant dense<0.000000e+00> : vector<32x512xf32>
    %191 = tpu.matmul %3, %190, %cst_85 {dimension_numbers = #tpu.dot_dimension_numbers<[1], [0], [0], [1], [0, 0, 1, 1], [], []>} : vector<32x32xf32>, vector<32x512xf32>, vector<32x512xf32> -> vector<32x512xf32>
    %192 = vector.broadcast %13 : vector<32x1xf32> to vector<32x512xf32>
    %193 = arith.addf %191, %192 : vector<32x512xf32>
    %cst_86 = arith.constant 0.000000e+00 : f32
    %194 = vector.broadcast %cst_86 : f32 to vector<32x512xf32>
    %195 = arith.maximumf %193, %194 : vector<32x512xf32>
    %cst_87 = arith.constant dense<0.000000e+00> : vector<32x512xf32>
    %196 = tpu.matmul %5, %195, %cst_87 {dimension_numbers = #tpu.dot_dimension_numbers<[1], [0], [0], [1], [0, 0, 1, 1], [], []>} : vector<32x32xf32>, vector<32x512xf32>, vector<32x512xf32> -> vector<32x512xf32>
    %197 = vector.broadcast %15 : vector<32x1xf32> to vector<32x512xf32>
    %198 = arith.addf %196, %197 : vector<32x512xf32>
    %199 = arith.addf %188, %198 : vector<32x512xf32>
    %cst_88 = arith.constant 0.000000e+00 : f32
    %200 = vector.broadcast %cst_88 : f32 to vector<32x512xf32>
    %201 = arith.maximumf %199, %200 : vector<32x512xf32>
    %cst_89 = arith.constant dense<0.000000e+00> : vector<32x512xf32>
    %202 = tpu.matmul %7, %201, %cst_89 {dimension_numbers = #tpu.dot_dimension_numbers<[1], [0], [0], [1], [0, 0, 1, 1], [], []>} : vector<32x32xf32>, vector<32x512xf32>, vector<32x512xf32> -> vector<32x512xf32>
    %203 = vector.broadcast %17 : vector<32x1xf32> to vector<32x512xf32>
    %204 = arith.addf %202, %203 : vector<32x512xf32>
    %cst_90 = arith.constant 0.000000e+00 : f32
    %205 = vector.broadcast %cst_90 : f32 to vector<32x512xf32>
    %206 = arith.maximumf %204, %205 : vector<32x512xf32>
    %cst_91 = arith.constant dense<0.000000e+00> : vector<32x512xf32>
    %207 = tpu.matmul %9, %206, %cst_91 {dimension_numbers = #tpu.dot_dimension_numbers<[1], [0], [0], [1], [0, 0, 1, 1], [], []>} : vector<32x32xf32>, vector<32x512xf32>, vector<32x512xf32> -> vector<32x512xf32>
    %208 = vector.broadcast %19 : vector<32x1xf32> to vector<32x512xf32>
    %209 = arith.addf %207, %208 : vector<32x512xf32>
    %210 = arith.addf %199, %209 : vector<32x512xf32>
    %cst_92 = arith.constant dense<0.000000e+00> : vector<16x512xf32>
    %211 = tpu.matmul %20, %210, %cst_92 {dimension_numbers = #tpu.dot_dimension_numbers<[1], [0], [0], [1], [0, 0, 1, 1], [], []>} : vector<16x32xf32>, vector<32x512xf32>, vector<16x512xf32> -> vector<16x512xf32>
    %212 = vector.broadcast %21 : vector<16x1xf32> to vector<16x512xf32>
    %213 = arith.addf %211, %212 : vector<16x512xf32>
    %214 = vector.extract_strided_slice %213 {offsets = [0, 0], sizes = [8, 512], strides = [1, 1]} : vector<16x512xf32> to vector<8x512xf32>
    %215 = vector.extract_strided_slice %213 {offsets = [8, 0], sizes = [8, 512], strides = [1, 1]} : vector<16x512xf32> to vector<8x512xf32>
    %216 = arith.negf %214 : vector<8x512xf32>
    %217 = math.exp %216 : vector<8x512xf32>
    %cst_93 = arith.constant 1.000000e+00 : f32
    %218 = vector.broadcast %cst_93 : f32 to vector<8x512xf32>
    %219 = arith.addf %218, %217 : vector<8x512xf32>
    %220 = arith.divf %218, %219 : vector<8x512xf32>
    %cst_94 = arith.constant 1.000000e-03 : f32
    %221 = vector.broadcast %cst_94 : f32 to vector<8x512xf32>
    %222 = arith.addf %220, %221 : vector<8x512xf32>
    %223 = arith.subf %0, %215 : vector<8x512xf32>
    %224 = arith.divf %223, %222 : vector<8x512xf32>
    %c5_i32 = arith.constant 5 : i32
    %cst_95 = arith.constant dense<0.000000e+00> : vector<32x512xf32>
    %225 = tpu.matmul %1, %224, %cst_95 {dimension_numbers = #tpu.dot_dimension_numbers<[1], [0], [0], [1], [0, 0, 1, 1], [], []>} : vector<32x8xf32>, vector<8x512xf32>, vector<32x512xf32> -> vector<32x512xf32>
    %226 = vector.broadcast %11 : vector<32x1xf32> to vector<32x512xf32>
    %227 = arith.addf %225, %226 : vector<32x512xf32>
    %cst_96 = arith.constant 0.000000e+00 : f32
    %228 = vector.broadcast %cst_96 : f32 to vector<32x512xf32>
    %229 = arith.maximumf %227, %228 : vector<32x512xf32>
    %cst_97 = arith.constant dense<0.000000e+00> : vector<32x512xf32>
    %230 = tpu.matmul %3, %229, %cst_97 {dimension_numbers = #tpu.dot_dimension_numbers<[1], [0], [0], [1], [0, 0, 1, 1], [], []>} : vector<32x32xf32>, vector<32x512xf32>, vector<32x512xf32> -> vector<32x512xf32>
    %231 = vector.broadcast %13 : vector<32x1xf32> to vector<32x512xf32>
    %232 = arith.addf %230, %231 : vector<32x512xf32>
    %cst_98 = arith.constant 0.000000e+00 : f32
    %233 = vector.broadcast %cst_98 : f32 to vector<32x512xf32>
    %234 = arith.maximumf %232, %233 : vector<32x512xf32>
    %cst_99 = arith.constant dense<0.000000e+00> : vector<32x512xf32>
    %235 = tpu.matmul %5, %234, %cst_99 {dimension_numbers = #tpu.dot_dimension_numbers<[1], [0], [0], [1], [0, 0, 1, 1], [], []>} : vector<32x32xf32>, vector<32x512xf32>, vector<32x512xf32> -> vector<32x512xf32>
    %236 = vector.broadcast %15 : vector<32x1xf32> to vector<32x512xf32>
    %237 = arith.addf %235, %236 : vector<32x512xf32>
    %238 = arith.addf %227, %237 : vector<32x512xf32>
    %cst_100 = arith.constant 0.000000e+00 : f32
    %239 = vector.broadcast %cst_100 : f32 to vector<32x512xf32>
    %240 = arith.maximumf %238, %239 : vector<32x512xf32>
    %cst_101 = arith.constant dense<0.000000e+00> : vector<32x512xf32>
    %241 = tpu.matmul %7, %240, %cst_101 {dimension_numbers = #tpu.dot_dimension_numbers<[1], [0], [0], [1], [0, 0, 1, 1], [], []>} : vector<32x32xf32>, vector<32x512xf32>, vector<32x512xf32> -> vector<32x512xf32>
    %242 = vector.broadcast %17 : vector<32x1xf32> to vector<32x512xf32>
    %243 = arith.addf %241, %242 : vector<32x512xf32>
    %cst_102 = arith.constant 0.000000e+00 : f32
    %244 = vector.broadcast %cst_102 : f32 to vector<32x512xf32>
    %245 = arith.maximumf %243, %244 : vector<32x512xf32>
    %cst_103 = arith.constant dense<0.000000e+00> : vector<32x512xf32>
    %246 = tpu.matmul %9, %245, %cst_103 {dimension_numbers = #tpu.dot_dimension_numbers<[1], [0], [0], [1], [0, 0, 1, 1], [], []>} : vector<32x32xf32>, vector<32x512xf32>, vector<32x512xf32> -> vector<32x512xf32>
    %247 = vector.broadcast %19 : vector<32x1xf32> to vector<32x512xf32>
    %248 = arith.addf %246, %247 : vector<32x512xf32>
    %249 = arith.addf %238, %248 : vector<32x512xf32>
    %cst_104 = arith.constant dense<0.000000e+00> : vector<16x512xf32>
    %250 = tpu.matmul %20, %249, %cst_104 {dimension_numbers = #tpu.dot_dimension_numbers<[1], [0], [0], [1], [0, 0, 1, 1], [], []>} : vector<16x32xf32>, vector<32x512xf32>, vector<16x512xf32> -> vector<16x512xf32>
    %251 = vector.broadcast %21 : vector<16x1xf32> to vector<16x512xf32>
    %252 = arith.addf %250, %251 : vector<16x512xf32>
    %253 = vector.extract_strided_slice %252 {offsets = [0, 0], sizes = [8, 512], strides = [1, 1]} : vector<16x512xf32> to vector<8x512xf32>
    %254 = vector.extract_strided_slice %252 {offsets = [8, 0], sizes = [8, 512], strides = [1, 1]} : vector<16x512xf32> to vector<8x512xf32>
    %255 = arith.negf %253 : vector<8x512xf32>
    %256 = math.exp %255 : vector<8x512xf32>
    %cst_105 = arith.constant 1.000000e+00 : f32
    %257 = vector.broadcast %cst_105 : f32 to vector<8x512xf32>
    %258 = arith.addf %257, %256 : vector<8x512xf32>
    %259 = arith.divf %257, %258 : vector<8x512xf32>
    %cst_106 = arith.constant 1.000000e-03 : f32
    %260 = vector.broadcast %cst_106 : f32 to vector<8x512xf32>
    %261 = arith.addf %259, %260 : vector<8x512xf32>
    %262 = arith.subf %0, %254 : vector<8x512xf32>
    %263 = arith.divf %262, %261 : vector<8x512xf32>
    %c6_i32 = arith.constant 6 : i32
    %cst_107 = arith.constant dense<0.000000e+00> : vector<32x512xf32>
    %264 = tpu.matmul %1, %263, %cst_107 {dimension_numbers = #tpu.dot_dimension_numbers<[1], [0], [0], [1], [0, 0, 1, 1], [], []>} : vector<32x8xf32>, vector<8x512xf32>, vector<32x512xf32> -> vector<32x512xf32>
    %265 = vector.broadcast %11 : vector<32x1xf32> to vector<32x512xf32>
    %266 = arith.addf %264, %265 : vector<32x512xf32>
    %cst_108 = arith.constant 0.000000e+00 : f32
    %267 = vector.broadcast %cst_108 : f32 to vector<32x512xf32>
    %268 = arith.maximumf %266, %267 : vector<32x512xf32>
    %cst_109 = arith.constant dense<0.000000e+00> : vector<32x512xf32>
    %269 = tpu.matmul %3, %268, %cst_109 {dimension_numbers = #tpu.dot_dimension_numbers<[1], [0], [0], [1], [0, 0, 1, 1], [], []>} : vector<32x32xf32>, vector<32x512xf32>, vector<32x512xf32> -> vector<32x512xf32>
    %270 = vector.broadcast %13 : vector<32x1xf32> to vector<32x512xf32>
    %271 = arith.addf %269, %270 : vector<32x512xf32>
    %cst_110 = arith.constant 0.000000e+00 : f32
    %272 = vector.broadcast %cst_110 : f32 to vector<32x512xf32>
    %273 = arith.maximumf %271, %272 : vector<32x512xf32>
    %cst_111 = arith.constant dense<0.000000e+00> : vector<32x512xf32>
    %274 = tpu.matmul %5, %273, %cst_111 {dimension_numbers = #tpu.dot_dimension_numbers<[1], [0], [0], [1], [0, 0, 1, 1], [], []>} : vector<32x32xf32>, vector<32x512xf32>, vector<32x512xf32> -> vector<32x512xf32>
    %275 = vector.broadcast %15 : vector<32x1xf32> to vector<32x512xf32>
    %276 = arith.addf %274, %275 : vector<32x512xf32>
    %277 = arith.addf %266, %276 : vector<32x512xf32>
    %cst_112 = arith.constant 0.000000e+00 : f32
    %278 = vector.broadcast %cst_112 : f32 to vector<32x512xf32>
    %279 = arith.maximumf %277, %278 : vector<32x512xf32>
    %cst_113 = arith.constant dense<0.000000e+00> : vector<32x512xf32>
    %280 = tpu.matmul %7, %279, %cst_113 {dimension_numbers = #tpu.dot_dimension_numbers<[1], [0], [0], [1], [0, 0, 1, 1], [], []>} : vector<32x32xf32>, vector<32x512xf32>, vector<32x512xf32> -> vector<32x512xf32>
    %281 = vector.broadcast %17 : vector<32x1xf32> to vector<32x512xf32>
    %282 = arith.addf %280, %281 : vector<32x512xf32>
    %cst_114 = arith.constant 0.000000e+00 : f32
    %283 = vector.broadcast %cst_114 : f32 to vector<32x512xf32>
    %284 = arith.maximumf %282, %283 : vector<32x512xf32>
    %cst_115 = arith.constant dense<0.000000e+00> : vector<32x512xf32>
    %285 = tpu.matmul %9, %284, %cst_115 {dimension_numbers = #tpu.dot_dimension_numbers<[1], [0], [0], [1], [0, 0, 1, 1], [], []>} : vector<32x32xf32>, vector<32x512xf32>, vector<32x512xf32> -> vector<32x512xf32>
    %286 = vector.broadcast %19 : vector<32x1xf32> to vector<32x512xf32>
    %287 = arith.addf %285, %286 : vector<32x512xf32>
    %288 = arith.addf %277, %287 : vector<32x512xf32>
    %cst_116 = arith.constant dense<0.000000e+00> : vector<16x512xf32>
    %289 = tpu.matmul %20, %288, %cst_116 {dimension_numbers = #tpu.dot_dimension_numbers<[1], [0], [0], [1], [0, 0, 1, 1], [], []>} : vector<16x32xf32>, vector<32x512xf32>, vector<16x512xf32> -> vector<16x512xf32>
    %290 = vector.broadcast %21 : vector<16x1xf32> to vector<16x512xf32>
    %291 = arith.addf %289, %290 : vector<16x512xf32>
    %292 = vector.extract_strided_slice %291 {offsets = [0, 0], sizes = [8, 512], strides = [1, 1]} : vector<16x512xf32> to vector<8x512xf32>
    %293 = vector.extract_strided_slice %291 {offsets = [8, 0], sizes = [8, 512], strides = [1, 1]} : vector<16x512xf32> to vector<8x512xf32>
    %294 = arith.negf %292 : vector<8x512xf32>
    %295 = math.exp %294 : vector<8x512xf32>
    %cst_117 = arith.constant 1.000000e+00 : f32
    %296 = vector.broadcast %cst_117 : f32 to vector<8x512xf32>
    %297 = arith.addf %296, %295 : vector<8x512xf32>
    %298 = arith.divf %296, %297 : vector<8x512xf32>
    %cst_118 = arith.constant 1.000000e-03 : f32
    %299 = vector.broadcast %cst_118 : f32 to vector<8x512xf32>
    %300 = arith.addf %298, %299 : vector<8x512xf32>
    %301 = arith.subf %0, %293 : vector<8x512xf32>
    %302 = arith.divf %301, %300 : vector<8x512xf32>
    %c0_119 = arith.constant 0 : index
    %c0_120 = arith.constant 0 : index
    %303 = vector.load %arg8[%c0_119, %c0_120] : memref<8x512xf32, #tpu.memory_space<vmem>>, vector<8x512xf32>
    tpu.vector_store %arg8[%c0_119, %c0_120], %302 {strides = array<i32>} : memref<8x512xf32, #tpu.memory_space<vmem>>, vector<8x512xf32>,
    return
  }
  func.func @transform_0(%arg0: i32) -> (i32, i32) {
    %c0_i32 = arith.constant 0 : i32
    %c0_i32_0 = arith.constant 0 : i32
    return %c0_i32, %arg0 : i32, i32
  }
  func.func @transform_1(%arg0: i32) -> (i32, i32) {
    %c0_i32 = arith.constant 0 : i32
    %c0_i32_0 = arith.constant 0 : i32
    %c0_i32_1 = arith.constant 0 : i32
    return %c0_i32, %c0_i32_0 : i32, i32
  }
  func.func @transform_2(%arg0: i32) -> (i32, i32, i32) {
    %c0_i32 = arith.constant 0 : i32
    %c0_i32_0 = arith.constant 0 : i32
    %c0_i32_1 = arith.constant 0 : i32
    %c0_i32_2 = arith.constant 0 : i32
    return %c0_i32, %c0_i32_0, %c0_i32_1 : i32, i32, i32
  }
  func.func @transform_3(%arg0: i32) -> (i32, i32, i32) {
    %c0_i32 = arith.constant 0 : i32
    %c0_i32_0 = arith.constant 0 : i32
    %c0_i32_1 = arith.constant 0 : i32
    %c0_i32_2 = arith.constant 0 : i32
    return %c0_i32, %c0_i32_0, %c0_i32_1 : i32, i32, i32
  }
  func.func @transform_4(%arg0: i32) -> (i32, i32) {
    %c0_i32 = arith.constant 0 : i32
    %c0_i32_0 = arith.constant 0 : i32
    %c0_i32_1 = arith.constant 0 : i32
    return %c0_i32, %c0_i32_0 : i32, i32
  }
  func.func @transform_5(%arg0: i32) -> (i32, i32) {
    %c0_i32 = arith.constant 0 : i32
    %c0_i32_0 = arith.constant 0 : i32
    %c0_i32_1 = arith.constant 0 : i32
    return %c0_i32, %c0_i32_0 : i32, i32
  }
  func.func @transform_6(%arg0: i32) -> (i32, i32, i32) {
    %c0_i32 = arith.constant 0 : i32
    %c0_i32_0 = arith.constant 0 : i32
    %c0_i32_1 = arith.constant 0 : i32
    %c0_i32_2 = arith.constant 0 : i32
    return %c0_i32, %c0_i32_0, %c0_i32_1 : i32, i32, i32
  }
  func.func @transform_7(%arg0: i32) -> (i32, i32) {
    %c0_i32 = arith.constant 0 : i32
    %c0_i32_0 = arith.constant 0 : i32
    return %c0_i32, %arg0 : i32, i32
  }
}

</mosaic_0001>

<bundles_post_ra>
// kernel: normalizing_flow_forward.1
= control target key start
LH: loop header
LB: loop body
LE: loop exit
PB: predicated region body
PF: predicated region fallthrough
CT: control target
= control target key end

     0   :  { %v9730_v0 = vmov 0   ;;  %v12804_v6 = vmov 0.0   ;;  %vm123_vm0 = vcmask 64512   ;;  %vm350_vm1 = vcmask 261120   ;;  %s12796_s6 = inlined_call_operand.vmem [shape: f32[2,8,1], index: 6, kind: input, shape index: {}]   ;;  %s12797_s3 = inlined_call_operand.vmem [shape: f32[5,32,1], index: 3, kind: input, shape index: {}]   ;;  %s12798_s5 = inlined_call_operand.vmem [shape: f32[16,1], index: 5, kind: input, shape index: {}]   ;;  %s12799_s0 = inlined_call_operand.vmem [shape: f32[8,512], index: 0, kind: input, shape index: {}]   ;;  %s12800_s1 = inlined_call_operand.vmem [shape: f32[32,8], index: 1, kind: input, shape index: {}]   ;;  %s12801_s2 = inlined_call_operand.vmem [shape: f32[4,32,32], index: 2, kind: input, shape index: {}]   ;;  %s12802_s4 = inlined_call_operand.vmem [shape: f32[16,32], index: 4, kind: input, shape index: {}]   ;;  %s12803_s7 = inlined_call_operand.vmem [shape: f32[8,512], index: 7, kind: output, shape index: {}]  }
   0x1   :  { %9476 = vset.pattern.permute.xlu0 %v9730_v0  ;;  %v81_v1 = vld [vmem:[%s12796_s6] sm:$0xff]  ;;  %9477 = vset.pattern.permute.xlu1 %v9730_v0  ;;  %v8577_v2 = vld [vmem:[%s12796_s6 + $0x8] sm:$0xff]  ;;  %v55_v3 = vld [vmem:[%s12797_s3 + $0x10] sm:$0xff] }
   0x2   :  { %95 = vperm.xlu0 %9476, %v81_v1   ;;  %v8561_v4 = vld [vmem:[%s12797_s3 + $0x20] sm:$0xff]  ;;  %v8563_v5 = vld [vmem:[%s12797_s3 + $0x30] sm:$0xff]  ;;  %200 = vmatprep.mubr.f32.mxu0 %v12804_v6  ;;  %v54_v15 = vld [vmem:[%s12797_s3 + $0x8] sm:$0xff] }
   0x3   :  { %289 = vmatprep.mubr.f32.mxu1 %v12804_v6  ;;  %v8565_v7 = vld [vmem:[%s12797_s3 + $0x40] sm:$0xff]  ;;  %v8567_v8 = vld [vmem:[%s12797_s3 + $0x50] sm:$0xff]  ;;  %v56_v16 = vld [vmem:[%s12797_s3 + $0x18] sm:$0xff] }
   0x4   :  { %v8569_v9 = vld [vmem:[%s12797_s3 + $0x60] sm:$0xff]  ;;  %v8571_v10 = vld [vmem:[%s12797_s3 + $0x70] sm:$0xff]  ;;  %v8562_v17 = vld [vmem:[%s12797_s3 + $0x28] sm:$0xff] }
   0x5   :  { %v8573_v11 = vld [vmem:[%s12797_s3 + $0x80] sm:$0xff]  ;;  %v8575_v12 = vld [vmem:[%s12797_s3 + $0x90] sm:$0xff]  ;;  %v8564_v18 = vld [vmem:[%s12797_s3 + $0x38] sm:$0xff] }
   0x6   :  { %86 = vperm.xlu0 %9476, %v8577_v2   ;;  %v79_v13 = vld [vmem:[%s12798_s5] sm:$0xff]  ;;  %v8566_v19 = vld [vmem:[%s12797_s3 + $0x48] sm:$0xff]  ;;  %v8568_v20 = vld [vmem:[%s12797_s3 + $0x58] sm:$0xff] }
   0x7   :  { %v53_v14 = vld [vmem:[%s12797_s3] sm:$0xff]  ;;  %v8570_v21 = vld [vmem:[%s12797_s3 + $0x68] sm:$0xff]  ;;  %v8572_v22 = vld [vmem:[%s12797_s3 + $0x78] sm:$0xff] }
   0x8   :  { %105 = vperm.xlu1 %9477, %v53_v14   ;;  %v8574_v23 = vld [vmem:[%s12797_s3 + $0x88] sm:$0xff]  ;;  %v8576_v24 = vld [vmem:[%s12797_s3 + $0x98] sm:$0xff]  ;;  %v26_v30 = vld [vmem:[%s12799_s0] sm:$0xff] }
   0x9   :  { %v80_v25 = vld [vmem:[%s12798_s5 + $0x8] sm:$0xff]  ;;  %v29_v29 = vld [vmem:[%s12799_s0 + $0x18] sm:$0xff]  ;;  %v28_v31 = vld [vmem:[%s12799_s0 + $0x10] sm:$0xff] }
   0xa   :  { %115 = vperm.xlu0 %9476, %v55_v3   ;;  %v27_v27 = vld [vmem:[%s12799_s0 + $0x8] sm:$0xff]  ;;  %v30_v41 = vld [vmem:[%s12800_s1] sm:$0xff]  ;;  %v32_v43 = vld [vmem:[%s12800_s1 + $0x10] sm:$0xff] }
   0xb   :  { %v31_v42 = vld [vmem:[%s12800_s1 + $0x8] sm:$0xff]  ;;  %v33_v44 = vld [vmem:[%s12800_s1 + $0x18] sm:$0xff] }
   0xc   :  { %110 = vperm.xlu1 %9477, %v54_v15  }
   0xe   :  { %332 = vperm.xlu0 %9476, %v8561_v4  }
  0x10   :  { %120 = vperm.xlu1 %9477, %v56_v16  }
  0x12   :  { %342 = vperm.xlu0 %9476, %v8563_v5  }
  0x14   :  { %337 = vperm.xlu1 %9477, %v8562_v17  }
  0x16   :  { %559 = vperm.xlu0 %9476, %v8565_v7  }
  0x18   :  { %347 = vperm.xlu1 %9477, %v8564_v18  }
  0x1a   :  { %569 = vperm.xlu0 %9476, %v8567_v8  }
  0x1c   :  { %564 = vperm.xlu1 %9477, %v8566_v19  }
  0x1e   :  { %801 = vperm.xlu0 %9476, %v8569_v9  }
  0x20   :  { %574 = vperm.xlu1 %9477, %v8568_v20  }
  0x22   :  { %811 = vperm.xlu0 %9476, %v8571_v10  }
  0x24   :  { %806 = vperm.xlu1 %9477, %v8570_v21  }
  0x26   :  { %1027 = vperm.xlu0 %9476, %v8573_v11  }
  0x28   :  { %816 = vperm.xlu1 %9477, %v8572_v22  }
  0x2a   :  { %1037 = vperm.xlu0 %9476, %v8575_v12  }
  0x2c   :  { %1032 = vperm.xlu1 %9477, %v8574_v23  }
  0x2e   :  { %1253 = vperm.xlu0 %9476, %v79_v13  }
  0x30   :  { %1042 = vperm.xlu1 %9477, %v8576_v24  }
  0x34   :  { %1258 = vperm.xlu1 %9477, %v80_v25  }
  0x81   :  { %v96_v26 = vpop.permute.xlu0 %95 }
  0x82   :  { %9478 = vrcp.f32 %v96_v26 }
  0x85   :  { %v87_v28 = vpop.permute.xlu0 %86 }
  0x86   :  { %v90_v32 = vsub.f32 %v27_v27, %v87_v28  ;;  %v92_v33 = vsub.f32 %v29_v29, %v87_v28  ;;  %v89_v34 = vsub.f32 %v26_v30, %v87_v28  ;;  %v91_v35 = vsub.f32 %v28_v31, %v87_v28 }
  0x87   :  { %v9886_v45 = vpop.permute.xlu1 %105 }
  0x88   :  { %12935 = vst [vmem:[#allocation2_spill] sm:$0xff] %v9886_v45 }
  0x89   :  { %v9922_v14 = vpop.permute.xlu0 %115 }
  0x8a   :  { %12937 = vst [vmem:[#allocation4_spill] sm:$0xff] %v9922_v14 }
  0x8b   :  { %v9888_v50 = vpop.permute.xlu1 %110 }
  0x8c   :  { %v9479_v36 = vpop.eup %9478  ;;  %12936 = vst [vmem:[#allocation3_spill] sm:$0xff] %v9888_v50 }
  0x8d   :  { %v100_v37 = vmul.f32 %v9479_v36, %v90_v32  ;;  %v102_v38 = vmul.f32 %v9479_v36, %v92_v33  ;;  %v99_v39 = vmul.f32 %v9479_v36, %v89_v34  ;;  %v101_v40 = vmul.f32 %v9479_v36, %v91_v35 }
  0x8f   :  { %136 = vmatprep.subr.mxu0 %v100_v37  ;;  %225 = vmatprep.subr.mxu1 %v102_v38  ;;  %v9924_v15 = vpop.permute.xlu1 %120 }
  0x90   :  { %137 = vmatpush1.msra.mxu0 %v99_v39  ;;  %226 = vmatpush1.msra.mxu1 %v101_v40  ;;  %12938 = vst [vmem:[#allocation5_spill] sm:$0xff] %v9924_v15 }
  0x91   :  { %8578 = vmatmul.mubr.msk.f32.vlgmr.msra.gmra.mrb[0].mxu0 %vm123_vm0, %v30_v41  ;;  %8582 = vmatmul.mubr.msk.f32.vlgmr.msra.gmra.mrb[0].mxu1 %vm123_vm0, %v30_v41 }
  0x92   :  { %206 = vmatprep.mubr.f32.mxu0 %v12804_v6  ;;  %295 = vmatprep.mubr.f32.mxu1 %v12804_v6 }
  0x95   :  { %8579 = vmatmul.mubr.msk.f32.gmra.mrb[2].mxu0 %vm123_vm0, %v31_v42  ;;  %8583 = vmatmul.mubr.msk.f32.gmra.mrb[2].mxu1 %vm123_vm0, %v31_v42  ;;  %v34_v42 = vld [vmem:[%s12801_s2] sm:$0xff] }
  0x96   :  { %212 = vmatprep.mubr.f32.mxu0 %v12804_v6  ;;  %301 = vmatprep.mubr.f32.mxu1 %v12804_v6 }
  0x99   :  { %8580 = vmatmul.mubr.msk.f32.gmra.mrb[4].mxu0 %vm123_vm0, %v32_v43  ;;  %8584 = vmatmul.mubr.msk.f32.gmra.mrb[4].mxu1 %vm123_vm0, %v32_v43  ;;  %v35_v43 = vld [vmem:[%s12801_s2 + $0x8] sm:$0xff] }
  0x9a   :  { %218 = vmatprep.mubr.f32.mxu0 %v12804_v6  ;;  %307 = vmatprep.mubr.f32.mxu1 %v12804_v6 }
  0x9d   :  { %8581 = vmatmul.mubr.msk.f32.gmra.mrb[6].mxu0 %vm123_vm0, %v33_v44  ;;  %8585 = vmatmul.mubr.msk.f32.gmra.mrb[6].mxu1 %vm123_vm0, %v33_v44  ;;  %v36_v44 = vld [vmem:[%s12801_s2 + $0x10] sm:$0xff] }
  0x9e   :  { %427 = vmatprep.mubr.f32.mxu0 %v12804_v6  ;;  %516 = vmatprep.mubr.f32.mxu1 %v12804_v6 }
 0x164   :  { %v202_v46 = vpop.f32.mrb[0].mxu0  ;;  %v291_v47 = vpop.f32.mrb[0].mxu1 }
 0x165   :  { %v204_v48 = vpop.f32.mrb[1].mxu0  ;;  %v293_v49 = vpop.f32.mrb[1].mxu1  ;;  %v9897_v55 = vadd.f32 %v202_v46, %v9886_v45  ;;  %v9900_v56 = vadd.f32 %v291_v47, %v9886_v45  ;;  %v37_v46 = vld [vmem:[%s12801_s2 + $0x18] sm:$0xff] }
 0x166   :  { %v9891_v51 = vadd.f32 %v204_v48, %v9886_v45  ;;  %v9894_v52 = vadd.f32 %v293_v49, %v9886_v45 }
 0x167   :  { %v314_v8 = vmax.f32 %v9897_v55, 0.0  ;;  %v316_v9 = vmax.f32 %v9900_v56, 0.0 }
 0x168   :  { %v208_v53 = vpop.f32.mrb[2].mxu0  ;;  %v297_v54 = vpop.f32.mrb[2].mxu1  ;;  %v315_v1 = vmax.f32 %v9891_v51, 0.0  ;;  %v317_v2 = vmax.f32 %v9894_v52, 0.0 }
 0x169   :  { %v9903_v57 = vadd.f32 %v208_v53, %v9888_v50  ;;  %v9906_v58 = vadd.f32 %v297_v54, %v9888_v50  ;;  %v210_v59 = vpop.f32.mrb[3].mxu0  ;;  %v299_v60 = vpop.f32.mrb[3].mxu1 }
 0x16a   :  { %v9909_v61 = vadd.f32 %v210_v59, %v9888_v50  ;;  %v9912_v62 = vadd.f32 %v299_v60, %v9888_v50  ;;  %v9986_v54 = vpop.permute.xlu0 %332  ;;  %v9988_v59 = vpop.permute.xlu1 %337 }
 0x16b   :  { %v318_v63 = vmax.f32 %v9903_v57, 0.0  ;;  %v320_v0 = vmax.f32 %v9906_v58, 0.0  ;;  %12939 = vst [vmem:[#allocation6_spill] sm:$0xff] %v9986_v54 }
 0x16c   :  { %v319_v3 = vmax.f32 %v9909_v61, 0.0  ;;  %v321_v4 = vmax.f32 %v9912_v62, 0.0  ;;  %v214_v5 = vpop.f32.mrb[4].mxu0  ;;  %v303_v7 = vpop.f32.mrb[4].mxu1 }
 0x16d   :  { %v216_v10 = vpop.f32.mrb[5].mxu0  ;;  %v305_v11 = vpop.f32.mrb[5].mxu1  ;;  %v8916_v16 = vpack.c.bf16 %v318_v63, %v314_v8  ;;  %v8924_v17 = vpack.c.bf16 %v320_v0, %v316_v9  ;;  %v9927_v18 = vadd.f32 %v214_v5, %v9922_v14  ;;  %v9936_v23 = vadd.f32 %v303_v7, %v9922_v14 }
 0x16e   :  { %v8914_v12 = vpack.c.bf16 %v319_v3, %v315_v1  ;;  %v8922_v13 = vpack.c.bf16 %v321_v4, %v317_v2  ;;  %v9930_v19 = vadd.f32 %v216_v10, %v9922_v14  ;;  %v9933_v20 = vadd.f32 %v305_v11, %v9922_v14 }
 0x16f   :  { %v322_v36 = vmax.f32 %v9927_v18, 0.0  ;;  %v324_v37 = vmax.f32 %v9936_v23, 0.0 }
 0x170   :  { %v220_v21 = vpop.f32.mrb[6].mxu0  ;;  %v309_v22 = vpop.f32.mrb[6].mxu1  ;;  %8915 = vmatprep.subr.bf16.mxu0 %v8914_v12  ;;  %8923 = vmatprep.subr.bf16.mxu1 %v8922_v13  ;;  %v323_v32 = vmax.f32 %v9930_v19, 0.0  ;;  %v325_v33 = vmax.f32 %v9933_v20, 0.0 }
 0x171   :  { %v9939_v24 = vadd.f32 %v220_v21, %v9924_v15  ;;  %v9942_v25 = vadd.f32 %v309_v22, %v9924_v15  ;;  %v222_v26 = vpop.f32.mrb[7].mxu0  ;;  %v311_v27 = vpop.f32.mrb[7].mxu1  ;;  %8917 = vmatpush1.bf16.msra.mxu0 %v8916_v16  ;;  %8925 = vmatpush1.bf16.msra.mxu1 %v8924_v17 }
 0x172   :  { %v9945_v28 = vadd.f32 %v222_v26, %v9924_v15  ;;  %v9948_v29 = vadd.f32 %v311_v27, %v9924_v15 }
 0x173   :  { %v326_v30 = vmax.f32 %v9939_v24, 0.0  ;;  %v328_v31 = vmax.f32 %v9942_v25, 0.0 }
 0x174   :  { %v327_v34 = vmax.f32 %v9945_v28, 0.0  ;;  %v329_v35 = vmax.f32 %v9948_v29, 0.0 }
 0x175   :  { %v8920_v40 = vpack.c.bf16 %v326_v30, %v322_v36  ;;  %v8928_v41 = vpack.c.bf16 %v328_v31, %v324_v37 }
 0x176   :  { %v8918_v38 = vpack.c.bf16 %v327_v34, %v323_v32  ;;  %v8926_v39 = vpack.c.bf16 %v329_v35, %v325_v33  ;;  %v9998_v35 = vpop.permute.xlu0 %342 }
 0x178   :  { %8919 = vmatprep.subr.bf16.mxu0 %v8918_v38  ;;  %8927 = vmatprep.subr.bf16.mxu1 %v8926_v39  ;;  %v10000_v38 = vpop.permute.xlu1 %347 }
 0x179   :  { %8921 = vmatpush1.bf16.msra.mxu0 %v8920_v40  ;;  %8929 = vmatpush1.bf16.msra.mxu1 %v8928_v41 }
 0x17c   :  { %8586 = vmatmul.mubr.msk.f32.vlgmr.msra.gmra.mrb[8].mxu0 %vm350_vm1, %v34_v42  ;;  %8590 = vmatmul.mubr.msk.f32.vlgmr.msra.gmra.mrb[8].mxu1 %vm350_vm1, %v34_v42 }
 0x17d   :  { %433 = vmatprep.mubr.f32.mxu0 %v12804_v6  ;;  %522 = vmatprep.mubr.f32.mxu1 %v12804_v6 }
 0x180   :  { %8587 = vmatmul.mubr.msk.f32.gmra.mrb[10].mxu0 %vm350_vm1, %v35_v43  ;;  %8591 = vmatmul.mubr.msk.f32.gmra.mrb[10].mxu1 %vm350_vm1, %v35_v43 }
 0x181   :  { %439 = vmatprep.mubr.f32.mxu0 %v12804_v6  ;;  %528 = vmatprep.mubr.f32.mxu1 %v12804_v6 }
 0x184   :  { %8588 = vmatmul.mubr.msk.f32.gmra.mrb[12].mxu0 %vm350_vm1, %v36_v44  ;;  %8592 = vmatmul.mubr.msk.f32.gmra.mrb[12].mxu1 %vm350_vm1, %v36_v44 }
 0x185   :  { %445 = vmatprep.mubr.f32.mxu0 %v12804_v6  ;;  %534 = vmatprep.mubr.f32.mxu1 %v12804_v6 }
 0x188   :  { %8589 = vmatmul.mubr.msk.f32.gmra.mrb[14].mxu0 %vm350_vm1, %v37_v46  ;;  %8593 = vmatmul.mubr.msk.f32.gmra.mrb[14].mxu1 %vm350_vm1, %v37_v46 }
 0x189   :  { %653 = vmatprep.mubr.f32.mxu0 %v12804_v6  ;;  %742 = vmatprep.mubr.f32.mxu1 %v12804_v6 }
 0x24f   :  { %v429_v47 = vpop.f32.mrb[8].mxu0  ;;  %v518_v48 = vpop.f32.mrb[8].mxu1 }
 0x250   :  { %v431_v49 = vpop.f32.mrb[9].mxu0  ;;  %v520_v53 = vpop.f32.mrb[9].mxu1  ;;  %v430_v60 = vadd.f32 %v429_v47, %v9986_v54  ;;  %v519_v63 = vadd.f32 %v518_v48, %v9986_v54 }
 0x251   :  { %v432_v0 = vadd.f32 %v431_v49, %v9986_v54  ;;  %v521_v1 = vadd.f32 %v520_v53, %v9986_v54 }
 0x252   :  { %v541_v11 = vmax.f32 %v430_v60, 0.0  ;;  %v543_v12 = vmax.f32 %v519_v63, 0.0 }
 0x253   :  { %v435_v2 = vpop.f32.mrb[10].mxu0  ;;  %v524_v3 = vpop.f32.mrb[10].mxu1  ;;  %v542_v17 = vmax.f32 %v432_v0, 0.0  ;;  %v544_v21 = vmax.f32 %v521_v1, 0.0 }
 0x254   :  { %v436_v4 = vadd.f32 %v435_v2, %v9988_v59  ;;  %v525_v5 = vadd.f32 %v524_v3, %v9988_v59  ;;  %v437_v7 = vpop.f32.mrb[11].mxu0  ;;  %v526_v8 = vpop.f32.mrb[11].mxu1 }
 0x255   :  { %v438_v9 = vadd.f32 %v437_v7, %v9988_v59  ;;  %v527_v10 = vadd.f32 %v526_v8, %v9988_v59 }
 0x256   :  { %v545_v13 = vmax.f32 %v436_v4, 0.0  ;;  %v547_v16 = vmax.f32 %v525_v5, 0.0 }
 0x257   :  { %v546_v22 = vmax.f32 %v438_v9, 0.0  ;;  %v548_v26 = vmax.f32 %v527_v10, 0.0  ;;  %v441_v27 = vpop.f32.mrb[12].mxu0  ;;  %v530_v30 = vpop.f32.mrb[12].mxu1 }
 0x258   :  { %v8932_v31 = vpack.c.bf16 %v545_v13, %v541_v11  ;;  %v8940_v32 = vpack.c.bf16 %v547_v16, %v543_v12  ;;  %v443_v33 = vpop.f32.mrb[13].mxu0  ;;  %v532_v34 = vpop.f32.mrb[13].mxu1  ;;  %v442_v39 = vadd.f32 %v441_v27, %v9998_v35  ;;  %v531_v40 = vadd.f32 %v530_v30, %v9998_v35  ;;  %v8549_v12 = vld [vmem:[%s12801_s2 + $0x20] sm:$0xff]  ;;  %v8550_v13 = vld [vmem:[%s12801_s2 + $0x28] sm:$0xff]  ;;  %v8551_v16 = vld [vmem:[%s12801_s2 + $0x30] sm:$0xff] }
 0x259   :  { %v8930_v36 = vpack.c.bf16 %v546_v22, %v542_v17  ;;  %v8938_v37 = vpack.c.bf16 %v548_v26, %v544_v21  ;;  %v444_v41 = vadd.f32 %v443_v33, %v9998_v35  ;;  %v533_v42 = vadd.f32 %v532_v34, %v9998_v35  ;;  %v8552_v17 = vld [vmem:[%s12801_s2 + $0x38] sm:$0xff]  ;;  %v10038_v21 = vpop.permute.xlu0 %559  ;;  %v10043_v34 = vpop.permute.xlu1 %564 }
 0x25a   :  { %v549_v63 = vmax.f32 %v442_v39, 0.0  ;;  %v551_v0 = vmax.f32 %v531_v40, 0.0  ;;  %12940 = vst [vmem:[#allocation7_spill] sm:$0xff] %v10038_v21  ;;  %12941 = vst [vmem:[#allocation8_spill] sm:$0xff] %v10043_v34 }
 0x25b   :  { %v447_v43 = vpop.f32.mrb[14].mxu0  ;;  %v536_v44 = vpop.f32.mrb[14].mxu1  ;;  %8931 = vmatprep.subr.bf16.mxu0 %v8930_v36  ;;  %8939 = vmatprep.subr.bf16.mxu1 %v8938_v37  ;;  %v550_v3 = vmax.f32 %v444_v41, 0.0  ;;  %v552_v4 = vmax.f32 %v533_v42, 0.0 }
 0x25c   :  { %v448_v46 = vadd.f32 %v447_v43, %v10000_v38  ;;  %v537_v47 = vadd.f32 %v536_v44, %v10000_v38  ;;  %v449_v48 = vpop.f32.mrb[15].mxu0  ;;  %v538_v49 = vpop.f32.mrb[15].mxu1  ;;  %8933 = vmatpush1.bf16.msra.mxu0 %v8932_v31  ;;  %8941 = vmatpush1.bf16.msra.mxu1 %v8940_v32 }
 0x25d   :  { %v450_v53 = vadd.f32 %v449_v48, %v10000_v38  ;;  %v539_v60 = vadd.f32 %v538_v49, %v10000_v38 }
 0x25e   :  { %v553_v1 = vmax.f32 %v448_v46, 0.0  ;;  %v555_v2 = vmax.f32 %v537_v47, 0.0 }
 0x25f   :  { %v554_v5 = vmax.f32 %v450_v53, 0.0  ;;  %v556_v7 = vmax.f32 %v539_v60, 0.0 }
 0x260   :  { %v8936_v8 = vpack.c.bf16 %v553_v1, %v549_v63  ;;  %v8944_v9 = vpack.c.bf16 %v555_v2, %v551_v0 }
 0x261   :  { %v8934_v10 = vpack.c.bf16 %v554_v5, %v550_v3  ;;  %v8942_v11 = vpack.c.bf16 %v556_v7, %v552_v4 }
 0x263   :  { %8935 = vmatprep.subr.bf16.mxu0 %v8934_v10  ;;  %8943 = vmatprep.subr.bf16.mxu1 %v8942_v11  ;;  %v10086_v10 = vpop.permute.xlu1 %574 }
 0x264   :  { %8937 = vmatpush1.bf16.msra.mxu0 %v8936_v8  ;;  %8945 = vmatpush1.bf16.msra.mxu1 %v8944_v9 }
 0x267   :  { %8594 = vmatmul.mubr.msk.f32.vlgmr.msra.gmra.mrb[16].mxu0 %vm350_vm1, %v8549_v12  ;;  %8598 = vmatmul.mubr.msk.f32.vlgmr.msra.gmra.mrb[16].mxu1 %vm350_vm1, %v8549_v12 }
 0x268   :  { %659 = vmatprep.mubr.f32.mxu0 %v12804_v6  ;;  %748 = vmatprep.mubr.f32.mxu1 %v12804_v6 }
 0x26b   :  { %8595 = vmatmul.mubr.msk.f32.gmra.mrb[18].mxu0 %vm350_vm1, %v8550_v13  ;;  %8599 = vmatmul.mubr.msk.f32.gmra.mrb[18].mxu1 %vm350_vm1, %v8550_v13 }
 0x26c   :  { %665 = vmatprep.mubr.f32.mxu0 %v12804_v6  ;;  %754 = vmatprep.mubr.f32.mxu1 %v12804_v6 }
 0x26f   :  { %8596 = vmatmul.mubr.msk.f32.gmra.mrb[20].mxu0 %vm350_vm1, %v8551_v16  ;;  %8600 = vmatmul.mubr.msk.f32.gmra.mrb[20].mxu1 %vm350_vm1, %v8551_v16 }
 0x270   :  { %671 = vmatprep.mubr.f32.mxu0 %v12804_v6  ;;  %760 = vmatprep.mubr.f32.mxu1 %v12804_v6 }
 0x273   :  { %8597 = vmatmul.mubr.msk.f32.gmra.mrb[22].mxu0 %vm350_vm1, %v8552_v17  ;;  %8601 = vmatmul.mubr.msk.f32.gmra.mrb[22].mxu1 %vm350_vm1, %v8552_v17 }
 0x274   :  { %895 = vmatprep.mubr.f32.mxu0 %v12804_v6  ;;  %984 = vmatprep.mubr.f32.mxu1 %v12804_v6 }
 0x33a   :  { %v655_v22 = vpop.f32.mrb[16].mxu0  ;;  %v744_v26 = vpop.f32.mrb[16].mxu1 }
 0x33b   :  { %v656_v27 = vadd.f32 %v655_v22, %v10038_v21  ;;  %v657_v30 = vpop.f32.mrb[17].mxu0  ;;  %v746_v31 = vpop.f32.mrb[17].mxu1  ;;  %v745_v36 = vadd.f32 %v744_v26, %v10038_v21 }
 0x33c   :  { %v658_v32 = vadd.f32 %v657_v30, %v10038_v21  ;;  %v747_v33 = vadd.f32 %v746_v31, %v10038_v21 }
 0x33d   :  { %v10047_v37 = vadd.f32 %v656_v27, %v9897_v55  ;;  %v10059_v55 = vpop.permute.xlu0 %569 }
 0x33e   :  { %v10050_v39 = vadd.f32 %v658_v32, %v9891_v51  ;;  %v661_v40 = vpop.f32.mrb[18].mxu0  ;;  %v750_v41 = vpop.f32.mrb[18].mxu1  ;;  %v10053_v42 = vadd.f32 %v747_v33, %v9894_v52  ;;  %v10062_v51 = vadd.f32 %v745_v36, %v9900_v56 }
 0x33f   :  { %v662_v43 = vadd.f32 %v661_v40, %v10043_v34  ;;  %v751_v44 = vadd.f32 %v750_v41, %v10043_v34  ;;  %v663_v46 = vpop.f32.mrb[19].mxu0  ;;  %v752_v47 = vpop.f32.mrb[19].mxu1  ;;  %v783_v60 = vmax.f32 %v10047_v37, 0.0 }
 0x340   :  { %v664_v48 = vadd.f32 %v663_v46, %v10043_v34  ;;  %v753_v49 = vadd.f32 %v752_v47, %v10043_v34  ;;  %v784_v3 = vmax.f32 %v10050_v39, 0.0  ;;  %v786_v7 = vmax.f32 %v10053_v42, 0.0 }
 0x341   :  { %v10065_v53 = vadd.f32 %v662_v43, %v9903_v57  ;;  %v10068_v52 = vadd.f32 %v751_v44, %v9906_v58  ;;  %v785_v11 = vmax.f32 %v10062_v51, 0.0 }
 0x342   :  { %v10072_v63 = vadd.f32 %v664_v48, %v9909_v61  ;;  %v10075_v0 = vadd.f32 %v753_v49, %v9912_v62  ;;  %v667_v1 = vpop.f32.mrb[20].mxu0  ;;  %v756_v2 = vpop.f32.mrb[20].mxu1 }
 0x343   :  { %v787_v56 = vmax.f32 %v10065_v53, 0.0  ;;  %v789_v57 = vmax.f32 %v10068_v52, 0.0  ;;  %v668_v4 = vadd.f32 %v667_v1, %v10059_v55  ;;  %v669_v58 = vpop.f32.mrb[21].mxu0  ;;  %v758_v5 = vpop.f32.mrb[21].mxu1  ;;  %v757_v12 = vadd.f32 %v756_v2, %v10059_v55 }
 0x344   :  { %v670_v61 = vadd.f32 %v669_v58, %v10059_v55  ;;  %v759_v8 = vadd.f32 %v758_v5, %v10059_v55  ;;  %v788_v62 = vmax.f32 %v10072_v63, 0.0  ;;  %v790_v9 = vmax.f32 %v10075_v0, 0.0  ;;  %v10151_v58 = vld [vmem:[%s12801_s2 + $0x50] sm:$0xff]  ;;  %v10162_v5 = vld [vmem:[%s12801_s2 + $0x58] sm:$0xff] }
 0x345   :  { %v10091_v13 = vadd.f32 %v668_v4, %v9927_v18  ;;  %v8948_v27 = vpack.c.bf16 %v787_v56, %v783_v60  ;;  %v8956_v40 = vpack.c.bf16 %v789_v57, %v785_v11  ;;  %v10104_v44 = vadd.f32 %v757_v12, %v9936_v23  ;;  %v10129_v57 = vld [vmem:[%s12801_s2 + $0x40] sm:$0xff]  ;;  %v10140_v4 = vld [vmem:[%s12801_s2 + $0x48] sm:$0xff]  ;;  %v10172_v11 = vpop.permute.xlu1 %806 }
 0x346   :  { %v673_v16 = vpop.f32.mrb[22].mxu0  ;;  %v762_v17 = vpop.f32.mrb[22].mxu1  ;;  %v8946_v22 = vpack.c.bf16 %v788_v62, %v784_v3  ;;  %v8954_v26 = vpack.c.bf16 %v790_v9, %v786_v7  ;;  %v10094_v30 = vadd.f32 %v670_v61, %v9930_v19  ;;  %v10099_v41 = vadd.f32 %v759_v8, %v9933_v20 }
 0x347   :  { %v674_v31 = vadd.f32 %v673_v16, %v10086_v10  ;;  %v763_v32 = vadd.f32 %v762_v17, %v10086_v10  ;;  %v675_v33 = vpop.f32.mrb[23].mxu0  ;;  %v764_v36 = vpop.f32.mrb[23].mxu1  ;;  %v791_v1 = vmax.f32 %v10091_v13, 0.0 }
 0x348   :  { %v676_v18 = vadd.f32 %v675_v33, %v10086_v10  ;;  %v765_v43 = vadd.f32 %v764_v36, %v10086_v10  ;;  %8947 = vmatprep.subr.bf16.mxu0 %v8946_v22  ;;  %8955 = vmatprep.subr.bf16.mxu1 %v8954_v26  ;;  %v792_v23 = vmax.f32 %v10094_v30, 0.0  ;;  %v794_v60 = vmax.f32 %v10099_v41, 0.0  ;;  %v10170_v9 = vpop.permute.xlu0 %801 }
 0x349   :  { %v10107_v19 = vadd.f32 %v674_v31, %v9939_v24  ;;  %v10110_v46 = vadd.f32 %v763_v32, %v9942_v25  ;;  %8949 = vmatpush1.bf16.msra.mxu0 %v8948_v27  ;;  %8957 = vmatpush1.bf16.msra.mxu1 %v8956_v40  ;;  %12942 = vst [vmem:[#allocation9_spill] sm:$0xff] %v10170_v9 }
 0x34a   :  { %v10113_v20 = vadd.f32 %v676_v18, %v9945_v28  ;;  %v10116_v47 = vadd.f32 %v765_v43, %v9948_v29  ;;  %v793_v28 = vmax.f32 %v10104_v44, 0.0 }
 0x34b   :  { %v795_v48 = vmax.f32 %v10107_v19, 0.0  ;;  %v797_v49 = vmax.f32 %v10110_v46, 0.0 }
 0x34c   :  { %v796_v24 = vmax.f32 %v10113_v20, 0.0  ;;  %v798_v25 = vmax.f32 %v10116_v47, 0.0 }
 0x34d   :  { %v8952_v29 = vpack.c.bf16 %v795_v48, %v791_v1  ;;  %v8960_v56 = vpack.c.bf16 %v797_v49, %v793_v28 }
 0x34e   :  { %v8950_v2 = vpack.c.bf16 %v796_v24, %v792_v23  ;;  %v8958_v3 = vpack.c.bf16 %v798_v25, %v794_v60 }
 0x350   :  { %8951 = vmatprep.subr.bf16.mxu0 %v8950_v2  ;;  %8959 = vmatprep.subr.bf16.mxu1 %v8958_v3 }
 0x351   :  { %8953 = vmatpush1.bf16.msra.mxu0 %v8952_v29  ;;  %8961 = vmatpush1.bf16.msra.mxu1 %v8960_v56 }
 0x354   :  { %8602 = vmatmul.mubr.msk.f32.vlgmr.msra.gmra.mrb[24].mxu0 %vm350_vm1, %v10129_v57  ;;  %8606 = vmatmul.mubr.msk.f32.vlgmr.msra.gmra.mrb[24].mxu1 %vm350_vm1, %v10129_v57 }
 0x355   :  { %901 = vmatprep.mubr.f32.mxu0 %v12804_v6  ;;  %990 = vmatprep.mubr.f32.mxu1 %v12804_v6 }
 0x358   :  { %8603 = vmatmul.mubr.msk.f32.gmra.mrb[26].mxu0 %vm350_vm1, %v10140_v4  ;;  %8607 = vmatmul.mubr.msk.f32.gmra.mrb[26].mxu1 %vm350_vm1, %v10140_v4 }
 0x359   :  { %907 = vmatprep.mubr.f32.mxu0 %v12804_v6  ;;  %996 = vmatprep.mubr.f32.mxu1 %v12804_v6 }
 0x35c   :  { %8604 = vmatmul.mubr.msk.f32.gmra.mrb[28].mxu0 %vm350_vm1, %v10151_v58  ;;  %8608 = vmatmul.mubr.msk.f32.gmra.mrb[28].mxu1 %vm350_vm1, %v10151_v58 }
 0x35d   :  { %913 = vmatprep.mubr.f32.mxu0 %v12804_v6  ;;  %1002 = vmatprep.mubr.f32.mxu1 %v12804_v6 }
 0x360   :  { %8605 = vmatmul.mubr.msk.f32.gmra.mrb[30].mxu0 %vm350_vm1, %v10162_v5  ;;  %8609 = vmatmul.mubr.msk.f32.gmra.mrb[30].mxu1 %vm350_vm1, %v10162_v5 }
 0x361   :  { %1121 = vmatprep.mubr.f32.mxu0 %v12804_v6  ;;  %1210 = vmatprep.mubr.f32.mxu1 %v12804_v6 }
 0x427   :  { %v897_v7 = vpop.f32.mrb[24].mxu0  ;;  %v986_v61 = vpop.f32.mrb[24].mxu1 }
 0x428   :  { %v899_v8 = vpop.f32.mrb[25].mxu0  ;;  %v988_v62 = vpop.f32.mrb[25].mxu1  ;;  %v898_v12 = vadd.f32 %v897_v7, %v10170_v9  ;;  %v987_v16 = vadd.f32 %v986_v61, %v10170_v9 }
 0x429   :  { %v900_v17 = vadd.f32 %v899_v8, %v10170_v9  ;;  %v989_v22 = vadd.f32 %v988_v62, %v10170_v9  ;;  %v10182_v61 = vpop.permute.xlu0 %811 }
 0x42a   :  { %v1009_v43 = vmax.f32 %v898_v12, 0.0  ;;  %v1011_v48 = vmax.f32 %v987_v16, 0.0 }
 0x42b   :  { %v903_v26 = vpop.f32.mrb[26].mxu0  ;;  %v992_v27 = vpop.f32.mrb[26].mxu1  ;;  %v1010_v24 = vmax.f32 %v900_v17, 0.0  ;;  %v1012_v60 = vmax.f32 %v989_v22, 0.0 }
 0x42c   :  { %v904_v31 = vadd.f32 %v903_v26, %v10172_v11  ;;  %v993_v32 = vadd.f32 %v992_v27, %v10172_v11  ;;  %v905_v33 = vpop.f32.mrb[27].mxu0  ;;  %v994_v36 = vpop.f32.mrb[27].mxu1 }
 0x42d   :  { %v906_v40 = vadd.f32 %v905_v33, %v10172_v11  ;;  %v995_v18 = vadd.f32 %v994_v36, %v10172_v11  ;;  %v10184_v26 = vpop.permute.xlu1 %816 }
 0x42e   :  { %v1013_v49 = vmax.f32 %v904_v31, 0.0  ;;  %v1015_v23 = vmax.f32 %v993_v32, 0.0 }
 0x42f   :  { %v1014_v25 = vmax.f32 %v906_v40, 0.0  ;;  %v1016_v1 = vmax.f32 %v995_v18, 0.0  ;;  %v909_v28 = vpop.f32.mrb[28].mxu0  ;;  %v998_v2 = vpop.f32.mrb[28].mxu1 }
 0x430   :  { %v8964_v3 = vpack.c.bf16 %v1013_v49, %v1009_v43  ;;  %v8972_v29 = vpack.c.bf16 %v1015_v23, %v1011_v48  ;;  %v911_v56 = vpop.f32.mrb[29].mxu0  ;;  %v1000_v7 = vpop.f32.mrb[29].mxu1  ;;  %v910_v12 = vadd.f32 %v909_v28, %v10182_v61  ;;  %v999_v16 = vadd.f32 %v998_v2, %v10182_v61 }
 0x431   :  { %v8962_v8 = vpack.c.bf16 %v1014_v25, %v1010_v24  ;;  %v8970_v62 = vpack.c.bf16 %v1016_v1, %v1012_v60  ;;  %v912_v17 = vadd.f32 %v911_v56, %v10182_v61  ;;  %v1001_v22 = vadd.f32 %v1000_v7, %v10182_v61 }
 0x432   :  { %v1017_v48 = vmax.f32 %v910_v12, 0.0  ;;  %v1019_v49 = vmax.f32 %v999_v16, 0.0  ;;  %v10230_v12 = vld [vmem:[%s12801_s2 + $0x78] sm:$0xff] }
 0x433   :  { %v915_v27 = vpop.f32.mrb[30].mxu0  ;;  %v1004_v31 = vpop.f32.mrb[30].mxu1  ;;  %8963 = vmatprep.subr.bf16.mxu0 %v8962_v8  ;;  %8971 = vmatprep.subr.bf16.mxu1 %v8970_v62  ;;  %v1018_v60 = vmax.f32 %v912_v17, 0.0  ;;  %v1020_v25 = vmax.f32 %v1001_v22, 0.0  ;;  %v10219_v62 = vld [vmem:[%s12801_s2 + $0x70] sm:$0xff] }
 0x434   :  { %v916_v32 = vadd.f32 %v915_v27, %v10184_v26  ;;  %v1005_v33 = vadd.f32 %v1004_v31, %v10184_v26  ;;  %v917_v36 = vpop.f32.mrb[31].mxu0  ;;  %v1006_v40 = vpop.f32.mrb[31].mxu1  ;;  %8965 = vmatpush1.bf16.msra.mxu0 %v8964_v3  ;;  %8973 = vmatpush1.bf16.msra.mxu1 %v8972_v29  ;;  %v10197_v3 = vld [vmem:[%s12801_s2 + $0x60] sm:$0xff]  ;;  %v10208_v29 = vld [vmem:[%s12801_s2 + $0x68] sm:$0xff] }
 0x435   :  { %v918_v18 = vadd.f32 %v917_v36, %v10184_v26  ;;  %v1007_v43 = vadd.f32 %v1006_v40, %v10184_v26  ;;  %v10238_v31 = vpop.permute.xlu0 %1027 }
 0x436   :  { %v1021_v23 = vmax.f32 %v916_v32, 0.0  ;;  %v1023_v24 = vmax.f32 %v1005_v33, 0.0  ;;  %v10240_v32 = vpop.permute.xlu1 %1032 }
 0x437   :  { %v1022_v1 = vmax.f32 %v918_v18, 0.0  ;;  %v1024_v28 = vmax.f32 %v1007_v43, 0.0 }
 0x438   :  { %v8968_v2 = vpack.c.bf16 %v1021_v23, %v1017_v48  ;;  %v8976_v56 = vpack.c.bf16 %v1023_v24, %v1019_v49 }
 0x439   :  { %v8966_v7 = vpack.c.bf16 %v1022_v1, %v1018_v60  ;;  %v8974_v8 = vpack.c.bf16 %v1024_v28, %v1020_v25 }
 0x43b   :  { %8967 = vmatprep.subr.bf16.mxu0 %v8966_v7  ;;  %8975 = vmatprep.subr.bf16.mxu1 %v8974_v8 }
 0x43c   :  { %8969 = vmatpush1.bf16.msra.mxu0 %v8968_v2  ;;  %8977 = vmatpush1.bf16.msra.mxu1 %v8976_v56 }
 0x43f   :  { %8610 = vmatmul.mubr.msk.f32.vlgmr.msra.gmra.mrb[32].mxu0 %vm350_vm1, %v10197_v3  ;;  %8614 = vmatmul.mubr.msk.f32.vlgmr.msra.gmra.mrb[32].mxu1 %vm350_vm1, %v10197_v3 }
 0x440   :  { %1127 = vmatprep.mubr.f32.mxu0 %v12804_v6  ;;  %1216 = vmatprep.mubr.f32.mxu1 %v12804_v6 }
 0x443   :  { %8611 = vmatmul.mubr.msk.f32.gmra.mrb[34].mxu0 %vm350_vm1, %v10208_v29  ;;  %8615 = vmatmul.mubr.msk.f32.gmra.mrb[34].mxu1 %vm350_vm1, %v10208_v29 }
 0x444   :  { %1133 = vmatprep.mubr.f32.mxu0 %v12804_v6  ;;  %1222 = vmatprep.mubr.f32.mxu1 %v12804_v6 }
 0x447   :  { %8612 = vmatmul.mubr.msk.f32.gmra.mrb[36].mxu0 %vm350_vm1, %v10219_v62  ;;  %8616 = vmatmul.mubr.msk.f32.gmra.mrb[36].mxu1 %vm350_vm1, %v10219_v62 }
 0x448   :  { %1139 = vmatprep.mubr.f32.mxu0 %v12804_v6  ;;  %1228 = vmatprep.mubr.f32.mxu1 %v12804_v6 }
 0x44b   :  { %8613 = vmatmul.mubr.msk.f32.gmra.mrb[38].mxu0 %vm350_vm1, %v10230_v12  ;;  %8617 = vmatmul.mubr.msk.f32.gmra.mrb[38].mxu1 %vm350_vm1, %v10230_v12 }
 0x44c   :  { %1331 = vmatprep.mubr.f32.mxu0 %v12804_v6  ;;  %1408 = vmatprep.mubr.f32.mxu1 %v12804_v6 }
 0x512   :  { %v1123_v16 = vpop.f32.mrb[32].mxu0  ;;  %v1212_v17 = vpop.f32.mrb[32].mxu1 }
 0x513   :  { %v1125_v22 = vpop.f32.mrb[33].mxu0  ;;  %v1214_v27 = vpop.f32.mrb[33].mxu1  ;;  %v1124_v33 = vadd.f32 %v1123_v16, %v10238_v31  ;;  %v1213_v36 = vadd.f32 %v1212_v17, %v10238_v31 }
 0x514   :  { %v1126_v40 = vadd.f32 %v1125_v22, %v10238_v31  ;;  %v1215_v18 = vadd.f32 %v1214_v27, %v10238_v31 }
 0x515   :  { %v1235_v28 = vadd.f32 %v1124_v33, %v10047_v37  ;;  %v1237_v2 = vadd.f32 %v1213_v36, %v10062_v51  ;;  %v10258_v33 = vpop.permute.xlu0 %1037  ;;  %v10260_v36 = vpop.permute.xlu1 %1042 }
 0x516   :  { %v1129_v43 = vpop.f32.mrb[34].mxu0  ;;  %v1218_v48 = vpop.f32.mrb[34].mxu1  ;;  %v1236_v8 = vadd.f32 %v1126_v40, %v10050_v39  ;;  %v1238_v16 = vadd.f32 %v1215_v18, %v10053_v42  ;;  %12943 = vst [vmem:[#allocation10_spill] sm:$0xff] %v10258_v33  ;;  %12944 = vst [vmem:[#allocation11_spill] sm:$0xff] %v10260_v36 }
 0x517   :  { %v1130_v49 = vadd.f32 %v1129_v43, %v10240_v32  ;;  %v1219_v23 = vadd.f32 %v1218_v48, %v10240_v32  ;;  %v1131_v24 = vpop.f32.mrb[35].mxu0  ;;  %v1220_v60 = vpop.f32.mrb[35].mxu1 }
 0x518   :  { %v1132_v25 = vadd.f32 %v1131_v24, %v10240_v32  ;;  %v1221_v1 = vadd.f32 %v1220_v60, %v10240_v32 }
 0x519   :  { %v1239_v56 = vadd.f32 %v1130_v49, %v10065_v53  ;;  %v1241_v7 = vadd.f32 %v1219_v23, %v10068_v52 }
 0x51a   :  { %v1240_v17 = vadd.f32 %v1132_v25, %v10072_v63  ;;  %v1242_v22 = vadd.f32 %v1221_v1, %v10075_v0  ;;  %v1135_v27 = vpop.f32.mrb[36].mxu0  ;;  %v1224_v43 = vpop.f32.mrb[36].mxu1 }
 0x51b   :  { %v1137_v48 = vpop.f32.mrb[37].mxu0  ;;  %v1226_v24 = vpop.f32.mrb[37].mxu1  ;;  %v8980_v60 = vpack.c.bf16 %v1239_v56, %v1235_v28  ;;  %v8988_v37 = vpack.c.bf16 %v1241_v7, %v1237_v2  ;;  %v1136_v39 = vadd.f32 %v1135_v27, %v10258_v33  ;;  %v1225_v42 = vadd.f32 %v1224_v43, %v10258_v33 }
 0x51c   :  { %v8978_v51 = vpack.c.bf16 %v1240_v17, %v1236_v8  ;;  %v8986_v53 = vpack.c.bf16 %v1242_v22, %v1238_v16  ;;  %v1138_v52 = vadd.f32 %v1137_v48, %v10258_v33  ;;  %v1227_v63 = vadd.f32 %v1226_v24, %v10258_v33 }
 0x51d   :  { %v1243_v2 = vadd.f32 %v1136_v39, %v10091_v13  ;;  %v1245_v56 = vadd.f32 %v1225_v42, %v10104_v44  ;;  %v10281_v13 = vld [vmem:[%s12802_s4] sm:$0xff] }
 0x51e   :  { %v1141_v0 = vpop.f32.mrb[38].mxu0  ;;  %v1230_v40 = vpop.f32.mrb[38].mxu1  ;;  %8979 = vmatprep.subr.bf16.mxu0 %v8978_v51  ;;  %8987 = vmatprep.subr.bf16.mxu1 %v8986_v53  ;;  %v1244_v16 = vadd.f32 %v1138_v52, %v10094_v30  ;;  %v1246_v17 = vadd.f32 %v1227_v63, %v10099_v41  ;;  %12945 = vst [vmem:[#allocation12_spill] sm:$0xff] %v10281_v13  ;;  %v10292_v30 = vld [vmem:[%s12802_s4 + $0x8] sm:$0xff] }
 0x51f   :  { %v1142_v18 = vadd.f32 %v1141_v0, %v10260_v36  ;;  %v1231_v49 = vadd.f32 %v1230_v40, %v10260_v36  ;;  %v1143_v23 = vpop.f32.mrb[39].mxu0  ;;  %v1232_v25 = vpop.f32.mrb[39].mxu1  ;;  %8981 = vmatpush1.bf16.msra.mxu0 %v8980_v60  ;;  %8989 = vmatpush1.bf16.msra.mxu1 %v8988_v37  ;;  %12946 = vst [vmem:[#allocation13_spill] sm:$0xff] %v10292_v30 }
 0x520   :  { %v1144_v1 = vadd.f32 %v1143_v23, %v10260_v36  ;;  %v1233_v28 = vadd.f32 %v1232_v25, %v10260_v36  ;;  %v10300_v41 = vpop.permute.xlu0 %1253 }
 0x521   :  { %v1247_v7 = vadd.f32 %v1142_v18, %v10107_v19  ;;  %v1249_v8 = vadd.f32 %v1231_v49, %v10110_v46  ;;  %12947 = vst [vmem:[#allocation14_spill] sm:$0xff] %v10300_v41 }
 0x522   :  { %v1248_v22 = vadd.f32 %v1144_v1, %v10113_v20  ;;  %v1250_v27 = vadd.f32 %v1233_v28, %v10116_v47 }
 0x523   :  { %v8984_v43 = vpack.c.bf16 %v1247_v7, %v1243_v2  ;;  %v8992_v48 = vpack.c.bf16 %v1249_v8, %v1245_v56 }
 0x524   :  { %v8982_v24 = vpack.c.bf16 %v1248_v22, %v1244_v16  ;;  %v8990_v60 = vpack.c.bf16 %v1250_v27, %v1246_v17 }
 0x526   :  { %8983 = vmatprep.subr.bf16.mxu0 %v8982_v24  ;;  %8991 = vmatprep.subr.bf16.mxu1 %v8990_v60 }
 0x527   :  { %8985 = vmatpush1.bf16.msra.mxu0 %v8984_v43  ;;  %8993 = vmatpush1.bf16.msra.mxu1 %v8992_v48 }
 0x52a   :  { %8618 = vmatmul.mubr.msk.f32.vlgmr.msra.gmra.mrb[40].mxu0 %vm350_vm1, %v10281_v13  ;;  %8620 = vmatmul.mubr.msk.f32.vlgmr.msra.gmra.mrb[40].mxu1 %vm350_vm1, %v10281_v13 }
 0x52b   :  { %1337 = vmatprep.mubr.f32.mxu0 %v12804_v6  ;;  %1414 = vmatprep.mubr.f32.mxu1 %v12804_v6 }
 0x52e   :  { %8619 = vmatmul.mubr.msk.f32.gmra.mrb[42].mxu0 %vm350_vm1, %v10292_v30  ;;  %8621 = vmatmul.mubr.msk.f32.gmra.mrb[42].mxu1 %vm350_vm1, %v10292_v30 }
 0x52f   :  { %1525 = vmatprep.mubr.f32.mxu0 %v12804_v6  ;;  %1614 = vmatprep.mubr.f32.mxu1 %v12804_v6 }
 0x5fd   :  { %v1333_v44 = vpop.f32.mrb[40].mxu0  ;;  %v1410_v19 = vpop.f32.mrb[40].mxu1 }
 0x5fe   :  { %v1334_v46 = vadd.f32 %v1333_v44, %v10300_v41  ;;  %v1411_v20 = vadd.f32 %v1410_v19, %v10300_v41  ;;  %v1335_v47 = vpop.f32.mrb[41].mxu0  ;;  %v1412_v37 = vpop.f32.mrb[41].mxu1 }
 0x5ff   :  { %v1336_v51 = vadd.f32 %v1335_v47, %v10300_v41  ;;  %v1413_v53 = vadd.f32 %v1412_v37, %v10300_v41  ;;  %v10306_v44 = vpop.permute.xlu1 %1258  ;;  %v10315_v37 = vld [vmem:[%s12799_s0] sm:$0xff] }
 0x600   :  { %v8622_v39 = vmul.f32 -1.442695, %v1334_v46  ;;  %v8624_v42 = vmul.f32 -1.442695, %v1411_v20  ;;  %12948 = vst [vmem:[#allocation15_spill] sm:$0xff] %v10306_v44  ;;  %12949 = vst [vmem:[#allocation16_spill] sm:$0xff] %v10315_v37 }
 0x601   :  { %v8623_v52 = vmul.f32 -1.442695, %v1336_v51  ;;  %v8625_v63 = vmul.f32 -1.442695, %v1413_v53  ;;  %v1339_v0 = vpop.f32.mrb[42].mxu0  ;;  %v1416_v40 = vpop.f32.mrb[42].mxu1 }
 0x602   :  { %9480 = vpow2.f32 %v8622_v39  ;;  %v1341_v18 = vpop.f32.mrb[43].mxu0  ;;  %v1418_v49 = vpop.f32.mrb[43].mxu1  ;;  %v1340_v19 = vadd.f32 %v1339_v0, %v10306_v44  ;;  %v1417_v46 = vadd.f32 %v1416_v40, %v10306_v44  ;;  %v10321_v39 = vld [vmem:[%s12799_s0 + $0x10] sm:$0xff] }
 0x603   :  { %9482 = vpow2.f32 %v8624_v42  ;;  %v1342_v20 = vadd.f32 %v1341_v18, %v10306_v44  ;;  %v1419_v47 = vadd.f32 %v1418_v49, %v10306_v44  ;;  %12950 = vst [vmem:[#allocation17_spill] sm:$0xff] %v10321_v39  ;;  %v10333_v49 = vld [vmem:[%s12799_s0 + $0x18] sm:$0xff] }
 0x604   :  { %9484 = vpow2.f32 %v8623_v52  ;;  %v1449_v51 = vsub.f32 %v10315_v37, %v1340_v19  ;;  %v1451_v42 = vsub.f32 %v10321_v39, %v1417_v46  ;;  %12952 = vst [vmem:[#allocation19_spill] sm:$0xff] %v10333_v49 }
 0x605   :  { %9486 = vpow2.f32 %v8625_v63  ;;  %v10327_v63 = vld [vmem:[%s12799_s0 + $0x8] sm:$0xff] }
 0x606   :  { %12951 = vst [vmem:[#allocation18_spill] sm:$0xff] %v10327_v63  ;;  %v1450_v0 = vsub.f32 %v10327_v63, %v1342_v20 }
 0x60c   :  { %v9481_v23 = vpop.eup %9480 }
 0x60d   :  { %v9483_v25 = vpop.eup %9482  ;;  %v1433_v1 = vadd.f32 1.0, %v9481_v23  ;;  %v1452_v23 = vsub.f32 %v10333_v49, %v1419_v47 }
 0x60e   :  { %v9485_v28 = vpop.eup %9484  ;;  %v1435_v2 = vadd.f32 1.0, %v9483_v25 }
 0x60f   :  { %v9487_v56 = vpop.eup %9486  ;;  %9488 = vrcp.f32 %v1433_v1  ;;  %v1434_v7 = vadd.f32 1.0, %v9485_v28 }
 0x610   :  { %9490 = vrcp.f32 %v1435_v2  ;;  %v1436_v8 = vadd.f32 1.0, %v9487_v56  ;;  %v10339_v56 = vld [vmem:[%s12800_s1] sm:$0xff] }
 0x611   :  { %9492 = vrcp.f32 %v1434_v7  ;;  %12953 = vst [vmem:[#allocation20_spill] sm:$0xff] %v10339_v56  ;;  %v10350_v7 = vld [vmem:[%s12800_s1 + $0x8] sm:$0xff] }
 0x612   :  { %9494 = vrcp.f32 %v1436_v8  ;;  %12954 = vst [vmem:[#allocation21_spill] sm:$0xff] %v10350_v7  ;;  %v10361_v8 = vld [vmem:[%s12800_s1 + $0x10] sm:$0xff] }
 0x613   :  { %12955 = vst [vmem:[#allocation22_spill] sm:$0xff] %v10361_v8 }
 0x619   :  { %v9489_v16 = vpop.eup %9488 }
 0x61a   :  { %v9491_v17 = vpop.eup %9490  ;;  %v1445_v22 = vadd.f32 0.001, %v9489_v16  ;;  %v10372_v16 = vld [vmem:[%s12800_s1 + $0x18] sm:$0xff] }
 0x61b   :  { %v9493_v27 = vpop.eup %9492  ;;  %v1447_v43 = vadd.f32 0.001, %v9491_v17  ;;  %12956 = vst [vmem:[#allocation23_spill] sm:$0xff] %v10372_v16 }
 0x61c   :  { %v9495_v48 = vpop.eup %9494  ;;  %9496 = vrcp.f32 %v1445_v22  ;;  %v1446_v24 = vadd.f32 0.001, %v9493_v27 }
 0x61d   :  { %9498 = vrcp.f32 %v1447_v43  ;;  %v1448_v60 = vadd.f32 0.001, %v9495_v48 }
 0x61e   :  { %9500 = vrcp.f32 %v1446_v24 }
 0x61f   :  { %9502 = vrcp.f32 %v1448_v60 }
 0x626   :  { %v9497_v53 = vpop.eup %9496 }
 0x627   :  { %v9499_v52 = vpop.eup %9498  ;;  %v1454_v40 = vmul.f32 %v9497_v53, %v1449_v51 }
 0x628   :  { %v9501_v18 = vpop.eup %9500  ;;  %v1458_v25 = vmul.f32 %v9499_v52, %v1451_v42 }
 0x629   :  { %v9503_v1 = vpop.eup %9502  ;;  %v1456_v28 = vmul.f32 %v9501_v18, %v1450_v0 }
 0x62a   :  { %v1460_v2 = vmul.f32 %v9503_v1, %v1452_v23 }
 0x62b   :  { %1461 = vmatprep.subr.mxu0 %v1456_v28 }
 0x62c   :  { %1550 = vmatprep.subr.mxu1 %v1460_v2  ;;  %1462 = vmatpush1.msra.mxu0 %v1454_v40 }
 0x62d   :  { %1551 = vmatpush1.msra.mxu1 %v1458_v25  ;;  %8626 = vmatmul.mubr.msk.f32.vlgmr.msra.gmra.mrb[44].mxu0 %vm123_vm0, %v10339_v56 }
 0x62e   :  { %8630 = vmatmul.mubr.msk.f32.vlgmr.msra.gmra.mrb[44].mxu1 %vm123_vm0, %v10339_v56  ;;  %1531 = vmatprep.mubr.f32.mxu0 %v12804_v6 }
 0x62f   :  { %1620 = vmatprep.mubr.f32.mxu1 %v12804_v6 }
 0x631   :  { %8627 = vmatmul.mubr.msk.f32.gmra.mrb[46].mxu0 %vm123_vm0, %v10350_v7 }
 0x632   :  { %8631 = vmatmul.mubr.msk.f32.gmra.mrb[46].mxu1 %vm123_vm0, %v10350_v7  ;;  %1537 = vmatprep.mubr.f32.mxu0 %v12804_v6 }
 0x633   :  { %1626 = vmatprep.mubr.f32.mxu1 %v12804_v6 }
 0x635   :  { %8628 = vmatmul.mubr.msk.f32.gmra.mrb[48].mxu0 %vm123_vm0, %v10361_v8 }
 0x636   :  { %8632 = vmatmul.mubr.msk.f32.gmra.mrb[48].mxu1 %vm123_vm0, %v10361_v8  ;;  %1543 = vmatprep.mubr.f32.mxu0 %v12804_v6 }
 0x637   :  { %1632 = vmatprep.mubr.f32.mxu1 %v12804_v6 }
 0x639   :  { %8629 = vmatmul.mubr.msk.f32.gmra.mrb[50].mxu0 %vm123_vm0, %v10372_v16 }
 0x63a   :  { %8633 = vmatmul.mubr.msk.f32.gmra.mrb[50].mxu1 %vm123_vm0, %v10372_v16  ;;  %1719 = vmatprep.mubr.f32.mxu0 %v12804_v6 }
 0x63b   :  { %1808 = vmatprep.mubr.f32.mxu1 %v12804_v6 }
 0x700   :  { %v1527_v17 = vpop.f32.mrb[44].mxu0 }
 0x701   :  { %v1616_v22 = vpop.f32.mrb[44].mxu1  ;;  %v1529_v27 = vpop.f32.mrb[45].mxu0  ;;  %v10384_v60 = vadd.f32 %v1527_v17, %v9886_v45 }
 0x702   :  { %v1618_v43 = vpop.f32.mrb[45].mxu1  ;;  %v10381_v48 = vadd.f32 %v1529_v27, %v9886_v45  ;;  %v10393_v51 = vadd.f32 %v1616_v22, %v9886_v45 }
 0x703   :  { %v10387_v19 = vadd.f32 %v1618_v43, %v9886_v45  ;;  %v1639_v28 = vmax.f32 %v10384_v60, 0.0 }
 0x704   :  { %v1533_v24 = vpop.f32.mrb[46].mxu0  ;;  %v1640_v18 = vmax.f32 %v10381_v48, 0.0  ;;  %v1641_v43 = vmax.f32 %v10393_v51, 0.0 }
 0x705   :  { %v10390_v46 = vadd.f32 %v1533_v24, %v9888_v50  ;;  %v1622_v20 = vpop.f32.mrb[46].mxu1  ;;  %v1535_v47 = vpop.f32.mrb[47].mxu0  ;;  %v1642_v2 = vmax.f32 %v10387_v19, 0.0 }
 0x706   :  { %v10396_v53 = vadd.f32 %v1622_v20, %v9888_v50  ;;  %v10399_v42 = vadd.f32 %v1535_v47, %v9888_v50  ;;  %v1624_v52 = vpop.f32.mrb[47].mxu1 }
 0x707   :  { %v1643_v0 = vmax.f32 %v10390_v46, 0.0  ;;  %v10403_v40 = vadd.f32 %v1624_v52, %v9888_v50 }
 0x708   :  { %v1645_v23 = vmax.f32 %v10396_v53, 0.0  ;;  %v1644_v25 = vmax.f32 %v10399_v42, 0.0  ;;  %v1539_v1 = vpop.f32.mrb[48].mxu0 }
 0x709   :  { %v1646_v17 = vmax.f32 %v10403_v40, 0.0  ;;  %v1628_v22 = vpop.f32.mrb[48].mxu1  ;;  %v1541_v27 = vpop.f32.mrb[49].mxu0  ;;  %v8996_v52 = vpack.c.bf16 %v1643_v0, %v1639_v28  ;;  %v10416_v16 = vadd.f32 %v1539_v1, %v9922_v14 }
 0x70a   :  { %v1630_v24 = vpop.f32.mrb[49].mxu1  ;;  %v8994_v20 = vpack.c.bf16 %v1644_v25, %v1640_v18  ;;  %v10413_v6 = vadd.f32 %v1541_v27, %v9922_v14  ;;  %v9004_v45 = vpack.c.bf16 %v1645_v23, %v1641_v43  ;;  %v10425_v0 = vadd.f32 %v1628_v22, %v9922_v14 }
 0x70b   :  { %v9002_v47 = vpack.c.bf16 %v1646_v17, %v1642_v2  ;;  %v10419_v8 = vadd.f32 %v1630_v24, %v9922_v14  ;;  %v1647_v27 = vmax.f32 %v10416_v16, 0.0 }
 0x70c   :  { %v1545_v50 = vpop.f32.mrb[50].mxu0  ;;  %8995 = vmatprep.subr.bf16.mxu0 %v8994_v20  ;;  %v1648_v2 = vmax.f32 %v10413_v6, 0.0  ;;  %v1649_v24 = vmax.f32 %v10425_v0, 0.0 }
 0x70d   :  { %v10422_v7 = vadd.f32 %v1545_v50, %v9924_v15  ;;  %v1634_v56 = vpop.f32.mrb[50].mxu1  ;;  %9003 = vmatprep.subr.bf16.mxu1 %v9002_v47  ;;  %v1547_v18 = vpop.f32.mrb[51].mxu0  ;;  %8997 = vmatpush1.bf16.msra.mxu0 %v8996_v52 }
 0x70e   :  { %v10428_v25 = vadd.f32 %v1634_v56, %v9924_v15  ;;  %v10431_v23 = vadd.f32 %v1547_v18, %v9924_v15  ;;  %v1636_v1 = vpop.f32.mrb[51].mxu1  ;;  %9005 = vmatpush1.bf16.msra.mxu1 %v9004_v45  ;;  %v1650_v56 = vmax.f32 %v10419_v8, 0.0  ;;  %v10447_v18 = vld [vmem:[%s12801_s2] sm:$0xff] }
 0x70f   :  { %v1651_v28 = vmax.f32 %v10422_v7, 0.0  ;;  %v10435_v50 = vadd.f32 %v1636_v1, %v9924_v15  ;;  %12957 = vst [vmem:[#allocation24_spill] sm:$0xff] %v10447_v18  ;;  %v12958_v1 = vmov 0.0  }
 0x710   :  { %v1653_v17 = vmax.f32 %v10428_v25, 0.0  ;;  %v1652_v22 = vmax.f32 %v10431_v23, 0.0 }
 0x711   :  { %v1654_v43 = vmax.f32 %v10435_v50, 0.0  ;;  %v9000_v47 = vpack.c.bf16 %v1651_v28, %v1647_v27  ;;  %v10458_v28 = vld [vmem:[%s12801_s2 + $0x8] sm:$0xff] }
 0x712   :  { %v8998_v45 = vpack.c.bf16 %v1652_v22, %v1648_v2  ;;  %v9008_v52 = vpack.c.bf16 %v1653_v17, %v1649_v24  ;;  %12959 = vst [vmem:[#allocation25_spill] sm:$0xff] %v10458_v28  ;;  %v10469_v2 = vld [vmem:[%s12801_s2 + $0x10] sm:$0xff]  ;;  %v10480_v17 = vld [vmem:[%s12801_s2 + $0x18] sm:$0xff] }
 0x713   :  { %v9006_v20 = vpack.c.bf16 %v1654_v43, %v1650_v56  ;;  %12960 = vst [vmem:[#allocation26_spill] sm:$0xff] %v10469_v2  ;;  %12961 = vst [vmem:[#allocation27_spill] sm:$0xff] %v10480_v17 }
 0x714   :  { %8999 = vmatprep.subr.bf16.mxu0 %v8998_v45 }
 0x715   :  { %9007 = vmatprep.subr.bf16.mxu1 %v9006_v20  ;;  %9001 = vmatpush1.bf16.msra.mxu0 %v9000_v47 }
 0x716   :  { %9009 = vmatpush1.bf16.msra.mxu1 %v9008_v52 }
 0x718   :  { %8634 = vmatmul.mubr.msk.f32.vlgmr.msra.gmra.mrb[52].mxu0 %vm350_vm1, %v10447_v18 }
 0x719   :  { %8638 = vmatmul.mubr.msk.f32.vlgmr.msra.gmra.mrb[52].mxu1 %vm350_vm1, %v10447_v18  ;;  %1725 = vmatprep.mubr.f32.mxu0 %v12958_v1 }
 0x71a   :  { %1814 = vmatprep.mubr.f32.mxu1 %v12958_v1 }
 0x71c   :  { %8635 = vmatmul.mubr.msk.f32.gmra.mrb[54].mxu0 %vm350_vm1, %v10458_v28 }
 0x71d   :  { %8639 = vmatmul.mubr.msk.f32.gmra.mrb[54].mxu1 %vm350_vm1, %v10458_v28  ;;  %1731 = vmatprep.mubr.f32.mxu0 %v12958_v1 }
 0x71e   :  { %1820 = vmatprep.mubr.f32.mxu1 %v12958_v1 }
 0x720   :  { %8636 = vmatmul.mubr.msk.f32.gmra.mrb[56].mxu0 %vm350_vm1, %v10469_v2 }
 0x721   :  { %8640 = vmatmul.mubr.msk.f32.gmra.mrb[56].mxu1 %vm350_vm1, %v10469_v2  ;;  %1737 = vmatprep.mubr.f32.mxu0 %v12958_v1 }
 0x722   :  { %1826 = vmatprep.mubr.f32.mxu1 %v12958_v1 }
 0x724   :  { %8637 = vmatmul.mubr.msk.f32.gmra.mrb[58].mxu0 %vm350_vm1, %v10480_v17 }
 0x725   :  { %8641 = vmatmul.mubr.msk.f32.gmra.mrb[58].mxu1 %vm350_vm1, %v10480_v17  ;;  %1913 = vmatprep.mubr.f32.mxu0 %v12958_v1 }
 0x726   :  { %2002 = vmatprep.mubr.f32.mxu1 %v12958_v1 }
 0x7eb   :  { %v1721_v22 = vpop.f32.mrb[52].mxu0 }
 0x7ec   :  { %v1810_v27 = vpop.f32.mrb[52].mxu1  ;;  %v1723_v56 = vpop.f32.mrb[53].mxu0  ;;  %v1722_v24 = vadd.f32 %v1721_v22, %v9986_v54 }
 0x7ed   :  { %v1812_v43 = vpop.f32.mrb[53].mxu1  ;;  %v1811_v45 = vadd.f32 %v1810_v27, %v9986_v54  ;;  %v1724_v20 = vadd.f32 %v1723_v56, %v9986_v54 }
 0x7ee   :  { %v1813_v52 = vadd.f32 %v1812_v43, %v9986_v54  ;;  %v1833_v49 = vmax.f32 %v1722_v24, 0.0 }
 0x7ef   :  { %v1727_v47 = vpop.f32.mrb[54].mxu0  ;;  %v1835_v39 = vmax.f32 %v1811_v45, 0.0  ;;  %v1834_v27 = vmax.f32 %v1724_v20, 0.0 }
 0x7f0   :  { %v1728_v2 = vadd.f32 %v1727_v47, %v9988_v59  ;;  %v1816_v17 = vpop.f32.mrb[54].mxu1  ;;  %v1729_v28 = vpop.f32.mrb[55].mxu0  ;;  %v1836_v41 = vmax.f32 %v1813_v52, 0.0 }
 0x7f1   :  { %v1817_v18 = vadd.f32 %v1816_v17, %v9988_v59  ;;  %v1730_v15 = vadd.f32 %v1729_v28, %v9988_v59  ;;  %v1818_v14 = vpop.f32.mrb[55].mxu1 }
 0x7f2   :  { %v1837_v63 = vmax.f32 %v1728_v2, 0.0  ;;  %v1819_v22 = vadd.f32 %v1818_v14, %v9988_v59 }
 0x7f3   :  { %v1839_v37 = vmax.f32 %v1817_v18, 0.0  ;;  %v1838_v56 = vmax.f32 %v1730_v15, 0.0  ;;  %v1733_v44 = vpop.f32.mrb[56].mxu0 }
 0x7f4   :  { %v9012_v43 = vpack.c.bf16 %v1837_v63, %v1833_v49  ;;  %v1840_v54 = vmax.f32 %v1819_v22, 0.0  ;;  %v1822_v47 = vpop.f32.mrb[56].mxu1  ;;  %v1735_v30 = vpop.f32.mrb[57].mxu0  ;;  %v1734_v28 = vadd.f32 %v1733_v44, %v9998_v35 }
 0x7f5   :  { %v9020_v13 = vpack.c.bf16 %v1839_v37, %v1835_v39  ;;  %v9010_v36 = vpack.c.bf16 %v1838_v56, %v1834_v27  ;;  %v1824_v17 = vpop.f32.mrb[57].mxu1  ;;  %v1823_v2 = vadd.f32 %v1822_v47, %v9998_v35  ;;  %v1736_v14 = vadd.f32 %v1735_v30, %v9998_v35 }
 0x7f6   :  { %v9018_v33 = vpack.c.bf16 %v1840_v54, %v1836_v41  ;;  %v1825_v15 = vadd.f32 %v1824_v17, %v9998_v35  ;;  %v1841_v44 = vmax.f32 %v1734_v28, 0.0  ;;  %v10518_v17 = vld [vmem:[%s12801_s2 + $0x28] sm:$0xff]  ;;  %v10529_v28 = vld [vmem:[%s12801_s2 + $0x30] sm:$0xff] }
 0x7f7   :  { %v1739_v24 = vpop.f32.mrb[58].mxu0  ;;  %9011 = vmatprep.subr.bf16.mxu0 %v9010_v36  ;;  %v1843_v45 = vmax.f32 %v1823_v2, 0.0  ;;  %v1842_v36 = vmax.f32 %v1736_v14, 0.0  ;;  %v10540_v2 = vld [vmem:[%s12801_s2 + $0x38] sm:$0xff] }
 0x7f8   :  { %v1740_v18 = vadd.f32 %v1739_v24, %v10000_v38  ;;  %v1828_v63 = vpop.f32.mrb[58].mxu1  ;;  %9019 = vmatprep.subr.bf16.mxu1 %v9018_v33  ;;  %v1741_v49 = vpop.f32.mrb[59].mxu0  ;;  %9013 = vmatpush1.bf16.msra.mxu0 %v9012_v43  ;;  %v1844_v22 = vmax.f32 %v1825_v15, 0.0  ;;  %12962 = vst [vmem:[#allocation28_spill] sm:$0xff] %v10540_v2 }
 0x7f9   :  { %v1829_v37 = vadd.f32 %v1828_v63, %v10000_v38  ;;  %v1742_v54 = vadd.f32 %v1741_v49, %v10000_v38  ;;  %v1830_v41 = vpop.f32.mrb[59].mxu1  ;;  %9021 = vmatpush1.bf16.msra.mxu1 %v9020_v13  ;;  %v10507_v13 = vld [vmem:[%s12801_s2 + $0x20] sm:$0xff] }
 0x7fa   :  { %v1845_v39 = vmax.f32 %v1740_v18, 0.0  ;;  %v1831_v30 = vadd.f32 %v1830_v41, %v10000_v38 }
 0x7fb   :  { %v1847_v20 = vmax.f32 %v1829_v37, 0.0  ;;  %v1846_v52 = vmax.f32 %v1742_v54, 0.0 }
 0x7fc   :  { %v9016_v27 = vpack.c.bf16 %v1845_v39, %v1841_v44  ;;  %v1848_v56 = vmax.f32 %v1831_v30, 0.0 }
 0x7fd   :  { %v9024_v33 = vpack.c.bf16 %v1847_v20, %v1843_v45  ;;  %v9014_v47 = vpack.c.bf16 %v1846_v52, %v1842_v36 }
 0x7fe   :  { %v9022_v43 = vpack.c.bf16 %v1848_v56, %v1844_v22 }
 0x7ff   :  { %9015 = vmatprep.subr.bf16.mxu0 %v9014_v47 }
 0x800   :  { %9023 = vmatprep.subr.bf16.mxu1 %v9022_v43  ;;  %9017 = vmatpush1.bf16.msra.mxu0 %v9016_v27 }
 0x801   :  { %9025 = vmatpush1.bf16.msra.mxu1 %v9024_v33 }
 0x803   :  { %8642 = vmatmul.mubr.msk.f32.vlgmr.msra.gmra.mrb[60].mxu0 %vm350_vm1, %v10507_v13 }
 0x804   :  { %8646 = vmatmul.mubr.msk.f32.vlgmr.msra.gmra.mrb[60].mxu1 %vm350_vm1, %v10507_v13  ;;  %1919 = vmatprep.mubr.f32.mxu0 %v12958_v1 }
 0x805   :  { %2008 = vmatprep.mubr.f32.mxu1 %v12958_v1 }
 0x807   :  { %8643 = vmatmul.mubr.msk.f32.gmra.mrb[62].mxu0 %vm350_vm1, %v10518_v17 }
 0x808   :  { %8647 = vmatmul.mubr.msk.f32.gmra.mrb[62].mxu1 %vm350_vm1, %v10518_v17  ;;  %1925 = vmatprep.mubr.f32.mxu0 %v12958_v1 }
 0x809   :  { %2014 = vmatprep.mubr.f32.mxu1 %v12958_v1 }
 0x80b   :  { %8644 = vmatmul.mubr.msk.f32.gmra.mrb[64].mxu0 %vm350_vm1, %v10529_v28 }
 0x80c   :  { %8648 = vmatmul.mubr.msk.f32.gmra.mrb[64].mxu1 %vm350_vm1, %v10529_v28  ;;  %1931 = vmatprep.mubr.f32.mxu0 %v12958_v1 }
 0x80d   :  { %2020 = vmatprep.mubr.f32.mxu1 %v12958_v1 }
 0x80f   :  { %8645 = vmatmul.mubr.msk.f32.gmra.mrb[66].mxu0 %vm350_vm1, %v10540_v2 }
 0x810   :  { %8649 = vmatmul.mubr.msk.f32.gmra.mrb[66].mxu1 %vm350_vm1, %v10540_v2  ;;  %2123 = vmatprep.mubr.f32.mxu0 %v12958_v1 }
 0x811   :  { %2212 = vmatprep.mubr.f32.mxu1 %v12958_v1 }
 0x8d6   :  { %v1915_v14 = vpop.f32.mrb[60].mxu0 }
 0x8d7   :  { %v2004_v24 = vpop.f32.mrb[60].mxu1  ;;  %v1917_v15 = vpop.f32.mrb[61].mxu0  ;;  %v1916_v49 = vadd.f32 %v1915_v14, %v10038_v21 }
 0x8d8   :  { %v1918_v18 = vadd.f32 %v1917_v15, %v10038_v21  ;;  %v2006_v63 = vpop.f32.mrb[61].mxu1  ;;  %v2005_v54 = vadd.f32 %v2004_v24, %v10038_v21 }
 0x8d9   :  { %v2007_v37 = vadd.f32 %v2006_v63, %v10038_v21  ;;  %v10559_v22 = vadd.f32 %v1916_v49, %v10384_v60 }
 0x8da   :  { %v1921_v41 = vpop.f32.mrb[62].mxu0  ;;  %v10554_v45 = vadd.f32 %v1918_v18, %v10381_v48  ;;  %v10569_v47 = vadd.f32 %v2005_v54, %v10393_v51 }
 0x8db   :  { %v1922_v44 = vadd.f32 %v1921_v41, %v10043_v34  ;;  %v2010_v39 = vpop.f32.mrb[62].mxu1  ;;  %v1923_v30 = vpop.f32.mrb[63].mxu0  ;;  %v10562_v27 = vadd.f32 %v2007_v37, %v10387_v19  ;;  %v2043_v49 = vmax.f32 %v10559_v22, 0.0 }
 0x8dc   :  { %v2011_v36 = vadd.f32 %v2010_v39, %v10043_v34  ;;  %v1924_v20 = vadd.f32 %v1923_v30, %v10043_v34  ;;  %v2012_v52 = vpop.f32.mrb[63].mxu1  ;;  %v2044_v18 = vmax.f32 %v10554_v45, 0.0  ;;  %v2045_v41 = vmax.f32 %v10569_v47, 0.0 }
 0x8dd   :  { %v10565_v56 = vadd.f32 %v1922_v44, %v10390_v46  ;;  %v2013_v33 = vadd.f32 %v2012_v52, %v10043_v34  ;;  %v2046_v37 = vmax.f32 %v10562_v27, 0.0 }
 0x8de   :  { %v10572_v48 = vadd.f32 %v2011_v36, %v10396_v53  ;;  %v10575_v43 = vadd.f32 %v1924_v20, %v10399_v42  ;;  %v1927_v14 = vpop.f32.mrb[64].mxu0 }
 0x8df   :  { %v2047_v60 = vmax.f32 %v10565_v56, 0.0  ;;  %v10579_v19 = vadd.f32 %v2013_v33, %v10403_v40  ;;  %v1928_v46 = vadd.f32 %v1927_v14, %v10059_v55  ;;  %v2016_v24 = vpop.f32.mrb[64].mxu1  ;;  %v1929_v15 = vpop.f32.mrb[65].mxu0 }
 0x8e0   :  { %v2049_v51 = vmax.f32 %v10572_v48, 0.0  ;;  %v2048_v53 = vmax.f32 %v10575_v43, 0.0  ;;  %v1930_v63 = vadd.f32 %v1929_v15, %v10059_v55  ;;  %v2018_v42 = vpop.f32.mrb[65].mxu1  ;;  %v2017_v44 = vadd.f32 %v2016_v24, %v10059_v55 }
 0x8e1   :  { %v2050_v40 = vmax.f32 %v10579_v19, 0.0  ;;  %v2019_v54 = vadd.f32 %v2018_v42, %v10059_v55  ;;  %v9028_v36 = vpack.c.bf16 %v2047_v60, %v2043_v49  ;;  %v10593_v20 = vadd.f32 %v1928_v46, %v10416_v16 }
 0x8e2   :  { %v1933_v39 = vpop.f32.mrb[66].mxu0  ;;  %v9026_v30 = vpack.c.bf16 %v2048_v53, %v2044_v18  ;;  %v9036_v34 = vpack.c.bf16 %v2049_v51, %v2045_v41  ;;  %v10597_v21 = vadd.f32 %v1930_v63, %v10413_v6  ;;  %v10609_v18 = vadd.f32 %v2017_v44, %v10425_v0 }
 0x8e3   :  { %v1934_v52 = vadd.f32 %v1933_v39, %v10086_v10  ;;  %v2022_v33 = vpop.f32.mrb[66].mxu1  ;;  %v1935_v14 = vpop.f32.mrb[67].mxu0  ;;  %v9034_v15 = vpack.c.bf16 %v2050_v40, %v2046_v37  ;;  %v10602_v60 = vadd.f32 %v2019_v54, %v10419_v8  ;;  %v2051_v0 = vmax.f32 %v10593_v20, 0.0 }
 0x8e4   :  { %v2023_v42 = vadd.f32 %v2022_v33, %v10086_v10  ;;  %v1936_v2 = vadd.f32 %v1935_v14, %v10086_v10  ;;  %v2024_v24 = vpop.f32.mrb[67].mxu1  ;;  %9027 = vmatprep.subr.bf16.mxu0 %v9026_v30 }
 0x8e5   :  { %v10605_v16 = vadd.f32 %v1934_v52, %v10422_v7  ;;  %v2025_v46 = vadd.f32 %v2024_v24, %v10086_v10  ;;  %9035 = vmatprep.subr.bf16.mxu1 %v9034_v15  ;;  %9029 = vmatpush1.bf16.msra.mxu0 %v9028_v36  ;;  %v2052_v7 = vmax.f32 %v10597_v21, 0.0 }
 0x8e6   :  { %v10612_v6 = vadd.f32 %v2023_v42, %v10428_v25  ;;  %v10615_v51 = vadd.f32 %v1936_v2, %v10431_v23  ;;  %9037 = vmatpush1.bf16.msra.mxu1 %v9036_v34  ;;  %v2054_v25 = vmax.f32 %v10602_v60, 0.0  ;;  %v2053_v23 = vmax.f32 %v10609_v18, 0.0 }
 0x8e7   :  { %v2055_v8 = vmax.f32 %v10605_v16, 0.0  ;;  %v10619_v53 = vadd.f32 %v2025_v46, %v10435_v50 }
 0x8e8   :  { %v2057_v63 = vmax.f32 %v10612_v6, 0.0  ;;  %v2056_v49 = vmax.f32 %v10615_v51, 0.0 }
 0x8e9   :  { %v2058_v37 = vmax.f32 %v10619_v53, 0.0  ;;  %v9032_v2 = vpack.c.bf16 %v2055_v8, %v2051_v0 }
 0x8ea   :  { %v9030_v34 = vpack.c.bf16 %v2056_v49, %v2052_v7  ;;  %v9040_v54 = vpack.c.bf16 %v2057_v63, %v2053_v23 }
 0x8eb   :  { %v9038_v40 = vpack.c.bf16 %v2058_v37, %v2054_v25 }
 0x8ec   :  { %9031 = vmatprep.subr.bf16.mxu0 %v9030_v34 }
 0x8ed   :  { %9039 = vmatprep.subr.bf16.mxu1 %v9038_v40  ;;  %9033 = vmatpush1.bf16.msra.mxu0 %v9032_v2 }
 0x8ee   :  { %9041 = vmatpush1.bf16.msra.mxu1 %v9040_v54 }
 0x8f0   :  { %8650 = vmatmul.mubr.msk.f32.vlgmr.msra.gmra.mrb[68].mxu0 %vm350_vm1, %v10129_v57 }
 0x8f1   :  { %8654 = vmatmul.mubr.msk.f32.vlgmr.msra.gmra.mrb[68].mxu1 %vm350_vm1, %v10129_v57  ;;  %2129 = vmatprep.mubr.f32.mxu0 %v12958_v1 }
 0x8f2   :  { %2218 = vmatprep.mubr.f32.mxu1 %v12958_v1 }
 0x8f4   :  { %8651 = vmatmul.mubr.msk.f32.gmra.mrb[70].mxu0 %vm350_vm1, %v10140_v4 }
 0x8f5   :  { %8655 = vmatmul.mubr.msk.f32.gmra.mrb[70].mxu1 %vm350_vm1, %v10140_v4  ;;  %2135 = vmatprep.mubr.f32.mxu0 %v12958_v1 }
 0x8f6   :  { %2224 = vmatprep.mubr.f32.mxu1 %v12958_v1 }
 0x8f8   :  { %8652 = vmatmul.mubr.msk.f32.gmra.mrb[72].mxu0 %vm350_vm1, %v10151_v58 }
 0x8f9   :  { %8656 = vmatmul.mubr.msk.f32.gmra.mrb[72].mxu1 %vm350_vm1, %v10151_v58  ;;  %2141 = vmatprep.mubr.f32.mxu0 %v12958_v1 }
 0x8fa   :  { %2230 = vmatprep.mubr.f32.mxu1 %v12958_v1 }
 0x8fc   :  { %8653 = vmatmul.mubr.msk.f32.gmra.mrb[74].mxu0 %vm350_vm1, %v10162_v5 }
 0x8fd   :  { %8657 = vmatmul.mubr.msk.f32.gmra.mrb[74].mxu1 %vm350_vm1, %v10162_v5  ;;  %2317 = vmatprep.mubr.f32.mxu0 %v12958_v1 }
 0x8fe   :  { %2406 = vmatprep.mubr.f32.mxu1 %v12958_v1 }
 0x9c3   :  { %v2125_v57 = vpop.f32.mrb[68].mxu0 }
 0x9c4   :  { %v2214_v4 = vpop.f32.mrb[68].mxu1  ;;  %v2127_v50 = vpop.f32.mrb[69].mxu0  ;;  %v2126_v58 = vadd.f32 %v2125_v57, %v10170_v9 }
 0x9c5   :  { %v2216_v41 = vpop.f32.mrb[69].mxu1  ;;  %v2215_v44 = vadd.f32 %v2214_v4, %v10170_v9  ;;  %v2128_v39 = vadd.f32 %v2127_v50, %v10170_v9 }
 0x9c6   :  { %v2217_v36 = vadd.f32 %v2216_v41, %v10170_v9  ;;  %v2237_v24 = vmax.f32 %v2126_v58, 0.0 }
 0x9c7   :  { %v2131_v30 = vpop.f32.mrb[70].mxu0  ;;  %v2239_v7 = vmax.f32 %v2215_v44, 0.0  ;;  %v2238_v63 = vmax.f32 %v2128_v39, 0.0 }
 0x9c8   :  { %v2132_v52 = vadd.f32 %v2131_v30, %v10172_v11  ;;  %v2220_v5 = vpop.f32.mrb[70].mxu1  ;;  %v2133_v33 = vpop.f32.mrb[71].mxu0  ;;  %v2240_v37 = vmax.f32 %v2217_v36, 0.0 }
 0x9c9   :  { %v2221_v14 = vadd.f32 %v2220_v5, %v10172_v11  ;;  %v2134_v15 = vadd.f32 %v2133_v33, %v10172_v11  ;;  %v2222_v42 = vpop.f32.mrb[71].mxu1 }
 0x9ca   :  { %v2241_v46 = vmax.f32 %v2132_v52, 0.0  ;;  %v2223_v8 = vadd.f32 %v2222_v42, %v10172_v11 }
 0x9cb   :  { %v2243_v49 = vmax.f32 %v2221_v14, 0.0  ;;  %v2242_v0 = vmax.f32 %v2134_v15, 0.0  ;;  %v2137_v25 = vpop.f32.mrb[72].mxu0 }
 0x9cc   :  { %v9044_v23 = vpack.c.bf16 %v2241_v46, %v2237_v24  ;;  %v2244_v34 = vmax.f32 %v2223_v8, 0.0  ;;  %v2226_v2 = vpop.f32.mrb[72].mxu1  ;;  %v2139_v40 = vpop.f32.mrb[73].mxu0  ;;  %v2138_v41 = vadd.f32 %v2137_v25, %v10182_v61 }
 0x9cd   :  { %v9052_v54 = vpack.c.bf16 %v2243_v49, %v2239_v7  ;;  %v9042_v57 = vpack.c.bf16 %v2242_v0, %v2238_v63  ;;  %v2228_v4 = vpop.f32.mrb[73].mxu1  ;;  %v2227_v58 = vadd.f32 %v2226_v2, %v10182_v61  ;;  %v2140_v30 = vadd.f32 %v2139_v40, %v10182_v61 }
 0x9ce   :  { %v9050_v50 = vpack.c.bf16 %v2244_v34, %v2240_v37  ;;  %v2229_v39 = vadd.f32 %v2228_v4, %v10182_v61  ;;  %v2245_v42 = vmax.f32 %v2138_v41, 0.0 }
 0x9cf   :  { %v2143_v44 = vpop.f32.mrb[74].mxu0  ;;  %9043 = vmatprep.subr.bf16.mxu0 %v9042_v57  ;;  %v2247_v8 = vmax.f32 %v2227_v58, 0.0  ;;  %v2246_v7 = vmax.f32 %v2140_v30, 0.0 }
 0x9d0   :  { %v2144_v36 = vadd.f32 %v2143_v44, %v10184_v26  ;;  %v2232_v52 = vpop.f32.mrb[74].mxu1  ;;  %9051 = vmatprep.subr.bf16.mxu1 %v9050_v50  ;;  %v2145_v5 = vpop.f32.mrb[75].mxu0  ;;  %9045 = vmatpush1.bf16.msra.mxu0 %v9044_v23  ;;  %v2248_v0 = vmax.f32 %v2229_v39, 0.0 }
 0x9d1   :  { %v2233_v33 = vadd.f32 %v2232_v52, %v10184_v26  ;;  %v2146_v14 = vadd.f32 %v2145_v5, %v10184_v26  ;;  %v2234_v15 = vpop.f32.mrb[75].mxu1  ;;  %9053 = vmatpush1.bf16.msra.mxu1 %v9052_v54 }
 0x9d2   :  { %v2249_v24 = vmax.f32 %v2144_v36, 0.0  ;;  %v2235_v46 = vadd.f32 %v2234_v15, %v10184_v26 }
 0x9d3   :  { %v2251_v63 = vmax.f32 %v2233_v33, 0.0  ;;  %v2250_v49 = vmax.f32 %v2146_v14, 0.0 }
 0x9d4   :  { %v9048_v25 = vpack.c.bf16 %v2249_v24, %v2245_v42  ;;  %v2252_v37 = vmax.f32 %v2235_v46, 0.0 }
 0x9d5   :  { %v9056_v34 = vpack.c.bf16 %v2251_v63, %v2247_v8  ;;  %v9046_v2 = vpack.c.bf16 %v2250_v49, %v2246_v7 }
 0x9d6   :  { %v9054_v23 = vpack.c.bf16 %v2252_v37, %v2248_v0  ;;  %v12963_v37 = vld [vmem:[#allocation10_spill] sm:$0xff] }
 0x9d7   :  { %9047 = vmatprep.subr.bf16.mxu0 %v9046_v2 }
 0x9d8   :  { %9055 = vmatprep.subr.bf16.mxu1 %v9054_v23  ;;  %9049 = vmatpush1.bf16.msra.mxu0 %v9048_v25 }
 0x9d9   :  { %9057 = vmatpush1.bf16.msra.mxu1 %v9056_v34 }
 0x9db   :  { %8658 = vmatmul.mubr.msk.f32.vlgmr.msra.gmra.mrb[76].mxu0 %vm350_vm1, %v10197_v3 }
 0x9dc   :  { %8662 = vmatmul.mubr.msk.f32.vlgmr.msra.gmra.mrb[76].mxu1 %vm350_vm1, %v10197_v3  ;;  %2323 = vmatprep.mubr.f32.mxu0 %v12958_v1 }
 0x9dd   :  { %2412 = vmatprep.mubr.f32.mxu1 %v12958_v1 }
 0x9df   :  { %8659 = vmatmul.mubr.msk.f32.gmra.mrb[78].mxu0 %vm350_vm1, %v10208_v29 }
 0x9e0   :  { %8663 = vmatmul.mubr.msk.f32.gmra.mrb[78].mxu1 %vm350_vm1, %v10208_v29  ;;  %2329 = vmatprep.mubr.f32.mxu0 %v12958_v1 }
 0x9e1   :  { %2418 = vmatprep.mubr.f32.mxu1 %v12958_v1 }
 0x9e3   :  { %8660 = vmatmul.mubr.msk.f32.gmra.mrb[80].mxu0 %vm350_vm1, %v10219_v62 }
 0x9e4   :  { %8664 = vmatmul.mubr.msk.f32.gmra.mrb[80].mxu1 %vm350_vm1, %v10219_v62  ;;  %2335 = vmatprep.mubr.f32.mxu0 %v12958_v1 }
 0x9e5   :  { %2424 = vmatprep.mubr.f32.mxu1 %v12958_v1 }
 0x9e7   :  { %8661 = vmatmul.mubr.msk.f32.gmra.mrb[82].mxu0 %vm350_vm1, %v10230_v12 }
 0x9e8   :  { %8665 = vmatmul.mubr.msk.f32.gmra.mrb[82].mxu1 %vm350_vm1, %v10230_v12  ;;  %2511 = vmatprep.mubr.f32.mxu0 %v12958_v1 }
 0x9e9   :  { %2588 = vmatprep.mubr.f32.mxu1 %v12958_v1 }
 0xaae   :  { %v2319_v3 = vpop.f32.mrb[76].mxu0 }
 0xaaf   :  { %v2408_v29 = vpop.f32.mrb[76].mxu1  ;;  %v2321_v40 = vpop.f32.mrb[77].mxu0  ;;  %v2320_v62 = vadd.f32 %v2319_v3, %v10238_v31 }
 0xab0   :  { %v2410_v54 = vpop.f32.mrb[77].mxu1  ;;  %v2409_v57 = vadd.f32 %v2408_v29, %v10238_v31  ;;  %v2322_v4 = vadd.f32 %v2321_v40, %v10238_v31 }
 0xab1   :  { %v2411_v41 = vadd.f32 %v2410_v54, %v10238_v31  ;;  %v2431_v52 = vadd.f32 %v2320_v62, %v10559_v22 }
 0xab2   :  { %v2325_v50 = vpop.f32.mrb[78].mxu0  ;;  %v2433_v14 = vadd.f32 %v2409_v57, %v10569_v47  ;;  %v2432_v15 = vadd.f32 %v2322_v4, %v10554_v45 }
 0xab3   :  { %v2326_v58 = vadd.f32 %v2325_v50, %v10240_v32  ;;  %v2414_v12 = vpop.f32.mrb[78].mxu1  ;;  %v2327_v30 = vpop.f32.mrb[79].mxu0  ;;  %v2434_v8 = vadd.f32 %v2411_v41, %v10562_v27  ;;  %v12964_v27 = vld [vmem:[#allocation11_spill] sm:$0xff] }
 0xab4   :  { %v2415_v44 = vadd.f32 %v2414_v12, %v10240_v32  ;;  %v2328_v39 = vadd.f32 %v2327_v30, %v10240_v32  ;;  %v2416_v36 = vpop.f32.mrb[79].mxu1 }
 0xab5   :  { %v2435_v5 = vadd.f32 %v2326_v58, %v10565_v56  ;;  %v2417_v33 = vadd.f32 %v2416_v36, %v10240_v32 }
 0xab6   :  { %v2437_v42 = vadd.f32 %v2415_v44, %v10572_v48  ;;  %v2436_v24 = vadd.f32 %v2328_v39, %v10575_v43  ;;  %v2331_v46 = vpop.f32.mrb[80].mxu0 }
 0xab7   :  { %v9060_v7 = vpack.c.bf16 %v2435_v5, %v2431_v52  ;;  %v2438_v63 = vadd.f32 %v2417_v33, %v10579_v19  ;;  %v2420_v49 = vpop.f32.mrb[80].mxu1  ;;  %v2333_v22 = vpop.f32.mrb[81].mxu0  ;;  %v2332_v34 = vadd.f32 %v2331_v46, %v12963_v37 }
 0xab8   :  { %v9068_v0 = vpack.c.bf16 %v2437_v42, %v2433_v14  ;;  %v2422_v56 = vpop.f32.mrb[81].mxu1  ;;  %v9058_v25 = vpack.c.bf16 %v2436_v24, %v2432_v15  ;;  %v2421_v45 = vadd.f32 %v2420_v49, %v12963_v37  ;;  %v2334_v48 = vadd.f32 %v2333_v22, %v12963_v37 }
 0xab9   :  { %v9066_v47 = vpack.c.bf16 %v2438_v63, %v2434_v8  ;;  %v2423_v43 = vadd.f32 %v2422_v56, %v12963_v37  ;;  %v2439_v62 = vadd.f32 %v2332_v34, %v10593_v20 }
 0xaba   :  { %v2337_v2 = vpop.f32.mrb[82].mxu0  ;;  %9059 = vmatprep.subr.bf16.mxu0 %v9058_v25  ;;  %v2441_v50 = vadd.f32 %v2421_v45, %v10609_v18  ;;  %v2440_v41 = vadd.f32 %v2334_v48, %v10597_v21  ;;  %v12966_v21 = vld [vmem:[#allocation13_spill] sm:$0xff]  ;;  %v12967_v18 = vld [vmem:[#allocation14_spill] sm:$0xff] }
 0xabb   :  { %v2338_v23 = vadd.f32 %v2337_v2, %v12964_v27  ;;  %v2426_v3 = vpop.f32.mrb[82].mxu1  ;;  %9067 = vmatprep.subr.bf16.mxu1 %v9066_v47  ;;  %v2339_v19 = vpop.f32.mrb[83].mxu0  ;;  %9061 = vmatpush1.bf16.msra.mxu0 %v9060_v7  ;;  %v2442_v30 = vadd.f32 %v2423_v43, %v10602_v60 }
 0xabc   :  { %v2427_v29 = vadd.f32 %v2426_v3, %v12964_v27  ;;  %v2340_v40 = vadd.f32 %v2339_v19, %v12964_v27  ;;  %v2428_v54 = vpop.f32.mrb[83].mxu1  ;;  %9069 = vmatpush1.bf16.msra.mxu1 %v9068_v0 }
 0xabd   :  { %v2443_v57 = vadd.f32 %v2338_v23, %v10605_v16  ;;  %v2429_v4 = vadd.f32 %v2428_v54, %v12964_v27  ;;  %v12965_v16 = vld [vmem:[#allocation12_spill] sm:$0xff] }
 0xabe   :  { %v2445_v58 = vadd.f32 %v2427_v29, %v10612_v6  ;;  %v2444_v12 = vadd.f32 %v2340_v40, %v10615_v51 }
 0xabf   :  { %v9064_v44 = vpack.c.bf16 %v2443_v57, %v2439_v62  ;;  %v2446_v39 = vadd.f32 %v2429_v4, %v10619_v53  ;;  %v12968_v57 = vld [vmem:[#allocation15_spill] sm:$0xff] }
 0xac0   :  { %v9072_v36 = vpack.c.bf16 %v2445_v58, %v2441_v50  ;;  %v9062_v52 = vpack.c.bf16 %v2444_v12, %v2440_v41  ;;  %v12969_v12 = vld [vmem:[#allocation16_spill] sm:$0xff] }
 0xac1   :  { %v9070_v20 = vpack.c.bf16 %v2446_v39, %v2442_v30  ;;  %v12970_v39 = vld [vmem:[#allocation17_spill] sm:$0xff] }
 0xac2   :  { %9063 = vmatprep.subr.bf16.mxu0 %v9062_v52 }
 0xac3   :  { %9071 = vmatprep.subr.bf16.mxu1 %v9070_v20  ;;  %9065 = vmatpush1.bf16.msra.mxu0 %v9064_v44 }
 0xac4   :  { %9073 = vmatpush1.bf16.msra.mxu1 %v9072_v36 }
 0xac6   :  { %8666 = vmatmul.mubr.msk.f32.vlgmr.msra.gmra.mrb[84].mxu0 %vm350_vm1, %v12965_v16 }
 0xac7   :  { %8668 = vmatmul.mubr.msk.f32.vlgmr.msra.gmra.mrb[84].mxu1 %vm350_vm1, %v12965_v16  ;;  %2517 = vmatprep.mubr.f32.mxu0 %v12958_v1  ;;  %v12971_v16 = vld [vmem:[#allocation18_spill] sm:$0xff] }
 0xac8   :  { %2594 = vmatprep.mubr.f32.mxu1 %v12958_v1 }
 0xaca   :  { %8667 = vmatmul.mubr.msk.f32.gmra.mrb[86].mxu0 %vm350_vm1, %v12966_v21 }
 0xacb   :  { %8669 = vmatmul.mubr.msk.f32.gmra.mrb[86].mxu1 %vm350_vm1, %v12966_v21  ;;  %2705 = vmatprep.mubr.f32.mxu0 %v12958_v1 }
 0xacc   :  { %2794 = vmatprep.mubr.f32.mxu1 %v12958_v1 }
 0xb99   :  { %v2513_v60 = vpop.f32.mrb[84].mxu0 }
 0xb9a   :  { %v2514_v6 = vadd.f32 %v2513_v60, %v12967_v18  ;;  %v2590_v51 = vpop.f32.mrb[84].mxu1  ;;  %v2515_v53 = vpop.f32.mrb[85].mxu0 }
 0xb9b   :  { %v2591_v5 = vadd.f32 %v2590_v51, %v12967_v18  ;;  %v2516_v33 = vadd.f32 %v2515_v53, %v12967_v18  ;;  %v2592_v14 = vpop.f32.mrb[85].mxu1  ;;  %v12972_v51 = vld [vmem:[#allocation19_spill] sm:$0xff] }
 0xb9c   :  { %v8670_v15 = vmul.f32 -1.442695, %v2514_v6  ;;  %v2593_v42 = vadd.f32 %v2592_v14, %v12967_v18 }
 0xb9d   :  { %v8672_v24 = vmul.f32 -1.442695, %v2591_v5  ;;  %v8671_v46 = vmul.f32 -1.442695, %v2516_v33  ;;  %v2519_v8 = vpop.f32.mrb[86].mxu0 }
 0xb9e   :  { %9504 = vpow2.f32 %v8670_v15  ;;  %v8673_v7 = vmul.f32 -1.442695, %v2593_v42  ;;  %v2596_v63 = vpop.f32.mrb[86].mxu1  ;;  %v2521_v49 = vpop.f32.mrb[87].mxu0  ;;  %v2520_v4 = vadd.f32 %v2519_v8, %v12968_v57  ;;  %v12973_v15 = vld [vmem:[#allocation20_spill] sm:$0xff]  ;;  %v12974_v42 = vld [vmem:[#allocation21_spill] sm:$0xff] }
 0xb9f   :  { %9506 = vpow2.f32 %v8672_v24  ;;  %v2598_v22 = vpop.f32.mrb[87].mxu1  ;;  %v2597_v50 = vadd.f32 %v2596_v63, %v12968_v57  ;;  %v2522_v41 = vadd.f32 %v2521_v49, %v12968_v57  ;;  %v12975_v24 = vld [vmem:[#allocation22_spill] sm:$0xff] }
 0xba0   :  { %9508 = vpow2.f32 %v8671_v46  ;;  %v2599_v58 = vadd.f32 %v2598_v22, %v12968_v57  ;;  %v2629_v30 = vsub.f32 %v12969_v12, %v2520_v4  ;;  %v12976_v46 = vld [vmem:[#allocation23_spill] sm:$0xff]  ;;  %v12977_v22 = vld [vmem:[#allocation2_spill] sm:$0xff] }
 0xba1   :  { %9510 = vpow2.f32 %v8673_v7  ;;  %v2631_v36 = vsub.f32 %v12970_v39, %v2597_v50  ;;  %v2630_v21 = vsub.f32 %v12971_v16, %v2522_v41 }
 0xba2   :  { %v2632_v53 = vsub.f32 %v12972_v51, %v2599_v58 }
 0xba8   :  { %v9505_v0 = vpop.eup %9504 }
 0xba9   :  { %v9507_v56 = vpop.eup %9506  ;;  %v2613_v25 = vadd.f32 1.0, %v9505_v0 }
 0xbaa   :  { %v9509_v34 = vpop.eup %9508  ;;  %v2615_v47 = vadd.f32 1.0, %v9507_v56 }
 0xbab   :  { %v9511_v45 = vpop.eup %9510  ;;  %9512 = vrcp.f32 %v2613_v25  ;;  %v2614_v48 = vadd.f32 1.0, %v9509_v34 }
 0xbac   :  { %9514 = vrcp.f32 %v2615_v47  ;;  %v2616_v2 = vadd.f32 1.0, %v9511_v45  ;;  %v12978_v47 = vld [vmem:[#allocation3_spill] sm:$0xff] }
 0xbad   :  { %9516 = vrcp.f32 %v2614_v48 }
 0xbae   :  { %9518 = vrcp.f32 %v2616_v2 }
 0xbb5   :  { %v9513_v43 = vpop.eup %9512 }
 0xbb6   :  { %v9515_v23 = vpop.eup %9514  ;;  %v2625_v3 = vadd.f32 0.001, %v9513_v43 }
 0xbb7   :  { %v9517_v19 = vpop.eup %9516  ;;  %v2627_v29 = vadd.f32 0.001, %v9515_v23 }
 0xbb8   :  { %v9519_v40 = vpop.eup %9518  ;;  %9520 = vrcp.f32 %v2625_v3  ;;  %v2626_v54 = vadd.f32 0.001, %v9517_v19 }
 0xbb9   :  { %9522 = vrcp.f32 %v2627_v29  ;;  %v2628_v62 = vadd.f32 0.001, %v9519_v40 }
 0xbba   :  { %9524 = vrcp.f32 %v2626_v54 }
 0xbbb   :  { %9526 = vrcp.f32 %v2628_v62 }
 0xbc2   :  { %v9521_v44 = vpop.eup %9520 }
 0xbc3   :  { %v9523_v52 = vpop.eup %9522  ;;  %v2634_v20 = vmul.f32 %v9521_v44, %v2629_v30 }
 0xbc4   :  { %v9525_v60 = vpop.eup %9524  ;;  %v2638_v6 = vmul.f32 %v9523_v52, %v2631_v36 }
 0xbc5   :  { %v9527_v5 = vpop.eup %9526  ;;  %v2636_v33 = vmul.f32 %v9525_v60, %v2630_v21  ;;  %v12979_v60 = vld [vmem:[#allocation4_spill] sm:$0xff] }
 0xbc6   :  { %v2640_v14 = vmul.f32 %v9527_v5, %v2632_v53 }
 0xbc7   :  { %2641 = vmatprep.subr.mxu0 %v2636_v33  ;;  %v12980_v33 = vld [vmem:[#allocation5_spill] sm:$0xff] }
 0xbc8   :  { %2730 = vmatprep.subr.mxu1 %v2640_v14  ;;  %2642 = vmatpush1.msra.mxu0 %v2634_v20 }
 0xbc9   :  { %2731 = vmatpush1.msra.mxu1 %v2638_v6  ;;  %8674 = vmatmul.mubr.msk.f32.vlgmr.msra.gmra.mrb[88].mxu0 %vm123_vm0, %v12973_v15 }
 0xbca   :  { %8678 = vmatmul.mubr.msk.f32.vlgmr.msra.gmra.mrb[88].mxu1 %vm123_vm0, %v12973_v15  ;;  %2711 = vmatprep.mubr.f32.mxu0 %v12958_v1 }
 0xbcb   :  { %2800 = vmatprep.mubr.f32.mxu1 %v12958_v1 }
 0xbcd   :  { %8675 = vmatmul.mubr.msk.f32.gmra.mrb[90].mxu0 %vm123_vm0, %v12974_v42 }
 0xbce   :  { %8679 = vmatmul.mubr.msk.f32.gmra.mrb[90].mxu1 %vm123_vm0, %v12974_v42  ;;  %2717 = vmatprep.mubr.f32.mxu0 %v12958_v1 }
 0xbcf   :  { %2806 = vmatprep.mubr.f32.mxu1 %v12958_v1 }
 0xbd1   :  { %8676 = vmatmul.mubr.msk.f32.gmra.mrb[92].mxu0 %vm123_vm0, %v12975_v24 }
 0xbd2   :  { %8680 = vmatmul.mubr.msk.f32.gmra.mrb[92].mxu1 %vm123_vm0, %v12975_v24  ;;  %2723 = vmatprep.mubr.f32.mxu0 %v12958_v1 }
 0xbd3   :  { %2812 = vmatprep.mubr.f32.mxu1 %v12958_v1 }
 0xbd5   :  { %8677 = vmatmul.mubr.msk.f32.gmra.mrb[94].mxu0 %vm123_vm0, %v12976_v46 }
 0xbd6   :  { %8681 = vmatmul.mubr.msk.f32.gmra.mrb[94].mxu1 %vm123_vm0, %v12976_v46  ;;  %2899 = vmatprep.mubr.f32.mxu0 %v12958_v1 }
 0xbd7   :  { %2988 = vmatprep.mubr.f32.mxu1 %v12958_v1 }
 0xc9c   :  { %v2707_v8 = vpop.f32.mrb[88].mxu0 }
 0xc9d   :  { %v2796_v7 = vpop.f32.mrb[88].mxu1  ;;  %v2709_v63 = vpop.f32.mrb[89].mxu0  ;;  %v10776_v25 = vadd.f32 %v2707_v8, %v12977_v22 }
 0xc9e   :  { %v2798_v49 = vpop.f32.mrb[89].mxu1  ;;  %v10773_v0 = vadd.f32 %v2709_v63, %v12977_v22  ;;  %v10785_v43 = vadd.f32 %v2796_v7, %v12977_v22 }
 0xc9f   :  { %v10779_v34 = vadd.f32 %v2798_v49, %v12977_v22  ;;  %v2819_v41 = vmax.f32 %v10776_v25, 0.0 }
 0xca0   :  { %v2713_v56 = vpop.f32.mrb[90].mxu0  ;;  %v2820_v54 = vmax.f32 %v10773_v0, 0.0  ;;  %v2821_v39 = vmax.f32 %v10785_v43, 0.0 }
 0xca1   :  { %v10782_v45 = vadd.f32 %v2713_v56, %v12978_v47  ;;  %v2802_v48 = vpop.f32.mrb[90].mxu1  ;;  %v2715_v2 = vpop.f32.mrb[91].mxu0  ;;  %v2822_v58 = vmax.f32 %v10779_v34, 0.0 }
 0xca2   :  { %v10788_v23 = vadd.f32 %v2802_v48, %v12978_v47  ;;  %v10791_v3 = vadd.f32 %v2715_v2, %v12978_v47  ;;  %v2804_v19 = vpop.f32.mrb[91].mxu1 }
 0xca3   :  { %v2823_v29 = vmax.f32 %v10782_v45, 0.0  ;;  %v10795_v40 = vadd.f32 %v2804_v19, %v12978_v47 }
 0xca4   :  { %v2825_v62 = vmax.f32 %v10788_v23, 0.0  ;;  %v2824_v4 = vmax.f32 %v10791_v3, 0.0  ;;  %v2719_v50 = vpop.f32.mrb[92].mxu0 }
 0xca5   :  { %v2826_v12 = vmax.f32 %v10795_v40, 0.0  ;;  %v2808_v30 = vpop.f32.mrb[92].mxu1  ;;  %v2721_v44 = vpop.f32.mrb[93].mxu0  ;;  %v9076_v20 = vpack.c.bf16 %v2823_v29, %v2819_v41  ;;  %v10808_v53 = vadd.f32 %v2719_v50, %v12979_v60 }
 0xca6   :  { %v2810_v36 = vpop.f32.mrb[93].mxu1  ;;  %v9074_v52 = vpack.c.bf16 %v2824_v4, %v2820_v54  ;;  %v9084_v21 = vpack.c.bf16 %v2825_v62, %v2821_v39  ;;  %v10805_v6 = vadd.f32 %v2721_v44, %v12979_v60  ;;  %v10817_v24 = vadd.f32 %v2808_v30, %v12979_v60  ;;  %v12982_v30 = vld [vmem:[#allocation25_spill] sm:$0xff]  ;;  %v12983_v44 = vld [vmem:[#allocation26_spill] sm:$0xff]  ;;  %v12984_v39 = vld [vmem:[#allocation27_spill] sm:$0xff] }
 0xca7   :  { %v9082_v16 = vpack.c.bf16 %v2826_v12, %v2822_v58  ;;  %v10811_v5 = vadd.f32 %v2810_v36, %v12979_v60  ;;  %v2827_v19 = vmax.f32 %v10808_v53, 0.0  ;;  %v12981_v12 = vld [vmem:[#allocation24_spill] sm:$0xff] }
 0xca8   :  { %v2725_v51 = vpop.f32.mrb[94].mxu0  ;;  %9075 = vmatprep.subr.bf16.mxu0 %v9074_v52  ;;  %v2828_v56 = vmax.f32 %v10805_v6, 0.0  ;;  %v2829_v62 = vmax.f32 %v10817_v24, 0.0 }
 0xca9   :  { %v10814_v14 = vadd.f32 %v2725_v51, %v12980_v33  ;;  %v2814_v15 = vpop.f32.mrb[94].mxu1  ;;  %9083 = vmatprep.subr.bf16.mxu1 %v9082_v16  ;;  %v2727_v42 = vpop.f32.mrb[95].mxu0  ;;  %9077 = vmatpush1.bf16.msra.mxu0 %v9076_v20  ;;  %v2830_v29 = vmax.f32 %v10811_v5, 0.0 }
 0xcaa   :  { %v10820_v46 = vadd.f32 %v2814_v15, %v12980_v33  ;;  %v10823_v8 = vadd.f32 %v2727_v42, %v12980_v33  ;;  %v2816_v7 = vpop.f32.mrb[95].mxu1  ;;  %9085 = vmatpush1.bf16.msra.mxu1 %v9084_v21  ;;  %v12985_v21 = vld [vmem:[#allocation6_spill] sm:$0xff] }
 0xcab   :  { %v2831_v63 = vmax.f32 %v10814_v14, 0.0  ;;  %v10827_v49 = vadd.f32 %v2816_v7, %v12980_v33 }
 0xcac   :  { %v2833_v48 = vmax.f32 %v10820_v46, 0.0  ;;  %v2832_v2 = vmax.f32 %v10823_v8, 0.0 }
 0xcad   :  { %v2834_v54 = vmax.f32 %v10827_v49, 0.0  ;;  %v9080_v50 = vpack.c.bf16 %v2831_v63, %v2827_v19 }
 0xcae   :  { %v9078_v4 = vpack.c.bf16 %v2832_v2, %v2828_v56  ;;  %v9088_v58 = vpack.c.bf16 %v2833_v48, %v2829_v62 }
 0xcaf   :  { %v9086_v41 = vpack.c.bf16 %v2834_v54, %v2830_v29 }
 0xcb0   :  { %9079 = vmatprep.subr.bf16.mxu0 %v9078_v4 }
 0xcb1   :  { %9087 = vmatprep.subr.bf16.mxu1 %v9086_v41  ;;  %9081 = vmatpush1.bf16.msra.mxu0 %v9080_v50 }
 0xcb2   :  { %9089 = vmatpush1.bf16.msra.mxu1 %v9088_v58 }
 0xcb4   :  { %8682 = vmatmul.mubr.msk.f32.vlgmr.msra.gmra.mrb[96].mxu0 %vm350_vm1, %v12981_v12 }
 0xcb5   :  { %8686 = vmatmul.mubr.msk.f32.vlgmr.msra.gmra.mrb[96].mxu1 %vm350_vm1, %v12981_v12  ;;  %2905 = vmatprep.mubr.f32.mxu0 %v12958_v1 }
 0xcb6   :  { %2994 = vmatprep.mubr.f32.mxu1 %v12958_v1 }
 0xcb8   :  { %8683 = vmatmul.mubr.msk.f32.gmra.mrb[98].mxu0 %vm350_vm1, %v12982_v30 }
 0xcb9   :  { %8687 = vmatmul.mubr.msk.f32.gmra.mrb[98].mxu1 %vm350_vm1, %v12982_v30  ;;  %2911 = vmatprep.mubr.f32.mxu0 %v12958_v1 }
 0xcba   :  { %3000 = vmatprep.mubr.f32.mxu1 %v12958_v1 }
 0xcbc   :  { %8684 = vmatmul.mubr.msk.f32.gmra.mrb[100].mxu0 %vm350_vm1, %v12983_v44 }
 0xcbd   :  { %8688 = vmatmul.mubr.msk.f32.gmra.mrb[100].mxu1 %vm350_vm1, %v12983_v44  ;;  %2917 = vmatprep.mubr.f32.mxu0 %v12958_v1 }
 0xcbe   :  { %3006 = vmatprep.mubr.f32.mxu1 %v12958_v1 }
 0xcc0   :  { %8685 = vmatmul.mubr.msk.f32.gmra.mrb[102].mxu0 %vm350_vm1, %v12984_v39 }
 0xcc1   :  { %8689 = vmatmul.mubr.msk.f32.gmra.mrb[102].mxu1 %vm350_vm1, %v12984_v39  ;;  %3093 = vmatprep.mubr.f32.mxu0 %v12958_v1 }
 0xcc2   :  { %3182 = vmatprep.mubr.f32.mxu1 %v12958_v1 }
 0xd87   :  { %v2901_v36 = vpop.f32.mrb[96].mxu0 }
 0xd88   :  { %v2990_v52 = vpop.f32.mrb[96].mxu1  ;;  %v2903_v20 = vpop.f32.mrb[97].mxu0  ;;  %v2902_v51 = vadd.f32 %v2901_v36, %v12985_v21 }
 0xd89   :  { %v2992_v16 = vpop.f32.mrb[97].mxu1  ;;  %v2991_v15 = vadd.f32 %v2990_v52, %v12985_v21  ;;  %v2904_v42 = vadd.f32 %v2903_v20, %v12985_v21 }
 0xd8a   :  { %v2993_v63 = vadd.f32 %v2992_v16, %v12985_v21  ;;  %v3013_v62 = vmax.f32 %v2902_v51, 0.0 }
 0xd8b   :  { %v2907_v7 = vpop.f32.mrb[98].mxu0  ;;  %v3015_v41 = vmax.f32 %v2991_v15, 0.0  ;;  %v3014_v58 = vmax.f32 %v2904_v42, 0.0 }
 0xd8c   :  { %v2908_v56 = vadd.f32 %v2907_v7, %v9988_v59  ;;  %v2996_v48 = vpop.f32.mrb[98].mxu1  ;;  %v2909_v2 = vpop.f32.mrb[99].mxu0  ;;  %v3016_v39 = vmax.f32 %v2993_v63, 0.0 }
 0xd8d   :  { %v2997_v19 = vadd.f32 %v2996_v48, %v9988_v59  ;;  %v2910_v29 = vadd.f32 %v2909_v2, %v9988_v59  ;;  %v2998_v54 = vpop.f32.mrb[99].mxu1 }
 0xd8e   :  { %v3017_v4 = vmax.f32 %v2908_v56, 0.0  ;;  %v2999_v50 = vadd.f32 %v2998_v54, %v9988_v59 }
 0xd8f   :  { %v3019_v12 = vmax.f32 %v2997_v19, 0.0  ;;  %v3018_v30 = vmax.f32 %v2910_v29, 0.0  ;;  %v2913_v44 = vpop.f32.mrb[100].mxu0 }
 0xd90   :  { %v9092_v36 = vpack.c.bf16 %v3017_v4, %v3013_v62  ;;  %v3020_v52 = vmax.f32 %v2999_v50, 0.0  ;;  %v3002_v20 = vpop.f32.mrb[100].mxu1  ;;  %v2915_v16 = vpop.f32.mrb[101].mxu0  ;;  %v2914_v2 = vadd.f32 %v2913_v44, %v9998_v35 }
 0xd91   :  { %v9100_v7 = vpack.c.bf16 %v3019_v12, %v3015_v41  ;;  %v9090_v21 = vpack.c.bf16 %v3018_v30, %v3014_v58  ;;  %v3004_v48 = vpop.f32.mrb[101].mxu1  ;;  %v3003_v51 = vadd.f32 %v3002_v20, %v9998_v35  ;;  %v2916_v56 = vadd.f32 %v2915_v16, %v9998_v35 }
 0xd92   :  { %v9098_v33 = vpack.c.bf16 %v3020_v52, %v3016_v39  ;;  %v3005_v42 = vadd.f32 %v3004_v48, %v9998_v35  ;;  %v3021_v50 = vmax.f32 %v2914_v2, 0.0  ;;  %v12987_v2 = vld [vmem:[#allocation7_spill] sm:$0xff] }
 0xd93   :  { %v2919_v15 = vpop.f32.mrb[102].mxu0  ;;  %9091 = vmatprep.subr.bf16.mxu0 %v9090_v21  ;;  %v3023_v12 = vmax.f32 %v3003_v51, 0.0  ;;  %v3022_v21 = vmax.f32 %v2916_v56, 0.0 }
 0xd94   :  { %v2920_v63 = vadd.f32 %v2919_v15, %v10000_v38  ;;  %v3008_v19 = vpop.f32.mrb[102].mxu1  ;;  %9099 = vmatprep.subr.bf16.mxu1 %v9098_v33  ;;  %v2921_v29 = vpop.f32.mrb[103].mxu0  ;;  %9093 = vmatpush1.bf16.msra.mxu0 %v9092_v36  ;;  %v3024_v39 = vmax.f32 %v3005_v42, 0.0 }
 0xd95   :  { %v3009_v54 = vadd.f32 %v3008_v19, %v10000_v38  ;;  %v2922_v62 = vadd.f32 %v2921_v29, %v10000_v38  ;;  %v3010_v4 = vpop.f32.mrb[103].mxu1  ;;  %9101 = vmatpush1.bf16.msra.mxu1 %v9100_v7  ;;  %v12988_v19 = vld [vmem:[#allocation8_spill] sm:$0xff] }
 0xd96   :  { %v3025_v41 = vmax.f32 %v2920_v63, 0.0  ;;  %v3011_v58 = vadd.f32 %v3010_v4, %v10000_v38 }
 0xd97   :  { %v3027_v30 = vmax.f32 %v3009_v54, 0.0  ;;  %v3026_v44 = vmax.f32 %v2922_v62, 0.0 }
 0xd98   :  { %v9096_v52 = vpack.c.bf16 %v3025_v41, %v3021_v50  ;;  %v3028_v20 = vmax.f32 %v3011_v58, 0.0 }
 0xd99   :  { %v9104_v33 = vpack.c.bf16 %v3027_v30, %v3023_v12  ;;  %v9094_v16 = vpack.c.bf16 %v3026_v44, %v3022_v21 }
 0xd9a   :  { %v9102_v36 = vpack.c.bf16 %v3028_v20, %v3024_v39 }
 0xd9b   :  { %9095 = vmatprep.subr.bf16.mxu0 %v9094_v16 }
 0xd9c   :  { %9103 = vmatprep.subr.bf16.mxu1 %v9102_v36  ;;  %9097 = vmatpush1.bf16.msra.mxu0 %v9096_v52 }
 0xd9d   :  { %9105 = vmatpush1.bf16.msra.mxu1 %v9104_v33 }
 0xd9f   :  { %8690 = vmatmul.mubr.msk.f32.vlgmr.msra.gmra.mrb[104].mxu0 %vm350_vm1, %v10507_v13 }
 0xda0   :  { %8694 = vmatmul.mubr.msk.f32.vlgmr.msra.gmra.mrb[104].mxu1 %vm350_vm1, %v10507_v13  ;;  %3099 = vmatprep.mubr.f32.mxu0 %v12958_v1  ;;  %v12986_v13 = vld [vmem:[#allocation28_spill] sm:$0xff] }
 0xda1   :  { %3188 = vmatprep.mubr.f32.mxu1 %v12958_v1 }
 0xda3   :  { %8691 = vmatmul.mubr.msk.f32.gmra.mrb[106].mxu0 %vm350_vm1, %v10518_v17 }
 0xda4   :  { %8695 = vmatmul.mubr.msk.f32.gmra.mrb[106].mxu1 %vm350_vm1, %v10518_v17  ;;  %3105 = vmatprep.mubr.f32.mxu0 %v12958_v1 }
 0xda5   :  { %3194 = vmatprep.mubr.f32.mxu1 %v12958_v1 }
 0xda7   :  { %8692 = vmatmul.mubr.msk.f32.gmra.mrb[108].mxu0 %vm350_vm1, %v10529_v28 }
 0xda8   :  { %8696 = vmatmul.mubr.msk.f32.gmra.mrb[108].mxu1 %vm350_vm1, %v10529_v28  ;;  %3111 = vmatprep.mubr.f32.mxu0 %v12958_v1 }
 0xda9   :  { %3200 = vmatprep.mubr.f32.mxu1 %v12958_v1 }
 0xdab   :  { %8693 = vmatmul.mubr.msk.f32.gmra.mrb[110].mxu0 %vm350_vm1, %v12986_v13 }
 0xdac   :  { %8697 = vmatmul.mubr.msk.f32.gmra.mrb[110].mxu1 %vm350_vm1, %v12986_v13  ;;  %3303 = vmatprep.mubr.f32.mxu0 %v12958_v1 }
 0xdad   :  { %3392 = vmatprep.mubr.f32.mxu1 %v12958_v1 }
 0xe72   :  { %v3095_v17 = vpop.f32.mrb[104].mxu0 }
 0xe73   :  { %v3184_v7 = vpop.f32.mrb[104].mxu1  ;;  %v3097_v48 = vpop.f32.mrb[105].mxu0  ;;  %v3096_v56 = vadd.f32 %v3095_v17, %v12987_v2 }
 0xe74   :  { %v3098_v51 = vadd.f32 %v3097_v48, %v12987_v2  ;;  %v3186_v28 = vpop.f32.mrb[105].mxu1  ;;  %v3185_v42 = vadd.f32 %v3184_v7, %v12987_v2 }
 0xe75   :  { %v3187_v15 = vadd.f32 %v3186_v28, %v12987_v2  ;;  %v10911_v12 = vadd.f32 %v3096_v56, %v10776_v25 }
 0xe76   :  { %v3101_v63 = vpop.f32.mrb[106].mxu0  ;;  %v10906_v4 = vadd.f32 %v3098_v51, %v10773_v0  ;;  %v10921_v39 = vadd.f32 %v3185_v42, %v10785_v43 }
 0xe77   :  { %v3102_v29 = vadd.f32 %v3101_v63, %v12988_v19  ;;  %v3190_v54 = vpop.f32.mrb[106].mxu1  ;;  %v3103_v62 = vpop.f32.mrb[107].mxu0  ;;  %v10914_v21 = vadd.f32 %v3187_v15, %v10779_v34  ;;  %v3223_v17 = vmax.f32 %v10911_v12, 0.0 }
 0xe78   :  { %v3191_v50 = vadd.f32 %v3190_v54, %v12988_v19  ;;  %v3104_v41 = vadd.f32 %v3103_v62, %v12988_v19  ;;  %v3192_v58 = vpop.f32.mrb[107].mxu1  ;;  %v3224_v36 = vmax.f32 %v10906_v4, 0.0  ;;  %v3225_v51 = vmax.f32 %v10921_v39, 0.0 }
 0xe79   :  { %v10917_v30 = vadd.f32 %v3102_v29, %v10782_v45  ;;  %v3193_v44 = vadd.f32 %v3192_v58, %v12988_v19  ;;  %v3226_v7 = vmax.f32 %v10914_v21, 0.0 }
 0xe7a   :  { %v10924_v0 = vadd.f32 %v3191_v50, %v10788_v23  ;;  %v10927_v52 = vadd.f32 %v3104_v41, %v10791_v3  ;;  %v3107_v20 = vpop.f32.mrb[108].mxu0 }
 0xe7b   :  { %v3227_v25 = vmax.f32 %v10917_v30, 0.0  ;;  %v10931_v34 = vadd.f32 %v3193_v44, %v10795_v40  ;;  %v3108_v45 = vadd.f32 %v3107_v20, %v10059_v55  ;;  %v3196_v33 = vpop.f32.mrb[108].mxu1  ;;  %v3109_v16 = vpop.f32.mrb[109].mxu0 }
 0xe7c   :  { %v3229_v43 = vmax.f32 %v10924_v0, 0.0  ;;  %v3228_v23 = vmax.f32 %v10927_v52, 0.0  ;;  %v3110_v13 = vadd.f32 %v3109_v16, %v10059_v55  ;;  %v3198_v3 = vpop.f32.mrb[109].mxu1  ;;  %v3197_v28 = vadd.f32 %v3196_v33, %v10059_v55 }
 0xe7d   :  { %v3230_v40 = vmax.f32 %v10931_v34, 0.0  ;;  %v3199_v48 = vadd.f32 %v3198_v3, %v10059_v55  ;;  %v9108_v42 = vpack.c.bf16 %v3227_v25, %v3223_v17  ;;  %v10945_v63 = vadd.f32 %v3108_v45, %v10808_v53 }
 0xe7e   :  { %v3113_v56 = vpop.f32.mrb[110].mxu0  ;;  %v9106_v15 = vpack.c.bf16 %v3228_v23, %v3224_v36  ;;  %v9116_v41 = vpack.c.bf16 %v3229_v43, %v3225_v51  ;;  %v10949_v58 = vadd.f32 %v3110_v13, %v10805_v6  ;;  %v10961_v16 = vadd.f32 %v3197_v28, %v10817_v24  ;;  %v10994_v51 = vld [vmem:[%s12801_s2 + $0x48] sm:$0xff]  ;;  %v11005_v28 = vld [vmem:[%s12801_s2 + $0x50] sm:$0xff] }
 0xe7f   :  { %v3114_v29 = vadd.f32 %v3113_v56, %v10086_v10  ;;  %v3202_v54 = vpop.f32.mrb[110].mxu1  ;;  %v3115_v62 = vpop.f32.mrb[111].mxu0  ;;  %v9114_v50 = vpack.c.bf16 %v3230_v40, %v3226_v7  ;;  %v10954_v25 = vadd.f32 %v3199_v48, %v10811_v5  ;;  %v3231_v24 = vmax.f32 %v10945_v63, 0.0  ;;  %12989 = vst [vmem:[#allocation10_spill] sm:$0xff] %v11005_v28  ;;  %v11016_v56 = vld [vmem:[%s12801_s2 + $0x58] sm:$0xff] }
 0xe80   :  { %v3203_v44 = vadd.f32 %v3202_v54, %v10086_v10  ;;  %v3116_v20 = vadd.f32 %v3115_v62, %v10086_v10  ;;  %v3204_v33 = vpop.f32.mrb[111].mxu1  ;;  %9107 = vmatprep.subr.bf16.mxu0 %v9106_v15  ;;  %12990 = vst [vmem:[#allocation11_spill] sm:$0xff] %v11016_v56 }
 0xe81   :  { %v10957_v53 = vadd.f32 %v3114_v29, %v10814_v14  ;;  %v3205_v45 = vadd.f32 %v3204_v33, %v10086_v10  ;;  %9115 = vmatprep.subr.bf16.mxu1 %v9114_v50  ;;  %9109 = vmatpush1.bf16.msra.mxu0 %v9108_v42  ;;  %v3232_v14 = vmax.f32 %v10949_v58, 0.0 }
 0xe82   :  { %v10964_v6 = vadd.f32 %v3203_v44, %v10820_v46  ;;  %v10967_v36 = vadd.f32 %v3116_v20, %v10823_v8  ;;  %9117 = vmatpush1.bf16.msra.mxu1 %v9116_v41  ;;  %v3234_v46 = vmax.f32 %v10954_v25, 0.0  ;;  %v3233_v8 = vmax.f32 %v10961_v16, 0.0 }
 0xe83   :  { %v3235_v5 = vmax.f32 %v10957_v53, 0.0  ;;  %v10971_v43 = vadd.f32 %v3205_v45, %v10827_v49  ;;  %v10983_v49 = vld [vmem:[%s12801_s2 + $0x40] sm:$0xff] }
 0xe84   :  { %v3237_v23 = vmax.f32 %v10964_v6, 0.0  ;;  %v3236_v13 = vmax.f32 %v10967_v36, 0.0 }
 0xe85   :  { %v3238_v3 = vmax.f32 %v10971_v43, 0.0  ;;  %v9112_v7 = vpack.c.bf16 %v3235_v5, %v3231_v24 }
 0xe86   :  { %v9110_v17 = vpack.c.bf16 %v3236_v13, %v3232_v14  ;;  %v9120_v48 = vpack.c.bf16 %v3237_v23, %v3233_v8 }
 0xe87   :  { %v9118_v40 = vpack.c.bf16 %v3238_v3, %v3234_v46 }
 0xe88   :  { %9111 = vmatprep.subr.bf16.mxu0 %v9110_v17 }
 0xe89   :  { %9119 = vmatprep.subr.bf16.mxu1 %v9118_v40  ;;  %9113 = vmatpush1.bf16.msra.mxu0 %v9112_v7 }
 0xe8a   :  { %9121 = vmatpush1.bf16.msra.mxu1 %v9120_v48 }
 0xe8c   :  { %8698 = vmatmul.mubr.msk.f32.vlgmr.msra.gmra.mrb[112].mxu0 %vm350_vm1, %v10983_v49 }
 0xe8d   :  { %8702 = vmatmul.mubr.msk.f32.vlgmr.msra.gmra.mrb[112].mxu1 %vm350_vm1, %v10983_v49  ;;  %3309 = vmatprep.mubr.f32.mxu0 %v12958_v1 }
 0xe8e   :  { %3398 = vmatprep.mubr.f32.mxu1 %v12958_v1 }
 0xe90   :  { %8699 = vmatmul.mubr.msk.f32.gmra.mrb[114].mxu0 %vm350_vm1, %v10994_v51 }
 0xe91   :  { %8703 = vmatmul.mubr.msk.f32.gmra.mrb[114].mxu1 %vm350_vm1, %v10994_v51  ;;  %3315 = vmatprep.mubr.f32.mxu0 %v12958_v1 }
 0xe92   :  { %3404 = vmatprep.mubr.f32.mxu1 %v12958_v1 }
 0xe94   :  { %8700 = vmatmul.mubr.msk.f32.gmra.mrb[116].mxu0 %vm350_vm1, %v11005_v28 }
 0xe95   :  { %8704 = vmatmul.mubr.msk.f32.gmra.mrb[116].mxu1 %vm350_vm1, %v11005_v28  ;;  %3321 = vmatprep.mubr.f32.mxu0 %v12958_v1 }
 0xe96   :  { %3410 = vmatprep.mubr.f32.mxu1 %v12958_v1 }
 0xe98   :  { %8701 = vmatmul.mubr.msk.f32.gmra.mrb[118].mxu0 %vm350_vm1, %v11016_v56 }
 0xe99   :  { %8705 = vmatmul.mubr.msk.f32.gmra.mrb[118].mxu1 %vm350_vm1, %v11016_v56  ;;  %3497 = vmatprep.mubr.f32.mxu0 %v12958_v1 }
 0xe9a   :  { %3586 = vmatprep.mubr.f32.mxu1 %v12958_v1 }
 0xf5f   :  { %v3305_v15 = vpop.f32.mrb[112].mxu0 }
 0xf60   :  { %v3394_v42 = vpop.f32.mrb[112].mxu1  ;;  %v3307_v29 = vpop.f32.mrb[113].mxu0  ;;  %v3306_v62 = vadd.f32 %v3305_v15, %v10170_v9 }
 0xf61   :  { %v3396_v54 = vpop.f32.mrb[113].mxu1  ;;  %v3395_v50 = vadd.f32 %v3394_v42, %v10170_v9  ;;  %v3308_v41 = vadd.f32 %v3307_v29, %v10170_v9 }
 0xf62   :  { %v3397_v20 = vadd.f32 %v3396_v54, %v10170_v9  ;;  %v3417_v24 = vmax.f32 %v3306_v62, 0.0 }
 0xf63   :  { %v3311_v44 = vpop.f32.mrb[114].mxu0  ;;  %v3419_v8 = vmax.f32 %v3395_v50, 0.0  ;;  %v3418_v17 = vmax.f32 %v3308_v41, 0.0 }
 0xf64   :  { %v3312_v33 = vadd.f32 %v3311_v44, %v10172_v11  ;;  %v3400_v45 = vpop.f32.mrb[114].mxu1  ;;  %v3313_v5 = vpop.f32.mrb[115].mxu0  ;;  %v3420_v15 = vmax.f32 %v3397_v20, 0.0 }
 0xf65   :  { %v3401_v14 = vadd.f32 %v3400_v45, %v10172_v11  ;;  %v3314_v23 = vadd.f32 %v3313_v5, %v10172_v11  ;;  %v3402_v13 = vpop.f32.mrb[115].mxu1 }
 0xf66   :  { %v3421_v46 = vmax.f32 %v3312_v33, 0.0  ;;  %v3403_v3 = vadd.f32 %v3402_v13, %v10172_v11 }
 0xf67   :  { %v3423_v7 = vmax.f32 %v3401_v14, 0.0  ;;  %v3422_v40 = vmax.f32 %v3314_v23, 0.0  ;;  %v3317_v48 = vpop.f32.mrb[116].mxu0 }
 0xf68   :  { %v9124_v42 = vpack.c.bf16 %v3421_v46, %v3417_v24  ;;  %v3424_v29 = vmax.f32 %v3403_v3, 0.0  ;;  %v3406_v54 = vpop.f32.mrb[116].mxu1  ;;  %v3319_v44 = vpop.f32.mrb[117].mxu0  ;;  %v3318_v5 = vadd.f32 %v3317_v48, %v10182_v61 }
 0xf69   :  { %v9132_v9 = vpack.c.bf16 %v3423_v7, %v3419_v8  ;;  %v9122_v56 = vpack.c.bf16 %v3422_v40, %v3418_v17  ;;  %v3408_v45 = vpop.f32.mrb[117].mxu1  ;;  %v3407_v62 = vadd.f32 %v3406_v54, %v10182_v61  ;;  %v3320_v33 = vadd.f32 %v3319_v44, %v10182_v61 }
 0xf6a   :  { %v9130_v28 = vpack.c.bf16 %v3424_v29, %v3420_v15  ;;  %v3409_v41 = vadd.f32 %v3408_v45, %v10182_v61  ;;  %v3425_v3 = vmax.f32 %v3318_v5, 0.0  ;;  %v11054_v45 = vld [vmem:[%s12801_s2 + $0x68] sm:$0xff]  ;;  %v11065_v5 = vld [vmem:[%s12801_s2 + $0x70] sm:$0xff] }
 0xf6b   :  { %v3323_v50 = vpop.f32.mrb[118].mxu0  ;;  %9123 = vmatprep.subr.bf16.mxu0 %v9122_v56  ;;  %v3427_v7 = vmax.f32 %v3407_v62, 0.0  ;;  %v3426_v56 = vmax.f32 %v3320_v33, 0.0  ;;  %v11076_v62 = vld [vmem:[%s12801_s2 + $0x78] sm:$0xff] }
 0xf6c   :  { %v3324_v20 = vadd.f32 %v3323_v50, %v10184_v26  ;;  %v3412_v14 = vpop.f32.mrb[118].mxu1  ;;  %9131 = vmatprep.subr.bf16.mxu1 %v9130_v28  ;;  %v3325_v23 = vpop.f32.mrb[119].mxu0  ;;  %9125 = vmatpush1.bf16.msra.mxu0 %v9124_v42  ;;  %v3428_v15 = vmax.f32 %v3409_v41, 0.0 }
 0xf6d   :  { %v3413_v13 = vadd.f32 %v3412_v14, %v10184_v26  ;;  %v3326_v24 = vadd.f32 %v3325_v23, %v10184_v26  ;;  %v3414_v46 = vpop.f32.mrb[119].mxu1  ;;  %9133 = vmatpush1.bf16.msra.mxu1 %v9132_v9  ;;  %v11043_v9 = vld [vmem:[%s12801_s2 + $0x60] sm:$0xff] }
 0xf6e   :  { %v3429_v8 = vmax.f32 %v3324_v20, 0.0  ;;  %v3415_v17 = vadd.f32 %v3414_v46, %v10184_v26 }
 0xf6f   :  { %v3431_v40 = vmax.f32 %v3413_v13, 0.0  ;;  %v3430_v48 = vmax.f32 %v3326_v24, 0.0 }
 0xf70   :  { %v9128_v29 = vpack.c.bf16 %v3429_v8, %v3425_v3  ;;  %v3432_v54 = vmax.f32 %v3415_v17, 0.0 }
 0xf71   :  { %v9136_v28 = vpack.c.bf16 %v3431_v40, %v3427_v7  ;;  %v9126_v44 = vpack.c.bf16 %v3430_v48, %v3426_v56 }
 0xf72   :  { %v9134_v42 = vpack.c.bf16 %v3432_v54, %v3428_v15 }
 0xf73   :  { %9127 = vmatprep.subr.bf16.mxu0 %v9126_v44 }
 0xf74   :  { %9135 = vmatprep.subr.bf16.mxu1 %v9134_v42  ;;  %9129 = vmatpush1.bf16.msra.mxu0 %v9128_v29 }
 0xf75   :  { %9137 = vmatpush1.bf16.msra.mxu1 %v9136_v28 }
 0xf77   :  { %8706 = vmatmul.mubr.msk.f32.vlgmr.msra.gmra.mrb[120].mxu0 %vm350_vm1, %v11043_v9 }
 0xf78   :  { %8710 = vmatmul.mubr.msk.f32.vlgmr.msra.gmra.mrb[120].mxu1 %vm350_vm1, %v11043_v9  ;;  %3503 = vmatprep.mubr.f32.mxu0 %v12958_v1 }
 0xf79   :  { %3592 = vmatprep.mubr.f32.mxu1 %v12958_v1 }
 0xf7b   :  { %8707 = vmatmul.mubr.msk.f32.gmra.mrb[122].mxu0 %vm350_vm1, %v11054_v45 }
 0xf7c   :  { %8711 = vmatmul.mubr.msk.f32.gmra.mrb[122].mxu1 %vm350_vm1, %v11054_v45  ;;  %3509 = vmatprep.mubr.f32.mxu0 %v12958_v1 }
 0xf7d   :  { %3598 = vmatprep.mubr.f32.mxu1 %v12958_v1 }
 0xf7f   :  { %8708 = vmatmul.mubr.msk.f32.gmra.mrb[124].mxu0 %vm350_vm1, %v11065_v5 }
 0xf80   :  { %8712 = vmatmul.mubr.msk.f32.gmra.mrb[124].mxu1 %vm350_vm1, %v11065_v5  ;;  %3515 = vmatprep.mubr.f32.mxu0 %v12958_v1 }
 0xf81   :  { %3604 = vmatprep.mubr.f32.mxu1 %v12958_v1 }
 0xf83   :  { %8709 = vmatmul.mubr.msk.f32.gmra.mrb[126].mxu0 %vm350_vm1, %v11076_v62 }
 0xf84   :  { %8713 = vmatmul.mubr.msk.f32.gmra.mrb[126].mxu1 %vm350_vm1, %v11076_v62  ;;  %3691 = vmatprep.mubr.f32.mxu0 %v12958_v1 }
 0xf85   :  { %3768 = vmatprep.mubr.f32.mxu1 %v12958_v1 }
0x104a   :  { %v3499_v33 = vpop.f32.mrb[120].mxu0 }
0x104b   :  { %v3588_v50 = vpop.f32.mrb[120].mxu1  ;;  %v3501_v41 = vpop.f32.mrb[121].mxu0  ;;  %v3500_v14 = vadd.f32 %v3499_v33, %v10238_v31 }
0x104c   :  { %v3590_v20 = vpop.f32.mrb[121].mxu1  ;;  %v3589_v23 = vadd.f32 %v3588_v50, %v10238_v31  ;;  %v3502_v13 = vadd.f32 %v3501_v41, %v10238_v31 }
0x104d   :  { %v3591_v46 = vadd.f32 %v3590_v20, %v10238_v31  ;;  %v3611_v48 = vadd.f32 %v3500_v14, %v10911_v12 }
0x104e   :  { %v3505_v24 = vpop.f32.mrb[122].mxu0  ;;  %v3613_v54 = vadd.f32 %v3589_v23, %v10921_v39  ;;  %v3612_v28 = vadd.f32 %v3502_v13, %v10906_v4 }
0x104f   :  { %v3506_v3 = vadd.f32 %v3505_v24, %v10240_v32  ;;  %v3594_v8 = vpop.f32.mrb[122].mxu1  ;;  %v3507_v17 = vpop.f32.mrb[123].mxu0  ;;  %v3614_v50 = vadd.f32 %v3591_v46, %v10914_v21 }
0x1050   :  { %v3595_v7 = vadd.f32 %v3594_v8, %v10240_v32  ;;  %v3508_v56 = vadd.f32 %v3507_v17, %v10240_v32  ;;  %v3596_v40 = vpop.f32.mrb[123].mxu1 }
0x1051   :  { %v3615_v15 = vadd.f32 %v3506_v3, %v10917_v30  ;;  %v3597_v29 = vadd.f32 %v3596_v40, %v10240_v32 }
0x1052   :  { %v3617_v44 = vadd.f32 %v3595_v7, %v10924_v0  ;;  %v3616_v42 = vadd.f32 %v3508_v56, %v10927_v52  ;;  %v3511_v33 = vpop.f32.mrb[124].mxu0 }
0x1053   :  { %v9140_v41 = vpack.c.bf16 %v3615_v15, %v3611_v48  ;;  %v3618_v20 = vadd.f32 %v3597_v29, %v10931_v34  ;;  %v3600_v24 = vpop.f32.mrb[124].mxu1  ;;  %v3513_v12 = vpop.f32.mrb[125].mxu0  ;;  %v3512_v8 = vadd.f32 %v3511_v33, %v12963_v37 }
0x1054   :  { %v9148_v14 = vpack.c.bf16 %v3617_v44, %v3613_v54  ;;  %v3602_v30 = vpop.f32.mrb[125].mxu1  ;;  %v9138_v3 = vpack.c.bf16 %v3616_v42, %v3612_v28  ;;  %v3601_v4 = vadd.f32 %v3600_v24, %v12963_v37  ;;  %v3514_v0 = vadd.f32 %v3513_v12, %v12963_v37 }
0x1055   :  { %v9146_v39 = vpack.c.bf16 %v3618_v20, %v3614_v50  ;;  %v3603_v52 = vadd.f32 %v3602_v30, %v12963_v37  ;;  %v3619_v56 = vadd.f32 %v3512_v8, %v10945_v63 }
0x1056   :  { %v3517_v23 = vpop.f32.mrb[126].mxu0  ;;  %9139 = vmatprep.subr.bf16.mxu0 %v9138_v3  ;;  %v3621_v15 = vadd.f32 %v3601_v4, %v10961_v16  ;;  %v3620_v29 = vadd.f32 %v3514_v0, %v10949_v58  ;;  %v11119_v58 = vld [vmem:[%s12802_s4] sm:$0xff] }
0x1057   :  { %v3518_v21 = vadd.f32 %v3517_v23, %v12964_v27  ;;  %v3606_v13 = vpop.f32.mrb[126].mxu1  ;;  %9147 = vmatprep.subr.bf16.mxu1 %v9146_v39  ;;  %v3519_v34 = vpop.f32.mrb[127].mxu0  ;;  %9141 = vmatpush1.bf16.msra.mxu0 %v9140_v41  ;;  %v3622_v44 = vadd.f32 %v3603_v52, %v10954_v25  ;;  %v11130_v25 = vld [vmem:[%s12802_s4 + $0x8] sm:$0xff] }
0x1058   :  { %v3607_v46 = vadd.f32 %v3606_v13, %v12964_v27  ;;  %v3520_v17 = vadd.f32 %v3519_v34, %v12964_v27  ;;  %v3608_v7 = vpop.f32.mrb[127].mxu1  ;;  %9149 = vmatpush1.bf16.msra.mxu1 %v9148_v14  ;;  %12991 = vst [vmem:[#allocation12_spill] sm:$0xff] %v11130_v25 }
0x1059   :  { %v3623_v40 = vadd.f32 %v3518_v21, %v10957_v53  ;;  %v3609_v48 = vadd.f32 %v3608_v7, %v12964_v27 }
0x105a   :  { %v3625_v54 = vadd.f32 %v3607_v46, %v10964_v6  ;;  %v3624_v28 = vadd.f32 %v3520_v17, %v10967_v36 }
0x105b   :  { %v9144_v42 = vpack.c.bf16 %v3623_v40, %v3619_v56  ;;  %v3626_v33 = vadd.f32 %v3609_v48, %v10971_v43 }
0x105c   :  { %v9152_v50 = vpack.c.bf16 %v3625_v54, %v3621_v15  ;;  %v9142_v41 = vpack.c.bf16 %v3624_v28, %v3620_v29 }
0x105d   :  { %v9150_v63 = vpack.c.bf16 %v3626_v33, %v3622_v44 }
0x105e   :  { %9143 = vmatprep.subr.bf16.mxu0 %v9142_v41 }
0x105f   :  { %9151 = vmatprep.subr.bf16.mxu1 %v9150_v63  ;;  %9145 = vmatpush1.bf16.msra.mxu0 %v9144_v42 }
0x1060   :  { %9153 = vmatpush1.bf16.msra.mxu1 %v9152_v50 }
0x1062   :  { %8714 = vmatmul.mubr.msk.f32.vlgmr.msra.gmra.mrb[128].mxu0 %vm350_vm1, %v11119_v58 }
0x1063   :  { %8716 = vmatmul.mubr.msk.f32.vlgmr.msra.gmra.mrb[128].mxu1 %vm350_vm1, %v11119_v58  ;;  %3697 = vmatprep.mubr.f32.mxu0 %v12958_v1 }
0x1064   :  { %3774 = vmatprep.mubr.f32.mxu1 %v12958_v1 }
0x1066   :  { %8715 = vmatmul.mubr.msk.f32.gmra.mrb[130].mxu0 %vm350_vm1, %v11130_v25 }
0x1067   :  { %8717 = vmatmul.mubr.msk.f32.gmra.mrb[130].mxu1 %vm350_vm1, %v11130_v25  ;;  %3885 = vmatprep.mubr.f32.mxu0 %v12958_v1 }
0x1068   :  { %3974 = vmatprep.mubr.f32.mxu1 %v12958_v1 }
0x1135   :  { %v3693_v53 = vpop.f32.mrb[128].mxu0 }
0x1136   :  { %v3694_v16 = vadd.f32 %v3693_v53, %v12967_v18  ;;  %v3770_v6 = vpop.f32.mrb[128].mxu1  ;;  %v3695_v36 = vpop.f32.mrb[129].mxu0  ;;  %v11149_v53 = vld [vmem:[%s12799_s0] sm:$0xff] }
0x1137   :  { %v3771_v43 = vadd.f32 %v3770_v6, %v12967_v18  ;;  %v3696_v20 = vadd.f32 %v3695_v36, %v12967_v18  ;;  %v3772_v24 = vpop.f32.mrb[129].mxu1  ;;  %12992 = vst [vmem:[#allocation13_spill] sm:$0xff] %v11149_v53  ;;  %v11155_v36 = vld [vmem:[%s12799_s0 + $0x10] sm:$0xff] }
0x1138   :  { %v8718_v12 = vmul.f32 -1.442695, %v3694_v16  ;;  %v3773_v14 = vadd.f32 %v3772_v24, %v12967_v18  ;;  %12993 = vst [vmem:[#allocation16_spill] sm:$0xff] %v11155_v36 }
0x1139   :  { %v8720_v30 = vmul.f32 -1.442695, %v3771_v43  ;;  %v8719_v3 = vmul.f32 -1.442695, %v3696_v20  ;;  %v3699_v8 = vpop.f32.mrb[130].mxu0 }
0x113a   :  { %9528 = vpow2.f32 %v8718_v12  ;;  %v8721_v39 = vmul.f32 -1.442695, %v3773_v14  ;;  %v3776_v4 = vpop.f32.mrb[130].mxu1  ;;  %v3701_v0 = vpop.f32.mrb[131].mxu0  ;;  %v3700_v33 = vadd.f32 %v3699_v8, %v12968_v57  ;;  %v11161_v12 = vld [vmem:[%s12799_s0 + $0x8] sm:$0xff]  ;;  %v11167_v8 = vld [vmem:[%s12799_s0 + $0x18] sm:$0xff] }
0x113b   :  { %9530 = vpow2.f32 %v8720_v30  ;;  %v3778_v23 = vpop.f32.mrb[131].mxu1  ;;  %v3777_v50 = vadd.f32 %v3776_v4, %v12968_v57  ;;  %v3702_v41 = vadd.f32 %v3701_v0, %v12968_v57  ;;  %12994 = vst [vmem:[#allocation17_spill] sm:$0xff] %v11161_v12  ;;  %12995 = vst [vmem:[#allocation18_spill] sm:$0xff] %v11167_v8 }
0x113c   :  { %9532 = vpow2.f32 %v8719_v3  ;;  %v3779_v63 = vadd.f32 %v3778_v23, %v12968_v57  ;;  %v3809_v16 = vsub.f32 %v11149_v53, %v3700_v33 }
0x113d   :  { %9534 = vpow2.f32 %v8721_v39  ;;  %v3811_v43 = vsub.f32 %v11155_v36, %v3777_v50  ;;  %v3810_v14 = vsub.f32 %v11161_v12, %v3702_v41 }
0x113e   :  { %v3812_v39 = vsub.f32 %v11167_v8, %v3779_v63 }
0x1144   :  { %v9529_v52 = vpop.eup %9528 }
0x1145   :  { %v9531_v21 = vpop.eup %9530  ;;  %v3793_v13 = vadd.f32 1.0, %v9529_v52  ;;  %v11173_v52 = vld [vmem:[%s12800_s1] sm:$0xff] }
0x1146   :  { %v9533_v34 = vpop.eup %9532  ;;  %v3795_v46 = vadd.f32 1.0, %v9531_v21  ;;  %12996 = vst [vmem:[#allocation19_spill] sm:$0xff] %v11173_v52  ;;  %v11184_v21 = vld [vmem:[%s12800_s1 + $0x8] sm:$0xff] }
0x1147   :  { %v9535_v17 = vpop.eup %9534  ;;  %9536 = vrcp.f32 %v3793_v13  ;;  %v3794_v7 = vadd.f32 1.0, %v9533_v34  ;;  %12997 = vst [vmem:[#allocation20_spill] sm:$0xff] %v11184_v21  ;;  %v11195_v13 = vld [vmem:[%s12800_s1 + $0x10] sm:$0xff]  ;;  %v11206_v34 = vld [vmem:[%s12800_s1 + $0x18] sm:$0xff] }
0x1148   :  { %9538 = vrcp.f32 %v3795_v46  ;;  %v3796_v56 = vadd.f32 1.0, %v9535_v17  ;;  %12998 = vst [vmem:[#allocation21_spill] sm:$0xff] %v11195_v13  ;;  %12999 = vst [vmem:[#allocation22_spill] sm:$0xff] %v11206_v34 }
0x1149   :  { %9540 = vrcp.f32 %v3794_v7 }
0x114a   :  { %9542 = vrcp.f32 %v3796_v56 }
0x1151   :  { %v9537_v40 = vpop.eup %9536 }
0x1152   :  { %v9539_v48 = vpop.eup %9538  ;;  %v3805_v15 = vadd.f32 0.001, %v9537_v40 }
0x1153   :  { %v9541_v29 = vpop.eup %9540  ;;  %v3807_v54 = vadd.f32 0.001, %v9539_v48 }
0x1154   :  { %v9543_v28 = vpop.eup %9542  ;;  %9544 = vrcp.f32 %v3805_v15  ;;  %v3806_v44 = vadd.f32 0.001, %v9541_v29 }
0x1155   :  { %9546 = vrcp.f32 %v3807_v54  ;;  %v3808_v42 = vadd.f32 0.001, %v9543_v28 }
0x1156   :  { %9548 = vrcp.f32 %v3806_v44 }
0x1157   :  { %9550 = vrcp.f32 %v3808_v42 }
0x115e   :  { %v9545_v6 = vpop.eup %9544 }
0x115f   :  { %v9547_v20 = vpop.eup %9546  ;;  %v3814_v24 = vmul.f32 %v9545_v6, %v3809_v16 }
0x1160   :  { %v9549_v30 = vpop.eup %9548  ;;  %v3818_v3 = vmul.f32 %v9547_v20, %v3811_v43 }
0x1161   :  { %v9551_v4 = vpop.eup %9550  ;;  %v3816_v0 = vmul.f32 %v9549_v30, %v3810_v14 }
0x1162   :  { %v3820_v23 = vmul.f32 %v9551_v4, %v3812_v39 }
0x1163   :  { %3821 = vmatprep.subr.mxu0 %v3816_v0 }
0x1164   :  { %3910 = vmatprep.subr.mxu1 %v3820_v23  ;;  %3822 = vmatpush1.msra.mxu0 %v3814_v24 }
0x1165   :  { %3911 = vmatpush1.msra.mxu1 %v3818_v3  ;;  %8722 = vmatmul.mubr.msk.f32.vlgmr.msra.gmra.mrb[132].mxu0 %vm123_vm0, %v11173_v52 }
0x1166   :  { %8726 = vmatmul.mubr.msk.f32.vlgmr.msra.gmra.mrb[132].mxu1 %vm123_vm0, %v11173_v52  ;;  %3891 = vmatprep.mubr.f32.mxu0 %v12958_v1 }
0x1167   :  { %3980 = vmatprep.mubr.f32.mxu1 %v12958_v1 }
0x1169   :  { %8723 = vmatmul.mubr.msk.f32.gmra.mrb[134].mxu0 %vm123_vm0, %v11184_v21 }
0x116a   :  { %8727 = vmatmul.mubr.msk.f32.gmra.mrb[134].mxu1 %vm123_vm0, %v11184_v21  ;;  %3897 = vmatprep.mubr.f32.mxu0 %v12958_v1 }
0x116b   :  { %3986 = vmatprep.mubr.f32.mxu1 %v12958_v1 }
0x116d   :  { %8724 = vmatmul.mubr.msk.f32.gmra.mrb[136].mxu0 %vm123_vm0, %v11195_v13 }
0x116e   :  { %8728 = vmatmul.mubr.msk.f32.gmra.mrb[136].mxu1 %vm123_vm0, %v11195_v13  ;;  %3903 = vmatprep.mubr.f32.mxu0 %v12958_v1 }
0x116f   :  { %3992 = vmatprep.mubr.f32.mxu1 %v12958_v1 }
0x1171   :  { %8725 = vmatmul.mubr.msk.f32.gmra.mrb[138].mxu0 %vm123_vm0, %v11206_v34 }
0x1172   :  { %8729 = vmatmul.mubr.msk.f32.gmra.mrb[138].mxu1 %vm123_vm0, %v11206_v34  ;;  %4079 = vmatprep.mubr.f32.mxu0 %v12958_v1 }
0x1173   :  { %4168 = vmatprep.mubr.f32.mxu1 %v12958_v1 }
0x1238   :  { %v3887_v46 = vpop.f32.mrb[132].mxu0 }
0x1239   :  { %v3976_v17 = vpop.f32.mrb[132].mxu1  ;;  %v3889_v7 = vpop.f32.mrb[133].mxu0  ;;  %v11218_v15 = vadd.f32 %v3887_v46, %v12977_v22 }
0x123a   :  { %v3978_v56 = vpop.f32.mrb[133].mxu1  ;;  %v11215_v40 = vadd.f32 %v3889_v7, %v12977_v22  ;;  %v11227_v42 = vadd.f32 %v3976_v17, %v12977_v22 }
0x123b   :  { %v11221_v29 = vadd.f32 %v3978_v56, %v12977_v22  ;;  %v3999_v14 = vmax.f32 %v11218_v15, 0.0 }
0x123c   :  { %v3893_v48 = vpop.f32.mrb[134].mxu0  ;;  %v4000_v6 = vmax.f32 %v11215_v40, 0.0  ;;  %v4001_v0 = vmax.f32 %v11227_v42, 0.0 }
0x123d   :  { %v11224_v54 = vadd.f32 %v3893_v48, %v12978_v47  ;;  %v3982_v28 = vpop.f32.mrb[134].mxu1  ;;  %v3895_v44 = vpop.f32.mrb[135].mxu0  ;;  %v4002_v30 = vmax.f32 %v11221_v29, 0.0 }
0x123e   :  { %v11230_v33 = vadd.f32 %v3982_v28, %v12978_v47  ;;  %v11233_v50 = vadd.f32 %v3895_v44, %v12978_v47  ;;  %v3984_v41 = vpop.f32.mrb[135].mxu1 }
0x123f   :  { %v4003_v63 = vmax.f32 %v11224_v54, 0.0  ;;  %v11237_v16 = vadd.f32 %v3984_v41, %v12978_v47  ;;  %v13000_v47 = vld [vmem:[#allocation5_spill] sm:$0xff] }
0x1240   :  { %v4005_v43 = vmax.f32 %v11230_v33, 0.0  ;;  %v4004_v20 = vmax.f32 %v11233_v50, 0.0  ;;  %v3899_v24 = vpop.f32.mrb[136].mxu0 }
0x1241   :  { %v4006_v3 = vmax.f32 %v11237_v16, 0.0  ;;  %v3988_v39 = vpop.f32.mrb[136].mxu1  ;;  %v3901_v4 = vpop.f32.mrb[137].mxu0  ;;  %v9156_v17 = vpack.c.bf16 %v4003_v63, %v3999_v14  ;;  %v11250_v44 = vadd.f32 %v3899_v24, %v12979_v60 }
0x1242   :  { %v3990_v23 = vpop.f32.mrb[137].mxu1  ;;  %v9154_v46 = vpack.c.bf16 %v4004_v20, %v4000_v6  ;;  %v9164_v56 = vpack.c.bf16 %v4005_v43, %v4001_v0  ;;  %v11247_v48 = vadd.f32 %v3901_v4, %v12979_v60  ;;  %v11259_v63 = vadd.f32 %v3988_v39, %v12979_v60 }
0x1243   :  { %v9162_v7 = vpack.c.bf16 %v4006_v3, %v4002_v30  ;;  %v11253_v41 = vadd.f32 %v3990_v23, %v12979_v60  ;;  %v4007_v0 = vmax.f32 %v11250_v44, 0.0 }
0x1244   :  { %v3905_v28 = vpop.f32.mrb[138].mxu0  ;;  %9155 = vmatprep.subr.bf16.mxu0 %v9154_v46  ;;  %v4008_v3 = vmax.f32 %v11247_v48, 0.0  ;;  %v4009_v46 = vmax.f32 %v11259_v63, 0.0 }
0x1245   :  { %v11256_v22 = vadd.f32 %v3905_v28, %v13000_v47  ;;  %v3994_v34 = vpop.f32.mrb[138].mxu1  ;;  %9163 = vmatprep.subr.bf16.mxu1 %v9162_v7  ;;  %v3907_v6 = vpop.f32.mrb[139].mxu0  ;;  %9157 = vmatpush1.bf16.msra.mxu0 %v9156_v17 }
0x1246   :  { %v11262_v43 = vadd.f32 %v3994_v34, %v13000_v47  ;;  %v11265_v20 = vadd.f32 %v3907_v6, %v13000_v47  ;;  %v3996_v24 = vpop.f32.mrb[139].mxu1  ;;  %9165 = vmatpush1.bf16.msra.mxu1 %v9164_v56  ;;  %v4010_v34 = vmax.f32 %v11253_v41, 0.0  ;;  %v11281_v6 = vld [vmem:[%s12801_s2] sm:$0xff] }
0x1247   :  { %v4011_v14 = vmax.f32 %v11256_v22, 0.0  ;;  %v11269_v30 = vadd.f32 %v3996_v24, %v13000_v47  ;;  %13001 = vst [vmem:[#allocation23_spill] sm:$0xff] %v11281_v6  ;;  %v11292_v24 = vld [vmem:[%s12801_s2 + $0x8] sm:$0xff] }
0x1248   :  { %v4013_v4 = vmax.f32 %v11262_v43, 0.0  ;;  %v4012_v39 = vmax.f32 %v11265_v20, 0.0  ;;  %13002 = vst [vmem:[#allocation24_spill] sm:$0xff] %v11292_v24 }
0x1249   :  { %v4014_v23 = vmax.f32 %v11269_v30, 0.0  ;;  %v9160_v7 = vpack.c.bf16 %v4011_v14, %v4007_v0  ;;  %v11303_v14 = vld [vmem:[%s12801_s2 + $0x10] sm:$0xff] }
0x124a   :  { %v9158_v17 = vpack.c.bf16 %v4012_v39, %v4008_v3  ;;  %v9168_v28 = vpack.c.bf16 %v4013_v4, %v4009_v46  ;;  %13003 = vst [vmem:[#allocation25_spill] sm:$0xff] %v11303_v14  ;;  %v11314_v3 = vld [vmem:[%s12801_s2 + $0x18] sm:$0xff] }
0x124b   :  { %v9166_v56 = vpack.c.bf16 %v4014_v23, %v4010_v34  ;;  %13004 = vst [vmem:[#allocation26_spill] sm:$0xff] %v11314_v3  ;;  %v13005_v23 = vld [vmem:[#allocation6_spill] sm:$0xff] }
0x124c   :  { %9159 = vmatprep.subr.bf16.mxu0 %v9158_v17 }
0x124d   :  { %9167 = vmatprep.subr.bf16.mxu1 %v9166_v56  ;;  %9161 = vmatpush1.bf16.msra.mxu0 %v9160_v7 }
0x124e   :  { %9169 = vmatpush1.bf16.msra.mxu1 %v9168_v28 }
0x1250   :  { %8730 = vmatmul.mubr.msk.f32.vlgmr.msra.gmra.mrb[140].mxu0 %vm350_vm1, %v11281_v6 }
0x1251   :  { %8734 = vmatmul.mubr.msk.f32.vlgmr.msra.gmra.mrb[140].mxu1 %vm350_vm1, %v11281_v6  ;;  %4085 = vmatprep.mubr.f32.mxu0 %v12958_v1 }
0x1252   :  { %4174 = vmatprep.mubr.f32.mxu1 %v12958_v1 }
0x1254   :  { %8731 = vmatmul.mubr.msk.f32.gmra.mrb[142].mxu0 %vm350_vm1, %v11292_v24 }
0x1255   :  { %8735 = vmatmul.mubr.msk.f32.gmra.mrb[142].mxu1 %vm350_vm1, %v11292_v24  ;;  %4091 = vmatprep.mubr.f32.mxu0 %v12958_v1 }
0x1256   :  { %4180 = vmatprep.mubr.f32.mxu1 %v12958_v1 }
0x1258   :  { %8732 = vmatmul.mubr.msk.f32.gmra.mrb[144].mxu0 %vm350_vm1, %v11303_v14 }
0x1259   :  { %8736 = vmatmul.mubr.msk.f32.gmra.mrb[144].mxu1 %vm350_vm1, %v11303_v14  ;;  %4097 = vmatprep.mubr.f32.mxu0 %v12958_v1 }
0x125a   :  { %4186 = vmatprep.mubr.f32.mxu1 %v12958_v1 }
0x125c   :  { %8733 = vmatmul.mubr.msk.f32.gmra.mrb[146].mxu0 %vm350_vm1, %v11314_v3 }
0x125d   :  { %8737 = vmatmul.mubr.msk.f32.gmra.mrb[146].mxu1 %vm350_vm1, %v11314_v3  ;;  %4273 = vmatprep.mubr.f32.mxu0 %v12958_v1 }
0x125e   :  { %4362 = vmatprep.mubr.f32.mxu1 %v12958_v1 }
0x1323   :  { %v4081_v4 = vpop.f32.mrb[140].mxu0 }
0x1324   :  { %v4170_v39 = vpop.f32.mrb[140].mxu1  ;;  %v4083_v0 = vpop.f32.mrb[141].mxu0  ;;  %v4082_v46 = vadd.f32 %v4081_v4, %v13005_v23 }
0x1325   :  { %v4172_v34 = vpop.f32.mrb[141].mxu1  ;;  %v4171_v17 = vadd.f32 %v4170_v39, %v13005_v23  ;;  %v4084_v7 = vadd.f32 %v4083_v0, %v13005_v23 }
0x1326   :  { %v4173_v28 = vadd.f32 %v4172_v34, %v13005_v23  ;;  %v4193_v13 = vmax.f32 %v4082_v46, 0.0 }
0x1327   :  { %v4087_v56 = vpop.f32.mrb[142].mxu0  ;;  %v4195_v52 = vmax.f32 %v4171_v17, 0.0  ;;  %v4194_v39 = vmax.f32 %v4084_v7, 0.0 }
0x1328   :  { %v4088_v14 = vadd.f32 %v4087_v56, %v9988_v59  ;;  %v4176_v3 = vpop.f32.mrb[142].mxu1  ;;  %v4089_v24 = vpop.f32.mrb[143].mxu0  ;;  %v4196_v36 = vmax.f32 %v4173_v28, 0.0 }
0x1329   :  { %v4177_v6 = vadd.f32 %v4176_v3, %v9988_v59  ;;  %v4090_v47 = vadd.f32 %v4089_v24, %v9988_v59  ;;  %v4178_v60 = vpop.f32.mrb[143].mxu1 }
0x132a   :  { %v4197_v21 = vmax.f32 %v4088_v14, 0.0  ;;  %v4179_v4 = vadd.f32 %v4178_v60, %v9988_v59 }
0x132b   :  { %v4199_v8 = vmax.f32 %v4177_v6, 0.0  ;;  %v4198_v0 = vmax.f32 %v4090_v47, 0.0  ;;  %v4093_v12 = vpop.f32.mrb[144].mxu0 }
0x132c   :  { %v9172_v34 = vpack.c.bf16 %v4197_v21, %v4193_v13  ;;  %v4200_v23 = vmax.f32 %v4179_v4, 0.0  ;;  %v4182_v56 = vpop.f32.mrb[144].mxu1  ;;  %v4095_v53 = vpop.f32.mrb[145].mxu0  ;;  %v4094_v24 = vadd.f32 %v4093_v12, %v9998_v35 }
0x132d   :  { %v9180_v57 = vpack.c.bf16 %v4199_v8, %v4195_v52  ;;  %v9170_v18 = vpack.c.bf16 %v4198_v0, %v4194_v39  ;;  %v4184_v3 = vpop.f32.mrb[145].mxu1  ;;  %v4183_v14 = vadd.f32 %v4182_v56, %v9998_v35  ;;  %v4096_v60 = vadd.f32 %v4095_v53, %v9998_v35 }
0x132e   :  { %v9178_v25 = vpack.c.bf16 %v4200_v23, %v4196_v36  ;;  %v4185_v47 = vadd.f32 %v4184_v3, %v9998_v35  ;;  %v4201_v12 = vmax.f32 %v4094_v24, 0.0  ;;  %v11352_v3 = vld [vmem:[%s12801_s2 + $0x28] sm:$0xff]  ;;  %v11363_v24 = vld [vmem:[%s12801_s2 + $0x30] sm:$0xff] }
0x132f   :  { %v4099_v46 = vpop.f32.mrb[146].mxu0  ;;  %9171 = vmatprep.subr.bf16.mxu0 %v9170_v18  ;;  %v4203_v17 = vmax.f32 %v4183_v14, 0.0  ;;  %v4202_v18 = vmax.f32 %v4096_v60, 0.0  ;;  %v11374_v14 = vld [vmem:[%s12801_s2 + $0x38] sm:$0xff] }
0x1330   :  { %v4100_v6 = vadd.f32 %v4099_v46, %v10000_v38  ;;  %v4188_v21 = vpop.f32.mrb[146].mxu1  ;;  %9179 = vmatprep.subr.bf16.mxu1 %v9178_v25  ;;  %v4101_v13 = vpop.f32.mrb[147].mxu0  ;;  %9173 = vmatpush1.bf16.msra.mxu0 %v9172_v34  ;;  %v4204_v4 = vmax.f32 %v4185_v47, 0.0  ;;  %13006 = vst [vmem:[#allocation27_spill] sm:$0xff] %v11374_v14 }
0x1331   :  { %v4189_v8 = vadd.f32 %v4188_v21, %v10000_v38  ;;  %v4102_v36 = vadd.f32 %v4101_v13, %v10000_v38  ;;  %v4190_v52 = vpop.f32.mrb[147].mxu1  ;;  %9181 = vmatpush1.bf16.msra.mxu1 %v9180_v57  ;;  %v11341_v57 = vld [vmem:[%s12801_s2 + $0x20] sm:$0xff] }
0x1332   :  { %v4205_v23 = vmax.f32 %v4100_v6, 0.0  ;;  %v4191_v53 = vadd.f32 %v4190_v52, %v10000_v38 }
0x1333   :  { %v4207_v7 = vmax.f32 %v4189_v8, 0.0  ;;  %v4206_v28 = vmax.f32 %v4102_v36, 0.0 }
0x1334   :  { %v9176_v39 = vpack.c.bf16 %v4205_v23, %v4201_v12  ;;  %v4208_v0 = vmax.f32 %v4191_v53, 0.0 }
0x1335   :  { %v9184_v25 = vpack.c.bf16 %v4207_v7, %v4203_v17  ;;  %v9174_v56 = vpack.c.bf16 %v4206_v28, %v4202_v18 }
0x1336   :  { %v9182_v34 = vpack.c.bf16 %v4208_v0, %v4204_v4 }
0x1337   :  { %9175 = vmatprep.subr.bf16.mxu0 %v9174_v56 }
0x1338   :  { %9183 = vmatprep.subr.bf16.mxu1 %v9182_v34  ;;  %9177 = vmatpush1.bf16.msra.mxu0 %v9176_v39 }
0x1339   :  { %9185 = vmatpush1.bf16.msra.mxu1 %v9184_v25 }
0x133b   :  { %8738 = vmatmul.mubr.msk.f32.vlgmr.msra.gmra.mrb[148].mxu0 %vm350_vm1, %v11341_v57 }
0x133c   :  { %8742 = vmatmul.mubr.msk.f32.vlgmr.msra.gmra.mrb[148].mxu1 %vm350_vm1, %v11341_v57  ;;  %4279 = vmatprep.mubr.f32.mxu0 %v12958_v1 }
0x133d   :  { %4368 = vmatprep.mubr.f32.mxu1 %v12958_v1 }
0x133f   :  { %8739 = vmatmul.mubr.msk.f32.gmra.mrb[150].mxu0 %vm350_vm1, %v11352_v3 }
0x1340   :  { %8743 = vmatmul.mubr.msk.f32.gmra.mrb[150].mxu1 %vm350_vm1, %v11352_v3  ;;  %4285 = vmatprep.mubr.f32.mxu0 %v12958_v1 }
0x1341   :  { %4374 = vmatprep.mubr.f32.mxu1 %v12958_v1 }
0x1343   :  { %8740 = vmatmul.mubr.msk.f32.gmra.mrb[152].mxu0 %vm350_vm1, %v11363_v24 }
0x1344   :  { %8744 = vmatmul.mubr.msk.f32.gmra.mrb[152].mxu1 %vm350_vm1, %v11363_v24  ;;  %4291 = vmatprep.mubr.f32.mxu0 %v12958_v1 }
0x1345   :  { %4380 = vmatprep.mubr.f32.mxu1 %v12958_v1 }
0x1347   :  { %8741 = vmatmul.mubr.msk.f32.gmra.mrb[154].mxu0 %vm350_vm1, %v11374_v14 }
0x1348   :  { %8745 = vmatmul.mubr.msk.f32.gmra.mrb[154].mxu1 %vm350_vm1, %v11374_v14  ;;  %4483 = vmatprep.mubr.f32.mxu0 %v12958_v1 }
0x1349   :  { %4572 = vmatprep.mubr.f32.mxu1 %v12958_v1 }
0x140e   :  { %v4275_v60 = vpop.f32.mrb[148].mxu0 }
0x140f   :  { %v4364_v46 = vpop.f32.mrb[148].mxu1  ;;  %v4277_v47 = vpop.f32.mrb[149].mxu0  ;;  %v4276_v13 = vadd.f32 %v4275_v60, %v12987_v2 }
0x1410   :  { %v4278_v6 = vadd.f32 %v4277_v47, %v12987_v2  ;;  %v4366_v21 = vpop.f32.mrb[149].mxu1  ;;  %v4365_v36 = vadd.f32 %v4364_v46, %v12987_v2 }
0x1411   :  { %v4367_v8 = vadd.f32 %v4366_v21, %v12987_v2  ;;  %v11393_v4 = vadd.f32 %v4276_v13, %v11218_v15 }
0x1412   :  { %v4281_v52 = vpop.f32.mrb[150].mxu0  ;;  %v11388_v17 = vadd.f32 %v4278_v6, %v11215_v40  ;;  %v11403_v56 = vadd.f32 %v4365_v36, %v11227_v42 }
0x1413   :  { %v4282_v12 = vadd.f32 %v4281_v52, %v12988_v19  ;;  %v4370_v23 = vpop.f32.mrb[150].mxu1  ;;  %v4283_v53 = vpop.f32.mrb[151].mxu0  ;;  %v11396_v39 = vadd.f32 %v4367_v8, %v11221_v29  ;;  %v4403_v13 = vmax.f32 %v11393_v4, 0.0 }
0x1414   :  { %v4371_v18 = vadd.f32 %v4370_v23, %v12988_v19  ;;  %v4284_v7 = vadd.f32 %v4283_v53, %v12988_v19  ;;  %v4372_v28 = vpop.f32.mrb[151].mxu1  ;;  %v4404_v6 = vmax.f32 %v11388_v17, 0.0  ;;  %v4405_v52 = vmax.f32 %v11403_v56, 0.0 }
0x1415   :  { %v11399_v0 = vadd.f32 %v4282_v12, %v11224_v54  ;;  %v4373_v25 = vadd.f32 %v4372_v28, %v12988_v19  ;;  %v4406_v8 = vmax.f32 %v11396_v39, 0.0 }
0x1416   :  { %v11406_v40 = vadd.f32 %v4371_v18, %v11230_v33  ;;  %v11409_v34 = vadd.f32 %v4284_v7, %v11233_v50  ;;  %v4287_v60 = vpop.f32.mrb[152].mxu0 }
0x1417   :  { %v4407_v15 = vmax.f32 %v11399_v0, 0.0  ;;  %v11413_v29 = vadd.f32 %v4373_v25, %v11237_v16  ;;  %v4288_v54 = vadd.f32 %v4287_v60, %v10059_v55  ;;  %v4376_v46 = vpop.f32.mrb[152].mxu1  ;;  %v4289_v47 = vpop.f32.mrb[153].mxu0 }
0x1418   :  { %v4409_v42 = vmax.f32 %v11406_v40, 0.0  ;;  %v4408_v33 = vmax.f32 %v11409_v34, 0.0  ;;  %v4290_v21 = vadd.f32 %v4289_v47, %v10059_v55  ;;  %v4378_v50 = vpop.f32.mrb[153].mxu1  ;;  %v4377_v12 = vadd.f32 %v4376_v46, %v10059_v55 }
0x1419   :  { %v4410_v16 = vmax.f32 %v11413_v29, 0.0  ;;  %v4379_v36 = vadd.f32 %v4378_v50, %v10059_v55  ;;  %v9188_v18 = vpack.c.bf16 %v4407_v15, %v4403_v13  ;;  %v11427_v7 = vadd.f32 %v4288_v54, %v11250_v44 }
0x141a   :  { %v4293_v23 = vpop.f32.mrb[154].mxu0  ;;  %v9186_v53 = vpack.c.bf16 %v4408_v33, %v4404_v6  ;;  %v9196_v19 = vpack.c.bf16 %v4409_v42, %v4405_v52  ;;  %v11431_v2 = vadd.f32 %v4290_v21, %v11247_v48  ;;  %v11443_v6 = vadd.f32 %v4377_v12, %v11259_v63 }
0x141b   :  { %v4294_v28 = vadd.f32 %v4293_v23, %v10086_v10  ;;  %v4382_v25 = vpop.f32.mrb[154].mxu1  ;;  %v4295_v60 = vpop.f32.mrb[155].mxu0  ;;  %v9194_v47 = vpack.c.bf16 %v4410_v16, %v4406_v8  ;;  %v11436_v15 = vadd.f32 %v4379_v36, %v11253_v41  ;;  %v4411_v63 = vmax.f32 %v11427_v7, 0.0 }
0x141c   :  { %v4383_v50 = vadd.f32 %v4382_v25, %v10086_v10  ;;  %v4296_v14 = vadd.f32 %v4295_v60, %v10086_v10  ;;  %v4384_v46 = vpop.f32.mrb[155].mxu1  ;;  %9187 = vmatprep.subr.bf16.mxu0 %v9186_v53  ;;  %v13009_v53 = vld [vmem:[#allocation9_spill] sm:$0xff] }
0x141d   :  { %v11439_v44 = vadd.f32 %v4294_v28, %v11256_v22  ;;  %v4385_v54 = vadd.f32 %v4384_v46, %v10086_v10  ;;  %9195 = vmatprep.subr.bf16.mxu1 %v9194_v47  ;;  %9189 = vmatpush1.bf16.msra.mxu0 %v9188_v18  ;;  %v4412_v22 = vmax.f32 %v11431_v2, 0.0 }
0x141e   :  { %v11446_v48 = vadd.f32 %v4383_v50, %v11262_v43  ;;  %v11449_v42 = vadd.f32 %v4296_v14, %v11265_v20  ;;  %9197 = vmatpush1.bf16.msra.mxu1 %v9196_v19  ;;  %v4414_v43 = vmax.f32 %v11436_v15, 0.0  ;;  %v4413_v20 = vmax.f32 %v11443_v6, 0.0 }
0x141f   :  { %v4415_v41 = vmax.f32 %v11439_v44, 0.0  ;;  %v11453_v33 = vadd.f32 %v4385_v54, %v11269_v30  ;;  %v13007_v30 = vld [vmem:[#allocation10_spill] sm:$0xff] }
0x1420   :  { %v4417_v21 = vmax.f32 %v11446_v48, 0.0  ;;  %v4416_v13 = vmax.f32 %v11449_v42, 0.0 }
0x1421   :  { %v4418_v8 = vmax.f32 %v11453_v33, 0.0  ;;  %v9192_v14 = vpack.c.bf16 %v4415_v41, %v4411_v63 }
0x1422   :  { %v9190_v19 = vpack.c.bf16 %v4416_v13, %v4412_v22  ;;  %v9200_v36 = vpack.c.bf16 %v4417_v21, %v4413_v20 }
0x1423   :  { %v9198_v16 = vpack.c.bf16 %v4418_v8, %v4414_v43 }
0x1424   :  { %9191 = vmatprep.subr.bf16.mxu0 %v9190_v19 }
0x1425   :  { %9199 = vmatprep.subr.bf16.mxu1 %v9198_v16  ;;  %9193 = vmatpush1.bf16.msra.mxu0 %v9192_v14 }
0x1426   :  { %9201 = vmatpush1.bf16.msra.mxu1 %v9200_v36 }
0x1428   :  { %8746 = vmatmul.mubr.msk.f32.vlgmr.msra.gmra.mrb[156].mxu0 %vm350_vm1, %v10983_v49 }
0x1429   :  { %8750 = vmatmul.mubr.msk.f32.vlgmr.msra.gmra.mrb[156].mxu1 %vm350_vm1, %v10983_v49  ;;  %4489 = vmatprep.mubr.f32.mxu0 %v12958_v1  ;;  %v13008_v49 = vld [vmem:[#allocation11_spill] sm:$0xff] }
0x142a   :  { %4578 = vmatprep.mubr.f32.mxu1 %v12958_v1 }
0x142c   :  { %8747 = vmatmul.mubr.msk.f32.gmra.mrb[158].mxu0 %vm350_vm1, %v10994_v51 }
0x142d   :  { %8751 = vmatmul.mubr.msk.f32.gmra.mrb[158].mxu1 %vm350_vm1, %v10994_v51  ;;  %4495 = vmatprep.mubr.f32.mxu0 %v12958_v1 }
0x142e   :  { %4584 = vmatprep.mubr.f32.mxu1 %v12958_v1 }
0x1430   :  { %8748 = vmatmul.mubr.msk.f32.gmra.mrb[160].mxu0 %vm350_vm1, %v13007_v30 }
0x1431   :  { %8752 = vmatmul.mubr.msk.f32.gmra.mrb[160].mxu1 %vm350_vm1, %v13007_v30  ;;  %4501 = vmatprep.mubr.f32.mxu0 %v12958_v1 }
0x1432   :  { %4590 = vmatprep.mubr.f32.mxu1 %v12958_v1 }
0x1434   :  { %8749 = vmatmul.mubr.msk.f32.gmra.mrb[162].mxu0 %vm350_vm1, %v13008_v49 }
0x1435   :  { %8753 = vmatmul.mubr.msk.f32.gmra.mrb[162].mxu1 %vm350_vm1, %v13008_v49  ;;  %4677 = vmatprep.mubr.f32.mxu0 %v12958_v1 }
0x1436   :  { %4766 = vmatprep.mubr.f32.mxu1 %v12958_v1 }
0x14fb   :  { %v4485_v51 = vpop.f32.mrb[156].mxu0 }
0x14fc   :  { %v4574_v52 = vpop.f32.mrb[156].mxu1  ;;  %v4487_v12 = vpop.f32.mrb[157].mxu0  ;;  %v4486_v18 = vadd.f32 %v4485_v51, %v13009_v53 }
0x14fd   :  { %v4576_v23 = vpop.f32.mrb[157].mxu1  ;;  %v4575_v28 = vadd.f32 %v4574_v52, %v13009_v53  ;;  %v4488_v25 = vadd.f32 %v4487_v12, %v13009_v53 }
0x14fe   :  { %v4577_v47 = vadd.f32 %v4576_v23, %v13009_v53  ;;  %v4597_v13 = vmax.f32 %v4486_v18, 0.0 }
0x14ff   :  { %v4491_v60 = vpop.f32.mrb[158].mxu0  ;;  %v4599_v8 = vmax.f32 %v4575_v28, 0.0  ;;  %v4598_v20 = vmax.f32 %v4488_v25, 0.0 }
0x1500   :  { %v4492_v50 = vadd.f32 %v4491_v60, %v10172_v11  ;;  %v4580_v46 = vpop.f32.mrb[158].mxu1  ;;  %v4493_v54 = vpop.f32.mrb[159].mxu0  ;;  %v4600_v36 = vmax.f32 %v4577_v47, 0.0 }
0x1501   :  { %v4581_v41 = vadd.f32 %v4580_v46, %v10172_v11  ;;  %v4494_v22 = vadd.f32 %v4493_v54, %v10172_v11  ;;  %v4582_v21 = vpop.f32.mrb[159].mxu1 }
0x1502   :  { %v4601_v63 = vmax.f32 %v4492_v50, 0.0  ;;  %v4583_v43 = vadd.f32 %v4582_v21, %v10172_v11 }
0x1503   :  { %v4603_v19 = vmax.f32 %v4581_v41, 0.0  ;;  %v4602_v14 = vmax.f32 %v4494_v22, 0.0  ;;  %v4497_v16 = vpop.f32.mrb[160].mxu0 }
0x1504   :  { %v9204_v30 = vpack.c.bf16 %v4601_v63, %v4597_v13  ;;  %v4604_v49 = vmax.f32 %v4583_v43, 0.0  ;;  %v4586_v51 = vpop.f32.mrb[160].mxu1  ;;  %v4499_v52 = vpop.f32.mrb[161].mxu0  ;;  %v4498_v54 = vadd.f32 %v4497_v16, %v10182_v61 }
0x1505   :  { %v9212_v12 = vpack.c.bf16 %v4603_v19, %v4599_v8  ;;  %v9202_v23 = vpack.c.bf16 %v4602_v14, %v4598_v20  ;;  %v4588_v60 = vpop.f32.mrb[161].mxu1  ;;  %v4587_v18 = vadd.f32 %v4586_v51, %v10182_v61  ;;  %v4500_v50 = vadd.f32 %v4499_v52, %v10182_v61 }
0x1506   :  { %v9210_v46 = vpack.c.bf16 %v4604_v49, %v4600_v36  ;;  %v4589_v25 = vadd.f32 %v4588_v60, %v10182_v61  ;;  %v4605_v43 = vmax.f32 %v4498_v54, 0.0 }
0x1507   :  { %v4503_v28 = vpop.f32.mrb[162].mxu0  ;;  %9203 = vmatprep.subr.bf16.mxu0 %v9202_v23  ;;  %v4607_v19 = vmax.f32 %v4587_v18, 0.0  ;;  %v4606_v14 = vmax.f32 %v4500_v50, 0.0 }
0x1508   :  { %v4504_v47 = vadd.f32 %v4503_v28, %v10184_v26  ;;  %v4592_v41 = vpop.f32.mrb[162].mxu1  ;;  %9211 = vmatprep.subr.bf16.mxu1 %v9210_v46  ;;  %v4505_v22 = vpop.f32.mrb[163].mxu0  ;;  %9205 = vmatpush1.bf16.msra.mxu0 %v9204_v30  ;;  %v4608_v49 = vmax.f32 %v4589_v25, 0.0 }
0x1509   :  { %v4593_v21 = vadd.f32 %v4592_v41, %v10184_v26  ;;  %v4506_v13 = vadd.f32 %v4505_v22, %v10184_v26  ;;  %v4594_v63 = vpop.f32.mrb[163].mxu1  ;;  %9213 = vmatpush1.bf16.msra.mxu1 %v9212_v12 }
0x150a   :  { %v4609_v8 = vmax.f32 %v4504_v47, 0.0  ;;  %v4595_v20 = vadd.f32 %v4594_v63, %v10184_v26 }
0x150b   :  { %v4611_v16 = vmax.f32 %v4593_v21, 0.0  ;;  %v4610_v36 = vmax.f32 %v4506_v13, 0.0 }
0x150c   :  { %v9208_v51 = vpack.c.bf16 %v4609_v8, %v4605_v43  ;;  %v4612_v52 = vmax.f32 %v4595_v20, 0.0 }
0x150d   :  { %v9216_v23 = vpack.c.bf16 %v4611_v16, %v4607_v19  ;;  %v9206_v60 = vpack.c.bf16 %v4610_v36, %v4606_v14 }
0x150e   :  { %v9214_v30 = vpack.c.bf16 %v4612_v52, %v4608_v49 }
0x150f   :  { %9207 = vmatprep.subr.bf16.mxu0 %v9206_v60 }
0x1510   :  { %9215 = vmatprep.subr.bf16.mxu1 %v9214_v30  ;;  %9209 = vmatpush1.bf16.msra.mxu0 %v9208_v51 }
0x1511   :  { %9217 = vmatpush1.bf16.msra.mxu1 %v9216_v23 }
0x1513   :  { %8754 = vmatmul.mubr.msk.f32.vlgmr.msra.gmra.mrb[164].mxu0 %vm350_vm1, %v11043_v9 }
0x1514   :  { %8758 = vmatmul.mubr.msk.f32.vlgmr.msra.gmra.mrb[164].mxu1 %vm350_vm1, %v11043_v9  ;;  %4683 = vmatprep.mubr.f32.mxu0 %v12958_v1 }
0x1515   :  { %4772 = vmatprep.mubr.f32.mxu1 %v12958_v1 }
0x1517   :  { %8755 = vmatmul.mubr.msk.f32.gmra.mrb[166].mxu0 %vm350_vm1, %v11054_v45 }
0x1518   :  { %8759 = vmatmul.mubr.msk.f32.gmra.mrb[166].mxu1 %vm350_vm1, %v11054_v45  ;;  %4689 = vmatprep.mubr.f32.mxu0 %v12958_v1 }
0x1519   :  { %4778 = vmatprep.mubr.f32.mxu1 %v12958_v1 }
0x151b   :  { %8756 = vmatmul.mubr.msk.f32.gmra.mrb[168].mxu0 %vm350_vm1, %v11065_v5 }
0x151c   :  { %8760 = vmatmul.mubr.msk.f32.gmra.mrb[168].mxu1 %vm350_vm1, %v11065_v5  ;;  %4695 = vmatprep.mubr.f32.mxu0 %v12958_v1 }
0x151d   :  { %4784 = vmatprep.mubr.f32.mxu1 %v12958_v1 }
0x151f   :  { %8757 = vmatmul.mubr.msk.f32.gmra.mrb[170].mxu0 %vm350_vm1, %v11076_v62 }
0x1520   :  { %8761 = vmatmul.mubr.msk.f32.gmra.mrb[170].mxu1 %vm350_vm1, %v11076_v62  ;;  %4871 = vmatprep.mubr.f32.mxu0 %v12958_v1 }
0x1521   :  { %4948 = vmatprep.mubr.f32.mxu1 %v12958_v1 }
0x15e6   :  { %v4679_v9 = vpop.f32.mrb[164].mxu0 }
0x15e7   :  { %v4768_v45 = vpop.f32.mrb[164].mxu1  ;;  %v4681_v12 = vpop.f32.mrb[165].mxu0  ;;  %v4680_v5 = vadd.f32 %v4679_v9, %v10238_v31 }
0x15e8   :  { %v4770_v46 = vpop.f32.mrb[165].mxu1  ;;  %v4769_v54 = vadd.f32 %v4768_v45, %v10238_v31  ;;  %v4682_v18 = vadd.f32 %v4681_v12, %v10238_v31 }
0x15e9   :  { %v4771_v28 = vadd.f32 %v4770_v46, %v10238_v31  ;;  %v4791_v13 = vadd.f32 %v4680_v5, %v11393_v4 }
0x15ea   :  { %v4685_v50 = vpop.f32.mrb[166].mxu0  ;;  %v4793_v8 = vadd.f32 %v4769_v54, %v11403_v56  ;;  %v4792_v20 = vadd.f32 %v4682_v18, %v11388_v17 }
0x15eb   :  { %v4686_v25 = vadd.f32 %v4685_v50, %v10240_v32  ;;  %v4774_v62 = vpop.f32.mrb[166].mxu1  ;;  %v4687_v47 = vpop.f32.mrb[167].mxu0  ;;  %v4794_v36 = vadd.f32 %v4771_v28, %v11396_v39 }
0x15ec   :  { %v4775_v41 = vadd.f32 %v4774_v62, %v10240_v32  ;;  %v4688_v22 = vadd.f32 %v4687_v47, %v10240_v32  ;;  %v4776_v21 = vpop.f32.mrb[167].mxu1 }
0x15ed   :  { %v4795_v63 = vadd.f32 %v4686_v25, %v11399_v0  ;;  %v4777_v43 = vadd.f32 %v4776_v21, %v10240_v32 }
0x15ee   :  { %v4797_v19 = vadd.f32 %v4775_v41, %v11406_v40  ;;  %v4796_v14 = vadd.f32 %v4688_v22, %v11409_v34  ;;  %v4691_v16 = vpop.f32.mrb[168].mxu0 }
0x15ef   :  { %v9220_v49 = vpack.c.bf16 %v4795_v63, %v4791_v13  ;;  %v4798_v51 = vadd.f32 %v4777_v43, %v11413_v29  ;;  %v4780_v52 = vpop.f32.mrb[168].mxu1  ;;  %v4693_v4 = vpop.f32.mrb[169].mxu0  ;;  %v4692_v30 = vadd.f32 %v4691_v16, %v12963_v37 }
0x15f0   :  { %v9228_v23 = vpack.c.bf16 %v4797_v19, %v4793_v8  ;;  %v4782_v0 = vpop.f32.mrb[169].mxu1  ;;  %v9218_v60 = vpack.c.bf16 %v4796_v14, %v4792_v20  ;;  %v4781_v17 = vadd.f32 %v4780_v52, %v12963_v37  ;;  %v4694_v40 = vadd.f32 %v4693_v4, %v12963_v37 }
0x15f1   :  { %v9226_v56 = vpack.c.bf16 %v4798_v51, %v4794_v36  ;;  %v4783_v34 = vadd.f32 %v4782_v0, %v12963_v37  ;;  %v4799_v54 = vadd.f32 %v4692_v30, %v11427_v7 }
0x15f2   :  { %v4697_v9 = vpop.f32.mrb[170].mxu0  ;;  %9219 = vmatprep.subr.bf16.mxu0 %v9218_v60  ;;  %v4801_v28 = vadd.f32 %v4781_v17, %v11443_v6  ;;  %v4800_v25 = vadd.f32 %v4694_v40, %v11431_v2  ;;  %v13010_v2 = vld [vmem:[#allocation12_spill] sm:$0xff] }
0x15f3   :  { %v4698_v39 = vadd.f32 %v4697_v9, %v12964_v27  ;;  %v4786_v45 = vpop.f32.mrb[170].mxu1  ;;  %9227 = vmatprep.subr.bf16.mxu1 %v9226_v56  ;;  %v4699_v29 = vpop.f32.mrb[171].mxu0  ;;  %9221 = vmatpush1.bf16.msra.mxu0 %v9220_v49  ;;  %v4802_v41 = vadd.f32 %v4783_v34, %v11436_v15 }
0x15f4   :  { %v4787_v12 = vadd.f32 %v4786_v45, %v12964_v27  ;;  %v4700_v46 = vadd.f32 %v4699_v29, %v12964_v27  ;;  %v4788_v5 = vpop.f32.mrb[171].mxu1  ;;  %9229 = vmatpush1.bf16.msra.mxu1 %v9228_v23 }
0x15f5   :  { %v4803_v18 = vadd.f32 %v4698_v39, %v11439_v44  ;;  %v4789_v50 = vadd.f32 %v4788_v5, %v12964_v27  ;;  %v13011_v44 = vld [vmem:[#allocation14_spill] sm:$0xff] }
0x15f6   :  { %v4805_v62 = vadd.f32 %v4787_v12, %v11446_v48  ;;  %v4804_v47 = vadd.f32 %v4700_v46, %v11449_v42 }
0x15f7   :  { %v9224_v22 = vpack.c.bf16 %v4803_v18, %v4799_v54  ;;  %v4806_v21 = vadd.f32 %v4789_v50, %v11453_v33  ;;  %v13012_v54 = vld [vmem:[#allocation15_spill] sm:$0xff] }
0x15f8   :  { %v9232_v13 = vpack.c.bf16 %v4805_v62, %v4801_v28  ;;  %v9222_v63 = vpack.c.bf16 %v4804_v47, %v4800_v25  ;;  %v13013_v62 = vld [vmem:[#allocation13_spill] sm:$0xff] }
0x15f9   :  { %v9230_v7 = vpack.c.bf16 %v4806_v21, %v4802_v41 }
0x15fa   :  { %9223 = vmatprep.subr.bf16.mxu0 %v9222_v63 }
0x15fb   :  { %9231 = vmatprep.subr.bf16.mxu1 %v9230_v7  ;;  %9225 = vmatpush1.bf16.msra.mxu0 %v9224_v22  ;;  %v13014_v22 = vld [vmem:[#allocation16_spill] sm:$0xff]  ;;  %v13015_v7 = vld [vmem:[#allocation17_spill] sm:$0xff] }
0x15fc   :  { %9233 = vmatpush1.bf16.msra.mxu1 %v9232_v13 }
0x15fe   :  { %8762 = vmatmul.mubr.msk.f32.vlgmr.msra.gmra.mrb[172].mxu0 %vm350_vm1, %v11119_v58 }
0x15ff   :  { %8764 = vmatmul.mubr.msk.f32.vlgmr.msra.gmra.mrb[172].mxu1 %vm350_vm1, %v11119_v58  ;;  %4877 = vmatprep.mubr.f32.mxu0 %v12958_v1 }
0x1600   :  { %4954 = vmatprep.mubr.f32.mxu1 %v12958_v1 }
0x1602   :  { %8763 = vmatmul.mubr.msk.f32.gmra.mrb[174].mxu0 %vm350_vm1, %v13010_v2 }
0x1603   :  { %8765 = vmatmul.mubr.msk.f32.gmra.mrb[174].mxu1 %vm350_vm1, %v13010_v2  ;;  %5065 = vmatprep.mubr.f32.mxu0 %v12958_v1 }
0x1604   :  { %5154 = vmatprep.mubr.f32.mxu1 %v12958_v1 }
0x16d1   :  { %v4873_v15 = vpop.f32.mrb[172].mxu0 }
0x16d2   :  { %v4874_v6 = vadd.f32 %v4873_v15, %v13011_v44  ;;  %v4950_v48 = vpop.f32.mrb[172].mxu1  ;;  %v4875_v42 = vpop.f32.mrb[173].mxu0 }
0x16d3   :  { %v4951_v58 = vadd.f32 %v4950_v48, %v13011_v44  ;;  %v4876_v33 = vadd.f32 %v4875_v42, %v13011_v44  ;;  %v4952_v43 = vpop.f32.mrb[173].mxu1  ;;  %v13016_v48 = vld [vmem:[#allocation18_spill] sm:$0xff] }
0x16d4   :  { %v8766_v8 = vmul.f32 -1.442695, %v4874_v6  ;;  %v4953_v20 = vadd.f32 %v4952_v43, %v13011_v44 }
0x16d5   :  { %v8768_v19 = vmul.f32 -1.442695, %v4951_v58  ;;  %v8767_v14 = vmul.f32 -1.442695, %v4876_v33  ;;  %v4879_v16 = vpop.f32.mrb[174].mxu0 }
0x16d6   :  { %9552 = vpow2.f32 %v8766_v8  ;;  %v8769_v36 = vmul.f32 -1.442695, %v4953_v20  ;;  %v4956_v49 = vpop.f32.mrb[174].mxu1  ;;  %v4881_v51 = vpop.f32.mrb[175].mxu0  ;;  %v4880_v18 = vadd.f32 %v4879_v16, %v13012_v54  ;;  %v13017_v8 = vld [vmem:[#allocation19_spill] sm:$0xff]  ;;  %v13018_v20 = vld [vmem:[#allocation20_spill] sm:$0xff] }
0x16d7   :  { %9554 = vpow2.f32 %v8768_v19  ;;  %v4958_v52 = vpop.f32.mrb[175].mxu1  ;;  %v4957_v50 = vadd.f32 %v4956_v49, %v13012_v54  ;;  %v4882_v28 = vadd.f32 %v4881_v51, %v13012_v54  ;;  %v13019_v19 = vld [vmem:[#allocation21_spill] sm:$0xff] }
0x16d8   :  { %9556 = vpow2.f32 %v8767_v14  ;;  %v4959_v25 = vadd.f32 %v4958_v52, %v13012_v54  ;;  %v4989_v47 = vsub.f32 %v13013_v62, %v4880_v18  ;;  %v13020_v14 = vld [vmem:[#allocation22_spill] sm:$0xff] }
0x16d9   :  { %9558 = vpow2.f32 %v8769_v36  ;;  %v4991_v21 = vsub.f32 %v13014_v22, %v4957_v50  ;;  %v4990_v2 = vsub.f32 %v13015_v7, %v4882_v28  ;;  %v13021_v52 = vld [vmem:[#allocation2_spill] sm:$0xff] }
0x16da   :  { %v4992_v42 = vsub.f32 %v13016_v48, %v4959_v25 }
0x16e0   :  { %v9553_v4 = vpop.eup %9552 }
0x16e1   :  { %v9555_v23 = vpop.eup %9554  ;;  %v4973_v0 = vadd.f32 1.0, %v9553_v4 }
0x16e2   :  { %v9557_v60 = vpop.eup %9556  ;;  %v4975_v30 = vadd.f32 1.0, %v9555_v23 }
0x16e3   :  { %v9559_v56 = vpop.eup %9558  ;;  %9560 = vrcp.f32 %v4973_v0  ;;  %v4974_v17 = vadd.f32 1.0, %v9557_v60 }
0x16e4   :  { %9562 = vrcp.f32 %v4975_v30  ;;  %v4976_v40 = vadd.f32 1.0, %v9559_v56  ;;  %v13022_v30 = vld [vmem:[#allocation3_spill] sm:$0xff] }
0x16e5   :  { %9564 = vrcp.f32 %v4974_v17 }
0x16e6   :  { %9566 = vrcp.f32 %v4976_v40 }
0x16ed   :  { %v9561_v9 = vpop.eup %9560 }
0x16ee   :  { %v9563_v34 = vpop.eup %9562  ;;  %v4985_v39 = vadd.f32 0.001, %v9561_v9 }
0x16ef   :  { %v9565_v45 = vpop.eup %9564  ;;  %v4987_v29 = vadd.f32 0.001, %v9563_v34 }
0x16f0   :  { %v9567_v12 = vpop.eup %9566  ;;  %9568 = vrcp.f32 %v4985_v39  ;;  %v4986_v46 = vadd.f32 0.001, %v9565_v45 }
0x16f1   :  { %9570 = vrcp.f32 %v4987_v29  ;;  %v4988_v5 = vadd.f32 0.001, %v9567_v12 }
0x16f2   :  { %9572 = vrcp.f32 %v4986_v46 }
0x16f3   :  { %9574 = vrcp.f32 %v4988_v5 }
0x16fa   :  { %v9569_v41 = vpop.eup %9568 }
0x16fb   :  { %v9571_v13 = vpop.eup %9570  ;;  %v4994_v63 = vmul.f32 %v9569_v41, %v4989_v47 }
0x16fc   :  { %v9573_v15 = vpop.eup %9572  ;;  %v4998_v6 = vmul.f32 %v9571_v13, %v4991_v21 }
0x16fd   :  { %v9575_v58 = vpop.eup %9574  ;;  %v4996_v33 = vmul.f32 %v9573_v15, %v4990_v2  ;;  %v13023_v15 = vld [vmem:[#allocation4_spill] sm:$0xff] }
0x16fe   :  { %v5000_v43 = vmul.f32 %v9575_v58, %v4992_v42 }
0x16ff   :  { %5001 = vmatprep.subr.mxu0 %v4996_v33  ;;  %v13024_v33 = vld [vmem:[#allocation5_spill] sm:$0xff] }
0x1700   :  { %5090 = vmatprep.subr.mxu1 %v5000_v43  ;;  %5002 = vmatpush1.msra.mxu0 %v4994_v63 }
0x1701   :  { %5091 = vmatpush1.msra.mxu1 %v4998_v6  ;;  %8770 = vmatmul.mubr.msk.f32.vlgmr.msra.gmra.mrb[176].mxu0 %vm123_vm0, %v13017_v8 }
0x1702   :  { %8774 = vmatmul.mubr.msk.f32.vlgmr.msra.gmra.mrb[176].mxu1 %vm123_vm0, %v13017_v8  ;;  %5071 = vmatprep.mubr.f32.mxu0 %v12958_v1 }
0x1703   :  { %5160 = vmatprep.mubr.f32.mxu1 %v12958_v1 }
0x1705   :  { %8771 = vmatmul.mubr.msk.f32.gmra.mrb[178].mxu0 %vm123_vm0, %v13018_v20 }
0x1706   :  { %8775 = vmatmul.mubr.msk.f32.gmra.mrb[178].mxu1 %vm123_vm0, %v13018_v20  ;;  %5077 = vmatprep.mubr.f32.mxu0 %v12958_v1 }
0x1707   :  { %5166 = vmatprep.mubr.f32.mxu1 %v12958_v1 }
0x1709   :  { %8772 = vmatmul.mubr.msk.f32.gmra.mrb[180].mxu0 %vm123_vm0, %v13019_v19 }
0x170a   :  { %8776 = vmatmul.mubr.msk.f32.gmra.mrb[180].mxu1 %vm123_vm0, %v13019_v19  ;;  %5083 = vmatprep.mubr.f32.mxu0 %v12958_v1 }
0x170b   :  { %5172 = vmatprep.mubr.f32.mxu1 %v12958_v1 }
0x170d   :  { %8773 = vmatmul.mubr.msk.f32.gmra.mrb[182].mxu0 %vm123_vm0, %v13020_v14 }
0x170e   :  { %8777 = vmatmul.mubr.msk.f32.gmra.mrb[182].mxu1 %vm123_vm0, %v13020_v14  ;;  %5259 = vmatprep.mubr.f32.mxu0 %v12958_v1 }
0x170f   :  { %5348 = vmatprep.mubr.f32.mxu1 %v12958_v1 }
0x17d4   :  { %v5067_v16 = vpop.f32.mrb[176].mxu0 }
0x17d5   :  { %v5156_v36 = vpop.f32.mrb[176].mxu1  ;;  %v5069_v49 = vpop.f32.mrb[177].mxu0  ;;  %v11610_v0 = vadd.f32 %v5067_v16, %v13021_v52 }
0x17d6   :  { %v5158_v51 = vpop.f32.mrb[177].mxu1  ;;  %v11607_v4 = vadd.f32 %v5069_v49, %v13021_v52  ;;  %v11619_v9 = vadd.f32 %v5156_v36, %v13021_v52 }
0x17d7   :  { %v11613_v60 = vadd.f32 %v5158_v51, %v13021_v52  ;;  %v5179_v28 = vmax.f32 %v11610_v0, 0.0 }
0x17d8   :  { %v5073_v23 = vpop.f32.mrb[178].mxu0  ;;  %v5180_v46 = vmax.f32 %v11607_v4, 0.0  ;;  %v5181_v22 = vmax.f32 %v11619_v9, 0.0 }
0x17d9   :  { %v11616_v56 = vadd.f32 %v5073_v23, %v13022_v30  ;;  %v5162_v17 = vpop.f32.mrb[178].mxu1  ;;  %v5075_v40 = vpop.f32.mrb[179].mxu0  ;;  %v5182_v25 = vmax.f32 %v11613_v60, 0.0 }
0x17da   :  { %v11622_v34 = vadd.f32 %v5162_v17, %v13022_v30  ;;  %v11625_v39 = vadd.f32 %v5075_v40, %v13022_v30  ;;  %v5164_v45 = vpop.f32.mrb[179].mxu1 }
0x17db   :  { %v5183_v29 = vmax.f32 %v11616_v56, 0.0  ;;  %v11629_v12 = vadd.f32 %v5164_v45, %v13022_v30 }
0x17dc   :  { %v5185_v5 = vmax.f32 %v11622_v34, 0.0  ;;  %v5184_v18 = vmax.f32 %v11625_v39, 0.0  ;;  %v5079_v50 = vpop.f32.mrb[180].mxu0 }
0x17dd   :  { %v5186_v62 = vmax.f32 %v11629_v12, 0.0  ;;  %v5168_v47 = vpop.f32.mrb[180].mxu1  ;;  %v5081_v41 = vpop.f32.mrb[181].mxu0  ;;  %v9236_v63 = vpack.c.bf16 %v5183_v29, %v5179_v28  ;;  %v11642_v42 = vadd.f32 %v5079_v50, %v13023_v15 }
0x17de   :  { %v5170_v21 = vpop.f32.mrb[181].mxu1  ;;  %v9234_v13 = vpack.c.bf16 %v5184_v18, %v5180_v46  ;;  %v9244_v2 = vpack.c.bf16 %v5185_v5, %v5181_v22  ;;  %v11639_v6 = vadd.f32 %v5081_v41, %v13023_v15  ;;  %v11651_v19 = vadd.f32 %v5168_v47, %v13023_v15  ;;  %v13026_v47 = vld [vmem:[#allocation24_spill] sm:$0xff]  ;;  %v13027_v41 = vld [vmem:[#allocation25_spill] sm:$0xff]  ;;  %v13028_v22 = vld [vmem:[#allocation26_spill] sm:$0xff] }
0x17df   :  { %v9242_v7 = vpack.c.bf16 %v5186_v62, %v5182_v25  ;;  %v11645_v58 = vadd.f32 %v5170_v21, %v13023_v15  ;;  %v5187_v45 = vmax.f32 %v11642_v42, 0.0  ;;  %v13025_v62 = vld [vmem:[#allocation23_spill] sm:$0xff] }
0x17e0   :  { %v5085_v48 = vpop.f32.mrb[182].mxu0  ;;  %9235 = vmatprep.subr.bf16.mxu0 %v9234_v13  ;;  %v5188_v23 = vmax.f32 %v11639_v6, 0.0  ;;  %v5189_v5 = vmax.f32 %v11651_v19, 0.0 }
0x17e1   :  { %v11648_v43 = vadd.f32 %v5085_v48, %v13024_v33  ;;  %v5174_v8 = vpop.f32.mrb[182].mxu1  ;;  %9243 = vmatprep.subr.bf16.mxu1 %v9242_v7  ;;  %v5087_v20 = vpop.f32.mrb[183].mxu0  ;;  %9237 = vmatpush1.bf16.msra.mxu0 %v9236_v63  ;;  %v5190_v29 = vmax.f32 %v11645_v58, 0.0 }
0x17e2   :  { %v11654_v14 = vadd.f32 %v5174_v8, %v13024_v33  ;;  %v11657_v16 = vadd.f32 %v5087_v20, %v13024_v33  ;;  %v5176_v36 = vpop.f32.mrb[183].mxu1  ;;  %9245 = vmatpush1.bf16.msra.mxu1 %v9244_v2  ;;  %v13029_v2 = vld [vmem:[#allocation6_spill] sm:$0xff] }
0x17e3   :  { %v5191_v49 = vmax.f32 %v11648_v43, 0.0  ;;  %v11661_v51 = vadd.f32 %v5176_v36, %v13024_v33 }
0x17e4   :  { %v5193_v17 = vmax.f32 %v11654_v14, 0.0  ;;  %v5192_v40 = vmax.f32 %v11657_v16, 0.0 }
0x17e5   :  { %v5194_v46 = vmax.f32 %v11661_v51, 0.0  ;;  %v9240_v50 = vpack.c.bf16 %v5191_v49, %v5187_v45 }
0x17e6   :  { %v9238_v18 = vpack.c.bf16 %v5192_v40, %v5188_v23  ;;  %v9248_v25 = vpack.c.bf16 %v5193_v17, %v5189_v5 }
0x17e7   :  { %v9246_v28 = vpack.c.bf16 %v5194_v46, %v5190_v29 }
0x17e8   :  { %9239 = vmatprep.subr.bf16.mxu0 %v9238_v18 }
0x17e9   :  { %9247 = vmatprep.subr.bf16.mxu1 %v9246_v28  ;;  %9241 = vmatpush1.bf16.msra.mxu0 %v9240_v50 }
0x17ea   :  { %9249 = vmatpush1.bf16.msra.mxu1 %v9248_v25 }
0x17ec   :  { %8778 = vmatmul.mubr.msk.f32.vlgmr.msra.gmra.mrb[184].mxu0 %vm350_vm1, %v13025_v62 }
0x17ed   :  { %8782 = vmatmul.mubr.msk.f32.vlgmr.msra.gmra.mrb[184].mxu1 %vm350_vm1, %v13025_v62  ;;  %5265 = vmatprep.mubr.f32.mxu0 %v12958_v1 }
0x17ee   :  { %5354 = vmatprep.mubr.f32.mxu1 %v12958_v1 }
0x17f0   :  { %8779 = vmatmul.mubr.msk.f32.gmra.mrb[186].mxu0 %vm350_vm1, %v13026_v47 }
0x17f1   :  { %8783 = vmatmul.mubr.msk.f32.gmra.mrb[186].mxu1 %vm350_vm1, %v13026_v47  ;;  %5271 = vmatprep.mubr.f32.mxu0 %v12958_v1 }
0x17f2   :  { %5360 = vmatprep.mubr.f32.mxu1 %v12958_v1 }
0x17f4   :  { %8780 = vmatmul.mubr.msk.f32.gmra.mrb[188].mxu0 %vm350_vm1, %v13027_v41 }
0x17f5   :  { %8784 = vmatmul.mubr.msk.f32.gmra.mrb[188].mxu1 %vm350_vm1, %v13027_v41  ;;  %5277 = vmatprep.mubr.f32.mxu0 %v12958_v1 }
0x17f6   :  { %5366 = vmatprep.mubr.f32.mxu1 %v12958_v1 }
0x17f8   :  { %8781 = vmatmul.mubr.msk.f32.gmra.mrb[190].mxu0 %vm350_vm1, %v13028_v22 }
0x17f9   :  { %8785 = vmatmul.mubr.msk.f32.gmra.mrb[190].mxu1 %vm350_vm1, %v13028_v22  ;;  %5453 = vmatprep.mubr.f32.mxu0 %v12958_v1 }
0x17fa   :  { %5542 = vmatprep.mubr.f32.mxu1 %v12958_v1 }
0x18bf   :  { %v5261_v21 = vpop.f32.mrb[184].mxu0 }
0x18c0   :  { %v5350_v13 = vpop.f32.mrb[184].mxu1  ;;  %v5263_v63 = vpop.f32.mrb[185].mxu0  ;;  %v5262_v48 = vadd.f32 %v5261_v21, %v13029_v2 }
0x18c1   :  { %v5352_v7 = vpop.f32.mrb[185].mxu1  ;;  %v5351_v8 = vadd.f32 %v5350_v13, %v13029_v2  ;;  %v5264_v20 = vadd.f32 %v5263_v63, %v13029_v2 }
0x18c2   :  { %v5353_v49 = vadd.f32 %v5352_v7, %v13029_v2  ;;  %v5373_v5 = vmax.f32 %v5262_v48, 0.0 }
0x18c3   :  { %v5267_v36 = vpop.f32.mrb[186].mxu0  ;;  %v5375_v28 = vmax.f32 %v5351_v8, 0.0  ;;  %v5374_v25 = vmax.f32 %v5264_v20, 0.0 }
0x18c4   :  { %v5268_v23 = vadd.f32 %v5267_v36, %v9988_v59  ;;  %v5356_v17 = vpop.f32.mrb[186].mxu1  ;;  %v5269_v40 = vpop.f32.mrb[187].mxu0  ;;  %v5376_v22 = vmax.f32 %v5353_v49, 0.0 }
0x18c5   :  { %v5357_v45 = vadd.f32 %v5356_v17, %v9988_v59  ;;  %v5270_v29 = vadd.f32 %v5269_v40, %v9988_v59  ;;  %v5358_v46 = vpop.f32.mrb[187].mxu1 }
0x18c6   :  { %v5377_v18 = vmax.f32 %v5268_v23, 0.0  ;;  %v5359_v50 = vadd.f32 %v5358_v46, %v9988_v59 }
0x18c7   :  { %v5379_v62 = vmax.f32 %v5357_v45, 0.0  ;;  %v5378_v47 = vmax.f32 %v5270_v29, 0.0  ;;  %v5273_v41 = vpop.f32.mrb[188].mxu0 }
0x18c8   :  { %v9252_v21 = vpack.c.bf16 %v5377_v18, %v5373_v5  ;;  %v5380_v13 = vmax.f32 %v5359_v50, 0.0  ;;  %v5362_v63 = vpop.f32.mrb[188].mxu1  ;;  %v5275_v7 = vpop.f32.mrb[189].mxu0  ;;  %v5274_v40 = vadd.f32 %v5273_v41, %v9998_v35 }
0x18c9   :  { %v9260_v36 = vpack.c.bf16 %v5379_v62, %v5375_v28  ;;  %v9250_v2 = vpack.c.bf16 %v5378_v47, %v5374_v25  ;;  %v5364_v17 = vpop.f32.mrb[189].mxu1  ;;  %v5363_v48 = vadd.f32 %v5362_v63, %v9998_v35  ;;  %v5276_v23 = vadd.f32 %v5275_v7, %v9998_v35 }
0x18ca   :  { %v9258_v33 = vpack.c.bf16 %v5380_v13, %v5376_v22  ;;  %v5365_v20 = vadd.f32 %v5364_v17, %v9998_v35  ;;  %v5381_v50 = vmax.f32 %v5274_v40, 0.0  ;;  %v13031_v40 = vld [vmem:[#allocation7_spill] sm:$0xff] }
0x18cb   :  { %v5279_v8 = vpop.f32.mrb[190].mxu0  ;;  %9251 = vmatprep.subr.bf16.mxu0 %v9250_v2  ;;  %v5383_v62 = vmax.f32 %v5363_v48, 0.0  ;;  %v5382_v2 = vmax.f32 %v5276_v23, 0.0 }
0x18cc   :  { %v5280_v49 = vadd.f32 %v5279_v8, %v10000_v38  ;;  %v5368_v45 = vpop.f32.mrb[190].mxu1  ;;  %9259 = vmatprep.subr.bf16.mxu1 %v9258_v33  ;;  %v5281_v29 = vpop.f32.mrb[191].mxu0  ;;  %9253 = vmatpush1.bf16.msra.mxu0 %v9252_v21  ;;  %v5384_v22 = vmax.f32 %v5365_v20, 0.0 }
0x18cd   :  { %v5369_v46 = vadd.f32 %v5368_v45, %v10000_v38  ;;  %v5282_v5 = vadd.f32 %v5281_v29, %v10000_v38  ;;  %v5370_v18 = vpop.f32.mrb[191].mxu1  ;;  %9261 = vmatpush1.bf16.msra.mxu1 %v9260_v36  ;;  %v13032_v45 = vld [vmem:[#allocation8_spill] sm:$0xff] }
0x18ce   :  { %v5385_v28 = vmax.f32 %v5280_v49, 0.0  ;;  %v5371_v25 = vadd.f32 %v5370_v18, %v10000_v38 }
0x18cf   :  { %v5387_v47 = vmax.f32 %v5369_v46, 0.0  ;;  %v5386_v41 = vmax.f32 %v5282_v5, 0.0 }
0x18d0   :  { %v9256_v13 = vpack.c.bf16 %v5385_v28, %v5381_v50  ;;  %v5388_v63 = vmax.f32 %v5371_v25, 0.0 }
0x18d1   :  { %v9264_v33 = vpack.c.bf16 %v5387_v47, %v5383_v62  ;;  %v9254_v7 = vpack.c.bf16 %v5386_v41, %v5382_v2 }
0x18d2   :  { %v9262_v21 = vpack.c.bf16 %v5388_v63, %v5384_v22 }
0x18d3   :  { %9255 = vmatprep.subr.bf16.mxu0 %v9254_v7 }
0x18d4   :  { %9263 = vmatprep.subr.bf16.mxu1 %v9262_v21  ;;  %9257 = vmatpush1.bf16.msra.mxu0 %v9256_v13 }
0x18d5   :  { %9265 = vmatpush1.bf16.msra.mxu1 %v9264_v33 }
0x18d7   :  { %8786 = vmatmul.mubr.msk.f32.vlgmr.msra.gmra.mrb[192].mxu0 %vm350_vm1, %v11341_v57 }
0x18d8   :  { %8790 = vmatmul.mubr.msk.f32.vlgmr.msra.gmra.mrb[192].mxu1 %vm350_vm1, %v11341_v57  ;;  %5459 = vmatprep.mubr.f32.mxu0 %v12958_v1  ;;  %v13030_v57 = vld [vmem:[#allocation27_spill] sm:$0xff] }
0x18d9   :  { %5548 = vmatprep.mubr.f32.mxu1 %v12958_v1 }
0x18db   :  { %8787 = vmatmul.mubr.msk.f32.gmra.mrb[194].mxu0 %vm350_vm1, %v11352_v3 }
0x18dc   :  { %8791 = vmatmul.mubr.msk.f32.gmra.mrb[194].mxu1 %vm350_vm1, %v11352_v3  ;;  %5465 = vmatprep.mubr.f32.mxu0 %v12958_v1 }
0x18dd   :  { %5554 = vmatprep.mubr.f32.mxu1 %v12958_v1 }
0x18df   :  { %8788 = vmatmul.mubr.msk.f32.gmra.mrb[196].mxu0 %vm350_vm1, %v11363_v24 }
0x18e0   :  { %8792 = vmatmul.mubr.msk.f32.gmra.mrb[196].mxu1 %vm350_vm1, %v11363_v24  ;;  %5471 = vmatprep.mubr.f32.mxu0 %v12958_v1 }
0x18e1   :  { %5560 = vmatprep.mubr.f32.mxu1 %v12958_v1 }
0x18e3   :  { %8789 = vmatmul.mubr.msk.f32.gmra.mrb[198].mxu0 %vm350_vm1, %v13030_v57 }
0x18e4   :  { %8793 = vmatmul.mubr.msk.f32.gmra.mrb[198].mxu1 %vm350_vm1, %v13030_v57  ;;  %5663 = vmatprep.mubr.f32.mxu0 %v12958_v1 }
0x18e5   :  { %5752 = vmatprep.mubr.f32.mxu1 %v12958_v1 }
0x19aa   :  { %v5455_v3 = vpop.f32.mrb[192].mxu0 }
0x19ab   :  { %v5544_v36 = vpop.f32.mrb[192].mxu1  ;;  %v5457_v17 = vpop.f32.mrb[193].mxu0  ;;  %v5456_v23 = vadd.f32 %v5455_v3, %v13031_v40 }
0x19ac   :  { %v5458_v48 = vadd.f32 %v5457_v17, %v13031_v40  ;;  %v5546_v24 = vpop.f32.mrb[193].mxu1  ;;  %v5545_v20 = vadd.f32 %v5544_v36, %v13031_v40 }
0x19ad   :  { %v5547_v8 = vadd.f32 %v5546_v24, %v13031_v40  ;;  %v11745_v62 = vadd.f32 %v5456_v23, %v11610_v0 }
0x19ae   :  { %v5461_v49 = vpop.f32.mrb[194].mxu0  ;;  %v11740_v18 = vadd.f32 %v5458_v48, %v11607_v4  ;;  %v11755_v22 = vadd.f32 %v5545_v20, %v11619_v9 }
0x19af   :  { %v5462_v29 = vadd.f32 %v5461_v49, %v13032_v45  ;;  %v5550_v46 = vpop.f32.mrb[194].mxu1  ;;  %v5463_v5 = vpop.f32.mrb[195].mxu0  ;;  %v11748_v2 = vadd.f32 %v5547_v8, %v11613_v60  ;;  %v5583_v3 = vmax.f32 %v11745_v62, 0.0 }
0x19b0   :  { %v5551_v50 = vadd.f32 %v5550_v46, %v13032_v45  ;;  %v5464_v28 = vadd.f32 %v5463_v5, %v13032_v45  ;;  %v5552_v25 = vpop.f32.mrb[195].mxu1  ;;  %v5584_v21 = vmax.f32 %v11740_v18, 0.0  ;;  %v5585_v48 = vmax.f32 %v11755_v22, 0.0 }
0x19b1   :  { %v11751_v47 = vadd.f32 %v5462_v29, %v11616_v56  ;;  %v5553_v41 = vadd.f32 %v5552_v25, %v13032_v45  ;;  %v5586_v36 = vmax.f32 %v11748_v2, 0.0 }
0x19b2   :  { %v11758_v4 = vadd.f32 %v5551_v50, %v11622_v34  ;;  %v11761_v13 = vadd.f32 %v5464_v28, %v11625_v39  ;;  %v5467_v63 = vpop.f32.mrb[196].mxu0 }
0x19b3   :  { %v5587_v0 = vmax.f32 %v11751_v47, 0.0  ;;  %v11765_v60 = vadd.f32 %v5553_v41, %v11629_v12  ;;  %v5468_v56 = vadd.f32 %v5467_v63, %v10059_v55  ;;  %v5556_v33 = vpop.f32.mrb[196].mxu1  ;;  %v5469_v7 = vpop.f32.mrb[197].mxu0 }
0x19b4   :  { %v5589_v9 = vmax.f32 %v11758_v4, 0.0  ;;  %v5588_v34 = vmax.f32 %v11761_v13, 0.0  ;;  %v5470_v57 = vadd.f32 %v5469_v7, %v10059_v55  ;;  %v5558_v39 = vpop.f32.mrb[197].mxu1  ;;  %v5557_v24 = vadd.f32 %v5556_v33, %v10059_v55 }
0x19b5   :  { %v5590_v12 = vmax.f32 %v11765_v60, 0.0  ;;  %v5559_v17 = vadd.f32 %v5558_v39, %v10059_v55  ;;  %v9268_v20 = vpack.c.bf16 %v5587_v0, %v5583_v3  ;;  %v11779_v49 = vadd.f32 %v5468_v56, %v11642_v42 }
0x19b6   :  { %v5473_v23 = vpop.f32.mrb[198].mxu0  ;;  %v9266_v8 = vpack.c.bf16 %v5588_v34, %v5584_v21  ;;  %v9276_v28 = vpack.c.bf16 %v5589_v9, %v5585_v48  ;;  %v11783_v25 = vadd.f32 %v5470_v57, %v11639_v6  ;;  %v11795_v7 = vadd.f32 %v5557_v24, %v11651_v19  ;;  %v11828_v48 = vld [vmem:[%s12801_s2 + $0x48] sm:$0xff]  ;;  %v11839_v24 = vld [vmem:[%s12801_s2 + $0x50] sm:$0xff] }
0x19b7   :  { %v5474_v29 = vadd.f32 %v5473_v23, %v10086_v10  ;;  %v5562_v46 = vpop.f32.mrb[198].mxu1  ;;  %v5475_v5 = vpop.f32.mrb[199].mxu0  ;;  %v9274_v50 = vpack.c.bf16 %v5590_v12, %v5586_v36  ;;  %v11788_v0 = vadd.f32 %v5559_v17, %v11645_v58  ;;  %v5591_v19 = vmax.f32 %v11779_v49, 0.0  ;;  %13033 = vst [vmem:[#allocation28_spill] sm:$0xff] %v11839_v24  ;;  %v11850_v23 = vld [vmem:[%s12801_s2 + $0x58] sm:$0xff] }
0x19b8   :  { %v5563_v41 = vadd.f32 %v5562_v46, %v10086_v10  ;;  %v5476_v63 = vadd.f32 %v5475_v5, %v10086_v10  ;;  %v5564_v33 = vpop.f32.mrb[199].mxu1  ;;  %9267 = vmatprep.subr.bf16.mxu0 %v9266_v8  ;;  %13034 = vst [vmem:[#allocation10_spill] sm:$0xff] %v11850_v23 }
0x19b9   :  { %v11791_v42 = vadd.f32 %v5474_v29, %v11648_v43  ;;  %v5565_v56 = vadd.f32 %v5564_v33, %v10086_v10  ;;  %9275 = vmatprep.subr.bf16.mxu1 %v9274_v50  ;;  %9269 = vmatpush1.bf16.msra.mxu0 %v9268_v20  ;;  %v5592_v43 = vmax.f32 %v11783_v25, 0.0 }
0x19ba   :  { %v11798_v6 = vadd.f32 %v5563_v41, %v11654_v14  ;;  %v11801_v21 = vadd.f32 %v5476_v63, %v11657_v16  ;;  %9277 = vmatpush1.bf16.msra.mxu1 %v9276_v28  ;;  %v5594_v14 = vmax.f32 %v11788_v0, 0.0  ;;  %v5593_v16 = vmax.f32 %v11795_v7, 0.0 }
0x19bb   :  { %v5595_v58 = vmax.f32 %v11791_v42, 0.0  ;;  %v11805_v9 = vadd.f32 %v5565_v56, %v11661_v51  ;;  %v11817_v51 = vld [vmem:[%s12801_s2 + $0x40] sm:$0xff] }
0x19bc   :  { %v5597_v34 = vmax.f32 %v11798_v6, 0.0  ;;  %v5596_v57 = vmax.f32 %v11801_v21, 0.0 }
0x19bd   :  { %v5598_v39 = vmax.f32 %v11805_v9, 0.0  ;;  %v9272_v36 = vpack.c.bf16 %v5595_v58, %v5591_v19 }
0x19be   :  { %v9270_v3 = vpack.c.bf16 %v5596_v57, %v5592_v43  ;;  %v9280_v17 = vpack.c.bf16 %v5597_v34, %v5593_v16 }
0x19bf   :  { %v9278_v12 = vpack.c.bf16 %v5598_v39, %v5594_v14 }
0x19c0   :  { %9271 = vmatprep.subr.bf16.mxu0 %v9270_v3 }
0x19c1   :  { %9279 = vmatprep.subr.bf16.mxu1 %v9278_v12  ;;  %9273 = vmatpush1.bf16.msra.mxu0 %v9272_v36 }
0x19c2   :  { %9281 = vmatpush1.bf16.msra.mxu1 %v9280_v17 }
0x19c4   :  { %8794 = vmatmul.mubr.msk.f32.vlgmr.msra.gmra.mrb[200].mxu0 %vm350_vm1, %v11817_v51 }
0x19c5   :  { %8798 = vmatmul.mubr.msk.f32.vlgmr.msra.gmra.mrb[200].mxu1 %vm350_vm1, %v11817_v51  ;;  %5669 = vmatprep.mubr.f32.mxu0 %v12958_v1 }
0x19c6   :  { %5758 = vmatprep.mubr.f32.mxu1 %v12958_v1 }
0x19c8   :  { %8795 = vmatmul.mubr.msk.f32.gmra.mrb[202].mxu0 %vm350_vm1, %v11828_v48 }
0x19c9   :  { %8799 = vmatmul.mubr.msk.f32.gmra.mrb[202].mxu1 %vm350_vm1, %v11828_v48  ;;  %5675 = vmatprep.mubr.f32.mxu0 %v12958_v1 }
0x19ca   :  { %5764 = vmatprep.mubr.f32.mxu1 %v12958_v1 }
0x19cc   :  { %8796 = vmatmul.mubr.msk.f32.gmra.mrb[204].mxu0 %vm350_vm1, %v11839_v24 }
0x19cd   :  { %8800 = vmatmul.mubr.msk.f32.gmra.mrb[204].mxu1 %vm350_vm1, %v11839_v24  ;;  %5681 = vmatprep.mubr.f32.mxu0 %v12958_v1 }
0x19ce   :  { %5770 = vmatprep.mubr.f32.mxu1 %v12958_v1 }
0x19d0   :  { %8797 = vmatmul.mubr.msk.f32.gmra.mrb[206].mxu0 %vm350_vm1, %v11850_v23 }
0x19d1   :  { %8801 = vmatmul.mubr.msk.f32.gmra.mrb[206].mxu1 %vm350_vm1, %v11850_v23  ;;  %5857 = vmatprep.mubr.f32.mxu0 %v12958_v1 }
0x19d2   :  { %5946 = vmatprep.mubr.f32.mxu1 %v12958_v1 }
0x1a97   :  { %v5665_v8 = vpop.f32.mrb[200].mxu0 }
0x1a98   :  { %v5754_v20 = vpop.f32.mrb[200].mxu1  ;;  %v5667_v29 = vpop.f32.mrb[201].mxu0  ;;  %v5666_v5 = vadd.f32 %v5665_v8, %v13009_v53 }
0x1a99   :  { %v5756_v46 = vpop.f32.mrb[201].mxu1  ;;  %v5755_v50 = vadd.f32 %v5754_v20, %v13009_v53  ;;  %v5668_v28 = vadd.f32 %v5667_v29, %v13009_v53 }
0x1a9a   :  { %v5757_v63 = vadd.f32 %v5756_v46, %v13009_v53  ;;  %v5777_v19 = vmax.f32 %v5666_v5, 0.0 }
0x1a9b   :  { %v5671_v41 = vpop.f32.mrb[202].mxu0  ;;  %v5779_v16 = vmax.f32 %v5755_v50, 0.0  ;;  %v5778_v3 = vmax.f32 %v5668_v28, 0.0 }
0x1a9c   :  { %v5672_v33 = vadd.f32 %v5671_v41, %v10172_v11  ;;  %v5760_v56 = vpop.f32.mrb[202].mxu1  ;;  %v5673_v58 = vpop.f32.mrb[203].mxu0  ;;  %v5780_v8 = vmax.f32 %v5757_v63, 0.0 }
0x1a9d   :  { %v5761_v43 = vadd.f32 %v5760_v56, %v10172_v11  ;;  %v5674_v34 = vadd.f32 %v5673_v58, %v10172_v11  ;;  %v5762_v57 = vpop.f32.mrb[203].mxu1 }
0x1a9e   :  { %v5781_v14 = vmax.f32 %v5672_v33, 0.0  ;;  %v5763_v39 = vadd.f32 %v5762_v57, %v10172_v11 }
0x1a9f   :  { %v5783_v36 = vmax.f32 %v5761_v43, 0.0  ;;  %v5782_v12 = vmax.f32 %v5674_v34, 0.0  ;;  %v5677_v17 = vpop.f32.mrb[204].mxu0 }
0x1aa0   :  { %v9284_v20 = vpack.c.bf16 %v5781_v14, %v5777_v19  ;;  %v5784_v29 = vmax.f32 %v5763_v39, 0.0  ;;  %v5766_v46 = vpop.f32.mrb[204].mxu1  ;;  %v5679_v41 = vpop.f32.mrb[205].mxu0  ;;  %v5678_v58 = vadd.f32 %v5677_v17, %v10182_v61 }
0x1aa1   :  { %v9292_v53 = vpack.c.bf16 %v5783_v36, %v5779_v16  ;;  %v9282_v23 = vpack.c.bf16 %v5782_v12, %v5778_v3  ;;  %v5768_v56 = vpop.f32.mrb[205].mxu1  ;;  %v5767_v5 = vadd.f32 %v5766_v46, %v10182_v61  ;;  %v5680_v33 = vadd.f32 %v5679_v41, %v10182_v61 }
0x1aa2   :  { %v9290_v24 = vpack.c.bf16 %v5784_v29, %v5780_v8  ;;  %v5769_v28 = vadd.f32 %v5768_v56, %v10182_v61  ;;  %v5785_v39 = vmax.f32 %v5678_v58, 0.0  ;;  %v11888_v56 = vld [vmem:[%s12801_s2 + $0x68] sm:$0xff]  ;;  %v11899_v58 = vld [vmem:[%s12801_s2 + $0x70] sm:$0xff] }
0x1aa3   :  { %v5683_v50 = vpop.f32.mrb[206].mxu0  ;;  %9283 = vmatprep.subr.bf16.mxu0 %v9282_v23  ;;  %v5787_v36 = vmax.f32 %v5767_v5, 0.0  ;;  %v5786_v23 = vmax.f32 %v5680_v33, 0.0  ;;  %v11910_v5 = vld [vmem:[%s12801_s2 + $0x78] sm:$0xff] }
0x1aa4   :  { %v5684_v63 = vadd.f32 %v5683_v50, %v10184_v26  ;;  %v5772_v43 = vpop.f32.mrb[206].mxu1  ;;  %9291 = vmatprep.subr.bf16.mxu1 %v9290_v24  ;;  %v5685_v34 = vpop.f32.mrb[207].mxu0  ;;  %9285 = vmatpush1.bf16.msra.mxu0 %v9284_v20  ;;  %v5788_v8 = vmax.f32 %v5769_v28, 0.0 }
0x1aa5   :  { %v5773_v57 = vadd.f32 %v5772_v43, %v10184_v26  ;;  %v5686_v19 = vadd.f32 %v5685_v34, %v10184_v26  ;;  %v5774_v14 = vpop.f32.mrb[207].mxu1  ;;  %9293 = vmatpush1.bf16.msra.mxu1 %v9292_v53  ;;  %v11877_v53 = vld [vmem:[%s12801_s2 + $0x60] sm:$0xff] }
0x1aa6   :  { %v5789_v16 = vmax.f32 %v5684_v63, 0.0  ;;  %v5775_v3 = vadd.f32 %v5774_v14, %v10184_v26 }
0x1aa7   :  { %v5791_v12 = vmax.f32 %v5773_v57, 0.0  ;;  %v5790_v17 = vmax.f32 %v5686_v19, 0.0 }
0x1aa8   :  { %v9288_v29 = vpack.c.bf16 %v5789_v16, %v5785_v39  ;;  %v5792_v46 = vmax.f32 %v5775_v3, 0.0 }
0x1aa9   :  { %v9296_v24 = vpack.c.bf16 %v5791_v12, %v5787_v36  ;;  %v9286_v41 = vpack.c.bf16 %v5790_v17, %v5786_v23 }
0x1aaa   :  { %v9294_v20 = vpack.c.bf16 %v5792_v46, %v5788_v8 }
0x1aab   :  { %9287 = vmatprep.subr.bf16.mxu0 %v9286_v41 }
0x1aac   :  { %9295 = vmatprep.subr.bf16.mxu1 %v9294_v20  ;;  %9289 = vmatpush1.bf16.msra.mxu0 %v9288_v29 }
0x1aad   :  { %9297 = vmatpush1.bf16.msra.mxu1 %v9296_v24 }
0x1aaf   :  { %8802 = vmatmul.mubr.msk.f32.vlgmr.msra.gmra.mrb[208].mxu0 %vm350_vm1, %v11877_v53 }
0x1ab0   :  { %8806 = vmatmul.mubr.msk.f32.vlgmr.msra.gmra.mrb[208].mxu1 %vm350_vm1, %v11877_v53  ;;  %5863 = vmatprep.mubr.f32.mxu0 %v12958_v1 }
0x1ab1   :  { %5952 = vmatprep.mubr.f32.mxu1 %v12958_v1 }
0x1ab3   :  { %8803 = vmatmul.mubr.msk.f32.gmra.mrb[210].mxu0 %vm350_vm1, %v11888_v56 }
0x1ab4   :  { %8807 = vmatmul.mubr.msk.f32.gmra.mrb[210].mxu1 %vm350_vm1, %v11888_v56  ;;  %5869 = vmatprep.mubr.f32.mxu0 %v12958_v1 }
0x1ab5   :  { %5958 = vmatprep.mubr.f32.mxu1 %v12958_v1 }
0x1ab7   :  { %8804 = vmatmul.mubr.msk.f32.gmra.mrb[212].mxu0 %vm350_vm1, %v11899_v58 }
0x1ab8   :  { %8808 = vmatmul.mubr.msk.f32.gmra.mrb[212].mxu1 %vm350_vm1, %v11899_v58  ;;  %5875 = vmatprep.mubr.f32.mxu0 %v12958_v1 }
0x1ab9   :  { %5964 = vmatprep.mubr.f32.mxu1 %v12958_v1 }
0x1abb   :  { %8805 = vmatmul.mubr.msk.f32.gmra.mrb[214].mxu0 %vm350_vm1, %v11910_v5 }
0x1abc   :  { %8809 = vmatmul.mubr.msk.f32.gmra.mrb[214].mxu1 %vm350_vm1, %v11910_v5  ;;  %6051 = vmatprep.mubr.f32.mxu0 %v12958_v1 }
0x1abd   :  { %6128 = vmatprep.mubr.f32.mxu1 %v12958_v1 }
0x1b82   :  { %v5859_v33 = vpop.f32.mrb[208].mxu0 }
0x1b83   :  { %v5948_v50 = vpop.f32.mrb[208].mxu1  ;;  %v5861_v28 = vpop.f32.mrb[209].mxu0  ;;  %v5860_v43 = vadd.f32 %v5859_v33, %v10238_v31 }
0x1b84   :  { %v5950_v63 = vpop.f32.mrb[209].mxu1  ;;  %v5949_v34 = vadd.f32 %v5948_v50, %v10238_v31  ;;  %v5862_v57 = vadd.f32 %v5861_v28, %v10238_v31 }
0x1b85   :  { %v5951_v14 = vadd.f32 %v5950_v63, %v10238_v31  ;;  %v5971_v17 = vadd.f32 %v5860_v43, %v11745_v62 }
0x1b86   :  { %v5865_v19 = vpop.f32.mrb[210].mxu0  ;;  %v5973_v46 = vadd.f32 %v5949_v34, %v11755_v22  ;;  %v5972_v24 = vadd.f32 %v5862_v57, %v11740_v18 }
0x1b87   :  { %v5866_v39 = vadd.f32 %v5865_v19, %v10240_v32  ;;  %v5954_v16 = vpop.f32.mrb[210].mxu1  ;;  %v5867_v3 = vpop.f32.mrb[211].mxu0  ;;  %v5974_v50 = vadd.f32 %v5951_v14, %v11748_v2 }
0x1b88   :  { %v5955_v36 = vadd.f32 %v5954_v16, %v10240_v32  ;;  %v5868_v23 = vadd.f32 %v5867_v3, %v10240_v32  ;;  %v5956_v12 = vpop.f32.mrb[211].mxu1 }
0x1b89   :  { %v5975_v8 = vadd.f32 %v5866_v39, %v11751_v47  ;;  %v5957_v29 = vadd.f32 %v5956_v12, %v10240_v32 }
0x1b8a   :  { %v5977_v41 = vadd.f32 %v5955_v36, %v11758_v4  ;;  %v5976_v20 = vadd.f32 %v5868_v23, %v11761_v13  ;;  %v5871_v33 = vpop.f32.mrb[212].mxu0 }
0x1b8b   :  { %v9300_v28 = vpack.c.bf16 %v5975_v8, %v5971_v17  ;;  %v5978_v63 = vadd.f32 %v5957_v29, %v11765_v60  ;;  %v5960_v19 = vpop.f32.mrb[212].mxu1  ;;  %v5873_v62 = vpop.f32.mrb[213].mxu0  ;;  %v5872_v16 = vadd.f32 %v5871_v33, %v12963_v37 }
0x1b8c   :  { %v9308_v43 = vpack.c.bf16 %v5977_v41, %v5973_v46  ;;  %v5962_v47 = vpop.f32.mrb[213].mxu1  ;;  %v9298_v39 = vpack.c.bf16 %v5976_v20, %v5972_v24  ;;  %v5961_v18 = vadd.f32 %v5960_v19, %v12963_v37  ;;  %v5874_v4 = vadd.f32 %v5873_v62, %v12963_v37 }
0x1b8d   :  { %v9306_v22 = vpack.c.bf16 %v5978_v63, %v5974_v50  ;;  %v5963_v13 = vadd.f32 %v5962_v47, %v12963_v37  ;;  %v5979_v23 = vadd.f32 %v5872_v16, %v11779_v49 }
0x1b8e   :  { %v5877_v34 = vpop.f32.mrb[214].mxu0  ;;  %9299 = vmatprep.subr.bf16.mxu0 %v9298_v39  ;;  %v5981_v8 = vadd.f32 %v5961_v18, %v11795_v7  ;;  %v5980_v29 = vadd.f32 %v5874_v4, %v11783_v25  ;;  %v11953_v25 = vld [vmem:[%s12802_s4] sm:$0xff] }
0x1b8f   :  { %v5878_v2 = vadd.f32 %v5877_v34, %v12964_v27  ;;  %v5966_v57 = vpop.f32.mrb[214].mxu1  ;;  %9307 = vmatprep.subr.bf16.mxu1 %v9306_v22  ;;  %v5879_v60 = vpop.f32.mrb[215].mxu0  ;;  %9301 = vmatpush1.bf16.msra.mxu0 %v9300_v28  ;;  %v5982_v41 = vadd.f32 %v5963_v13, %v11788_v0  ;;  %v11964_v0 = vld [vmem:[%s12802_s4 + $0x8] sm:$0xff] }
0x1b90   :  { %v5967_v14 = vadd.f32 %v5966_v57, %v12964_v27  ;;  %v5880_v3 = vadd.f32 %v5879_v60, %v12964_v27  ;;  %v5968_v36 = vpop.f32.mrb[215].mxu1  ;;  %9309 = vmatpush1.bf16.msra.mxu1 %v9308_v43  ;;  %13035 = vst [vmem:[#allocation11_spill] sm:$0xff] %v11964_v0 }
0x1b91   :  { %v5983_v12 = vadd.f32 %v5878_v2, %v11791_v42  ;;  %v5969_v17 = vadd.f32 %v5968_v36, %v12964_v27 }
0x1b92   :  { %v5985_v46 = vadd.f32 %v5967_v14, %v11798_v6  ;;  %v5984_v24 = vadd.f32 %v5880_v3, %v11801_v21 }
0x1b93   :  { %v9304_v20 = vpack.c.bf16 %v5983_v12, %v5979_v23  ;;  %v5986_v33 = vadd.f32 %v5969_v17, %v11805_v9 }
0x1b94   :  { %v9312_v50 = vpack.c.bf16 %v5985_v46, %v5981_v8  ;;  %v9302_v28 = vpack.c.bf16 %v5984_v24, %v5980_v29 }
0x1b95   :  { %v9310_v49 = vpack.c.bf16 %v5986_v33, %v5982_v41 }
0x1b96   :  { %9303 = vmatprep.subr.bf16.mxu0 %v9302_v28 }
0x1b97   :  { %9311 = vmatprep.subr.bf16.mxu1 %v9310_v49  ;;  %9305 = vmatpush1.bf16.msra.mxu0 %v9304_v20 }
0x1b98   :  { %9313 = vmatpush1.bf16.msra.mxu1 %v9312_v50 }
0x1b9a   :  { %8810 = vmatmul.mubr.msk.f32.vlgmr.msra.gmra.mrb[216].mxu0 %vm350_vm1, %v11953_v25 }
0x1b9b   :  { %8812 = vmatmul.mubr.msk.f32.vlgmr.msra.gmra.mrb[216].mxu1 %vm350_vm1, %v11953_v25  ;;  %6057 = vmatprep.mubr.f32.mxu0 %v12958_v1 }
0x1b9c   :  { %6134 = vmatprep.mubr.f32.mxu1 %v12958_v1 }
0x1b9e   :  { %8811 = vmatmul.mubr.msk.f32.gmra.mrb[218].mxu0 %vm350_vm1, %v11964_v0 }
0x1b9f   :  { %8813 = vmatmul.mubr.msk.f32.gmra.mrb[218].mxu1 %vm350_vm1, %v11964_v0  ;;  %6245 = vmatprep.mubr.f32.mxu0 %v12958_v1 }
0x1ba0   :  { %6334 = vmatprep.mubr.f32.mxu1 %v12958_v1 }
0x1c6d   :  { %v6053_v42 = vpop.f32.mrb[216].mxu0 }
0x1c6e   :  { %v6054_v7 = vadd.f32 %v6053_v42, %v13011_v44  ;;  %v6130_v6 = vpop.f32.mrb[216].mxu1  ;;  %v6055_v21 = vpop.f32.mrb[217].mxu0  ;;  %v11983_v42 = vld [vmem:[%s12799_s0] sm:$0xff] }
0x1c6f   :  { %v6131_v9 = vadd.f32 %v6130_v6, %v13011_v44  ;;  %v6056_v63 = vadd.f32 %v6055_v21, %v13011_v44  ;;  %v6132_v19 = vpop.f32.mrb[217].mxu1  ;;  %13036 = vst [vmem:[#allocation12_spill] sm:$0xff] %v11983_v42  ;;  %v11989_v21 = vld [vmem:[%s12799_s0 + $0x10] sm:$0xff] }
0x1c70   :  { %v8814_v62 = vmul.f32 -1.442695, %v6054_v7  ;;  %v6133_v43 = vadd.f32 %v6132_v19, %v13011_v44  ;;  %13037 = vst [vmem:[#allocation13_spill] sm:$0xff] %v11989_v21 }
0x1c71   :  { %v8816_v47 = vmul.f32 -1.442695, %v6131_v9  ;;  %v8815_v39 = vmul.f32 -1.442695, %v6056_v63  ;;  %v6059_v16 = vpop.f32.mrb[218].mxu0 }
0x1c72   :  { %9576 = vpow2.f32 %v8814_v62  ;;  %v8817_v22 = vmul.f32 -1.442695, %v6133_v43  ;;  %v6136_v18 = vpop.f32.mrb[218].mxu1  ;;  %v6061_v4 = vpop.f32.mrb[219].mxu0  ;;  %v6060_v33 = vadd.f32 %v6059_v16, %v13012_v54  ;;  %v11995_v62 = vld [vmem:[%s12799_s0 + $0x8] sm:$0xff]  ;;  %v12001_v16 = vld [vmem:[%s12799_s0 + $0x18] sm:$0xff] }
0x1c73   :  { %9578 = vpow2.f32 %v8816_v47  ;;  %v6138_v34 = vpop.f32.mrb[219].mxu1  ;;  %v6137_v50 = vadd.f32 %v6136_v18, %v13012_v54  ;;  %v6062_v28 = vadd.f32 %v6061_v4, %v13012_v54  ;;  %13038 = vst [vmem:[#allocation16_spill] sm:$0xff] %v11995_v62  ;;  %13039 = vst [vmem:[#allocation17_spill] sm:$0xff] %v12001_v16 }
0x1c74   :  { %9580 = vpow2.f32 %v8815_v39  ;;  %v6139_v49 = vadd.f32 %v6138_v34, %v13012_v54  ;;  %v6169_v7 = vsub.f32 %v11983_v42, %v6060_v33 }
0x1c75   :  { %9582 = vpow2.f32 %v8817_v22  ;;  %v6171_v9 = vsub.f32 %v11989_v21, %v6137_v50  ;;  %v6170_v43 = vsub.f32 %v11995_v62, %v6062_v28 }
0x1c76   :  { %v6172_v22 = vsub.f32 %v12001_v16, %v6139_v49 }
0x1c7c   :  { %v9577_v13 = vpop.eup %9576 }
0x1c7d   :  { %v9579_v2 = vpop.eup %9578  ;;  %v6153_v57 = vadd.f32 1.0, %v9577_v13  ;;  %v12007_v13 = vld [vmem:[%s12800_s1] sm:$0xff] }
0x1c7e   :  { %v9581_v60 = vpop.eup %9580  ;;  %v6155_v14 = vadd.f32 1.0, %v9579_v2  ;;  %13040 = vst [vmem:[#allocation18_spill] sm:$0xff] %v12007_v13  ;;  %v12018_v2 = vld [vmem:[%s12800_s1 + $0x8] sm:$0xff] }
0x1c7f   :  { %v9583_v3 = vpop.eup %9582  ;;  %9584 = vrcp.f32 %v6153_v57  ;;  %v6154_v36 = vadd.f32 1.0, %v9581_v60  ;;  %13041 = vst [vmem:[#allocation19_spill] sm:$0xff] %v12018_v2  ;;  %v12029_v57 = vld [vmem:[%s12800_s1 + $0x10] sm:$0xff]  ;;  %v12040_v60 = vld [vmem:[%s12800_s1 + $0x18] sm:$0xff] }
0x1c80   :  { %9586 = vrcp.f32 %v6155_v14  ;;  %v6156_v23 = vadd.f32 1.0, %v9583_v3  ;;  %13042 = vst [vmem:[#allocation20_spill] sm:$0xff] %v12029_v57  ;;  %13043 = vst [vmem:[#allocation21_spill] sm:$0xff] %v12040_v60 }
0x1c81   :  { %9588 = vrcp.f32 %v6154_v36 }
0x1c82   :  { %9590 = vrcp.f32 %v6156_v23 }
0x1c89   :  { %v9585_v12 = vpop.eup %9584 }
0x1c8a   :  { %v9587_v17 = vpop.eup %9586  ;;  %v6165_v8 = vadd.f32 0.001, %v9585_v12 }
0x1c8b   :  { %v9589_v29 = vpop.eup %9588  ;;  %v6167_v46 = vadd.f32 0.001, %v9587_v17 }
0x1c8c   :  { %v9591_v24 = vpop.eup %9590  ;;  %9592 = vrcp.f32 %v6165_v8  ;;  %v6166_v41 = vadd.f32 0.001, %v9589_v29 }
0x1c8d   :  { %9594 = vrcp.f32 %v6167_v46  ;;  %v6168_v20 = vadd.f32 0.001, %v9591_v24 }
0x1c8e   :  { %9596 = vrcp.f32 %v6166_v41 }
0x1c8f   :  { %9598 = vrcp.f32 %v6168_v20 }
0x1c96   :  { %v9593_v6 = vpop.eup %9592 }
0x1c97   :  { %v9595_v63 = vpop.eup %9594  ;;  %v6174_v19 = vmul.f32 %v9593_v6, %v6169_v7 }
0x1c98   :  { %v9597_v47 = vpop.eup %9596  ;;  %v6178_v39 = vmul.f32 %v9595_v63, %v6171_v9 }
0x1c99   :  { %v9599_v18 = vpop.eup %9598  ;;  %v6176_v4 = vmul.f32 %v9597_v47, %v6170_v43 }
0x1c9a   :  { %v6180_v34 = vmul.f32 %v9599_v18, %v6172_v22 }
0x1c9b   :  { %6181 = vmatprep.subr.mxu0 %v6176_v4 }
0x1c9c   :  { %6270 = vmatprep.subr.mxu1 %v6180_v34  ;;  %6182 = vmatpush1.msra.mxu0 %v6174_v19 }
0x1c9d   :  { %6271 = vmatpush1.msra.mxu1 %v6178_v39  ;;  %8818 = vmatmul.mubr.msk.f32.vlgmr.msra.gmra.mrb[220].mxu0 %vm123_vm0, %v12007_v13 }
0x1c9e   :  { %8822 = vmatmul.mubr.msk.f32.vlgmr.msra.gmra.mrb[220].mxu1 %vm123_vm0, %v12007_v13  ;;  %6251 = vmatprep.mubr.f32.mxu0 %v12958_v1 }
0x1c9f   :  { %6340 = vmatprep.mubr.f32.mxu1 %v12958_v1 }
0x1ca1   :  { %8819 = vmatmul.mubr.msk.f32.gmra.mrb[222].mxu0 %vm123_vm0, %v12018_v2 }
0x1ca2   :  { %8823 = vmatmul.mubr.msk.f32.gmra.mrb[222].mxu1 %vm123_vm0, %v12018_v2  ;;  %6257 = vmatprep.mubr.f32.mxu0 %v12958_v1 }
0x1ca3   :  { %6346 = vmatprep.mubr.f32.mxu1 %v12958_v1 }
0x1ca5   :  { %8820 = vmatmul.mubr.msk.f32.gmra.mrb[224].mxu0 %vm123_vm0, %v12029_v57 }
0x1ca6   :  { %8824 = vmatmul.mubr.msk.f32.gmra.mrb[224].mxu1 %vm123_vm0, %v12029_v57  ;;  %6263 = vmatprep.mubr.f32.mxu0 %v12958_v1 }
0x1ca7   :  { %6352 = vmatprep.mubr.f32.mxu1 %v12958_v1 }
0x1ca9   :  { %8821 = vmatmul.mubr.msk.f32.gmra.mrb[226].mxu0 %vm123_vm0, %v12040_v60 }
0x1caa   :  { %8825 = vmatmul.mubr.msk.f32.gmra.mrb[226].mxu1 %vm123_vm0, %v12040_v60  ;;  %6439 = vmatprep.mubr.f32.mxu0 %v12958_v1 }
0x1cab   :  { %6528 = vmatprep.mubr.f32.mxu1 %v12958_v1 }
0x1d70   :  { %v6247_v14 = vpop.f32.mrb[220].mxu0 }
0x1d71   :  { %v6336_v3 = vpop.f32.mrb[220].mxu1  ;;  %v6249_v36 = vpop.f32.mrb[221].mxu0  ;;  %v12052_v8 = vadd.f32 %v6247_v14, %v13021_v52 }
0x1d72   :  { %v6338_v23 = vpop.f32.mrb[221].mxu1  ;;  %v12049_v12 = vadd.f32 %v6249_v36, %v13021_v52  ;;  %v12061_v20 = vadd.f32 %v6336_v3, %v13021_v52 }
0x1d73   :  { %v12055_v29 = vadd.f32 %v6338_v23, %v13021_v52  ;;  %v6359_v43 = vmax.f32 %v12052_v8, 0.0 }
0x1d74   :  { %v6253_v17 = vpop.f32.mrb[222].mxu0  ;;  %v6360_v6 = vmax.f32 %v12049_v12, 0.0  ;;  %v6361_v4 = vmax.f32 %v12061_v20, 0.0 }
0x1d75   :  { %v12058_v46 = vadd.f32 %v6253_v17, %v13022_v30  ;;  %v6342_v24 = vpop.f32.mrb[222].mxu1  ;;  %v6255_v41 = vpop.f32.mrb[223].mxu0  ;;  %v6362_v47 = vmax.f32 %v12055_v29, 0.0 }
0x1d76   :  { %v12064_v33 = vadd.f32 %v6342_v24, %v13022_v30  ;;  %v12067_v50 = vadd.f32 %v6255_v41, %v13022_v30  ;;  %v6344_v28 = vpop.f32.mrb[223].mxu1 }
0x1d77   :  { %v6363_v49 = vmax.f32 %v12058_v46, 0.0  ;;  %v12071_v7 = vadd.f32 %v6344_v28, %v13022_v30  ;;  %v13044_v30 = vld [vmem:[#allocation5_spill] sm:$0xff] }
0x1d78   :  { %v6365_v9 = vmax.f32 %v12064_v33, 0.0  ;;  %v6364_v63 = vmax.f32 %v12067_v50, 0.0  ;;  %v6259_v19 = vpop.f32.mrb[224].mxu0 }
0x1d79   :  { %v6366_v39 = vmax.f32 %v12071_v7, 0.0  ;;  %v6348_v22 = vpop.f32.mrb[224].mxu1  ;;  %v6261_v18 = vpop.f32.mrb[225].mxu0  ;;  %v9316_v3 = vpack.c.bf16 %v6363_v49, %v6359_v43  ;;  %v12084_v41 = vadd.f32 %v6259_v19, %v13023_v15 }
0x1d7a   :  { %v6350_v34 = vpop.f32.mrb[225].mxu1  ;;  %v9314_v14 = vpack.c.bf16 %v6364_v63, %v6360_v6  ;;  %v9324_v23 = vpack.c.bf16 %v6365_v9, %v6361_v4  ;;  %v12081_v17 = vadd.f32 %v6261_v18, %v13023_v15  ;;  %v12093_v49 = vadd.f32 %v6348_v22, %v13023_v15 }
0x1d7b   :  { %v9322_v36 = vpack.c.bf16 %v6366_v39, %v6362_v47  ;;  %v12087_v28 = vadd.f32 %v6350_v34, %v13023_v15  ;;  %v6367_v4 = vmax.f32 %v12084_v41, 0.0 }
0x1d7c   :  { %v6265_v24 = vpop.f32.mrb[226].mxu0  ;;  %9315 = vmatprep.subr.bf16.mxu0 %v9314_v14  ;;  %v6368_v39 = vmax.f32 %v12081_v17, 0.0  ;;  %v6369_v14 = vmax.f32 %v12093_v49, 0.0 }
0x1d7d   :  { %v12090_v52 = vadd.f32 %v6265_v24, %v13044_v30  ;;  %v6354_v60 = vpop.f32.mrb[226].mxu1  ;;  %9323 = vmatprep.subr.bf16.mxu1 %v9322_v36  ;;  %v6267_v6 = vpop.f32.mrb[227].mxu0  ;;  %9317 = vmatpush1.bf16.msra.mxu0 %v9316_v3 }
0x1d7e   :  { %v12096_v9 = vadd.f32 %v6354_v60, %v13044_v30  ;;  %v12099_v63 = vadd.f32 %v6267_v6, %v13044_v30  ;;  %v6356_v19 = vpop.f32.mrb[227].mxu1  ;;  %9325 = vmatpush1.bf16.msra.mxu1 %v9324_v23  ;;  %v6370_v60 = vmax.f32 %v12087_v28, 0.0  ;;  %v12115_v6 = vld [vmem:[%s12801_s2] sm:$0xff] }
0x1d7f   :  { %v6371_v43 = vmax.f32 %v12090_v52, 0.0  ;;  %v12103_v47 = vadd.f32 %v6356_v19, %v13044_v30  ;;  %13045 = vst [vmem:[#allocation22_spill] sm:$0xff] %v12115_v6  ;;  %v12126_v19 = vld [vmem:[%s12801_s2 + $0x8] sm:$0xff] }
0x1d80   :  { %v6373_v18 = vmax.f32 %v12096_v9, 0.0  ;;  %v6372_v22 = vmax.f32 %v12099_v63, 0.0  ;;  %13046 = vst [vmem:[#allocation23_spill] sm:$0xff] %v12126_v19 }
0x1d81   :  { %v6374_v34 = vmax.f32 %v12103_v47, 0.0  ;;  %v9320_v36 = vpack.c.bf16 %v6371_v43, %v6367_v4  ;;  %v12137_v43 = vld [vmem:[%s12801_s2 + $0x10] sm:$0xff] }
0x1d82   :  { %v9318_v3 = vpack.c.bf16 %v6372_v22, %v6368_v39  ;;  %v9328_v24 = vpack.c.bf16 %v6373_v18, %v6369_v14  ;;  %13047 = vst [vmem:[#allocation24_spill] sm:$0xff] %v12137_v43  ;;  %v12148_v39 = vld [vmem:[%s12801_s2 + $0x18] sm:$0xff] }
0x1d83   :  { %v9326_v23 = vpack.c.bf16 %v6374_v34, %v6370_v60  ;;  %13048 = vst [vmem:[#allocation25_spill] sm:$0xff] %v12148_v39  ;;  %v13049_v34 = vld [vmem:[#allocation6_spill] sm:$0xff] }
0x1d84   :  { %9319 = vmatprep.subr.bf16.mxu0 %v9318_v3 }
0x1d85   :  { %9327 = vmatprep.subr.bf16.mxu1 %v9326_v23  ;;  %9321 = vmatpush1.bf16.msra.mxu0 %v9320_v36 }
0x1d86   :  { %9329 = vmatpush1.bf16.msra.mxu1 %v9328_v24 }
0x1d88   :  { %8826 = vmatmul.mubr.msk.f32.vlgmr.msra.gmra.mrb[228].mxu0 %vm350_vm1, %v12115_v6 }
0x1d89   :  { %8830 = vmatmul.mubr.msk.f32.vlgmr.msra.gmra.mrb[228].mxu1 %vm350_vm1, %v12115_v6  ;;  %6445 = vmatprep.mubr.f32.mxu0 %v12958_v1 }
0x1d8a   :  { %6534 = vmatprep.mubr.f32.mxu1 %v12958_v1 }
0x1d8c   :  { %8827 = vmatmul.mubr.msk.f32.gmra.mrb[230].mxu0 %vm350_vm1, %v12126_v19 }
0x1d8d   :  { %8831 = vmatmul.mubr.msk.f32.gmra.mrb[230].mxu1 %vm350_vm1, %v12126_v19  ;;  %6451 = vmatprep.mubr.f32.mxu0 %v12958_v1 }
0x1d8e   :  { %6540 = vmatprep.mubr.f32.mxu1 %v12958_v1 }
0x1d90   :  { %8828 = vmatmul.mubr.msk.f32.gmra.mrb[232].mxu0 %vm350_vm1, %v12137_v43 }
0x1d91   :  { %8832 = vmatmul.mubr.msk.f32.gmra.mrb[232].mxu1 %vm350_vm1, %v12137_v43  ;;  %6457 = vmatprep.mubr.f32.mxu0 %v12958_v1 }
0x1d92   :  { %6546 = vmatprep.mubr.f32.mxu1 %v12958_v1 }
0x1d94   :  { %8829 = vmatmul.mubr.msk.f32.gmra.mrb[234].mxu0 %vm350_vm1, %v12148_v39 }
0x1d95   :  { %8833 = vmatmul.mubr.msk.f32.gmra.mrb[234].mxu1 %vm350_vm1, %v12148_v39  ;;  %6633 = vmatprep.mubr.f32.mxu0 %v12958_v1 }
0x1d96   :  { %6722 = vmatprep.mubr.f32.mxu1 %v12958_v1 }
0x1e5b   :  { %v6441_v18 = vpop.f32.mrb[228].mxu0 }
0x1e5c   :  { %v6530_v22 = vpop.f32.mrb[228].mxu1  ;;  %v6443_v4 = vpop.f32.mrb[229].mxu0  ;;  %v6442_v14 = vadd.f32 %v6441_v18, %v13049_v34 }
0x1e5d   :  { %v6532_v60 = vpop.f32.mrb[229].mxu1  ;;  %v6531_v3 = vadd.f32 %v6530_v22, %v13049_v34  ;;  %v6444_v36 = vadd.f32 %v6443_v4, %v13049_v34 }
0x1e5e   :  { %v6533_v24 = vadd.f32 %v6532_v60, %v13049_v34  ;;  %v6553_v57 = vmax.f32 %v6442_v14, 0.0 }
0x1e5f   :  { %v6447_v23 = vpop.f32.mrb[230].mxu0  ;;  %v6555_v13 = vmax.f32 %v6531_v3, 0.0  ;;  %v6554_v22 = vmax.f32 %v6444_v36, 0.0 }
0x1e60   :  { %v6448_v43 = vadd.f32 %v6447_v23, %v9988_v59  ;;  %v6536_v39 = vpop.f32.mrb[230].mxu1  ;;  %v6449_v19 = vpop.f32.mrb[231].mxu0  ;;  %v6556_v21 = vmax.f32 %v6533_v24, 0.0 }
0x1e61   :  { %v6537_v6 = vadd.f32 %v6536_v39, %v9988_v59  ;;  %v6450_v30 = vadd.f32 %v6449_v19, %v9988_v59  ;;  %v6538_v15 = vpop.f32.mrb[231].mxu1 }
0x1e62   :  { %v6557_v2 = vmax.f32 %v6448_v43, 0.0  ;;  %v6539_v18 = vadd.f32 %v6538_v15, %v9988_v59 }
0x1e63   :  { %v6559_v16 = vmax.f32 %v6537_v6, 0.0  ;;  %v6558_v4 = vmax.f32 %v6450_v30, 0.0  ;;  %v6453_v62 = vpop.f32.mrb[232].mxu0 }
0x1e64   :  { %v9332_v60 = vpack.c.bf16 %v6557_v2, %v6553_v57  ;;  %v6560_v34 = vmax.f32 %v6539_v18, 0.0  ;;  %v6542_v23 = vpop.f32.mrb[232].mxu1  ;;  %v6455_v42 = vpop.f32.mrb[233].mxu0  ;;  %v6454_v19 = vadd.f32 %v6453_v62, %v9998_v35 }
0x1e65   :  { %v9340_v54 = vpack.c.bf16 %v6559_v16, %v6555_v13  ;;  %v9330_v44 = vpack.c.bf16 %v6558_v4, %v6554_v22  ;;  %v6544_v39 = vpop.f32.mrb[233].mxu1  ;;  %v6543_v43 = vadd.f32 %v6542_v23, %v9998_v35  ;;  %v6456_v15 = vadd.f32 %v6455_v42, %v9998_v35 }
0x1e66   :  { %v9338_v0 = vpack.c.bf16 %v6560_v34, %v6556_v21  ;;  %v6545_v30 = vadd.f32 %v6544_v39, %v9998_v35  ;;  %v6561_v62 = vmax.f32 %v6454_v19, 0.0  ;;  %v12186_v39 = vld [vmem:[%s12801_s2 + $0x28] sm:$0xff]  ;;  %v12197_v19 = vld [vmem:[%s12801_s2 + $0x30] sm:$0xff] }
0x1e67   :  { %v6459_v14 = vpop.f32.mrb[234].mxu0  ;;  %9331 = vmatprep.subr.bf16.mxu0 %v9330_v44  ;;  %v6563_v3 = vmax.f32 %v6543_v43, 0.0  ;;  %v6562_v44 = vmax.f32 %v6456_v15, 0.0  ;;  %v12208_v43 = vld [vmem:[%s12801_s2 + $0x38] sm:$0xff] }
0x1e68   :  { %v6460_v6 = vadd.f32 %v6459_v14, %v10000_v38  ;;  %v6548_v2 = vpop.f32.mrb[234].mxu1  ;;  %9339 = vmatprep.subr.bf16.mxu1 %v9338_v0  ;;  %v6461_v57 = vpop.f32.mrb[235].mxu0  ;;  %9333 = vmatpush1.bf16.msra.mxu0 %v9332_v60  ;;  %v6564_v18 = vmax.f32 %v6545_v30, 0.0  ;;  %13050 = vst [vmem:[#allocation26_spill] sm:$0xff] %v12208_v43 }
0x1e69   :  { %v6549_v16 = vadd.f32 %v6548_v2, %v10000_v38  ;;  %v6462_v21 = vadd.f32 %v6461_v57, %v10000_v38  ;;  %v6550_v13 = vpop.f32.mrb[235].mxu1  ;;  %9341 = vmatpush1.bf16.msra.mxu1 %v9340_v54  ;;  %v12175_v54 = vld [vmem:[%s12801_s2 + $0x20] sm:$0xff] }
0x1e6a   :  { %v6565_v34 = vmax.f32 %v6460_v6, 0.0  ;;  %v6551_v42 = vadd.f32 %v6550_v13, %v10000_v38 }
0x1e6b   :  { %v6567_v36 = vmax.f32 %v6549_v16, 0.0  ;;  %v6566_v24 = vmax.f32 %v6462_v21, 0.0 }
0x1e6c   :  { %v9336_v22 = vpack.c.bf16 %v6565_v34, %v6561_v62  ;;  %v6568_v4 = vmax.f32 %v6551_v42, 0.0 }
0x1e6d   :  { %v9344_v0 = vpack.c.bf16 %v6567_v36, %v6563_v3  ;;  %v9334_v23 = vpack.c.bf16 %v6566_v24, %v6562_v44 }
0x1e6e   :  { %v9342_v60 = vpack.c.bf16 %v6568_v4, %v6564_v18 }
0x1e6f   :  { %9335 = vmatprep.subr.bf16.mxu0 %v9334_v23 }
0x1e70   :  { %9343 = vmatprep.subr.bf16.mxu1 %v9342_v60  ;;  %9337 = vmatpush1.bf16.msra.mxu0 %v9336_v22 }
0x1e71   :  { %9345 = vmatpush1.bf16.msra.mxu1 %v9344_v0 }
0x1e73   :  { %8834 = vmatmul.mubr.msk.f32.vlgmr.msra.gmra.mrb[236].mxu0 %vm350_vm1, %v12175_v54 }
0x1e74   :  { %8838 = vmatmul.mubr.msk.f32.vlgmr.msra.gmra.mrb[236].mxu1 %vm350_vm1, %v12175_v54  ;;  %6639 = vmatprep.mubr.f32.mxu0 %v12958_v1 }
0x1e75   :  { %6728 = vmatprep.mubr.f32.mxu1 %v12958_v1 }
0x1e77   :  { %8835 = vmatmul.mubr.msk.f32.gmra.mrb[238].mxu0 %vm350_vm1, %v12186_v39 }
0x1e78   :  { %8839 = vmatmul.mubr.msk.f32.gmra.mrb[238].mxu1 %vm350_vm1, %v12186_v39  ;;  %6645 = vmatprep.mubr.f32.mxu0 %v12958_v1 }
0x1e79   :  { %6734 = vmatprep.mubr.f32.mxu1 %v12958_v1 }
0x1e7b   :  { %8836 = vmatmul.mubr.msk.f32.gmra.mrb[240].mxu0 %vm350_vm1, %v12197_v19 }
0x1e7c   :  { %8840 = vmatmul.mubr.msk.f32.gmra.mrb[240].mxu1 %vm350_vm1, %v12197_v19  ;;  %6651 = vmatprep.mubr.f32.mxu0 %v12958_v1 }
0x1e7d   :  { %6740 = vmatprep.mubr.f32.mxu1 %v12958_v1 }
0x1e7f   :  { %8837 = vmatmul.mubr.msk.f32.gmra.mrb[242].mxu0 %vm350_vm1, %v12208_v43 }
0x1e80   :  { %8841 = vmatmul.mubr.msk.f32.gmra.mrb[242].mxu1 %vm350_vm1, %v12208_v43  ;;  %6843 = vmatprep.mubr.f32.mxu0 %v12958_v1 }
0x1e81   :  { %6932 = vmatprep.mubr.f32.mxu1 %v12958_v1 }
0x1f46   :  { %v6635_v15 = vpop.f32.mrb[236].mxu0 }
0x1f47   :  { %v6724_v14 = vpop.f32.mrb[236].mxu1  ;;  %v6637_v30 = vpop.f32.mrb[237].mxu0  ;;  %v6636_v57 = vadd.f32 %v6635_v15, %v13031_v40 }
0x1f48   :  { %v6638_v6 = vadd.f32 %v6637_v30, %v13031_v40  ;;  %v6726_v2 = vpop.f32.mrb[237].mxu1  ;;  %v6725_v21 = vadd.f32 %v6724_v14, %v13031_v40 }
0x1f49   :  { %v6727_v16 = vadd.f32 %v6726_v2, %v13031_v40  ;;  %v12227_v18 = vadd.f32 %v6636_v57, %v12052_v8 }
0x1f4a   :  { %v6641_v13 = vpop.f32.mrb[238].mxu0  ;;  %v12222_v3 = vadd.f32 %v6638_v6, %v12049_v12  ;;  %v12237_v23 = vadd.f32 %v6725_v21, %v12061_v20 }
0x1f4b   :  { %v6642_v62 = vadd.f32 %v6641_v13, %v13032_v45  ;;  %v6730_v34 = vpop.f32.mrb[238].mxu1  ;;  %v6643_v42 = vpop.f32.mrb[239].mxu0  ;;  %v12230_v22 = vadd.f32 %v6727_v16, %v12055_v29  ;;  %v6763_v57 = vmax.f32 %v12227_v18, 0.0 }
0x1f4c   :  { %v6731_v44 = vadd.f32 %v6730_v34, %v13032_v45  ;;  %v6644_v36 = vadd.f32 %v6643_v42, %v13032_v45  ;;  %v6732_v24 = vpop.f32.mrb[239].mxu1  ;;  %v6764_v6 = vmax.f32 %v12222_v3, 0.0  ;;  %v6765_v13 = vmax.f32 %v12237_v23, 0.0 }
0x1f4d   :  { %v12233_v4 = vadd.f32 %v6642_v62, %v12058_v46  ;;  %v6733_v0 = vadd.f32 %v6732_v24, %v13032_v45  ;;  %v6766_v16 = vmax.f32 %v12230_v22, 0.0 }
0x1f4e   :  { %v12240_v12 = vadd.f32 %v6731_v44, %v12064_v33  ;;  %v12243_v60 = vadd.f32 %v6644_v36, %v12067_v50  ;;  %v6647_v15 = vpop.f32.mrb[240].mxu0 }
0x1f4f   :  { %v6767_v8 = vmax.f32 %v12233_v4, 0.0  ;;  %v12247_v29 = vadd.f32 %v6733_v0, %v12071_v7  ;;  %v6648_v46 = vadd.f32 %v6647_v15, %v10059_v55  ;;  %v6736_v14 = vpop.f32.mrb[240].mxu1  ;;  %v6649_v30 = vpop.f32.mrb[241].mxu0 }
0x1f50   :  { %v6769_v20 = vmax.f32 %v12240_v12, 0.0  ;;  %v6768_v33 = vmax.f32 %v12243_v60, 0.0  ;;  %v6650_v2 = vadd.f32 %v6649_v30, %v10059_v55  ;;  %v6738_v50 = vpop.f32.mrb[241].mxu1  ;;  %v6737_v62 = vadd.f32 %v6736_v14, %v10059_v55 }
0x1f51   :  { %v6770_v7 = vmax.f32 %v12247_v29, 0.0  ;;  %v6739_v21 = vadd.f32 %v6738_v50, %v10059_v55  ;;  %v9348_v44 = vpack.c.bf16 %v6767_v8, %v6763_v57  ;;  %v12261_v36 = vadd.f32 %v6648_v46, %v12084_v41 }
0x1f52   :  { %v6653_v34 = vpop.f32.mrb[242].mxu0  ;;  %v9346_v42 = vpack.c.bf16 %v6768_v33, %v6764_v6  ;;  %v9356_v45 = vpack.c.bf16 %v6769_v20, %v6765_v13  ;;  %v12265_v40 = vadd.f32 %v6650_v2, %v12081_v17  ;;  %v12277_v6 = vadd.f32 %v6737_v62, %v12093_v49 }
0x1f53   :  { %v6654_v24 = vadd.f32 %v6653_v34, %v10086_v10  ;;  %v6742_v0 = vpop.f32.mrb[242].mxu1  ;;  %v6655_v15 = vpop.f32.mrb[243].mxu0  ;;  %v9354_v30 = vpack.c.bf16 %v6770_v7, %v6766_v16  ;;  %v12270_v8 = vadd.f32 %v6739_v21, %v12087_v28  ;;  %v6771_v49 = vmax.f32 %v12261_v36, 0.0 }
0x1f54   :  { %v6743_v50 = vadd.f32 %v6742_v0, %v10086_v10  ;;  %v6656_v43 = vadd.f32 %v6655_v15, %v10086_v10  ;;  %v6744_v14 = vpop.f32.mrb[243].mxu1  ;;  %9347 = vmatprep.subr.bf16.mxu0 %v9346_v42  ;;  %v13053_v42 = vld [vmem:[#allocation9_spill] sm:$0xff] }
0x1f55   :  { %v12273_v41 = vadd.f32 %v6654_v24, %v12090_v52  ;;  %v6745_v46 = vadd.f32 %v6744_v14, %v10086_v10  ;;  %9355 = vmatprep.subr.bf16.mxu1 %v9354_v30  ;;  %9349 = vmatpush1.bf16.msra.mxu0 %v9348_v44  ;;  %v6772_v52 = vmax.f32 %v12265_v40, 0.0 }
0x1f56   :  { %v12280_v17 = vadd.f32 %v6743_v50, %v12096_v9  ;;  %v12283_v20 = vadd.f32 %v6656_v43, %v12099_v63  ;;  %9357 = vmatpush1.bf16.msra.mxu1 %v9356_v45  ;;  %v6774_v9 = vmax.f32 %v12270_v8, 0.0  ;;  %v6773_v63 = vmax.f32 %v12277_v6, 0.0 }
0x1f57   :  { %v6775_v28 = vmax.f32 %v12273_v41, 0.0  ;;  %v12287_v33 = vadd.f32 %v6745_v46, %v12103_v47  ;;  %v13051_v47 = vld [vmem:[#allocation28_spill] sm:$0xff] }
0x1f58   :  { %v6777_v2 = vmax.f32 %v12280_v17, 0.0  ;;  %v6776_v57 = vmax.f32 %v12283_v20, 0.0 }
0x1f59   :  { %v6778_v16 = vmax.f32 %v12287_v33, 0.0  ;;  %v9352_v43 = vpack.c.bf16 %v6775_v28, %v6771_v49 }
0x1f5a   :  { %v9350_v45 = vpack.c.bf16 %v6776_v57, %v6772_v52  ;;  %v9360_v21 = vpack.c.bf16 %v6777_v2, %v6773_v63 }
0x1f5b   :  { %v9358_v7 = vpack.c.bf16 %v6778_v16, %v6774_v9 }
0x1f5c   :  { %9351 = vmatprep.subr.bf16.mxu0 %v9350_v45 }
0x1f5d   :  { %9359 = vmatprep.subr.bf16.mxu1 %v9358_v7  ;;  %9353 = vmatpush1.bf16.msra.mxu0 %v9352_v43 }
0x1f5e   :  { %9361 = vmatpush1.bf16.msra.mxu1 %v9360_v21 }
0x1f60   :  { %8842 = vmatmul.mubr.msk.f32.vlgmr.msra.gmra.mrb[244].mxu0 %vm350_vm1, %v11817_v51 }
0x1f61   :  { %8846 = vmatmul.mubr.msk.f32.vlgmr.msra.gmra.mrb[244].mxu1 %vm350_vm1, %v11817_v51  ;;  %6849 = vmatprep.mubr.f32.mxu0 %v12958_v1  ;;  %v13052_v51 = vld [vmem:[#allocation10_spill] sm:$0xff] }
0x1f62   :  { %6938 = vmatprep.mubr.f32.mxu1 %v12958_v1 }
0x1f64   :  { %8843 = vmatmul.mubr.msk.f32.gmra.mrb[246].mxu0 %vm350_vm1, %v11828_v48 }
0x1f65   :  { %8847 = vmatmul.mubr.msk.f32.gmra.mrb[246].mxu1 %vm350_vm1, %v11828_v48  ;;  %6855 = vmatprep.mubr.f32.mxu0 %v12958_v1 }
0x1f66   :  { %6944 = vmatprep.mubr.f32.mxu1 %v12958_v1 }
0x1f68   :  { %8844 = vmatmul.mubr.msk.f32.gmra.mrb[248].mxu0 %vm350_vm1, %v13051_v47 }
0x1f69   :  { %8848 = vmatmul.mubr.msk.f32.gmra.mrb[248].mxu1 %vm350_vm1, %v13051_v47  ;;  %6861 = vmatprep.mubr.f32.mxu0 %v12958_v1 }
0x1f6a   :  { %6950 = vmatprep.mubr.f32.mxu1 %v12958_v1 }
0x1f6c   :  { %8845 = vmatmul.mubr.msk.f32.gmra.mrb[250].mxu0 %vm350_vm1, %v13052_v51 }
0x1f6d   :  { %8849 = vmatmul.mubr.msk.f32.gmra.mrb[250].mxu1 %vm350_vm1, %v13052_v51  ;;  %7037 = vmatprep.mubr.f32.mxu0 %v12958_v1 }
0x1f6e   :  { %7126 = vmatprep.mubr.f32.mxu1 %v12958_v1 }
0x2033   :  { %v6845_v48 = vpop.f32.mrb[244].mxu0 }
0x2034   :  { %v6934_v13 = vpop.f32.mrb[244].mxu1  ;;  %v6847_v62 = vpop.f32.mrb[245].mxu0  ;;  %v6846_v44 = vadd.f32 %v6845_v48, %v13053_v42 }
0x2035   :  { %v6936_v34 = vpop.f32.mrb[245].mxu1  ;;  %v6935_v24 = vadd.f32 %v6934_v13, %v13053_v42  ;;  %v6848_v0 = vadd.f32 %v6847_v62, %v13053_v42 }
0x2036   :  { %v6937_v30 = vadd.f32 %v6936_v34, %v13053_v42  ;;  %v6957_v57 = vmax.f32 %v6846_v44, 0.0 }
0x2037   :  { %v6851_v15 = vpop.f32.mrb[246].mxu0  ;;  %v6959_v16 = vmax.f32 %v6935_v24, 0.0  ;;  %v6958_v63 = vmax.f32 %v6848_v0, 0.0 }
0x2038   :  { %v6852_v50 = vadd.f32 %v6851_v15, %v10172_v11  ;;  %v6940_v14 = vpop.f32.mrb[246].mxu1  ;;  %v6853_v46 = vpop.f32.mrb[247].mxu0  ;;  %v6960_v21 = vmax.f32 %v6937_v30, 0.0 }
0x2039   :  { %v6941_v28 = vadd.f32 %v6940_v14, %v10172_v11  ;;  %v6854_v52 = vadd.f32 %v6853_v46, %v10172_v11  ;;  %v6942_v2 = vpop.f32.mrb[247].mxu1 }
0x203a   :  { %v6961_v49 = vmax.f32 %v6852_v50, 0.0  ;;  %v6943_v9 = vadd.f32 %v6942_v2, %v10172_v11 }
0x203b   :  { %v6963_v45 = vmax.f32 %v6941_v28, 0.0  ;;  %v6962_v43 = vmax.f32 %v6854_v52, 0.0  ;;  %v6857_v7 = vpop.f32.mrb[248].mxu0 }
0x203c   :  { %v9364_v47 = vpack.c.bf16 %v6961_v49, %v6957_v57  ;;  %v6964_v51 = vmax.f32 %v6943_v9, 0.0  ;;  %v6946_v48 = vpop.f32.mrb[248].mxu1  ;;  %v6859_v13 = vpop.f32.mrb[249].mxu0  ;;  %v6858_v46 = vadd.f32 %v6857_v7, %v10182_v61 }
0x203d   :  { %v9372_v62 = vpack.c.bf16 %v6963_v45, %v6959_v16  ;;  %v9362_v34 = vpack.c.bf16 %v6962_v43, %v6958_v63  ;;  %v6948_v15 = vpop.f32.mrb[249].mxu1  ;;  %v6947_v44 = vadd.f32 %v6946_v48, %v10182_v61  ;;  %v6860_v50 = vadd.f32 %v6859_v13, %v10182_v61 }
0x203e   :  { %v9370_v14 = vpack.c.bf16 %v6964_v51, %v6960_v21  ;;  %v6949_v0 = vadd.f32 %v6948_v15, %v10182_v61  ;;  %v6965_v9 = vmax.f32 %v6858_v46, 0.0 }
0x203f   :  { %v6863_v24 = vpop.f32.mrb[250].mxu0  ;;  %9363 = vmatprep.subr.bf16.mxu0 %v9362_v34  ;;  %v6967_v45 = vmax.f32 %v6947_v44, 0.0  ;;  %v6966_v43 = vmax.f32 %v6860_v50, 0.0 }
0x2040   :  { %v6864_v30 = vadd.f32 %v6863_v24, %v10184_v26  ;;  %v6952_v28 = vpop.f32.mrb[250].mxu1  ;;  %9371 = vmatprep.subr.bf16.mxu1 %v9370_v14  ;;  %v6865_v52 = vpop.f32.mrb[251].mxu0  ;;  %9365 = vmatpush1.bf16.msra.mxu0 %v9364_v47  ;;  %v6968_v51 = vmax.f32 %v6949_v0, 0.0 }
0x2041   :  { %v6953_v2 = vadd.f32 %v6952_v28, %v10184_v26  ;;  %v6866_v57 = vadd.f32 %v6865_v52, %v10184_v26  ;;  %v6954_v49 = vpop.f32.mrb[251].mxu1  ;;  %9373 = vmatpush1.bf16.msra.mxu1 %v9372_v62 }
0x2042   :  { %v6969_v16 = vmax.f32 %v6864_v30, 0.0  ;;  %v6955_v63 = vadd.f32 %v6954_v49, %v10184_v26 }
0x2043   :  { %v6971_v7 = vmax.f32 %v6953_v2, 0.0  ;;  %v6970_v21 = vmax.f32 %v6866_v57, 0.0 }
0x2044   :  { %v9368_v48 = vpack.c.bf16 %v6969_v16, %v6965_v9  ;;  %v6972_v13 = vmax.f32 %v6955_v63, 0.0 }
0x2045   :  { %v9376_v34 = vpack.c.bf16 %v6971_v7, %v6967_v45  ;;  %v9366_v15 = vpack.c.bf16 %v6970_v21, %v6966_v43 }
0x2046   :  { %v9374_v47 = vpack.c.bf16 %v6972_v13, %v6968_v51 }
0x2047   :  { %9367 = vmatprep.subr.bf16.mxu0 %v9366_v15 }
0x2048   :  { %9375 = vmatprep.subr.bf16.mxu1 %v9374_v47  ;;  %9369 = vmatpush1.bf16.msra.mxu0 %v9368_v48 }
0x2049   :  { %9377 = vmatpush1.bf16.msra.mxu1 %v9376_v34 }
0x204b   :  { %8850 = vmatmul.mubr.msk.f32.vlgmr.msra.gmra.mrb[252].mxu0 %vm350_vm1, %v11877_v53 }
0x204c   :  { %8854 = vmatmul.mubr.msk.f32.vlgmr.msra.gmra.mrb[252].mxu1 %vm350_vm1, %v11877_v53  ;;  %7043 = vmatprep.mubr.f32.mxu0 %v12958_v1 }
0x204d   :  { %7132 = vmatprep.mubr.f32.mxu1 %v12958_v1 }
0x204f   :  { %8851 = vmatmul.mubr.msk.f32.gmra.mrb[254].mxu0 %vm350_vm1, %v11888_v56 }
0x2050   :  { %8855 = vmatmul.mubr.msk.f32.gmra.mrb[254].mxu1 %vm350_vm1, %v11888_v56  ;;  %7049 = vmatprep.mubr.f32.mxu0 %v12958_v1 }
0x2051   :  { %7138 = vmatprep.mubr.f32.mxu1 %v12958_v1 }
0x2053   :  { %8852 = vmatmul.mubr.msk.f32.gmra.mrb[0].mxu0 %vm350_vm1, %v11899_v58 }
0x2054   :  { %8856 = vmatmul.mubr.msk.f32.gmra.mrb[0].mxu1 %vm350_vm1, %v11899_v58  ;;  %7055 = vmatprep.mubr.f32.mxu0 %v12958_v1 }
0x2055   :  { %7144 = vmatprep.mubr.f32.mxu1 %v12958_v1 }
0x2057   :  { %8853 = vmatmul.mubr.msk.f32.gmra.mrb[2].mxu0 %vm350_vm1, %v11910_v5 }
0x2058   :  { %8857 = vmatmul.mubr.msk.f32.gmra.mrb[2].mxu1 %vm350_vm1, %v11910_v5  ;;  %7231 = vmatprep.mubr.f32.mxu0 %v12958_v1 }
0x2059   :  { %7308 = vmatprep.mubr.f32.mxu1 %v12958_v1 }
0x211e   :  { %v7039_v53 = vpop.f32.mrb[252].mxu0 }
0x211f   :  { %v7128_v56 = vpop.f32.mrb[252].mxu1  ;;  %v7041_v62 = vpop.f32.mrb[253].mxu0  ;;  %v7040_v58 = vadd.f32 %v7039_v53, %v10238_v31 }
0x2120   :  { %v7130_v14 = vpop.f32.mrb[253].mxu1  ;;  %v7129_v46 = vadd.f32 %v7128_v56, %v10238_v31  ;;  %v7042_v44 = vadd.f32 %v7041_v62, %v10238_v31 }
0x2121   :  { %v7131_v24 = vadd.f32 %v7130_v14, %v10238_v31  ;;  %v7151_v57 = vadd.f32 %v7040_v58, %v12227_v18 }
0x2122   :  { %v7045_v50 = vpop.f32.mrb[254].mxu0  ;;  %v7153_v16 = vadd.f32 %v7129_v46, %v12237_v23  ;;  %v7152_v63 = vadd.f32 %v7042_v44, %v12222_v3 }
0x2123   :  { %v7046_v0 = vadd.f32 %v7045_v50, %v10240_v32  ;;  %v7134_v5 = vpop.f32.mrb[254].mxu1  ;;  %v7047_v30 = vpop.f32.mrb[255].mxu0  ;;  %v7154_v21 = vadd.f32 %v7131_v24, %v12230_v22 }
0x2124   :  { %v7135_v28 = vadd.f32 %v7134_v5, %v10240_v32  ;;  %v7048_v52 = vadd.f32 %v7047_v30, %v10240_v32  ;;  %v7136_v2 = vpop.f32.mrb[255].mxu1 }
0x2125   :  { %v7155_v49 = vadd.f32 %v7046_v0, %v12233_v4  ;;  %v7137_v9 = vadd.f32 %v7136_v2, %v10240_v32 }
0x2126   :  { %v7157_v45 = vadd.f32 %v7135_v28, %v12240_v12  ;;  %v7156_v43 = vadd.f32 %v7048_v52, %v12243_v60  ;;  %v7051_v7 = vpop.f32.mrb[0].mxu0 }
0x2127   :  { %v9380_v51 = vpack.c.bf16 %v7155_v49, %v7151_v57  ;;  %v7158_v48 = vadd.f32 %v7137_v9, %v12247_v29  ;;  %v7140_v13 = vpop.f32.mrb[0].mxu1  ;;  %v7053_v18 = vpop.f32.mrb[1].mxu0  ;;  %v7052_v47 = vadd.f32 %v7051_v7, %v12963_v37 }
0x2128   :  { %v9388_v34 = vpack.c.bf16 %v7157_v45, %v7153_v16  ;;  %v7142_v4 = vpop.f32.mrb[1].mxu1  ;;  %v9378_v15 = vpack.c.bf16 %v7156_v43, %v7152_v63  ;;  %v7141_v3 = vadd.f32 %v7140_v13, %v12963_v37  ;;  %v7054_v12 = vadd.f32 %v7053_v18, %v12963_v37 }
0x2129   :  { %v9386_v23 = vpack.c.bf16 %v7158_v48, %v7154_v21  ;;  %v7143_v60 = vadd.f32 %v7142_v4, %v12963_v37  ;;  %v7159_v46 = vadd.f32 %v7052_v47, %v12261_v36 }
0x212a   :  { %v7057_v53 = vpop.f32.mrb[2].mxu0  ;;  %9379 = vmatprep.subr.bf16.mxu0 %v9378_v15  ;;  %v7161_v24 = vadd.f32 %v7141_v3, %v12277_v6  ;;  %v7160_v0 = vadd.f32 %v7054_v12, %v12265_v40  ;;  %v13054_v40 = vld [vmem:[#allocation11_spill] sm:$0xff] }
0x212b   :  { %v7058_v22 = vadd.f32 %v7057_v53, %v12964_v27  ;;  %v7146_v56 = vpop.f32.mrb[2].mxu1  ;;  %9387 = vmatprep.subr.bf16.mxu1 %v9386_v23  ;;  %v7059_v29 = vpop.f32.mrb[3].mxu0  ;;  %9381 = vmatpush1.bf16.msra.mxu0 %v9380_v51  ;;  %v7162_v28 = vadd.f32 %v7143_v60, %v12270_v8 }
0x212c   :  { %v7147_v62 = vadd.f32 %v7146_v56, %v12964_v27  ;;  %v7060_v14 = vadd.f32 %v7059_v29, %v12964_v27  ;;  %v7148_v58 = vpop.f32.mrb[3].mxu1  ;;  %9389 = vmatpush1.bf16.msra.mxu1 %v9388_v34 }
0x212d   :  { %v7163_v44 = vadd.f32 %v7058_v22, %v12273_v41  ;;  %v7149_v50 = vadd.f32 %v7148_v58, %v12964_v27  ;;  %v13055_v41 = vld [vmem:[#allocation14_spill] sm:$0xff] }
0x212e   :  { %v7165_v5 = vadd.f32 %v7147_v62, %v12280_v17  ;;  %v7164_v30 = vadd.f32 %v7060_v14, %v12283_v20 }
0x212f   :  { %v9384_v52 = vpack.c.bf16 %v7163_v44, %v7159_v46  ;;  %v7166_v2 = vadd.f32 %v7149_v50, %v12287_v33  ;;  %v13056_v46 = vld [vmem:[#allocation15_spill] sm:$0xff] }
0x2130   :  { %v9392_v57 = vpack.c.bf16 %v7165_v5, %v7161_v24  ;;  %v9382_v49 = vpack.c.bf16 %v7164_v30, %v7160_v0  ;;  %v13057_v5 = vld [vmem:[#allocation12_spill] sm:$0xff] }
0x2131   :  { %v9390_v36 = vpack.c.bf16 %v7166_v2, %v7162_v28 }
0x2132   :  { %9383 = vmatprep.subr.bf16.mxu0 %v9382_v49 }
0x2133   :  { %9391 = vmatprep.subr.bf16.mxu1 %v9390_v36  ;;  %9385 = vmatpush1.bf16.msra.mxu0 %v9384_v52  ;;  %v13058_v52 = vld [vmem:[#allocation13_spill] sm:$0xff]  ;;  %v13059_v36 = vld [vmem:[#allocation16_spill] sm:$0xff] }
0x2134   :  { %9393 = vmatpush1.bf16.msra.mxu1 %v9392_v57 }
0x2136   :  { %8858 = vmatmul.mubr.msk.f32.vlgmr.msra.gmra.mrb[4].mxu0 %vm350_vm1, %v11953_v25 }
0x2137   :  { %8860 = vmatmul.mubr.msk.f32.vlgmr.msra.gmra.mrb[4].mxu1 %vm350_vm1, %v11953_v25  ;;  %7237 = vmatprep.mubr.f32.mxu0 %v12958_v1 }
0x2138   :  { %7314 = vmatprep.mubr.f32.mxu1 %v12958_v1 }
0x213a   :  { %8859 = vmatmul.mubr.msk.f32.gmra.mrb[6].mxu0 %vm350_vm1, %v13054_v40 }
0x213b   :  { %8861 = vmatmul.mubr.msk.f32.gmra.mrb[6].mxu1 %vm350_vm1, %v13054_v40  ;;  %7425 = vmatprep.mubr.f32.mxu0 %v12958_v1 }
0x213c   :  { %7514 = vmatprep.mubr.f32.mxu1 %v12958_v1 }
0x2209   :  { %v7233_v8 = vpop.f32.mrb[4].mxu0 }
0x220a   :  { %v7234_v6 = vadd.f32 %v7233_v8, %v13055_v41  ;;  %v7310_v17 = vpop.f32.mrb[4].mxu1  ;;  %v7235_v20 = vpop.f32.mrb[5].mxu0 }
0x220b   :  { %v7311_v25 = vadd.f32 %v7310_v17, %v13055_v41  ;;  %v7236_v33 = vadd.f32 %v7235_v20, %v13055_v41  ;;  %v7312_v9 = vpop.f32.mrb[5].mxu1  ;;  %v13060_v17 = vld [vmem:[#allocation17_spill] sm:$0xff] }
0x220c   :  { %v8862_v16 = vmul.f32 -1.442695, %v7234_v6  ;;  %v7313_v63 = vadd.f32 %v7312_v9, %v13055_v41 }
0x220d   :  { %v8864_v45 = vmul.f32 -1.442695, %v7311_v25  ;;  %v8863_v43 = vmul.f32 -1.442695, %v7236_v33  ;;  %v7239_v7 = vpop.f32.mrb[6].mxu0 }
0x220e   :  { %9600 = vpow2.f32 %v8862_v16  ;;  %v8865_v21 = vmul.f32 -1.442695, %v7313_v63  ;;  %v7316_v51 = vpop.f32.mrb[6].mxu1  ;;  %v7241_v48 = vpop.f32.mrb[7].mxu0  ;;  %v7240_v44 = vadd.f32 %v7239_v7, %v13056_v46  ;;  %v13061_v16 = vld [vmem:[#allocation18_spill] sm:$0xff]  ;;  %v13062_v63 = vld [vmem:[#allocation19_spill] sm:$0xff] }
0x220f   :  { %9602 = vpow2.f32 %v8864_v45  ;;  %v7318_v13 = vpop.f32.mrb[7].mxu1  ;;  %v7317_v50 = vadd.f32 %v7316_v51, %v13056_v46  ;;  %v7242_v24 = vadd.f32 %v7241_v48, %v13056_v46  ;;  %v13063_v45 = vld [vmem:[#allocation20_spill] sm:$0xff] }
0x2210   :  { %9604 = vpow2.f32 %v8863_v43  ;;  %v7319_v0 = vadd.f32 %v7318_v13, %v13056_v46  ;;  %v7349_v30 = vsub.f32 %v13057_v5, %v7240_v44  ;;  %v13064_v43 = vld [vmem:[#allocation21_spill] sm:$0xff]  ;;  %v13065_v13 = vld [vmem:[#allocation2_spill] sm:$0xff] }
0x2211   :  { %9606 = vpow2.f32 %v8865_v21  ;;  %v7351_v2 = vsub.f32 %v13058_v52, %v7317_v50  ;;  %v7350_v40 = vsub.f32 %v13059_v36, %v7242_v24 }
0x2212   :  { %v7352_v20 = vsub.f32 %v13060_v17, %v7319_v0 }
0x2218   :  { %v9601_v18 = vpop.eup %9600 }
0x2219   :  { %v9603_v34 = vpop.eup %9602  ;;  %v7333_v4 = vadd.f32 1.0, %v9601_v18 }
0x221a   :  { %v9605_v15 = vpop.eup %9604  ;;  %v7335_v47 = vadd.f32 1.0, %v9603_v34 }
0x221b   :  { %v9607_v23 = vpop.eup %9606  ;;  %9608 = vrcp.f32 %v7333_v4  ;;  %v7334_v3 = vadd.f32 1.0, %v9605_v15 }
0x221c   :  { %9610 = vrcp.f32 %v7335_v47  ;;  %v7336_v12 = vadd.f32 1.0, %v9607_v23  ;;  %v13066_v47 = vld [vmem:[#allocation3_spill] sm:$0xff] }
0x221d   :  { %9612 = vrcp.f32 %v7334_v3 }
0x221e   :  { %9614 = vrcp.f32 %v7336_v12 }
0x2225   :  { %v9609_v53 = vpop.eup %9608 }
0x2226   :  { %v9611_v60 = vpop.eup %9610  ;;  %v7345_v22 = vadd.f32 0.001, %v9609_v53 }
0x2227   :  { %v9613_v56 = vpop.eup %9612  ;;  %v7347_v29 = vadd.f32 0.001, %v9611_v60 }
0x2228   :  { %v9615_v62 = vpop.eup %9614  ;;  %9616 = vrcp.f32 %v7345_v22  ;;  %v7346_v14 = vadd.f32 0.001, %v9613_v56 }
0x2229   :  { %9618 = vrcp.f32 %v7347_v29  ;;  %v7348_v58 = vadd.f32 0.001, %v9615_v62 }
0x222a   :  { %9620 = vrcp.f32 %v7346_v14 }
0x222b   :  { %9622 = vrcp.f32 %v7348_v58 }
0x2232   :  { %v9617_v28 = vpop.eup %9616 }
0x2233   :  { %v9619_v57 = vpop.eup %9618  ;;  %v7354_v49 = vmul.f32 %v9617_v28, %v7349_v30 }
0x2234   :  { %v9621_v8 = vpop.eup %9620  ;;  %v7358_v6 = vmul.f32 %v9619_v57, %v7351_v2 }
0x2235   :  { %v9623_v25 = vpop.eup %9622  ;;  %v7356_v33 = vmul.f32 %v9621_v8, %v7350_v40  ;;  %v13067_v8 = vld [vmem:[#allocation4_spill] sm:$0xff] }
0x2236   :  { %v7360_v9 = vmul.f32 %v9623_v25, %v7352_v20 }
0x2237   :  { %7361 = vmatprep.subr.mxu0 %v7356_v33  ;;  %v13068_v33 = vld [vmem:[#allocation5_spill] sm:$0xff] }
0x2238   :  { %7450 = vmatprep.subr.mxu1 %v7360_v9  ;;  %7362 = vmatpush1.msra.mxu0 %v7354_v49 }
0x2239   :  { %7451 = vmatpush1.msra.mxu1 %v7358_v6  ;;  %8866 = vmatmul.mubr.msk.f32.vlgmr.msra.gmra.mrb[8].mxu0 %vm123_vm0, %v13061_v16 }
0x223a   :  { %8870 = vmatmul.mubr.msk.f32.vlgmr.msra.gmra.mrb[8].mxu1 %vm123_vm0, %v13061_v16  ;;  %7431 = vmatprep.mubr.f32.mxu0 %v12958_v1 }
0x223b   :  { %7520 = vmatprep.mubr.f32.mxu1 %v12958_v1 }
0x223d   :  { %8867 = vmatmul.mubr.msk.f32.gmra.mrb[10].mxu0 %vm123_vm0, %v13062_v63 }
0x223e   :  { %8871 = vmatmul.mubr.msk.f32.gmra.mrb[10].mxu1 %vm123_vm0, %v13062_v63  ;;  %7437 = vmatprep.mubr.f32.mxu0 %v12958_v1 }
0x223f   :  { %7526 = vmatprep.mubr.f32.mxu1 %v12958_v1 }
0x2241   :  { %8868 = vmatmul.mubr.msk.f32.gmra.mrb[12].mxu0 %vm123_vm0, %v13063_v45 }
0x2242   :  { %8872 = vmatmul.mubr.msk.f32.gmra.mrb[12].mxu1 %vm123_vm0, %v13063_v45  ;;  %7443 = vmatprep.mubr.f32.mxu0 %v12958_v1 }
0x2243   :  { %7532 = vmatprep.mubr.f32.mxu1 %v12958_v1 }
0x2245   :  { %8869 = vmatmul.mubr.msk.f32.gmra.mrb[14].mxu0 %vm123_vm0, %v13064_v43 }
0x2246   :  { %8873 = vmatmul.mubr.msk.f32.gmra.mrb[14].mxu1 %vm123_vm0, %v13064_v43  ;;  %7619 = vmatprep.mubr.f32.mxu0 %v12958_v1 }
0x2247   :  { %7708 = vmatprep.mubr.f32.mxu1 %v12958_v1 }
0x230c   :  { %v7427_v7 = vpop.f32.mrb[8].mxu0 }
0x230d   :  { %v7516_v21 = vpop.f32.mrb[8].mxu1  ;;  %v7429_v51 = vpop.f32.mrb[9].mxu0  ;;  %v12444_v4 = vadd.f32 %v7427_v7, %v13065_v13 }
0x230e   :  { %v7518_v48 = vpop.f32.mrb[9].mxu1  ;;  %v12441_v18 = vadd.f32 %v7429_v51, %v13065_v13  ;;  %v12453_v53 = vadd.f32 %v7516_v21, %v13065_v13 }
0x230f   :  { %v12447_v15 = vadd.f32 %v7518_v48, %v13065_v13  ;;  %v7539_v24 = vmax.f32 %v12444_v4, 0.0 }
0x2310   :  { %v7433_v34 = vpop.f32.mrb[10].mxu0  ;;  %v7540_v14 = vmax.f32 %v12441_v18, 0.0  ;;  %v7541_v52 = vmax.f32 %v12453_v53, 0.0 }
0x2311   :  { %v12450_v23 = vadd.f32 %v7433_v34, %v13066_v47  ;;  %v7522_v3 = vpop.f32.mrb[10].mxu1  ;;  %v7435_v12 = vpop.f32.mrb[11].mxu0  ;;  %v7542_v0 = vmax.f32 %v12447_v15, 0.0 }
0x2312   :  { %v12456_v60 = vadd.f32 %v7522_v3, %v13066_v47  ;;  %v12459_v22 = vadd.f32 %v7435_v12, %v13066_v47  ;;  %v7524_v56 = vpop.f32.mrb[11].mxu1 }
0x2313   :  { %v7543_v29 = vmax.f32 %v12450_v23, 0.0  ;;  %v12463_v62 = vadd.f32 %v7524_v56, %v13066_v47 }
0x2314   :  { %v7545_v58 = vmax.f32 %v12456_v60, 0.0  ;;  %v7544_v44 = vmax.f32 %v12459_v22, 0.0  ;;  %v7439_v50 = vpop.f32.mrb[12].mxu0 }
0x2315   :  { %v7546_v5 = vmax.f32 %v12463_v62, 0.0  ;;  %v7528_v30 = vpop.f32.mrb[12].mxu1  ;;  %v7441_v28 = vpop.f32.mrb[13].mxu0  ;;  %v9396_v49 = vpack.c.bf16 %v7543_v29, %v7539_v24  ;;  %v12476_v20 = vadd.f32 %v7439_v50, %v13067_v8  ;;  %v13069_v24 = vld [vmem:[#allocation22_spill] sm:$0xff] }
0x2316   :  { %v7530_v2 = vpop.f32.mrb[13].mxu1  ;;  %v9394_v57 = vpack.c.bf16 %v7544_v44, %v7540_v14  ;;  %v9404_v40 = vpack.c.bf16 %v7545_v58, %v7541_v52  ;;  %v12473_v6 = vadd.f32 %v7441_v28, %v13067_v8  ;;  %v12485_v45 = vadd.f32 %v7528_v30, %v13067_v8  ;;  %v13072_v30 = vld [vmem:[#allocation25_spill] sm:$0xff] }
0x2317   :  { %v9402_v36 = vpack.c.bf16 %v7546_v5, %v7542_v0  ;;  %v12479_v25 = vadd.f32 %v7530_v2, %v13067_v8  ;;  %v7547_v3 = vmax.f32 %v12476_v20, 0.0  ;;  %v13070_v0 = vld [vmem:[#allocation23_spill] sm:$0xff]  ;;  %v13071_v5 = vld [vmem:[#allocation24_spill] sm:$0xff] }
0x2318   :  { %v7445_v17 = vpop.f32.mrb[14].mxu0  ;;  %9395 = vmatprep.subr.bf16.mxu0 %v9394_v57  ;;  %v7548_v13 = vmax.f32 %v12473_v6, 0.0  ;;  %v7549_v29 = vmax.f32 %v12485_v45, 0.0 }
0x2319   :  { %v12482_v9 = vadd.f32 %v7445_v17, %v13068_v33  ;;  %v7534_v16 = vpop.f32.mrb[14].mxu1  ;;  %9403 = vmatprep.subr.bf16.mxu1 %v9402_v36  ;;  %v7447_v63 = vpop.f32.mrb[15].mxu0  ;;  %9397 = vmatpush1.bf16.msra.mxu0 %v9396_v49  ;;  %v7550_v12 = vmax.f32 %v12479_v25, 0.0  ;;  %v13073_v49 = vld [vmem:[#allocation6_spill] sm:$0xff] }
0x231a   :  { %v12488_v43 = vadd.f32 %v7534_v16, %v13068_v33  ;;  %v12491_v7 = vadd.f32 %v7447_v63, %v13068_v33  ;;  %v7536_v21 = vpop.f32.mrb[15].mxu1  ;;  %9405 = vmatpush1.bf16.msra.mxu1 %v9404_v40 }
0x231b   :  { %v7551_v51 = vmax.f32 %v12482_v9, 0.0  ;;  %v12495_v48 = vadd.f32 %v7536_v21, %v13068_v33 }
0x231c   :  { %v7553_v34 = vmax.f32 %v12488_v43, 0.0  ;;  %v7552_v47 = vmax.f32 %v12491_v7, 0.0 }
0x231d   :  { %v7554_v56 = vmax.f32 %v12495_v48, 0.0  ;;  %v9400_v58 = vpack.c.bf16 %v7551_v51, %v7547_v3 }
0x231e   :  { %v9398_v14 = vpack.c.bf16 %v7552_v47, %v7548_v13  ;;  %v9408_v50 = vpack.c.bf16 %v7553_v34, %v7549_v29 }
0x231f   :  { %v9406_v44 = vpack.c.bf16 %v7554_v56, %v7550_v12 }
0x2320   :  { %9399 = vmatprep.subr.bf16.mxu0 %v9398_v14 }
0x2321   :  { %9407 = vmatprep.subr.bf16.mxu1 %v9406_v44  ;;  %9401 = vmatpush1.bf16.msra.mxu0 %v9400_v58 }
0x2322   :  { %9409 = vmatpush1.bf16.msra.mxu1 %v9408_v50 }
0x2324   :  { %8874 = vmatmul.mubr.msk.f32.vlgmr.msra.gmra.mrb[16].mxu0 %vm350_vm1, %v13069_v24 }
0x2325   :  { %8878 = vmatmul.mubr.msk.f32.vlgmr.msra.gmra.mrb[16].mxu1 %vm350_vm1, %v13069_v24  ;;  %7625 = vmatprep.mubr.f32.mxu0 %v12958_v1 }
0x2326   :  { %7714 = vmatprep.mubr.f32.mxu1 %v12958_v1 }
0x2328   :  { %8875 = vmatmul.mubr.msk.f32.gmra.mrb[18].mxu0 %vm350_vm1, %v13070_v0 }
0x2329   :  { %8879 = vmatmul.mubr.msk.f32.gmra.mrb[18].mxu1 %vm350_vm1, %v13070_v0  ;;  %7631 = vmatprep.mubr.f32.mxu0 %v12958_v1 }
0x232a   :  { %7720 = vmatprep.mubr.f32.mxu1 %v12958_v1 }
0x232c   :  { %8876 = vmatmul.mubr.msk.f32.gmra.mrb[20].mxu0 %vm350_vm1, %v13071_v5 }
0x232d   :  { %8880 = vmatmul.mubr.msk.f32.gmra.mrb[20].mxu1 %vm350_vm1, %v13071_v5  ;;  %7637 = vmatprep.mubr.f32.mxu0 %v12958_v1 }
0x232e   :  { %7726 = vmatprep.mubr.f32.mxu1 %v12958_v1 }
0x2330   :  { %8877 = vmatmul.mubr.msk.f32.gmra.mrb[22].mxu0 %vm350_vm1, %v13072_v30 }
0x2331   :  { %8881 = vmatmul.mubr.msk.f32.gmra.mrb[22].mxu1 %vm350_vm1, %v13072_v30  ;;  %7813 = vmatprep.mubr.f32.mxu0 %v12958_v1 }
0x2332   :  { %7902 = vmatprep.mubr.f32.mxu1 %v12958_v1 }
0x23f7   :  { %v7621_v28 = vpop.f32.mrb[16].mxu0 }
0x23f8   :  { %v7710_v52 = vpop.f32.mrb[16].mxu1  ;;  %v7623_v2 = vpop.f32.mrb[17].mxu0  ;;  %v7622_v36 = vadd.f32 %v7621_v28, %v13073_v49 }
0x23f9   :  { %v7712_v57 = vpop.f32.mrb[17].mxu1  ;;  %v7711_v40 = vadd.f32 %v7710_v52, %v13073_v49  ;;  %v7624_v8 = vadd.f32 %v7623_v2, %v13073_v49 }
0x23fa   :  { %v7713_v33 = vadd.f32 %v7712_v57, %v13073_v49  ;;  %v7733_v47 = vmax.f32 %v7622_v36, 0.0 }
0x23fb   :  { %v7627_v17 = vpop.f32.mrb[18].mxu0  ;;  %v7735_v56 = vmax.f32 %v7711_v40, 0.0  ;;  %v7734_v29 = vmax.f32 %v7624_v8, 0.0 }
0x23fc   :  { %v7628_v16 = vadd.f32 %v7627_v17, %v9988_v59  ;;  %v7716_v63 = vpop.f32.mrb[18].mxu1  ;;  %v7629_v21 = vpop.f32.mrb[19].mxu0  ;;  %v7736_v50 = vmax.f32 %v7713_v33, 0.0 }
0x23fd   :  { %v7717_v51 = vadd.f32 %v7716_v63, %v9988_v59  ;;  %v7630_v13 = vadd.f32 %v7629_v21, %v9988_v59  ;;  %v7718_v34 = vpop.f32.mrb[19].mxu1 }
0x23fe   :  { %v7737_v3 = vmax.f32 %v7628_v16, 0.0  ;;  %v7719_v12 = vadd.f32 %v7718_v34, %v9988_v59 }
0x23ff   :  { %v7739_v14 = vmax.f32 %v7717_v51, 0.0  ;;  %v7738_v58 = vmax.f32 %v7630_v13, 0.0  ;;  %v7633_v44 = vpop.f32.mrb[20].mxu0 }
0x2400   :  { %v9412_v24 = vpack.c.bf16 %v7737_v3, %v7733_v47  ;;  %v7740_v0 = vmax.f32 %v7719_v12, 0.0  ;;  %v7722_v5 = vpop.f32.mrb[20].mxu1  ;;  %v7635_v30 = vpop.f32.mrb[21].mxu0  ;;  %v7634_v49 = vadd.f32 %v7633_v44, %v9998_v35 }
0x2401   :  { %v9420_v28 = vpack.c.bf16 %v7739_v14, %v7735_v56  ;;  %v9410_v52 = vpack.c.bf16 %v7738_v58, %v7734_v29  ;;  %v7724_v2 = vpop.f32.mrb[21].mxu1  ;;  %v7723_v36 = vadd.f32 %v7722_v5, %v9998_v35  ;;  %v7636_v59 = vadd.f32 %v7635_v30, %v9998_v35  ;;  %v13075_v5 = vld [vmem:[#allocation7_spill] sm:$0xff] }
0x2402   :  { %v9418_v57 = vpack.c.bf16 %v7740_v0, %v7736_v50  ;;  %v7725_v8 = vadd.f32 %v7724_v2, %v9998_v35  ;;  %v7741_v13 = vmax.f32 %v7634_v49, 0.0  ;;  %v13076_v49 = vld [vmem:[#allocation8_spill] sm:$0xff] }
0x2403   :  { %v7639_v40 = vpop.f32.mrb[22].mxu0  ;;  %9411 = vmatprep.subr.bf16.mxu0 %v9410_v52  ;;  %v7743_v3 = vmax.f32 %v7723_v36, 0.0  ;;  %v7742_v12 = vmax.f32 %v7636_v59, 0.0 }
0x2404   :  { %v7640_v17 = vadd.f32 %v7639_v40, %v10000_v38  ;;  %v7728_v33 = vpop.f32.mrb[22].mxu1  ;;  %9419 = vmatprep.subr.bf16.mxu1 %v9418_v57  ;;  %v7641_v16 = vpop.f32.mrb[23].mxu0  ;;  %9413 = vmatpush1.bf16.msra.mxu0 %v9412_v24  ;;  %v7744_v29 = vmax.f32 %v7725_v8, 0.0 }
0x2405   :  { %v7729_v63 = vadd.f32 %v7728_v33, %v10000_v38  ;;  %v7642_v21 = vadd.f32 %v7641_v16, %v10000_v38  ;;  %v7730_v51 = vpop.f32.mrb[23].mxu1  ;;  %9421 = vmatpush1.bf16.msra.mxu1 %v9420_v28 }
0x2406   :  { %v7745_v34 = vmax.f32 %v7640_v17, 0.0  ;;  %v7731_v47 = vadd.f32 %v7730_v51, %v10000_v38  ;;  %v13074_v38 = vld [vmem:[#allocation26_spill] sm:$0xff] }
0x2407   :  { %v7747_v56 = vmax.f32 %v7729_v63, 0.0  ;;  %v7746_v35 = vmax.f32 %v7642_v21, 0.0 }
0x2408   :  { %v9416_v14 = vpack.c.bf16 %v7745_v34, %v7741_v13  ;;  %v7748_v58 = vmax.f32 %v7731_v47, 0.0 }
0x2409   :  { %v9424_v44 = vpack.c.bf16 %v7747_v56, %v7743_v3  ;;  %v9414_v50 = vpack.c.bf16 %v7746_v35, %v7742_v12 }
0x240a   :  { %v9422_v24 = vpack.c.bf16 %v7748_v58, %v7744_v29 }
0x240b   :  { %9415 = vmatprep.subr.bf16.mxu0 %v9414_v50 }
0x240c   :  { %9423 = vmatprep.subr.bf16.mxu1 %v9422_v24  ;;  %9417 = vmatpush1.bf16.msra.mxu0 %v9416_v14 }
0x240d   :  { %9425 = vmatpush1.bf16.msra.mxu1 %v9424_v44 }
0x240f   :  { %8882 = vmatmul.mubr.msk.f32.vlgmr.msra.gmra.mrb[24].mxu0 %vm350_vm1, %v12175_v54 }
0x2410   :  { %8886 = vmatmul.mubr.msk.f32.vlgmr.msra.gmra.mrb[24].mxu1 %vm350_vm1, %v12175_v54  ;;  %7819 = vmatprep.mubr.f32.mxu0 %v12958_v1 }
0x2411   :  { %7908 = vmatprep.mubr.f32.mxu1 %v12958_v1 }
0x2413   :  { %8883 = vmatmul.mubr.msk.f32.gmra.mrb[26].mxu0 %vm350_vm1, %v12186_v39 }
0x2414   :  { %8887 = vmatmul.mubr.msk.f32.gmra.mrb[26].mxu1 %vm350_vm1, %v12186_v39  ;;  %7825 = vmatprep.mubr.f32.mxu0 %v12958_v1 }
0x2415   :  { %7914 = vmatprep.mubr.f32.mxu1 %v12958_v1 }
0x2417   :  { %8884 = vmatmul.mubr.msk.f32.gmra.mrb[28].mxu0 %vm350_vm1, %v12197_v19 }
0x2418   :  { %8888 = vmatmul.mubr.msk.f32.gmra.mrb[28].mxu1 %vm350_vm1, %v12197_v19  ;;  %7831 = vmatprep.mubr.f32.mxu0 %v12958_v1 }
0x2419   :  { %7920 = vmatprep.mubr.f32.mxu1 %v12958_v1 }
0x241b   :  { %8885 = vmatmul.mubr.msk.f32.gmra.mrb[30].mxu0 %vm350_vm1, %v13074_v38 }
0x241c   :  { %8889 = vmatmul.mubr.msk.f32.gmra.mrb[30].mxu1 %vm350_vm1, %v13074_v38  ;;  %8023 = vmatprep.mubr.f32.mxu0 %v12958_v1 }
0x241d   :  { %8112 = vmatprep.mubr.f32.mxu1 %v12958_v1 }
0x24e2   :  { %v7815_v54 = vpop.f32.mrb[24].mxu0 }
0x24e3   :  { %v7904_v39 = vpop.f32.mrb[24].mxu1  ;;  %v7817_v0 = vpop.f32.mrb[25].mxu0  ;;  %v7816_v28 = vadd.f32 %v7815_v54, %v13075_v5 }
0x24e4   :  { %v7818_v30 = vadd.f32 %v7817_v0, %v13075_v5  ;;  %v7906_v19 = vpop.f32.mrb[25].mxu1  ;;  %v7905_v2 = vadd.f32 %v7904_v39, %v13075_v5 }
0x24e5   :  { %v7907_v52 = vadd.f32 %v7906_v19, %v13075_v5  ;;  %v12579_v63 = vadd.f32 %v7816_v28, %v12444_v4 }
0x24e6   :  { %v7821_v57 = vpop.f32.mrb[26].mxu0  ;;  %v12574_v8 = vadd.f32 %v7818_v30, %v12441_v18  ;;  %v12589_v34 = vadd.f32 %v7905_v2, %v12453_v53 }
0x24e7   :  { %v7822_v36 = vadd.f32 %v7821_v57, %v13076_v49  ;;  %v7910_v59 = vpop.f32.mrb[26].mxu1  ;;  %v7823_v40 = vpop.f32.mrb[27].mxu0  ;;  %v12582_v21 = vadd.f32 %v7907_v52, %v12447_v15  ;;  %v7943_v14 = vmax.f32 %v12579_v63, 0.0 }
0x24e8   :  { %v7911_v17 = vadd.f32 %v7910_v59, %v13076_v49  ;;  %v7824_v33 = vadd.f32 %v7823_v40, %v13076_v49  ;;  %v7912_v16 = vpop.f32.mrb[27].mxu1  ;;  %v7944_v35 = vmax.f32 %v12574_v8, 0.0  ;;  %v7945_v50 = vmax.f32 %v12589_v34, 0.0 }
0x24e9   :  { %v12585_v51 = vadd.f32 %v7822_v36, %v12450_v23  ;;  %v7913_v13 = vadd.f32 %v7912_v16, %v13076_v49  ;;  %v7946_v58 = vmax.f32 %v12582_v21, 0.0 }
0x24ea   :  { %v12592_v18 = vadd.f32 %v7911_v17, %v12456_v60  ;;  %v12595_v47 = vadd.f32 %v7824_v33, %v12459_v22  ;;  %v7827_v3 = vpop.f32.mrb[28].mxu0 }
0x24eb   :  { %v7947_v4 = vmax.f32 %v12585_v51, 0.0  ;;  %v12599_v15 = vadd.f32 %v7913_v13, %v12463_v62  ;;  %v7828_v23 = vadd.f32 %v7827_v3, %v10059_v55  ;;  %v7916_v12 = vpop.f32.mrb[28].mxu1  ;;  %v7829_v56 = vpop.f32.mrb[29].mxu0 }
0x24ec   :  { %v7949_v53 = vmax.f32 %v12592_v18, 0.0  ;;  %v7948_v60 = vmax.f32 %v12595_v47, 0.0  ;;  %v7830_v29 = vadd.f32 %v7829_v56, %v10059_v55  ;;  %v7918_v22 = vpop.f32.mrb[29].mxu1  ;;  %v7917_v24 = vadd.f32 %v7916_v12, %v10059_v55  ;;  %v9717_v56 = vld [vmem:[%s12801_s2 + $0x48] sm:$0xff] }
0x24ed   :  { %v7950_v62 = vmax.f32 %v12599_v15, 0.0  ;;  %v7919_v44 = vadd.f32 %v7918_v22, %v10059_v55  ;;  %v9428_v39 = vpack.c.bf16 %v7947_v4, %v7943_v14  ;;  %v12613_v0 = vadd.f32 %v7828_v23, %v12476_v20 }
0x24ee   :  { %v7833_v38 = vpop.f32.mrb[30].mxu0  ;;  %v9426_v54 = vpack.c.bf16 %v7948_v60, %v7944_v35  ;;  %v9436_v52 = vpack.c.bf16 %v7949_v53, %v7945_v50  ;;  %v12617_v2 = vadd.f32 %v7830_v29, %v12473_v6  ;;  %v12629_v40 = vadd.f32 %v7917_v24, %v12485_v45  ;;  %v9718_v35 = vld [vmem:[%s12801_s2 + $0x50] sm:$0xff]  ;;  %v9719_v53 = vld [vmem:[%s12801_s2 + $0x58] sm:$0xff] }
0x24ef   :  { %v7834_v5 = vadd.f32 %v7833_v38, %v10086_v10  ;;  %v7922_v30 = vpop.f32.mrb[30].mxu1  ;;  %v7835_v19 = vpop.f32.mrb[31].mxu0  ;;  %v9434_v28 = vpack.c.bf16 %v7950_v62, %v7946_v58  ;;  %v12622_v36 = vadd.f32 %v7919_v44, %v12479_v25  ;;  %v7951_v45 = vmax.f32 %v12613_v0, 0.0 }
0x24f0   :  { %v7923_v57 = vadd.f32 %v7922_v30, %v10086_v10  ;;  %v7836_v49 = vadd.f32 %v7835_v19, %v10086_v10  ;;  %v7924_v55 = vpop.f32.mrb[31].mxu1  ;;  %9427 = vmatprep.subr.bf16.mxu0 %v9426_v54 }
0x24f1   :  { %v12625_v20 = vadd.f32 %v7834_v5, %v12482_v9  ;;  %v7925_v59 = vadd.f32 %v7924_v55, %v10086_v10  ;;  %9435 = vmatprep.subr.bf16.mxu1 %v9434_v28  ;;  %9429 = vmatpush1.bf16.msra.mxu0 %v9428_v39  ;;  %v7952_v9 = vmax.f32 %v12617_v2, 0.0 }
0x24f2   :  { %v12632_v6 = vadd.f32 %v7923_v57, %v12488_v43  ;;  %v12635_v17 = vadd.f32 %v7836_v49, %v12491_v7  ;;  %9437 = vmatpush1.bf16.msra.mxu1 %v9436_v52  ;;  %v7954_v43 = vmax.f32 %v12622_v36, 0.0  ;;  %v7953_v7 = vmax.f32 %v12629_v40, 0.0 }
0x24f3   :  { %v7955_v25 = vmax.f32 %v12625_v20, 0.0  ;;  %v12639_v33 = vadd.f32 %v7925_v59, %v12495_v48  ;;  %v9716_v48 = vld [vmem:[%s12801_s2 + $0x40] sm:$0xff] }
0x24f4   :  { %v7957_v10 = vmax.f32 %v12632_v6, 0.0  ;;  %v7956_v16 = vmax.f32 %v12635_v17, 0.0 }
0x24f5   :  { %v7958_v13 = vmax.f32 %v12639_v33, 0.0  ;;  %v9432_v4 = vpack.c.bf16 %v7955_v25, %v7951_v45 }
0x24f6   :  { %v9430_v3 = vpack.c.bf16 %v7956_v16, %v7952_v9  ;;  %v9440_v12 = vpack.c.bf16 %v7957_v10, %v7953_v7 }
0x24f7   :  { %v9438_v23 = vpack.c.bf16 %v7958_v13, %v7954_v43 }
0x24f8   :  { %9431 = vmatprep.subr.bf16.mxu0 %v9430_v3 }
0x24f9   :  { %9439 = vmatprep.subr.bf16.mxu1 %v9438_v23  ;;  %9433 = vmatpush1.bf16.msra.mxu0 %v9432_v4 }
0x24fa   :  { %9441 = vmatpush1.bf16.msra.mxu1 %v9440_v12 }
0x24fc   :  { %8890 = vmatmul.mubr.msk.f32.vlgmr.msra.gmra.mrb[32].mxu0 %vm350_vm1, %v9716_v48 }
0x24fd   :  { %8894 = vmatmul.mubr.msk.f32.vlgmr.msra.gmra.mrb[32].mxu1 %vm350_vm1, %v9716_v48  ;;  %8029 = vmatprep.mubr.f32.mxu0 %v12958_v1 }
0x24fe   :  { %8118 = vmatprep.mubr.f32.mxu1 %v12958_v1 }
0x2500   :  { %8891 = vmatmul.mubr.msk.f32.gmra.mrb[34].mxu0 %vm350_vm1, %v9717_v56 }
0x2501   :  { %8895 = vmatmul.mubr.msk.f32.gmra.mrb[34].mxu1 %vm350_vm1, %v9717_v56  ;;  %8035 = vmatprep.mubr.f32.mxu0 %v12958_v1 }
0x2502   :  { %8124 = vmatprep.mubr.f32.mxu1 %v12958_v1 }
0x2504   :  { %8892 = vmatmul.mubr.msk.f32.gmra.mrb[36].mxu0 %vm350_vm1, %v9718_v35 }
0x2505   :  { %8896 = vmatmul.mubr.msk.f32.gmra.mrb[36].mxu1 %vm350_vm1, %v9718_v35  ;;  %8041 = vmatprep.mubr.f32.mxu0 %v12958_v1 }
0x2506   :  { %8130 = vmatprep.mubr.f32.mxu1 %v12958_v1 }
0x2508   :  { %8893 = vmatmul.mubr.msk.f32.gmra.mrb[38].mxu0 %vm350_vm1, %v9719_v53 }
0x2509   :  { %8897 = vmatmul.mubr.msk.f32.gmra.mrb[38].mxu1 %vm350_vm1, %v9719_v53  ;;  %8217 = vmatprep.mubr.f32.mxu0 %v12958_v1 }
0x250a   :  { %8306 = vmatprep.mubr.f32.mxu1 %v12958_v1 }
0x25cf   :  { %v8025_v60 = vpop.f32.mrb[32].mxu0 }
0x25d0   :  { %v8114_v29 = vpop.f32.mrb[32].mxu1  ;;  %v8027_v22 = vpop.f32.mrb[33].mxu0  ;;  %v8026_v58 = vadd.f32 %v8025_v60, %v13053_v42 }
0x25d1   :  { %v8116_v14 = vpop.f32.mrb[33].mxu1  ;;  %v8115_v62 = vadd.f32 %v8114_v29, %v13053_v42  ;;  %v8028_v44 = vadd.f32 %v8027_v22, %v13053_v42 }
0x25d2   :  { %v8117_v24 = vadd.f32 %v8116_v14, %v13053_v42  ;;  %v8137_v28 = vmax.f32 %v8026_v58, 0.0 }
0x25d3   :  { %v8031_v50 = vpop.f32.mrb[34].mxu0  ;;  %v8139_v49 = vmax.f32 %v8115_v62, 0.0  ;;  %v8138_v55 = vmax.f32 %v8028_v44, 0.0 }
0x25d4   :  { %v8032_v38 = vadd.f32 %v8031_v50, %v10172_v11  ;;  %v8120_v54 = vpop.f32.mrb[34].mxu1  ;;  %v8033_v39 = vpop.f32.mrb[35].mxu0  ;;  %v8140_v10 = vmax.f32 %v8117_v24, 0.0 }
0x25d5   :  { %v8121_v5 = vadd.f32 %v8120_v54, %v10172_v11  ;;  %v8034_v30 = vadd.f32 %v8033_v39, %v10172_v11  ;;  %v8122_v19 = vpop.f32.mrb[35].mxu1 }
0x25d6   :  { %v8141_v52 = vmax.f32 %v8032_v38, 0.0  ;;  %v8123_v57 = vadd.f32 %v8122_v19, %v10172_v11 }
0x25d7   :  { %v8143_v59 = vmax.f32 %v8121_v5, 0.0  ;;  %v8142_v25 = vmax.f32 %v8034_v30, 0.0  ;;  %v8037_v9 = vpop.f32.mrb[36].mxu0 }
0x25d8   :  { %v9444_v42 = vpack.c.bf16 %v8141_v52, %v8137_v28  ;;  %v8144_v16 = vmax.f32 %v8123_v57, 0.0  ;;  %v8126_v45 = vpop.f32.mrb[36].mxu1  ;;  %v8039_v43 = vpop.f32.mrb[37].mxu0  ;;  %v8038_v23 = vadd.f32 %v8037_v9, %v10182_v61  ;;  %v9720_v52 = vld [vmem:[%s12801_s2 + $0x60] sm:$0xff]  ;;  %v9722_v57 = vld [vmem:[%s12801_s2 + $0x70] sm:$0xff] }
0x25d9   :  { %v9452_v13 = vpack.c.bf16 %v8143_v59, %v8139_v49  ;;  %v9442_v7 = vpack.c.bf16 %v8142_v25, %v8138_v55  ;;  %v8128_v3 = vpop.f32.mrb[37].mxu1  ;;  %v8127_v12 = vadd.f32 %v8126_v45, %v10182_v61  ;;  %v8040_v11 = vadd.f32 %v8039_v43, %v10182_v61  ;;  %v9723_v49 = vld [vmem:[%s12801_s2 + $0x78] sm:$0xff] }
0x25da   :  { %v9450_v4 = vpack.c.bf16 %v8144_v16, %v8140_v10  ;;  %v8129_v56 = vadd.f32 %v8128_v3, %v10182_v61  ;;  %v8145_v58 = vmax.f32 %v8038_v23, 0.0 }
0x25db   :  { %v8043_v48 = vpop.f32.mrb[38].mxu0  ;;  %9443 = vmatprep.subr.bf16.mxu0 %v9442_v7  ;;  %v8147_v50 = vmax.f32 %v8127_v12, 0.0  ;;  %v8146_v24 = vmax.f32 %v8040_v11, 0.0 }
0x25dc   :  { %v8044_v35 = vadd.f32 %v8043_v48, %v10184_v26  ;;  %v8132_v53 = vpop.f32.mrb[38].mxu1  ;;  %9451 = vmatprep.subr.bf16.mxu1 %v9450_v4  ;;  %v8045_v60 = vpop.f32.mrb[39].mxu0  ;;  %9445 = vmatpush1.bf16.msra.mxu0 %v9444_v42  ;;  %v8148_v54 = vmax.f32 %v8129_v56, 0.0 }
0x25dd   :  { %v8133_v29 = vadd.f32 %v8132_v53, %v10184_v26  ;;  %v8046_v22 = vadd.f32 %v8045_v60, %v10184_v26  ;;  %v8134_v14 = vpop.f32.mrb[39].mxu1  ;;  %9453 = vmatpush1.bf16.msra.mxu1 %v9452_v13 }
0x25de   :  { %v8149_v62 = vmax.f32 %v8044_v35, 0.0  ;;  %v8135_v44 = vadd.f32 %v8134_v14, %v10184_v26  ;;  %v9721_v26 = vld [vmem:[%s12801_s2 + $0x68] sm:$0xff] }
0x25df   :  { %v8151_v38 = vmax.f32 %v8133_v29, 0.0  ;;  %v8150_v61 = vmax.f32 %v8046_v22, 0.0 }
0x25e0   :  { %v9448_v39 = vpack.c.bf16 %v8149_v62, %v8145_v58  ;;  %v8152_v5 = vmax.f32 %v8135_v44, 0.0 }
0x25e1   :  { %v9456_v30 = vpack.c.bf16 %v8151_v38, %v8147_v50  ;;  %v9446_v19 = vpack.c.bf16 %v8150_v61, %v8146_v24 }
0x25e2   :  { %v9454_v28 = vpack.c.bf16 %v8152_v5, %v8148_v54 }
0x25e3   :  { %9447 = vmatprep.subr.bf16.mxu0 %v9446_v19 }
0x25e4   :  { %9455 = vmatprep.subr.bf16.mxu1 %v9454_v28  ;;  %9449 = vmatpush1.bf16.msra.mxu0 %v9448_v39 }
0x25e5   :  { %9457 = vmatpush1.bf16.msra.mxu1 %v9456_v30 }
0x25e7   :  { %8898 = vmatmul.mubr.msk.f32.vlgmr.msra.gmra.mrb[40].mxu0 %vm350_vm1, %v9720_v52 }
0x25e8   :  { %8902 = vmatmul.mubr.msk.f32.vlgmr.msra.gmra.mrb[40].mxu1 %vm350_vm1, %v9720_v52  ;;  %8223 = vmatprep.mubr.f32.mxu0 %v12958_v1 }
0x25e9   :  { %8312 = vmatprep.mubr.f32.mxu1 %v12958_v1 }
0x25eb   :  { %8899 = vmatmul.mubr.msk.f32.gmra.mrb[42].mxu0 %vm350_vm1, %v9721_v26 }
0x25ec   :  { %8903 = vmatmul.mubr.msk.f32.gmra.mrb[42].mxu1 %vm350_vm1, %v9721_v26  ;;  %8229 = vmatprep.mubr.f32.mxu0 %v12958_v1 }
0x25ed   :  { %8318 = vmatprep.mubr.f32.mxu1 %v12958_v1 }
0x25ef   :  { %8900 = vmatmul.mubr.msk.f32.gmra.mrb[44].mxu0 %vm350_vm1, %v9722_v57 }
0x25f0   :  { %8904 = vmatmul.mubr.msk.f32.gmra.mrb[44].mxu1 %vm350_vm1, %v9722_v57  ;;  %8235 = vmatprep.mubr.f32.mxu0 %v12958_v1 }
0x25f1   :  { %8324 = vmatprep.mubr.f32.mxu1 %v12958_v1 }
0x25f3   :  { %8901 = vmatmul.mubr.msk.f32.gmra.mrb[46].mxu0 %vm350_vm1, %v9723_v49 }
0x25f4   :  { %8905 = vmatmul.mubr.msk.f32.gmra.mrb[46].mxu1 %vm350_vm1, %v9723_v49  ;;  %8411 = vmatprep.mubr.f32.mxu0 %v12958_v1 }
0x25f5   :  { %8488 = vmatprep.mubr.f32.mxu1 %v12958_v1 }
0x26ba   :  { %v8219_v55 = vpop.f32.mrb[40].mxu0 }
0x26bb   :  { %v8308_v59 = vpop.f32.mrb[40].mxu1  ;;  %v8221_v25 = vpop.f32.mrb[41].mxu0  ;;  %v8220_v10 = vadd.f32 %v8219_v55, %v10238_v31 }
0x26bc   :  { %v8310_v9 = vpop.f32.mrb[41].mxu1  ;;  %v8309_v42 = vadd.f32 %v8308_v59, %v10238_v31  ;;  %v8222_v16 = vadd.f32 %v8221_v25, %v10238_v31 }
0x26bd   :  { %v8311_v43 = vadd.f32 %v8310_v9, %v10238_v31  ;;  %v8331_v11 = vadd.f32 %v8220_v10, %v12579_v63 }
0x26be   :  { %v8225_v45 = vpop.f32.mrb[42].mxu0  ;;  %v8333_v35 = vadd.f32 %v8309_v42, %v12589_v34  ;;  %v8332_v53 = vadd.f32 %v8222_v16, %v12574_v8 }
0x26bf   :  { %v8226_v13 = vadd.f32 %v8225_v45, %v10240_v32  ;;  %v8314_v7 = vpop.f32.mrb[42].mxu1  ;;  %v8227_v3 = vpop.f32.mrb[43].mxu0  ;;  %v8334_v22 = vadd.f32 %v8311_v43, %v12582_v21 }
0x26c0   :  { %v8315_v4 = vadd.f32 %v8314_v7, %v10240_v32  ;;  %v8228_v23 = vadd.f32 %v8227_v3, %v10240_v32  ;;  %v8316_v12 = vpop.f32.mrb[43].mxu1 }
0x26c1   :  { %v8335_v48 = vadd.f32 %v8226_v13, %v12585_v51  ;;  %v8317_v56 = vadd.f32 %v8316_v12, %v10240_v32 }
0x26c2   :  { %v8337_v31 = vadd.f32 %v8315_v4, %v12592_v18  ;;  %v8336_v60 = vadd.f32 %v8228_v23, %v12595_v47  ;;  %v8231_v29 = vpop.f32.mrb[44].mxu0 }
0x26c3   :  { %v9460_v14 = vpack.c.bf16 %v8335_v48, %v8331_v11  ;;  %v8338_v58 = vadd.f32 %v8317_v56, %v12599_v15  ;;  %v8320_v62 = vpop.f32.mrb[44].mxu1  ;;  %v8233_v63 = vpop.f32.mrb[45].mxu0  ;;  %v8232_v32 = vadd.f32 %v8231_v29, %v12963_v37 }
0x26c4   :  { %v9468_v44 = vpack.c.bf16 %v8337_v31, %v8333_v35  ;;  %v8322_v51 = vpop.f32.mrb[45].mxu1  ;;  %v9458_v50 = vpack.c.bf16 %v8336_v60, %v8332_v53  ;;  %v8321_v8 = vadd.f32 %v8320_v62, %v12963_v37  ;;  %v8234_v18 = vadd.f32 %v8233_v63, %v12963_v37 }
0x26c5   :  { %v9466_v34 = vpack.c.bf16 %v8338_v58, %v8334_v22  ;;  %v8323_v47 = vadd.f32 %v8322_v51, %v12963_v37  ;;  %v8339_v5 = vadd.f32 %v8232_v32, %v12613_v0  ;;  %v9726_v32 = vld [vmem:[%s12799_s0] sm:$0xff] }
0x26c6   :  { %v8237_v24 = vpop.f32.mrb[46].mxu0  ;;  %9459 = vmatprep.subr.bf16.mxu0 %v9458_v50  ;;  %v8341_v37 = vadd.f32 %v8321_v8, %v12629_v40  ;;  %v8340_v28 = vadd.f32 %v8234_v18, %v12617_v2  ;;  %v9725_v2 = vld [vmem:[%s12802_s4 + $0x8] sm:$0xff]  ;;  %v9727_v18 = vld [vmem:[%s12799_s0 + $0x10] sm:$0xff] }
0x26c7   :  { %v8238_v21 = vadd.f32 %v8237_v24, %v12964_v27  ;;  %v8326_v38 = vpop.f32.mrb[46].mxu1  ;;  %9467 = vmatprep.subr.bf16.mxu1 %v9466_v34  ;;  %v8239_v15 = vpop.f32.mrb[47].mxu0  ;;  %9461 = vmatpush1.bf16.msra.mxu0 %v9460_v14  ;;  %v8342_v57 = vadd.f32 %v8323_v47, %v12622_v36 }
0x26c8   :  { %v8327_v61 = vadd.f32 %v8326_v38, %v12964_v27  ;;  %v8240_v54 = vadd.f32 %v8239_v15, %v12964_v27  ;;  %v8328_v39 = vpop.f32.mrb[47].mxu1  ;;  %9469 = vmatpush1.bf16.msra.mxu1 %v9468_v44  ;;  %v9728_v38 = vld [vmem:[%s12799_s0 + $0x8] sm:$0xff] }
0x26c9   :  { %v8343_v30 = vadd.f32 %v8238_v21, %v12625_v20  ;;  %v8329_v19 = vadd.f32 %v8328_v39, %v12964_v27  ;;  %v9724_v27 = vld [vmem:[%s12802_s4] sm:$0xff] }
0x26ca   :  { %v8345_v52 = vadd.f32 %v8327_v61, %v12632_v6  ;;  %v8344_v26 = vadd.f32 %v8240_v54, %v12635_v17  ;;  %v9729_v54 = vld [vmem:[%s12799_s0 + $0x18] sm:$0xff] }
0x26cb   :  { %v9464_v49 = vpack.c.bf16 %v8343_v30, %v8339_v5  ;;  %v8346_v55 = vadd.f32 %v8329_v19, %v12639_v33 }
0x26cc   :  { %v9472_v59 = vpack.c.bf16 %v8345_v52, %v8341_v37  ;;  %v9462_v25 = vpack.c.bf16 %v8344_v26, %v8340_v28 }
0x26cd   :  { %v9470_v0 = vpack.c.bf16 %v8346_v55, %v8342_v57 }
0x26ce   :  { %9463 = vmatprep.subr.bf16.mxu0 %v9462_v25 }
0x26cf   :  { %9471 = vmatprep.subr.bf16.mxu1 %v9470_v0  ;;  %9465 = vmatpush1.bf16.msra.mxu0 %v9464_v49 }
0x26d0   :  { %9473 = vmatpush1.bf16.msra.mxu1 %v9472_v59 }
0x26d2   :  { %8906 = vmatmul.mubr.msk.f32.vlgmr.msra.gmra.mrb[48].mxu0 %vm350_vm1, %v9724_v27 }
0x26d3   :  { %8908 = vmatmul.mubr.msk.f32.vlgmr.msra.gmra.mrb[48].mxu1 %vm350_vm1, %v9724_v27  ;;  %8417 = vmatprep.mubr.f32.mxu0 %v12958_v1 }
0x26d4   :  { %8494 = vmatprep.mubr.f32.mxu1 %v12958_v1 }
0x26d6   :  { %8907 = vmatmul.mubr.msk.f32.gmra.mrb[50].mxu0 %vm350_vm1, %v9725_v2 }
0x26d7   :  { %8909 = vmatmul.mubr.msk.f32.gmra.mrb[50].mxu1 %vm350_vm1, %v9725_v2 }
0x27a5   :  { %v8413_v36 = vpop.f32.mrb[48].mxu0 }
0x27a6   :  { %v8414_v20 = vadd.f32 %v8413_v36, %v13055_v41  ;;  %v8490_v40 = vpop.f32.mrb[48].mxu1  ;;  %v8415_v6 = vpop.f32.mrb[49].mxu0 }
0x27a7   :  { %v8491_v17 = vadd.f32 %v8490_v40, %v13055_v41  ;;  %v8416_v33 = vadd.f32 %v8415_v6, %v13055_v41  ;;  %v8492_v9 = vpop.f32.mrb[49].mxu1 }
0x27a8   :  { %v8910_v10 = vmul.f32 -1.442695, %v8414_v20  ;;  %v8493_v1 = vadd.f32 %v8492_v9, %v13055_v41 }
0x27a9   :  { %v8912_v42 = vmul.f32 -1.442695, %v8491_v17  ;;  %v8911_v16 = vmul.f32 -1.442695, %v8416_v33  ;;  %v8419_v45 = vpop.f32.mrb[50].mxu0 }
0x27aa   :  { %9624 = vpow2.f32 %v8910_v10  ;;  %v8913_v43 = vmul.f32 -1.442695, %v8493_v1  ;;  %v8496_v13 = vpop.f32.mrb[50].mxu1  ;;  %v8421_v7 = vpop.f32.mrb[51].mxu0  ;;  %v8420_v63 = vadd.f32 %v8419_v45, %v13056_v46 }
0x27ab   :  { %9626 = vpow2.f32 %v8912_v42  ;;  %v8498_v3 = vpop.f32.mrb[51].mxu1  ;;  %v8497_v44 = vadd.f32 %v8496_v13, %v13056_v46  ;;  %v8422_v51 = vadd.f32 %v8421_v7, %v13056_v46 }
0x27ac   :  { %9628 = vpow2.f32 %v8911_v16  ;;  %v8499_v50 = vadd.f32 %v8498_v3, %v13056_v46  ;;  %v8529_v34 = vsub.f32 %v9726_v32, %v8420_v63 }
0x27ad   :  { %9630 = vpow2.f32 %v8913_v43  ;;  %v8531_v24 = vsub.f32 %v9727_v18, %v8497_v44  ;;  %v8530_v15 = vsub.f32 %v9728_v38, %v8422_v51 }
0x27ae   :  { %v8532_v39 = vsub.f32 %v9729_v54, %v8499_v50 }
0x27b4   :  { %v9625_v4 = vpop.eup %9624 }
0x27b5   :  { %v9627_v23 = vpop.eup %9626  ;;  %v8513_v12 = vadd.f32 1.0, %v9625_v4 }
0x27b6   :  { %v9629_v11 = vpop.eup %9628  ;;  %v8515_v48 = vadd.f32 1.0, %v9627_v23 }
0x27b7   :  { %v9631_v56 = vpop.eup %9630  ;;  %9632 = vrcp.f32 %v8513_v12  ;;  %v8514_v35 = vadd.f32 1.0, %v9629_v11 }
0x27b8   :  { %9634 = vrcp.f32 %v8515_v48  ;;  %v8516_v41 = vadd.f32 1.0, %v9631_v56 }
0x27b9   :  { %9636 = vrcp.f32 %v8514_v35 }
0x27ba   :  { %9638 = vrcp.f32 %v8516_v41 }
0x27c1   :  { %v9633_v53 = vpop.eup %9632 }
0x27c2   :  { %v9635_v31 = vpop.eup %9634  ;;  %v8525_v60 = vadd.f32 0.001, %v9633_v53 }
0x27c3   :  { %v9637_v29 = vpop.eup %9636  ;;  %v8527_v22 = vadd.f32 0.001, %v9635_v31 }
0x27c4   :  { %v9639_v14 = vpop.eup %9638  ;;  %9640 = vrcp.f32 %v8525_v60  ;;  %v8526_v58 = vadd.f32 0.001, %v9637_v29 }
0x27c5   :  { %9642 = vrcp.f32 %v8527_v22  ;;  %v8528_v62 = vadd.f32 0.001, %v9639_v14 }
0x27c6   :  { %9644 = vrcp.f32 %v8526_v58 }
0x27c7   :  { %9646 = vrcp.f32 %v8528_v62 }
0x27ce   :  { %v9641_v8 = vpop.eup %9640 }
0x27cf   :  { %v9643_v47 = vpop.eup %9642  ;;  %v8534_v21 = vmul.f32 %v9641_v8, %v8529_v34 }
0x27d0   :  { %v9645_v61 = vpop.eup %9644  ;;  %v8538_v46 = vmul.f32 %v9643_v47, %v8531_v24 }
0x27d1   :  { %v9647_v5 = vpop.eup %9646  ;;  %8541 = vst [vmem:[%s12803_s7] sm:$0xff] %v8534_v21  ;;  %v8536_v30 = vmul.f32 %v9645_v61, %v8530_v15 }
0x27d2   :  { %8543 = vst [vmem:[%s12803_s7 + $0x10] sm:$0xff] %v8538_v46  ;;  %v8540_v19 = vmul.f32 %v9647_v5, %v8532_v39 }
0x27d3   :  { %8542 = vst [vmem:[%s12803_s7 + $0x8] sm:$0xff] %v8536_v30 }
0x27d4   :  { %8544 = vst [vmem:[%s12803_s7 + $0x18] sm:$0xff] %v8540_v19 }

</bundles_post_ra>
